<compile_context>
chip_gen: v7x
topology: tpu7x:2x2x1
jax: 0.10.0
libtpu: 0.0.40
codegen_flags: <defaults>
</compile_context>

<pallas_src>
import jax
import jax.numpy as jnp
from jax.experimental import pallas as pl
from jax.experimental.pallas import tpu as pltpu

K = 16                 # Conv1d kernel size
LEFT = (K - 1) // 2    # PyTorch 'same' padding for K=16: 7 left, 8 right


def _sigmoid(z):
    return 1.0 / (1.0 + jnp.exp(-z))


# ----------------------------------------------------------------------------------------
# Bidirectional LSTM (input_size=1, single layer).  PyTorch gate order i, f, g, o.
# Weights pre-transposed: wi (1, 4H), wh (H, 4H), b (1, 4H) (= b_ih + b_hh).
# Output: (L, B, 2H), forward hidden states in [..., :H], backward in [..., H:].
# ----------------------------------------------------------------------------------------
def _bilstm_kernel(x_ref, wif_ref, whf_ref, bf_ref, wib_ref, whb_ref, bb_ref, out_ref):
    L, B, _ = x_ref.shape
    H = whf_ref.shape[0]

    # Hoisted input projection: x @ W_ih^T with input_size == 1 is just a broadcast
    # multiply (VPU) over the whole (L, B, 4H) block, done once before the recurrence.
    xw_f = x_ref[...] * wif_ref[...] + bf_ref[...]        # (L, B, 4H)
    xw_b = x_ref[...] * wib_ref[...] + bb_ref[...]        # (L, B, 4H)
    wh_f = whf_ref[...]
    wh_b = whb_ref[...]

    def cell(pre, h, c, wh):
        gates = pre + jnp.dot(h, wh, preferred_element_type=jnp.float32)   # (B, 4H)
        i = _sigmoid(gates[:, 0 * H:1 * H])
        f = _sigmoid(gates[:, 1 * H:2 * H])
        g = jnp.tanh(gates[:, 2 * H:3 * H])
        o = _sigmoid(gates[:, 3 * H:4 * H])
        c_new = f * c + i * g
        h_new = o * jnp.tanh(c_new)
        return h_new, c_new

    zeros = jnp.zeros((B, H), jnp.float32)
    h_f, c_f = zeros, zeros
    h_b, c_b = zeros, zeros
    # Fused fwd/bwd recurrence, statically unrolled (L is a small static kernel constant).
    for s in range(L):
        tb = L - 1 - s
        h_f, c_f = cell(xw_f[s], h_f, c_f, wh_f)
        h_b, c_b = cell(xw_b[tb], h_b, c_b, wh_b)
        out_ref[s, :, 0:H] = h_f
        out_ref[tb, :, H:2 * H] = h_b


def bilstm(x, p):
    """x: (B, L) float32 -> (B, 2H, L) float32 (conv-stack layout)."""
    B, L = x.shape
    H = p["wh_f"].shape[0]                                 # static (fixes traced-h_dim bug)
    x_tb = jnp.transpose(x)[:, :, None]                    # (L, B, 1) time-major
    out = pl.pallas_call(
        _bilstm_kernel,
        out_shape=jax.ShapeDtypeStruct((L, B, 2 * H), jnp.float32),
    )(x_tb, p["wi_f"], p["wh_f"], p["b_f"], p["wi_b"], p["wh_b"], p["b_b"])
    # TODO(synk): fold this tiny transpose into a transposed in-kernel store; here it is a
    # single 4 KiB XLA op between the two fused kernels.
    return jnp.transpose(out, (1, 2, 0))                   # (B, 2H, L)


# ----------------------------------------------------------------------------------------
# Fused conv stack: conv1..conv5 ('same', K=16) + LeakyReLU/tanh + two x2 nearest upsamples.
# One grid step per batch element; every conv is a single big-K matmul.
# ----------------------------------------------------------------------------------------
def _conv_stack_kernel(h_ref, w1_ref, b1_ref, w2_ref, b2_ref, w3_ref, b3_ref,
                       w4_ref, b4_ref, w5_ref, b5_ref, u1_ref, u2_ref,
                       out_ref, cols1, cols2, cols3, cols4, cols5):
    def conv_same(x, cols_ref, w_ref, b_ref, act):
        # x: (C_in, Lx).  cols[k*C_in + c, l] = x[c, l + k - LEFT] (0 outside = zero pad);
        # W2[co, k*C_in + c] = weight[co, c, k]  ->  y = W2 @ cols  (one MXU contraction).
        C_in, Lx = x.shape
        cols_ref[...] = jnp.zeros_like(cols_ref)
        for k in range(K):                                  # static unroll: 16 shifted copies
            lo = max(0, LEFT - k)
            hi = min(Lx, Lx + LEFT - k)
            if lo < hi:
                cols_ref[k * C_in:(k + 1) * C_in, lo:hi] = x[:, lo - LEFT + k:hi - LEFT + k]
        y = jnp.dot(w_ref[...], cols_ref[...],
                    preferred_element_type=jnp.float32)     # (C_out, Lx)
        y = y + b_ref[...]                                  # (C_out, 1) broadcast over Lx
        if act == "leaky_relu":
            return jnp.where(y >= 0.0, y, 0.01 * y)
        return jnp.tanh(y)

    def upsample2x(x, u_ref):
        # nearest-neighbor x2 along length as a matmul with a 0/1 replication matrix
        return jnp.dot(x, u_ref[...], preferred_element_type=jnp.float32)

    x = h_ref[0]                                            # (2H, L)
    x = conv_same(x, cols1, w1_ref, b1_ref, "leaky_relu")   # (2H, L)
    x = conv_same(x, cols2, w2_ref, b2_ref, "leaky_relu")   # (H, L)
    x = upsample2x(x, u1_ref)                               # (H, 2L)
    x = conv_same(x, cols3, w3_ref, b3_ref, "leaky_relu")   # (H/2, 2L)
    x = conv_same(x, cols4, w4_ref, b4_ref, "leaky_relu")   # (H/4, 2L)
    x = upsample2x(x, u2_ref)                               # (H/4, 4L)
    x = conv_same(x, cols5, w5_ref, b5_ref, "tanh")         # (1, 4L)
    out_ref[0] = x.astype(out_ref.dtype)


def conv_stack(h0, p):
    """h0: (B, 2H, L) -> (B, 1, 4L).  Entire conv/upsample stack in one pallas_call."""
    B, C, L = h0.shape
    H = C // 2
    L4 = 4 * L
    f32 = jnp.float32

    # 0/1 replication matrices for the two nearest x2 upsamples (constant-folded under jit).
    u1 = jnp.repeat(jnp.eye(L, dtype=f32), 2, axis=1)       # (L, 2L)
    u2 = jnp.repeat(jnp.eye(2 * L, dtype=f32), 2, axis=1)   # (2L, 4L)

    weight_args = [p["conv1_w"], p["conv1_b"], p["conv2_w"], p["conv2_b"],
                   p["conv3_w"], p["conv3_b"], p["conv4_w"], p["conv4_b"],
                   p["conv5_w"], p["conv5_b"], u1, u2]

    in_specs = [pl.BlockSpec((1, C, L), lambda i: (i, 0, 0))]
    in_specs += [pl.BlockSpec(a.shape, lambda i: (0, 0)) for a in weight_args]

    return pl.pallas_call(
        _conv_stack_kernel,
        out_shape=jax.ShapeDtypeStruct((B, 1, L4), f32),
        grid=(B,),
        in_specs=in_specs,
        out_specs=pl.BlockSpec((1, 1, L4), lambda i: (i, 0, 0)),
        scratch_shapes=[
            pltpu.VMEM((K * C, L), f32),             # im2col scratch: conv1
            pltpu.VMEM((K * C, L), f32),             # conv2
            pltpu.VMEM((K * H, 2 * L), f32),         # conv3
            pltpu.VMEM((K * (H // 2), 2 * L), f32),  # conv4
            pltpu.VMEM((K * (H // 4), 4 * L), f32),  # conv5
        ],
        compiler_params=pltpu.CompilerParams(dimension_semantics=("parallel",)),
    )(h0, *weight_args)


# ----------------------------------------------------------------------------------------
# Parameter init (PyTorch-style U(-1/sqrt(fan), 1/sqrt(fan))), pre-packed to kernel layout.
# ----------------------------------------------------------------------------------------
def _uniform(key, shape, fan):
    bound = 1.0 / (fan ** 0.5)
    return jax.random.uniform(key, shape, jnp.float32, -bound, bound)


def init_params(key, h_dim):
    H = h_dim
    keys = iter(jax.random.split(key, 18))
    p = {}

    # LSTM (input_size=1, hidden=H, bidirectional). PyTorch layouts, then pre-transposed.
    for d in ("f", "b"):
        w_ih = _uniform(next(keys), (4 * H, 1), H)
        w_hh = _uniform(next(keys), (4 * H, H), H)
        b_ih = _uniform(next(keys), (4 * H,), H)
        b_hh = _uniform(next(keys), (4 * H,), H)
        p[f"wi_{d}"] = jnp.transpose(w_ih)                   # (1, 4H)
        p[f"wh_{d}"] = jnp.transpose(w_hh)                   # (H, 4H)
        p[f"b_{d}"] = (b_ih + b_hh).reshape(1, 4 * H)        # (1, 4H)

    # Conv1d layers (PyTorch weight (C_out, C_in, K), bias (C_out,)), packed for im2col:
    #   W2[co, k*C_in + c] = w[co, c, k]
    conv_dims = [("conv1", 2 * H, 2 * H), ("conv2", 2 * H, H),
                 ("conv3", H, H // 2), ("conv4", H // 2, H // 4),
                 ("conv5", H // 4, 1)]
    for name, cin, cout in conv_dims:
        fan = cin * K
        w = _uniform(next(keys), (cout, cin, K), fan)
        b = _uniform(next(keys), (cout,), fan)
        p[f"{name}_w"] = jnp.transpose(w, (0, 2, 1)).reshape(cout, K * cin)
        p[f"{name}_b"] = b.reshape(cout, 1)
    return p


# ----------------------------------------------------------------------------------------
# Full forward pass (mirrors RNNDecoder.forward; the debug print() calls are omitted).
# ----------------------------------------------------------------------------------------
@jax.jit
def rnn_decoder_forward(x, p):
    # x: (B, L) -> (B, 4L, 1)
    h = bilstm(x, p)                        # (B, 2H, L)
    y = conv_stack(h, p)                    # (B, 1, 4L)
    return jnp.transpose(y, (0, 2, 1))      # (B, 4L, 1)


if __name__ == "__main__":
    B, L, H = 2, 8, 32                      # batch, seqlen, h_dim
    key = jax.random.PRNGKey(0)
    k_x, k_p = jax.random.split(key)
    x = jax.random.normal(k_x, (B, L), jnp.float32)
    params = init_params(k_p, H)

    out = jax.block_until_ready(rnn_decoder_forward(x, params))

    assert out.shape == (B, 4 * L, 1), out.shape
    assert bool(jnp.all(jnp.isfinite(out)))
    print("KERNEL_OK")
</pallas_src>

<mosaic_0001>
module attributes {stable_mosaic.version = 11 : i64} {
  func.func @_bilstm_kernel(%arg0: memref<8x2x1xf32, #tpu.memory_space<vmem>>, %arg1: memref<1x128xf32, #tpu.memory_space<vmem>>, %arg2: memref<32x128xf32, #tpu.memory_space<vmem>>, %arg3: memref<1x128xf32, #tpu.memory_space<vmem>>, %arg4: memref<1x128xf32, #tpu.memory_space<vmem>>, %arg5: memref<32x128xf32, #tpu.memory_space<vmem>>, %arg6: memref<1x128xf32, #tpu.memory_space<vmem>>, %arg7: memref<8x2x64xf32, #tpu.memory_space<vmem>>) attributes {dimension_semantics = [], scalar_prefetch = 0 : i64, scratch_operands = 0 : i64, tpu.core_type = #tpu.core_type<tc>} {
    %c0 = arith.constant 0 : index
    %c0_0 = arith.constant 0 : index
    %c0_1 = arith.constant 0 : index
    %0 = vector.load %arg0[%c0, %c0_0, %c0_1] : memref<8x2x1xf32, #tpu.memory_space<vmem>>, vector<8x2x1xf32>
    %c0_2 = arith.constant 0 : index
    %c0_3 = arith.constant 0 : index
    %1 = vector.load %arg1[%c0_2, %c0_3] : memref<1x128xf32, #tpu.memory_space<vmem>>, vector<1x128xf32>
    %2 = vector.shape_cast %1 : vector<1x128xf32> to vector<1x1x128xf32>
    %3 = vector.broadcast %0 : vector<8x2x1xf32> to vector<8x2x128xf32>
    %4 = vector.broadcast %2 : vector<1x1x128xf32> to vector<8x2x128xf32>
    %5 = arith.mulf %3, %4 : vector<8x2x128xf32>
    %c0_4 = arith.constant 0 : index
    %c0_5 = arith.constant 0 : index
    %6 = vector.load %arg3[%c0_4, %c0_5] : memref<1x128xf32, #tpu.memory_space<vmem>>, vector<1x128xf32>
    %7 = vector.shape_cast %6 : vector<1x128xf32> to vector<1x1x128xf32>
    %8 = vector.broadcast %7 : vector<1x1x128xf32> to vector<8x2x128xf32>
    %9 = arith.addf %5, %8 : vector<8x2x128xf32>
    %c0_6 = arith.constant 0 : index
    %c0_7 = arith.constant 0 : index
    %c0_8 = arith.constant 0 : index
    %10 = vector.load %arg0[%c0_6, %c0_7, %c0_8] : memref<8x2x1xf32, #tpu.memory_space<vmem>>, vector<8x2x1xf32>
    %c0_9 = arith.constant 0 : index
    %c0_10 = arith.constant 0 : index
    %11 = vector.load %arg4[%c0_9, %c0_10] : memref<1x128xf32, #tpu.memory_space<vmem>>, vector<1x128xf32>
    %12 = vector.shape_cast %11 : vector<1x128xf32> to vector<1x1x128xf32>
    %13 = vector.broadcast %10 : vector<8x2x1xf32> to vector<8x2x128xf32>
    %14 = vector.broadcast %12 : vector<1x1x128xf32> to vector<8x2x128xf32>
    %15 = arith.mulf %13, %14 : vector<8x2x128xf32>
    %c0_11 = arith.constant 0 : index
    %c0_12 = arith.constant 0 : index
    %16 = vector.load %arg6[%c0_11, %c0_12] : memref<1x128xf32, #tpu.memory_space<vmem>>, vector<1x128xf32>
    %17 = vector.shape_cast %16 : vector<1x128xf32> to vector<1x1x128xf32>
    %18 = vector.broadcast %17 : vector<1x1x128xf32> to vector<8x2x128xf32>
    %19 = arith.addf %15, %18 : vector<8x2x128xf32>
    %c0_13 = arith.constant 0 : index
    %c0_14 = arith.constant 0 : index
    %20 = vector.load %arg2[%c0_13, %c0_14] : memref<32x128xf32, #tpu.memory_space<vmem>>, vector<32x128xf32>
    %c0_15 = arith.constant 0 : index
    %c0_16 = arith.constant 0 : index
    %21 = vector.load %arg5[%c0_15, %c0_16] : memref<32x128xf32, #tpu.memory_space<vmem>>, vector<32x128xf32>
    %cst = arith.constant 0.000000e+00 : f32
    %22 = vector.broadcast %cst : f32 to vector<2x32xf32>
    %23 = vector.extract_strided_slice %9 {offsets = [0, 0, 0], sizes = [1, 2, 128], strides = [1, 1, 1]} : vector<8x2x128xf32> to vector<1x2x128xf32>
    %24 = vector.shape_cast %23 : vector<1x2x128xf32> to vector<2x128xf32>
    %cst_17 = arith.constant dense<0.000000e+00> : vector<2x128xf32>
    %25 = tpu.matmul %22, %20, %cst_17 {dimension_numbers = #tpu.dot_dimension_numbers<[1], [0], [0], [1], [0, 0, 1, 1], [], []>} : vector<2x32xf32>, vector<32x128xf32>, vector<2x128xf32> -> vector<2x128xf32>
    %26 = arith.addf %24, %25 : vector<2x128xf32>
    %27 = vector.extract_strided_slice %26 {offsets = [0, 0], sizes = [2, 32], strides = [1, 1]} : vector<2x128xf32> to vector<2x32xf32>
    %cst_18 = arith.constant 0.000000e+00 : f32
    %28 = vector.broadcast %cst_18 : f32 to vector<2x32xf32>
    %29 = arith.subf %28, %27 : vector<2x32xf32>
    %30 = math.exp %29 : vector<2x32xf32>
    %cst_19 = arith.constant 1.000000e+00 : f32
    %31 = vector.broadcast %cst_19 : f32 to vector<2x32xf32>
    %32 = arith.addf %31, %30 : vector<2x32xf32>
    %cst_20 = arith.constant 1.000000e+00 : f32
    %33 = vector.broadcast %cst_20 : f32 to vector<2x32xf32>
    %34 = arith.divf %33, %32 : vector<2x32xf32>
    %35 = vector.extract_strided_slice %26 {offsets = [0, 32], sizes = [2, 32], strides = [1, 1]} : vector<2x128xf32> to vector<2x32xf32>
    %cst_21 = arith.constant 0.000000e+00 : f32
    %36 = vector.broadcast %cst_21 : f32 to vector<2x32xf32>
    %37 = arith.subf %36, %35 : vector<2x32xf32>
    %38 = math.exp %37 : vector<2x32xf32>
    %cst_22 = arith.constant 1.000000e+00 : f32
    %39 = vector.broadcast %cst_22 : f32 to vector<2x32xf32>
    %40 = arith.addf %39, %38 : vector<2x32xf32>
    %cst_23 = arith.constant 1.000000e+00 : f32
    %41 = vector.broadcast %cst_23 : f32 to vector<2x32xf32>
    %42 = arith.divf %41, %40 : vector<2x32xf32>
    %43 = vector.extract_strided_slice %26 {offsets = [0, 64], sizes = [2, 32], strides = [1, 1]} : vector<2x128xf32> to vector<2x32xf32>
    %44 = math.tanh %43 : vector<2x32xf32>
    %45 = vector.extract_strided_slice %26 {offsets = [0, 96], sizes = [2, 32], strides = [1, 1]} : vector<2x128xf32> to vector<2x32xf32>
    %cst_24 = arith.constant 0.000000e+00 : f32
    %46 = vector.broadcast %cst_24 : f32 to vector<2x32xf32>
    %47 = arith.subf %46, %45 : vector<2x32xf32>
    %48 = math.exp %47 : vector<2x32xf32>
    %cst_25 = arith.constant 1.000000e+00 : f32
    %49 = vector.broadcast %cst_25 : f32 to vector<2x32xf32>
    %50 = arith.addf %49, %48 : vector<2x32xf32>
    %cst_26 = arith.constant 1.000000e+00 : f32
    %51 = vector.broadcast %cst_26 : f32 to vector<2x32xf32>
    %52 = arith.divf %51, %50 : vector<2x32xf32>
    %53 = arith.mulf %42, %22 : vector<2x32xf32>
    %54 = arith.mulf %34, %44 : vector<2x32xf32>
    %55 = arith.addf %53, %54 : vector<2x32xf32>
    %56 = math.tanh %55 : vector<2x32xf32>
    %57 = arith.mulf %52, %56 : vector<2x32xf32>
    %58 = vector.extract_strided_slice %19 {offsets = [7, 0, 0], sizes = [1, 2, 128], strides = [1, 1, 1]} : vector<8x2x128xf32> to vector<1x2x128xf32>
    %59 = vector.shape_cast %58 : vector<1x2x128xf32> to vector<2x128xf32>
    %cst_27 = arith.constant dense<0.000000e+00> : vector<2x128xf32>
    %60 = tpu.matmul %22, %21, %cst_27 {dimension_numbers = #tpu.dot_dimension_numbers<[1], [0], [0], [1], [0, 0, 1, 1], [], []>} : vector<2x32xf32>, vector<32x128xf32>, vector<2x128xf32> -> vector<2x128xf32>
    %61 = arith.addf %59, %60 : vector<2x128xf32>
    %62 = vector.extract_strided_slice %61 {offsets = [0, 0], sizes = [2, 32], strides = [1, 1]} : vector<2x128xf32> to vector<2x32xf32>
    %cst_28 = arith.constant 0.000000e+00 : f32
    %63 = vector.broadcast %cst_28 : f32 to vector<2x32xf32>
    %64 = arith.subf %63, %62 : vector<2x32xf32>
    %65 = math.exp %64 : vector<2x32xf32>
    %cst_29 = arith.constant 1.000000e+00 : f32
    %66 = vector.broadcast %cst_29 : f32 to vector<2x32xf32>
    %67 = arith.addf %66, %65 : vector<2x32xf32>
    %cst_30 = arith.constant 1.000000e+00 : f32
    %68 = vector.broadcast %cst_30 : f32 to vector<2x32xf32>
    %69 = arith.divf %68, %67 : vector<2x32xf32>
    %70 = vector.extract_strided_slice %61 {offsets = [0, 32], sizes = [2, 32], strides = [1, 1]} : vector<2x128xf32> to vector<2x32xf32>
    %cst_31 = arith.constant 0.000000e+00 : f32
    %71 = vector.broadcast %cst_31 : f32 to vector<2x32xf32>
    %72 = arith.subf %71, %70 : vector<2x32xf32>
    %73 = math.exp %72 : vector<2x32xf32>
    %cst_32 = arith.constant 1.000000e+00 : f32
    %74 = vector.broadcast %cst_32 : f32 to vector<2x32xf32>
    %75 = arith.addf %74, %73 : vector<2x32xf32>
    %cst_33 = arith.constant 1.000000e+00 : f32
    %76 = vector.broadcast %cst_33 : f32 to vector<2x32xf32>
    %77 = arith.divf %76, %75 : vector<2x32xf32>
    %78 = vector.extract_strided_slice %61 {offsets = [0, 64], sizes = [2, 32], strides = [1, 1]} : vector<2x128xf32> to vector<2x32xf32>
    %79 = math.tanh %78 : vector<2x32xf32>
    %80 = vector.extract_strided_slice %61 {offsets = [0, 96], sizes = [2, 32], strides = [1, 1]} : vector<2x128xf32> to vector<2x32xf32>
    %cst_34 = arith.constant 0.000000e+00 : f32
    %81 = vector.broadcast %cst_34 : f32 to vector<2x32xf32>
    %82 = arith.subf %81, %80 : vector<2x32xf32>
    %83 = math.exp %82 : vector<2x32xf32>
    %cst_35 = arith.constant 1.000000e+00 : f32
    %84 = vector.broadcast %cst_35 : f32 to vector<2x32xf32>
    %85 = arith.addf %84, %83 : vector<2x32xf32>
    %cst_36 = arith.constant 1.000000e+00 : f32
    %86 = vector.broadcast %cst_36 : f32 to vector<2x32xf32>
    %87 = arith.divf %86, %85 : vector<2x32xf32>
    %88 = arith.mulf %77, %22 : vector<2x32xf32>
    %89 = arith.mulf %69, %79 : vector<2x32xf32>
    %90 = arith.addf %88, %89 : vector<2x32xf32>
    %91 = math.tanh %90 : vector<2x32xf32>
    %92 = arith.mulf %87, %91 : vector<2x32xf32>
    %c0_37 = arith.constant 0 : index
    %c0_38 = arith.constant 0 : index
    %c0_39 = arith.constant 0 : index
    %93 = vector.load %arg7[%c0_37, %c0_38, %c0_39] : memref<8x2x64xf32, #tpu.memory_space<vmem>>, vector<1x2x32xf32>
    %94 = vector.shape_cast %93 : vector<1x2x32xf32> to vector<2x32xf32>
    %95 = vector.shape_cast %57 : vector<2x32xf32> to vector<1x2x32xf32>
    tpu.vector_store %arg7[%c0_37, %c0_38, %c0_39], %95 {strides = array<i32>} : memref<8x2x64xf32, #tpu.memory_space<vmem>>, vector<1x2x32xf32>,
    %c7 = arith.constant 7 : index
    %c0_40 = arith.constant 0 : index
    %c32 = arith.constant 32 : index
    %96 = vector.load %arg7[%c7, %c0_40, %c32] : memref<8x2x64xf32, #tpu.memory_space<vmem>>, vector<1x2x32xf32>
    %97 = vector.shape_cast %96 : vector<1x2x32xf32> to vector<2x32xf32>
    %98 = vector.shape_cast %92 : vector<2x32xf32> to vector<1x2x32xf32>
    tpu.vector_store %arg7[%c7, %c0_40, %c32], %98 {strides = array<i32>} : memref<8x2x64xf32, #tpu.memory_space<vmem>>, vector<1x2x32xf32>,
    %99 = vector.extract_strided_slice %9 {offsets = [1, 0, 0], sizes = [1, 2, 128], strides = [1, 1, 1]} : vector<8x2x128xf32> to vector<1x2x128xf32>
    %100 = vector.shape_cast %99 : vector<1x2x128xf32> to vector<2x128xf32>
    %cst_41 = arith.constant dense<0.000000e+00> : vector<2x128xf32>
    %101 = tpu.matmul %57, %20, %cst_41 {dimension_numbers = #tpu.dot_dimension_numbers<[1], [0], [0], [1], [0, 0, 1, 1], [], []>} : vector<2x32xf32>, vector<32x128xf32>, vector<2x128xf32> -> vector<2x128xf32>
    %102 = arith.addf %100, %101 : vector<2x128xf32>
    %103 = vector.extract_strided_slice %102 {offsets = [0, 0], sizes = [2, 32], strides = [1, 1]} : vector<2x128xf32> to vector<2x32xf32>
    %cst_42 = arith.constant 0.000000e+00 : f32
    %104 = vector.broadcast %cst_42 : f32 to vector<2x32xf32>
    %105 = arith.subf %104, %103 : vector<2x32xf32>
    %106 = math.exp %105 : vector<2x32xf32>
    %cst_43 = arith.constant 1.000000e+00 : f32
    %107 = vector.broadcast %cst_43 : f32 to vector<2x32xf32>
    %108 = arith.addf %107, %106 : vector<2x32xf32>
    %cst_44 = arith.constant 1.000000e+00 : f32
    %109 = vector.broadcast %cst_44 : f32 to vector<2x32xf32>
    %110 = arith.divf %109, %108 : vector<2x32xf32>
    %111 = vector.extract_strided_slice %102 {offsets = [0, 32], sizes = [2, 32], strides = [1, 1]} : vector<2x128xf32> to vector<2x32xf32>
    %cst_45 = arith.constant 0.000000e+00 : f32
    %112 = vector.broadcast %cst_45 : f32 to vector<2x32xf32>
    %113 = arith.subf %112, %111 : vector<2x32xf32>
    %114 = math.exp %113 : vector<2x32xf32>
    %cst_46 = arith.constant 1.000000e+00 : f32
    %115 = vector.broadcast %cst_46 : f32 to vector<2x32xf32>
    %116 = arith.addf %115, %114 : vector<2x32xf32>
    %cst_47 = arith.constant 1.000000e+00 : f32
    %117 = vector.broadcast %cst_47 : f32 to vector<2x32xf32>
    %118 = arith.divf %117, %116 : vector<2x32xf32>
    %119 = vector.extract_strided_slice %102 {offsets = [0, 64], sizes = [2, 32], strides = [1, 1]} : vector<2x128xf32> to vector<2x32xf32>
    %120 = math.tanh %119 : vector<2x32xf32>
    %121 = vector.extract_strided_slice %102 {offsets = [0, 96], sizes = [2, 32], strides = [1, 1]} : vector<2x128xf32> to vector<2x32xf32>
    %cst_48 = arith.constant 0.000000e+00 : f32
    %122 = vector.broadcast %cst_48 : f32 to vector<2x32xf32>
    %123 = arith.subf %122, %121 : vector<2x32xf32>
    %124 = math.exp %123 : vector<2x32xf32>
    %cst_49 = arith.constant 1.000000e+00 : f32
    %125 = vector.broadcast %cst_49 : f32 to vector<2x32xf32>
    %126 = arith.addf %125, %124 : vector<2x32xf32>
    %cst_50 = arith.constant 1.000000e+00 : f32
    %127 = vector.broadcast %cst_50 : f32 to vector<2x32xf32>
    %128 = arith.divf %127, %126 : vector<2x32xf32>
    %129 = arith.mulf %118, %55 : vector<2x32xf32>
    %130 = arith.mulf %110, %120 : vector<2x32xf32>
    %131 = arith.addf %129, %130 : vector<2x32xf32>
    %132 = math.tanh %131 : vector<2x32xf32>
    %133 = arith.mulf %128, %132 : vector<2x32xf32>
    %134 = vector.extract_strided_slice %19 {offsets = [6, 0, 0], sizes = [1, 2, 128], strides = [1, 1, 1]} : vector<8x2x128xf32> to vector<1x2x128xf32>
    %135 = vector.shape_cast %134 : vector<1x2x128xf32> to vector<2x128xf32>
    %cst_51 = arith.constant dense<0.000000e+00> : vector<2x128xf32>
    %136 = tpu.matmul %92, %21, %cst_51 {dimension_numbers = #tpu.dot_dimension_numbers<[1], [0], [0], [1], [0, 0, 1, 1], [], []>} : vector<2x32xf32>, vector<32x128xf32>, vector<2x128xf32> -> vector<2x128xf32>
    %137 = arith.addf %135, %136 : vector<2x128xf32>
    %138 = vector.extract_strided_slice %137 {offsets = [0, 0], sizes = [2, 32], strides = [1, 1]} : vector<2x128xf32> to vector<2x32xf32>
    %cst_52 = arith.constant 0.000000e+00 : f32
    %139 = vector.broadcast %cst_52 : f32 to vector<2x32xf32>
    %140 = arith.subf %139, %138 : vector<2x32xf32>
    %141 = math.exp %140 : vector<2x32xf32>
    %cst_53 = arith.constant 1.000000e+00 : f32
    %142 = vector.broadcast %cst_53 : f32 to vector<2x32xf32>
    %143 = arith.addf %142, %141 : vector<2x32xf32>
    %cst_54 = arith.constant 1.000000e+00 : f32
    %144 = vector.broadcast %cst_54 : f32 to vector<2x32xf32>
    %145 = arith.divf %144, %143 : vector<2x32xf32>
    %146 = vector.extract_strided_slice %137 {offsets = [0, 32], sizes = [2, 32], strides = [1, 1]} : vector<2x128xf32> to vector<2x32xf32>
    %cst_55 = arith.constant 0.000000e+00 : f32
    %147 = vector.broadcast %cst_55 : f32 to vector<2x32xf32>
    %148 = arith.subf %147, %146 : vector<2x32xf32>
    %149 = math.exp %148 : vector<2x32xf32>
    %cst_56 = arith.constant 1.000000e+00 : f32
    %150 = vector.broadcast %cst_56 : f32 to vector<2x32xf32>
    %151 = arith.addf %150, %149 : vector<2x32xf32>
    %cst_57 = arith.constant 1.000000e+00 : f32
    %152 = vector.broadcast %cst_57 : f32 to vector<2x32xf32>
    %153 = arith.divf %152, %151 : vector<2x32xf32>
    %154 = vector.extract_strided_slice %137 {offsets = [0, 64], sizes = [2, 32], strides = [1, 1]} : vector<2x128xf32> to vector<2x32xf32>
    %155 = math.tanh %154 : vector<2x32xf32>
    %156 = vector.extract_strided_slice %137 {offsets = [0, 96], sizes = [2, 32], strides = [1, 1]} : vector<2x128xf32> to vector<2x32xf32>
    %cst_58 = arith.constant 0.000000e+00 : f32
    %157 = vector.broadcast %cst_58 : f32 to vector<2x32xf32>
    %158 = arith.subf %157, %156 : vector<2x32xf32>
    %159 = math.exp %158 : vector<2x32xf32>
    %cst_59 = arith.constant 1.000000e+00 : f32
    %160 = vector.broadcast %cst_59 : f32 to vector<2x32xf32>
    %161 = arith.addf %160, %159 : vector<2x32xf32>
    %cst_60 = arith.constant 1.000000e+00 : f32
    %162 = vector.broadcast %cst_60 : f32 to vector<2x32xf32>
    %163 = arith.divf %162, %161 : vector<2x32xf32>
    %164 = arith.mulf %153, %90 : vector<2x32xf32>
    %165 = arith.mulf %145, %155 : vector<2x32xf32>
    %166 = arith.addf %164, %165 : vector<2x32xf32>
    %167 = math.tanh %166 : vector<2x32xf32>
    %168 = arith.mulf %163, %167 : vector<2x32xf32>
    %c1 = arith.constant 1 : index
    %c0_61 = arith.constant 0 : index
    %c0_62 = arith.constant 0 : index
    %169 = vector.load %arg7[%c1, %c0_61, %c0_62] : memref<8x2x64xf32, #tpu.memory_space<vmem>>, vector<1x2x32xf32>
    %170 = vector.shape_cast %169 : vector<1x2x32xf32> to vector<2x32xf32>
    %171 = vector.shape_cast %133 : vector<2x32xf32> to vector<1x2x32xf32>
    tpu.vector_store %arg7[%c1, %c0_61, %c0_62], %171 {strides = array<i32>} : memref<8x2x64xf32, #tpu.memory_space<vmem>>, vector<1x2x32xf32>,
    %c6 = arith.constant 6 : index
    %c0_63 = arith.constant 0 : index
    %c32_64 = arith.constant 32 : index
    %172 = vector.load %arg7[%c6, %c0_63, %c32_64] : memref<8x2x64xf32, #tpu.memory_space<vmem>>, vector<1x2x32xf32>
    %173 = vector.shape_cast %172 : vector<1x2x32xf32> to vector<2x32xf32>
    %174 = vector.shape_cast %168 : vector<2x32xf32> to vector<1x2x32xf32>
    tpu.vector_store %arg7[%c6, %c0_63, %c32_64], %174 {strides = array<i32>} : memref<8x2x64xf32, #tpu.memory_space<vmem>>, vector<1x2x32xf32>,
    %175 = vector.extract_strided_slice %9 {offsets = [2, 0, 0], sizes = [1, 2, 128], strides = [1, 1, 1]} : vector<8x2x128xf32> to vector<1x2x128xf32>
    %176 = vector.shape_cast %175 : vector<1x2x128xf32> to vector<2x128xf32>
    %cst_65 = arith.constant dense<0.000000e+00> : vector<2x128xf32>
    %177 = tpu.matmul %133, %20, %cst_65 {dimension_numbers = #tpu.dot_dimension_numbers<[1], [0], [0], [1], [0, 0, 1, 1], [], []>} : vector<2x32xf32>, vector<32x128xf32>, vector<2x128xf32> -> vector<2x128xf32>
    %178 = arith.addf %176, %177 : vector<2x128xf32>
    %179 = vector.extract_strided_slice %178 {offsets = [0, 0], sizes = [2, 32], strides = [1, 1]} : vector<2x128xf32> to vector<2x32xf32>
    %cst_66 = arith.constant 0.000000e+00 : f32
    %180 = vector.broadcast %cst_66 : f32 to vector<2x32xf32>
    %181 = arith.subf %180, %179 : vector<2x32xf32>
    %182 = math.exp %181 : vector<2x32xf32>
    %cst_67 = arith.constant 1.000000e+00 : f32
    %183 = vector.broadcast %cst_67 : f32 to vector<2x32xf32>
    %184 = arith.addf %183, %182 : vector<2x32xf32>
    %cst_68 = arith.constant 1.000000e+00 : f32
    %185 = vector.broadcast %cst_68 : f32 to vector<2x32xf32>
    %186 = arith.divf %185, %184 : vector<2x32xf32>
    %187 = vector.extract_strided_slice %178 {offsets = [0, 32], sizes = [2, 32], strides = [1, 1]} : vector<2x128xf32> to vector<2x32xf32>
    %cst_69 = arith.constant 0.000000e+00 : f32
    %188 = vector.broadcast %cst_69 : f32 to vector<2x32xf32>
    %189 = arith.subf %188, %187 : vector<2x32xf32>
    %190 = math.exp %189 : vector<2x32xf32>
    %cst_70 = arith.constant 1.000000e+00 : f32
    %191 = vector.broadcast %cst_70 : f32 to vector<2x32xf32>
    %192 = arith.addf %191, %190 : vector<2x32xf32>
    %cst_71 = arith.constant 1.000000e+00 : f32
    %193 = vector.broadcast %cst_71 : f32 to vector<2x32xf32>
    %194 = arith.divf %193, %192 : vector<2x32xf32>
    %195 = vector.extract_strided_slice %178 {offsets = [0, 64], sizes = [2, 32], strides = [1, 1]} : vector<2x128xf32> to vector<2x32xf32>
    %196 = math.tanh %195 : vector<2x32xf32>
    %197 = vector.extract_strided_slice %178 {offsets = [0, 96], sizes = [2, 32], strides = [1, 1]} : vector<2x128xf32> to vector<2x32xf32>
    %cst_72 = arith.constant 0.000000e+00 : f32
    %198 = vector.broadcast %cst_72 : f32 to vector<2x32xf32>
    %199 = arith.subf %198, %197 : vector<2x32xf32>
    %200 = math.exp %199 : vector<2x32xf32>
    %cst_73 = arith.constant 1.000000e+00 : f32
    %201 = vector.broadcast %cst_73 : f32 to vector<2x32xf32>
    %202 = arith.addf %201, %200 : vector<2x32xf32>
    %cst_74 = arith.constant 1.000000e+00 : f32
    %203 = vector.broadcast %cst_74 : f32 to vector<2x32xf32>
    %204 = arith.divf %203, %202 : vector<2x32xf32>
    %205 = arith.mulf %194, %131 : vector<2x32xf32>
    %206 = arith.mulf %186, %196 : vector<2x32xf32>
    %207 = arith.addf %205, %206 : vector<2x32xf32>
    %208 = math.tanh %207 : vector<2x32xf32>
    %209 = arith.mulf %204, %208 : vector<2x32xf32>
    %210 = vector.extract_strided_slice %19 {offsets = [5, 0, 0], sizes = [1, 2, 128], strides = [1, 1, 1]} : vector<8x2x128xf32> to vector<1x2x128xf32>
    %211 = vector.shape_cast %210 : vector<1x2x128xf32> to vector<2x128xf32>
    %cst_75 = arith.constant dense<0.000000e+00> : vector<2x128xf32>
    %212 = tpu.matmul %168, %21, %cst_75 {dimension_numbers = #tpu.dot_dimension_numbers<[1], [0], [0], [1], [0, 0, 1, 1], [], []>} : vector<2x32xf32>, vector<32x128xf32>, vector<2x128xf32> -> vector<2x128xf32>
    %213 = arith.addf %211, %212 : vector<2x128xf32>
    %214 = vector.extract_strided_slice %213 {offsets = [0, 0], sizes = [2, 32], strides = [1, 1]} : vector<2x128xf32> to vector<2x32xf32>
    %cst_76 = arith.constant 0.000000e+00 : f32
    %215 = vector.broadcast %cst_76 : f32 to vector<2x32xf32>
    %216 = arith.subf %215, %214 : vector<2x32xf32>
    %217 = math.exp %216 : vector<2x32xf32>
    %cst_77 = arith.constant 1.000000e+00 : f32
    %218 = vector.broadcast %cst_77 : f32 to vector<2x32xf32>
    %219 = arith.addf %218, %217 : vector<2x32xf32>
    %cst_78 = arith.constant 1.000000e+00 : f32
    %220 = vector.broadcast %cst_78 : f32 to vector<2x32xf32>
    %221 = arith.divf %220, %219 : vector<2x32xf32>
    %222 = vector.extract_strided_slice %213 {offsets = [0, 32], sizes = [2, 32], strides = [1, 1]} : vector<2x128xf32> to vector<2x32xf32>
    %cst_79 = arith.constant 0.000000e+00 : f32
    %223 = vector.broadcast %cst_79 : f32 to vector<2x32xf32>
    %224 = arith.subf %223, %222 : vector<2x32xf32>
    %225 = math.exp %224 : vector<2x32xf32>
    %cst_80 = arith.constant 1.000000e+00 : f32
    %226 = vector.broadcast %cst_80 : f32 to vector<2x32xf32>
    %227 = arith.addf %226, %225 : vector<2x32xf32>
    %cst_81 = arith.constant 1.000000e+00 : f32
    %228 = vector.broadcast %cst_81 : f32 to vector<2x32xf32>
    %229 = arith.divf %228, %227 : vector<2x32xf32>
    %230 = vector.extract_strided_slice %213 {offsets = [0, 64], sizes = [2, 32], strides = [1, 1]} : vector<2x128xf32> to vector<2x32xf32>
    %231 = math.tanh %230 : vector<2x32xf32>
    %232 = vector.extract_strided_slice %213 {offsets = [0, 96], sizes = [2, 32], strides = [1, 1]} : vector<2x128xf32> to vector<2x32xf32>
    %cst_82 = arith.constant 0.000000e+00 : f32
    %233 = vector.broadcast %cst_82 : f32 to vector<2x32xf32>
    %234 = arith.subf %233, %232 : vector<2x32xf32>
    %235 = math.exp %234 : vector<2x32xf32>
    %cst_83 = arith.constant 1.000000e+00 : f32
    %236 = vector.broadcast %cst_83 : f32 to vector<2x32xf32>
    %237 = arith.addf %236, %235 : vector<2x32xf32>
    %cst_84 = arith.constant 1.000000e+00 : f32
    %238 = vector.broadcast %cst_84 : f32 to vector<2x32xf32>
    %239 = arith.divf %238, %237 : vector<2x32xf32>
    %240 = arith.mulf %229, %166 : vector<2x32xf32>
    %241 = arith.mulf %221, %231 : vector<2x32xf32>
    %242 = arith.addf %240, %241 : vector<2x32xf32>
    %243 = math.tanh %242 : vector<2x32xf32>
    %244 = arith.mulf %239, %243 : vector<2x32xf32>
    %c2 = arith.constant 2 : index
    %c0_85 = arith.constant 0 : index
    %c0_86 = arith.constant 0 : index
    %245 = vector.load %arg7[%c2, %c0_85, %c0_86] : memref<8x2x64xf32, #tpu.memory_space<vmem>>, vector<1x2x32xf32>
    %246 = vector.shape_cast %245 : vector<1x2x32xf32> to vector<2x32xf32>
    %247 = vector.shape_cast %209 : vector<2x32xf32> to vector<1x2x32xf32>
    tpu.vector_store %arg7[%c2, %c0_85, %c0_86], %247 {strides = array<i32>} : memref<8x2x64xf32, #tpu.memory_space<vmem>>, vector<1x2x32xf32>,
    %c5 = arith.constant 5 : index
    %c0_87 = arith.constant 0 : index
    %c32_88 = arith.constant 32 : index
    %248 = vector.load %arg7[%c5, %c0_87, %c32_88] : memref<8x2x64xf32, #tpu.memory_space<vmem>>, vector<1x2x32xf32>
    %249 = vector.shape_cast %248 : vector<1x2x32xf32> to vector<2x32xf32>
    %250 = vector.shape_cast %244 : vector<2x32xf32> to vector<1x2x32xf32>
    tpu.vector_store %arg7[%c5, %c0_87, %c32_88], %250 {strides = array<i32>} : memref<8x2x64xf32, #tpu.memory_space<vmem>>, vector<1x2x32xf32>,
    %251 = vector.extract_strided_slice %9 {offsets = [3, 0, 0], sizes = [1, 2, 128], strides = [1, 1, 1]} : vector<8x2x128xf32> to vector<1x2x128xf32>
    %252 = vector.shape_cast %251 : vector<1x2x128xf32> to vector<2x128xf32>
    %cst_89 = arith.constant dense<0.000000e+00> : vector<2x128xf32>
    %253 = tpu.matmul %209, %20, %cst_89 {dimension_numbers = #tpu.dot_dimension_numbers<[1], [0], [0], [1], [0, 0, 1, 1], [], []>} : vector<2x32xf32>, vector<32x128xf32>, vector<2x128xf32> -> vector<2x128xf32>
    %254 = arith.addf %252, %253 : vector<2x128xf32>
    %255 = vector.extract_strided_slice %254 {offsets = [0, 0], sizes = [2, 32], strides = [1, 1]} : vector<2x128xf32> to vector<2x32xf32>
    %cst_90 = arith.constant 0.000000e+00 : f32
    %256 = vector.broadcast %cst_90 : f32 to vector<2x32xf32>
    %257 = arith.subf %256, %255 : vector<2x32xf32>
    %258 = math.exp %257 : vector<2x32xf32>
    %cst_91 = arith.constant 1.000000e+00 : f32
    %259 = vector.broadcast %cst_91 : f32 to vector<2x32xf32>
    %260 = arith.addf %259, %258 : vector<2x32xf32>
    %cst_92 = arith.constant 1.000000e+00 : f32
    %261 = vector.broadcast %cst_92 : f32 to vector<2x32xf32>
    %262 = arith.divf %261, %260 : vector<2x32xf32>
    %263 = vector.extract_strided_slice %254 {offsets = [0, 32], sizes = [2, 32], strides = [1, 1]} : vector<2x128xf32> to vector<2x32xf32>
    %cst_93 = arith.constant 0.000000e+00 : f32
    %264 = vector.broadcast %cst_93 : f32 to vector<2x32xf32>
    %265 = arith.subf %264, %263 : vector<2x32xf32>
    %266 = math.exp %265 : vector<2x32xf32>
    %cst_94 = arith.constant 1.000000e+00 : f32
    %267 = vector.broadcast %cst_94 : f32 to vector<2x32xf32>
    %268 = arith.addf %267, %266 : vector<2x32xf32>
    %cst_95 = arith.constant 1.000000e+00 : f32
    %269 = vector.broadcast %cst_95 : f32 to vector<2x32xf32>
    %270 = arith.divf %269, %268 : vector<2x32xf32>
    %271 = vector.extract_strided_slice %254 {offsets = [0, 64], sizes = [2, 32], strides = [1, 1]} : vector<2x128xf32> to vector<2x32xf32>
    %272 = math.tanh %271 : vector<2x32xf32>
    %273 = vector.extract_strided_slice %254 {offsets = [0, 96], sizes = [2, 32], strides = [1, 1]} : vector<2x128xf32> to vector<2x32xf32>
    %cst_96 = arith.constant 0.000000e+00 : f32
    %274 = vector.broadcast %cst_96 : f32 to vector<2x32xf32>
    %275 = arith.subf %274, %273 : vector<2x32xf32>
    %276 = math.exp %275 : vector<2x32xf32>
    %cst_97 = arith.constant 1.000000e+00 : f32
    %277 = vector.broadcast %cst_97 : f32 to vector<2x32xf32>
    %278 = arith.addf %277, %276 : vector<2x32xf32>
    %cst_98 = arith.constant 1.000000e+00 : f32
    %279 = vector.broadcast %cst_98 : f32 to vector<2x32xf32>
    %280 = arith.divf %279, %278 : vector<2x32xf32>
    %281 = arith.mulf %270, %207 : vector<2x32xf32>
    %282 = arith.mulf %262, %272 : vector<2x32xf32>
    %283 = arith.addf %281, %282 : vector<2x32xf32>
    %284 = math.tanh %283 : vector<2x32xf32>
    %285 = arith.mulf %280, %284 : vector<2x32xf32>
    %286 = vector.extract_strided_slice %19 {offsets = [4, 0, 0], sizes = [1, 2, 128], strides = [1, 1, 1]} : vector<8x2x128xf32> to vector<1x2x128xf32>
    %287 = vector.shape_cast %286 : vector<1x2x128xf32> to vector<2x128xf32>
    %cst_99 = arith.constant dense<0.000000e+00> : vector<2x128xf32>
    %288 = tpu.matmul %244, %21, %cst_99 {dimension_numbers = #tpu.dot_dimension_numbers<[1], [0], [0], [1], [0, 0, 1, 1], [], []>} : vector<2x32xf32>, vector<32x128xf32>, vector<2x128xf32> -> vector<2x128xf32>
    %289 = arith.addf %287, %288 : vector<2x128xf32>
    %290 = vector.extract_strided_slice %289 {offsets = [0, 0], sizes = [2, 32], strides = [1, 1]} : vector<2x128xf32> to vector<2x32xf32>
    %cst_100 = arith.constant 0.000000e+00 : f32
    %291 = vector.broadcast %cst_100 : f32 to vector<2x32xf32>
    %292 = arith.subf %291, %290 : vector<2x32xf32>
    %293 = math.exp %292 : vector<2x32xf32>
    %cst_101 = arith.constant 1.000000e+00 : f32
    %294 = vector.broadcast %cst_101 : f32 to vector<2x32xf32>
    %295 = arith.addf %294, %293 : vector<2x32xf32>
    %cst_102 = arith.constant 1.000000e+00 : f32
    %296 = vector.broadcast %cst_102 : f32 to vector<2x32xf32>
    %297 = arith.divf %296, %295 : vector<2x32xf32>
    %298 = vector.extract_strided_slice %289 {offsets = [0, 32], sizes = [2, 32], strides = [1, 1]} : vector<2x128xf32> to vector<2x32xf32>
    %cst_103 = arith.constant 0.000000e+00 : f32
    %299 = vector.broadcast %cst_103 : f32 to vector<2x32xf32>
    %300 = arith.subf %299, %298 : vector<2x32xf32>
    %301 = math.exp %300 : vector<2x32xf32>
    %cst_104 = arith.constant 1.000000e+00 : f32
    %302 = vector.broadcast %cst_104 : f32 to vector<2x32xf32>
    %303 = arith.addf %302, %301 : vector<2x32xf32>
    %cst_105 = arith.constant 1.000000e+00 : f32
    %304 = vector.broadcast %cst_105 : f32 to vector<2x32xf32>
    %305 = arith.divf %304, %303 : vector<2x32xf32>
    %306 = vector.extract_strided_slice %289 {offsets = [0, 64], sizes = [2, 32], strides = [1, 1]} : vector<2x128xf32> to vector<2x32xf32>
    %307 = math.tanh %306 : vector<2x32xf32>
    %308 = vector.extract_strided_slice %289 {offsets = [0, 96], sizes = [2, 32], strides = [1, 1]} : vector<2x128xf32> to vector<2x32xf32>
    %cst_106 = arith.constant 0.000000e+00 : f32
    %309 = vector.broadcast %cst_106 : f32 to vector<2x32xf32>
    %310 = arith.subf %309, %308 : vector<2x32xf32>
    %311 = math.exp %310 : vector<2x32xf32>
    %cst_107 = arith.constant 1.000000e+00 : f32
    %312 = vector.broadcast %cst_107 : f32 to vector<2x32xf32>
    %313 = arith.addf %312, %311 : vector<2x32xf32>
    %cst_108 = arith.constant 1.000000e+00 : f32
    %314 = vector.broadcast %cst_108 : f32 to vector<2x32xf32>
    %315 = arith.divf %314, %313 : vector<2x32xf32>
    %316 = arith.mulf %305, %242 : vector<2x32xf32>
    %317 = arith.mulf %297, %307 : vector<2x32xf32>
    %318 = arith.addf %316, %317 : vector<2x32xf32>
    %319 = math.tanh %318 : vector<2x32xf32>
    %320 = arith.mulf %315, %319 : vector<2x32xf32>
    %c3 = arith.constant 3 : index
    %c0_109 = arith.constant 0 : index
    %c0_110 = arith.constant 0 : index
    %321 = vector.load %arg7[%c3, %c0_109, %c0_110] : memref<8x2x64xf32, #tpu.memory_space<vmem>>, vector<1x2x32xf32>
    %322 = vector.shape_cast %321 : vector<1x2x32xf32> to vector<2x32xf32>
    %323 = vector.shape_cast %285 : vector<2x32xf32> to vector<1x2x32xf32>
    tpu.vector_store %arg7[%c3, %c0_109, %c0_110], %323 {strides = array<i32>} : memref<8x2x64xf32, #tpu.memory_space<vmem>>, vector<1x2x32xf32>,
    %c4 = arith.constant 4 : index
    %c0_111 = arith.constant 0 : index
    %c32_112 = arith.constant 32 : index
    %324 = vector.load %arg7[%c4, %c0_111, %c32_112] : memref<8x2x64xf32, #tpu.memory_space<vmem>>, vector<1x2x32xf32>
    %325 = vector.shape_cast %324 : vector<1x2x32xf32> to vector<2x32xf32>
    %326 = vector.shape_cast %320 : vector<2x32xf32> to vector<1x2x32xf32>
    tpu.vector_store %arg7[%c4, %c0_111, %c32_112], %326 {strides = array<i32>} : memref<8x2x64xf32, #tpu.memory_space<vmem>>, vector<1x2x32xf32>,
    %327 = vector.extract_strided_slice %9 {offsets = [4, 0, 0], sizes = [1, 2, 128], strides = [1, 1, 1]} : vector<8x2x128xf32> to vector<1x2x128xf32>
    %328 = vector.shape_cast %327 : vector<1x2x128xf32> to vector<2x128xf32>
    %cst_113 = arith.constant dense<0.000000e+00> : vector<2x128xf32>
    %329 = tpu.matmul %285, %20, %cst_113 {dimension_numbers = #tpu.dot_dimension_numbers<[1], [0], [0], [1], [0, 0, 1, 1], [], []>} : vector<2x32xf32>, vector<32x128xf32>, vector<2x128xf32> -> vector<2x128xf32>
    %330 = arith.addf %328, %329 : vector<2x128xf32>
    %331 = vector.extract_strided_slice %330 {offsets = [0, 0], sizes = [2, 32], strides = [1, 1]} : vector<2x128xf32> to vector<2x32xf32>
    %cst_114 = arith.constant 0.000000e+00 : f32
    %332 = vector.broadcast %cst_114 : f32 to vector<2x32xf32>
    %333 = arith.subf %332, %331 : vector<2x32xf32>
    %334 = math.exp %333 : vector<2x32xf32>
    %cst_115 = arith.constant 1.000000e+00 : f32
    %335 = vector.broadcast %cst_115 : f32 to vector<2x32xf32>
    %336 = arith.addf %335, %334 : vector<2x32xf32>
    %cst_116 = arith.constant 1.000000e+00 : f32
    %337 = vector.broadcast %cst_116 : f32 to vector<2x32xf32>
    %338 = arith.divf %337, %336 : vector<2x32xf32>
    %339 = vector.extract_strided_slice %330 {offsets = [0, 32], sizes = [2, 32], strides = [1, 1]} : vector<2x128xf32> to vector<2x32xf32>
    %cst_117 = arith.constant 0.000000e+00 : f32
    %340 = vector.broadcast %cst_117 : f32 to vector<2x32xf32>
    %341 = arith.subf %340, %339 : vector<2x32xf32>
    %342 = math.exp %341 : vector<2x32xf32>
    %cst_118 = arith.constant 1.000000e+00 : f32
    %343 = vector.broadcast %cst_118 : f32 to vector<2x32xf32>
    %344 = arith.addf %343, %342 : vector<2x32xf32>
    %cst_119 = arith.constant 1.000000e+00 : f32
    %345 = vector.broadcast %cst_119 : f32 to vector<2x32xf32>
    %346 = arith.divf %345, %344 : vector<2x32xf32>
    %347 = vector.extract_strided_slice %330 {offsets = [0, 64], sizes = [2, 32], strides = [1, 1]} : vector<2x128xf32> to vector<2x32xf32>
    %348 = math.tanh %347 : vector<2x32xf32>
    %349 = vector.extract_strided_slice %330 {offsets = [0, 96], sizes = [2, 32], strides = [1, 1]} : vector<2x128xf32> to vector<2x32xf32>
    %cst_120 = arith.constant 0.000000e+00 : f32
    %350 = vector.broadcast %cst_120 : f32 to vector<2x32xf32>
    %351 = arith.subf %350, %349 : vector<2x32xf32>
    %352 = math.exp %351 : vector<2x32xf32>
    %cst_121 = arith.constant 1.000000e+00 : f32
    %353 = vector.broadcast %cst_121 : f32 to vector<2x32xf32>
    %354 = arith.addf %353, %352 : vector<2x32xf32>
    %cst_122 = arith.constant 1.000000e+00 : f32
    %355 = vector.broadcast %cst_122 : f32 to vector<2x32xf32>
    %356 = arith.divf %355, %354 : vector<2x32xf32>
    %357 = arith.mulf %346, %283 : vector<2x32xf32>
    %358 = arith.mulf %338, %348 : vector<2x32xf32>
    %359 = arith.addf %357, %358 : vector<2x32xf32>
    %360 = math.tanh %359 : vector<2x32xf32>
    %361 = arith.mulf %356, %360 : vector<2x32xf32>
    %362 = vector.extract_strided_slice %19 {offsets = [3, 0, 0], sizes = [1, 2, 128], strides = [1, 1, 1]} : vector<8x2x128xf32> to vector<1x2x128xf32>
    %363 = vector.shape_cast %362 : vector<1x2x128xf32> to vector<2x128xf32>
    %cst_123 = arith.constant dense<0.000000e+00> : vector<2x128xf32>
    %364 = tpu.matmul %320, %21, %cst_123 {dimension_numbers = #tpu.dot_dimension_numbers<[1], [0], [0], [1], [0, 0, 1, 1], [], []>} : vector<2x32xf32>, vector<32x128xf32>, vector<2x128xf32> -> vector<2x128xf32>
    %365 = arith.addf %363, %364 : vector<2x128xf32>
    %366 = vector.extract_strided_slice %365 {offsets = [0, 0], sizes = [2, 32], strides = [1, 1]} : vector<2x128xf32> to vector<2x32xf32>
    %cst_124 = arith.constant 0.000000e+00 : f32
    %367 = vector.broadcast %cst_124 : f32 to vector<2x32xf32>
    %368 = arith.subf %367, %366 : vector<2x32xf32>
    %369 = math.exp %368 : vector<2x32xf32>
    %cst_125 = arith.constant 1.000000e+00 : f32
    %370 = vector.broadcast %cst_125 : f32 to vector<2x32xf32>
    %371 = arith.addf %370, %369 : vector<2x32xf32>
    %cst_126 = arith.constant 1.000000e+00 : f32
    %372 = vector.broadcast %cst_126 : f32 to vector<2x32xf32>
    %373 = arith.divf %372, %371 : vector<2x32xf32>
    %374 = vector.extract_strided_slice %365 {offsets = [0, 32], sizes = [2, 32], strides = [1, 1]} : vector<2x128xf32> to vector<2x32xf32>
    %cst_127 = arith.constant 0.000000e+00 : f32
    %375 = vector.broadcast %cst_127 : f32 to vector<2x32xf32>
    %376 = arith.subf %375, %374 : vector<2x32xf32>
    %377 = math.exp %376 : vector<2x32xf32>
    %cst_128 = arith.constant 1.000000e+00 : f32
    %378 = vector.broadcast %cst_128 : f32 to vector<2x32xf32>
    %379 = arith.addf %378, %377 : vector<2x32xf32>
    %cst_129 = arith.constant 1.000000e+00 : f32
    %380 = vector.broadcast %cst_129 : f32 to vector<2x32xf32>
    %381 = arith.divf %380, %379 : vector<2x32xf32>
    %382 = vector.extract_strided_slice %365 {offsets = [0, 64], sizes = [2, 32], strides = [1, 1]} : vector<2x128xf32> to vector<2x32xf32>
    %383 = math.tanh %382 : vector<2x32xf32>
    %384 = vector.extract_strided_slice %365 {offsets = [0, 96], sizes = [2, 32], strides = [1, 1]} : vector<2x128xf32> to vector<2x32xf32>
    %cst_130 = arith.constant 0.000000e+00 : f32
    %385 = vector.broadcast %cst_130 : f32 to vector<2x32xf32>
    %386 = arith.subf %385, %384 : vector<2x32xf32>
    %387 = math.exp %386 : vector<2x32xf32>
    %cst_131 = arith.constant 1.000000e+00 : f32
    %388 = vector.broadcast %cst_131 : f32 to vector<2x32xf32>
    %389 = arith.addf %388, %387 : vector<2x32xf32>
    %cst_132 = arith.constant 1.000000e+00 : f32
    %390 = vector.broadcast %cst_132 : f32 to vector<2x32xf32>
    %391 = arith.divf %390, %389 : vector<2x32xf32>
    %392 = arith.mulf %381, %318 : vector<2x32xf32>
    %393 = arith.mulf %373, %383 : vector<2x32xf32>
    %394 = arith.addf %392, %393 : vector<2x32xf32>
    %395 = math.tanh %394 : vector<2x32xf32>
    %396 = arith.mulf %391, %395 : vector<2x32xf32>
    %c4_133 = arith.constant 4 : index
    %c0_134 = arith.constant 0 : index
    %c0_135 = arith.constant 0 : index
    %397 = vector.load %arg7[%c4_133, %c0_134, %c0_135] : memref<8x2x64xf32, #tpu.memory_space<vmem>>, vector<1x2x32xf32>
    %398 = vector.shape_cast %397 : vector<1x2x32xf32> to vector<2x32xf32>
    %399 = vector.shape_cast %361 : vector<2x32xf32> to vector<1x2x32xf32>
    tpu.vector_store %arg7[%c4_133, %c0_134, %c0_135], %399 {strides = array<i32>} : memref<8x2x64xf32, #tpu.memory_space<vmem>>, vector<1x2x32xf32>,
    %c3_136 = arith.constant 3 : index
    %c0_137 = arith.constant 0 : index
    %c32_138 = arith.constant 32 : index
    %400 = vector.load %arg7[%c3_136, %c0_137, %c32_138] : memref<8x2x64xf32, #tpu.memory_space<vmem>>, vector<1x2x32xf32>
    %401 = vector.shape_cast %400 : vector<1x2x32xf32> to vector<2x32xf32>
    %402 = vector.shape_cast %396 : vector<2x32xf32> to vector<1x2x32xf32>
    tpu.vector_store %arg7[%c3_136, %c0_137, %c32_138], %402 {strides = array<i32>} : memref<8x2x64xf32, #tpu.memory_space<vmem>>, vector<1x2x32xf32>,
    %403 = vector.extract_strided_slice %9 {offsets = [5, 0, 0], sizes = [1, 2, 128], strides = [1, 1, 1]} : vector<8x2x128xf32> to vector<1x2x128xf32>
    %404 = vector.shape_cast %403 : vector<1x2x128xf32> to vector<2x128xf32>
    %cst_139 = arith.constant dense<0.000000e+00> : vector<2x128xf32>
    %405 = tpu.matmul %361, %20, %cst_139 {dimension_numbers = #tpu.dot_dimension_numbers<[1], [0], [0], [1], [0, 0, 1, 1], [], []>} : vector<2x32xf32>, vector<32x128xf32>, vector<2x128xf32> -> vector<2x128xf32>
    %406 = arith.addf %404, %405 : vector<2x128xf32>
    %407 = vector.extract_strided_slice %406 {offsets = [0, 0], sizes = [2, 32], strides = [1, 1]} : vector<2x128xf32> to vector<2x32xf32>
    %cst_140 = arith.constant 0.000000e+00 : f32
    %408 = vector.broadcast %cst_140 : f32 to vector<2x32xf32>
    %409 = arith.subf %408, %407 : vector<2x32xf32>
    %410 = math.exp %409 : vector<2x32xf32>
    %cst_141 = arith.constant 1.000000e+00 : f32
    %411 = vector.broadcast %cst_141 : f32 to vector<2x32xf32>
    %412 = arith.addf %411, %410 : vector<2x32xf32>
    %cst_142 = arith.constant 1.000000e+00 : f32
    %413 = vector.broadcast %cst_142 : f32 to vector<2x32xf32>
    %414 = arith.divf %413, %412 : vector<2x32xf32>
    %415 = vector.extract_strided_slice %406 {offsets = [0, 32], sizes = [2, 32], strides = [1, 1]} : vector<2x128xf32> to vector<2x32xf32>
    %cst_143 = arith.constant 0.000000e+00 : f32
    %416 = vector.broadcast %cst_143 : f32 to vector<2x32xf32>
    %417 = arith.subf %416, %415 : vector<2x32xf32>
    %418 = math.exp %417 : vector<2x32xf32>
    %cst_144 = arith.constant 1.000000e+00 : f32
    %419 = vector.broadcast %cst_144 : f32 to vector<2x32xf32>
    %420 = arith.addf %419, %418 : vector<2x32xf32>
    %cst_145 = arith.constant 1.000000e+00 : f32
    %421 = vector.broadcast %cst_145 : f32 to vector<2x32xf32>
    %422 = arith.divf %421, %420 : vector<2x32xf32>
    %423 = vector.extract_strided_slice %406 {offsets = [0, 64], sizes = [2, 32], strides = [1, 1]} : vector<2x128xf32> to vector<2x32xf32>
    %424 = math.tanh %423 : vector<2x32xf32>
    %425 = vector.extract_strided_slice %406 {offsets = [0, 96], sizes = [2, 32], strides = [1, 1]} : vector<2x128xf32> to vector<2x32xf32>
    %cst_146 = arith.constant 0.000000e+00 : f32
    %426 = vector.broadcast %cst_146 : f32 to vector<2x32xf32>
    %427 = arith.subf %426, %425 : vector<2x32xf32>
    %428 = math.exp %427 : vector<2x32xf32>
    %cst_147 = arith.constant 1.000000e+00 : f32
    %429 = vector.broadcast %cst_147 : f32 to vector<2x32xf32>
    %430 = arith.addf %429, %428 : vector<2x32xf32>
    %cst_148 = arith.constant 1.000000e+00 : f32
    %431 = vector.broadcast %cst_148 : f32 to vector<2x32xf32>
    %432 = arith.divf %431, %430 : vector<2x32xf32>
    %433 = arith.mulf %422, %359 : vector<2x32xf32>
    %434 = arith.mulf %414, %424 : vector<2x32xf32>
    %435 = arith.addf %433, %434 : vector<2x32xf32>
    %436 = math.tanh %435 : vector<2x32xf32>
    %437 = arith.mulf %432, %436 : vector<2x32xf32>
    %438 = vector.extract_strided_slice %19 {offsets = [2, 0, 0], sizes = [1, 2, 128], strides = [1, 1, 1]} : vector<8x2x128xf32> to vector<1x2x128xf32>
    %439 = vector.shape_cast %438 : vector<1x2x128xf32> to vector<2x128xf32>
    %cst_149 = arith.constant dense<0.000000e+00> : vector<2x128xf32>
    %440 = tpu.matmul %396, %21, %cst_149 {dimension_numbers = #tpu.dot_dimension_numbers<[1], [0], [0], [1], [0, 0, 1, 1], [], []>} : vector<2x32xf32>, vector<32x128xf32>, vector<2x128xf32> -> vector<2x128xf32>
    %441 = arith.addf %439, %440 : vector<2x128xf32>
    %442 = vector.extract_strided_slice %441 {offsets = [0, 0], sizes = [2, 32], strides = [1, 1]} : vector<2x128xf32> to vector<2x32xf32>
    %cst_150 = arith.constant 0.000000e+00 : f32
    %443 = vector.broadcast %cst_150 : f32 to vector<2x32xf32>
    %444 = arith.subf %443, %442 : vector<2x32xf32>
    %445 = math.exp %444 : vector<2x32xf32>
    %cst_151 = arith.constant 1.000000e+00 : f32
    %446 = vector.broadcast %cst_151 : f32 to vector<2x32xf32>
    %447 = arith.addf %446, %445 : vector<2x32xf32>
    %cst_152 = arith.constant 1.000000e+00 : f32
    %448 = vector.broadcast %cst_152 : f32 to vector<2x32xf32>
    %449 = arith.divf %448, %447 : vector<2x32xf32>
    %450 = vector.extract_strided_slice %441 {offsets = [0, 32], sizes = [2, 32], strides = [1, 1]} : vector<2x128xf32> to vector<2x32xf32>
    %cst_153 = arith.constant 0.000000e+00 : f32
    %451 = vector.broadcast %cst_153 : f32 to vector<2x32xf32>
    %452 = arith.subf %451, %450 : vector<2x32xf32>
    %453 = math.exp %452 : vector<2x32xf32>
    %cst_154 = arith.constant 1.000000e+00 : f32
    %454 = vector.broadcast %cst_154 : f32 to vector<2x32xf32>
    %455 = arith.addf %454, %453 : vector<2x32xf32>
    %cst_155 = arith.constant 1.000000e+00 : f32
    %456 = vector.broadcast %cst_155 : f32 to vector<2x32xf32>
    %457 = arith.divf %456, %455 : vector<2x32xf32>
    %458 = vector.extract_strided_slice %441 {offsets = [0, 64], sizes = [2, 32], strides = [1, 1]} : vector<2x128xf32> to vector<2x32xf32>
    %459 = math.tanh %458 : vector<2x32xf32>
    %460 = vector.extract_strided_slice %441 {offsets = [0, 96], sizes = [2, 32], strides = [1, 1]} : vector<2x128xf32> to vector<2x32xf32>
    %cst_156 = arith.constant 0.000000e+00 : f32
    %461 = vector.broadcast %cst_156 : f32 to vector<2x32xf32>
    %462 = arith.subf %461, %460 : vector<2x32xf32>
    %463 = math.exp %462 : vector<2x32xf32>
    %cst_157 = arith.constant 1.000000e+00 : f32
    %464 = vector.broadcast %cst_157 : f32 to vector<2x32xf32>
    %465 = arith.addf %464, %463 : vector<2x32xf32>
    %cst_158 = arith.constant 1.000000e+00 : f32
    %466 = vector.broadcast %cst_158 : f32 to vector<2x32xf32>
    %467 = arith.divf %466, %465 : vector<2x32xf32>
    %468 = arith.mulf %457, %394 : vector<2x32xf32>
    %469 = arith.mulf %449, %459 : vector<2x32xf32>
    %470 = arith.addf %468, %469 : vector<2x32xf32>
    %471 = math.tanh %470 : vector<2x32xf32>
    %472 = arith.mulf %467, %471 : vector<2x32xf32>
    %c5_159 = arith.constant 5 : index
    %c0_160 = arith.constant 0 : index
    %c0_161 = arith.constant 0 : index
    %473 = vector.load %arg7[%c5_159, %c0_160, %c0_161] : memref<8x2x64xf32, #tpu.memory_space<vmem>>, vector<1x2x32xf32>
    %474 = vector.shape_cast %473 : vector<1x2x32xf32> to vector<2x32xf32>
    %475 = vector.shape_cast %437 : vector<2x32xf32> to vector<1x2x32xf32>
    tpu.vector_store %arg7[%c5_159, %c0_160, %c0_161], %475 {strides = array<i32>} : memref<8x2x64xf32, #tpu.memory_space<vmem>>, vector<1x2x32xf32>,
    %c2_162 = arith.constant 2 : index
    %c0_163 = arith.constant 0 : index
    %c32_164 = arith.constant 32 : index
    %476 = vector.load %arg7[%c2_162, %c0_163, %c32_164] : memref<8x2x64xf32, #tpu.memory_space<vmem>>, vector<1x2x32xf32>
    %477 = vector.shape_cast %476 : vector<1x2x32xf32> to vector<2x32xf32>
    %478 = vector.shape_cast %472 : vector<2x32xf32> to vector<1x2x32xf32>
    tpu.vector_store %arg7[%c2_162, %c0_163, %c32_164], %478 {strides = array<i32>} : memref<8x2x64xf32, #tpu.memory_space<vmem>>, vector<1x2x32xf32>,
    %479 = vector.extract_strided_slice %9 {offsets = [6, 0, 0], sizes = [1, 2, 128], strides = [1, 1, 1]} : vector<8x2x128xf32> to vector<1x2x128xf32>
    %480 = vector.shape_cast %479 : vector<1x2x128xf32> to vector<2x128xf32>
    %cst_165 = arith.constant dense<0.000000e+00> : vector<2x128xf32>
    %481 = tpu.matmul %437, %20, %cst_165 {dimension_numbers = #tpu.dot_dimension_numbers<[1], [0], [0], [1], [0, 0, 1, 1], [], []>} : vector<2x32xf32>, vector<32x128xf32>, vector<2x128xf32> -> vector<2x128xf32>
    %482 = arith.addf %480, %481 : vector<2x128xf32>
    %483 = vector.extract_strided_slice %482 {offsets = [0, 0], sizes = [2, 32], strides = [1, 1]} : vector<2x128xf32> to vector<2x32xf32>
    %cst_166 = arith.constant 0.000000e+00 : f32
    %484 = vector.broadcast %cst_166 : f32 to vector<2x32xf32>
    %485 = arith.subf %484, %483 : vector<2x32xf32>
    %486 = math.exp %485 : vector<2x32xf32>
    %cst_167 = arith.constant 1.000000e+00 : f32
    %487 = vector.broadcast %cst_167 : f32 to vector<2x32xf32>
    %488 = arith.addf %487, %486 : vector<2x32xf32>
    %cst_168 = arith.constant 1.000000e+00 : f32
    %489 = vector.broadcast %cst_168 : f32 to vector<2x32xf32>
    %490 = arith.divf %489, %488 : vector<2x32xf32>
    %491 = vector.extract_strided_slice %482 {offsets = [0, 32], sizes = [2, 32], strides = [1, 1]} : vector<2x128xf32> to vector<2x32xf32>
    %cst_169 = arith.constant 0.000000e+00 : f32
    %492 = vector.broadcast %cst_169 : f32 to vector<2x32xf32>
    %493 = arith.subf %492, %491 : vector<2x32xf32>
    %494 = math.exp %493 : vector<2x32xf32>
    %cst_170 = arith.constant 1.000000e+00 : f32
    %495 = vector.broadcast %cst_170 : f32 to vector<2x32xf32>
    %496 = arith.addf %495, %494 : vector<2x32xf32>
    %cst_171 = arith.constant 1.000000e+00 : f32
    %497 = vector.broadcast %cst_171 : f32 to vector<2x32xf32>
    %498 = arith.divf %497, %496 : vector<2x32xf32>
    %499 = vector.extract_strided_slice %482 {offsets = [0, 64], sizes = [2, 32], strides = [1, 1]} : vector<2x128xf32> to vector<2x32xf32>
    %500 = math.tanh %499 : vector<2x32xf32>
    %501 = vector.extract_strided_slice %482 {offsets = [0, 96], sizes = [2, 32], strides = [1, 1]} : vector<2x128xf32> to vector<2x32xf32>
    %cst_172 = arith.constant 0.000000e+00 : f32
    %502 = vector.broadcast %cst_172 : f32 to vector<2x32xf32>
    %503 = arith.subf %502, %501 : vector<2x32xf32>
    %504 = math.exp %503 : vector<2x32xf32>
    %cst_173 = arith.constant 1.000000e+00 : f32
    %505 = vector.broadcast %cst_173 : f32 to vector<2x32xf32>
    %506 = arith.addf %505, %504 : vector<2x32xf32>
    %cst_174 = arith.constant 1.000000e+00 : f32
    %507 = vector.broadcast %cst_174 : f32 to vector<2x32xf32>
    %508 = arith.divf %507, %506 : vector<2x32xf32>
    %509 = arith.mulf %498, %435 : vector<2x32xf32>
    %510 = arith.mulf %490, %500 : vector<2x32xf32>
    %511 = arith.addf %509, %510 : vector<2x32xf32>
    %512 = math.tanh %511 : vector<2x32xf32>
    %513 = arith.mulf %508, %512 : vector<2x32xf32>
    %514 = vector.extract_strided_slice %19 {offsets = [1, 0, 0], sizes = [1, 2, 128], strides = [1, 1, 1]} : vector<8x2x128xf32> to vector<1x2x128xf32>
    %515 = vector.shape_cast %514 : vector<1x2x128xf32> to vector<2x128xf32>
    %cst_175 = arith.constant dense<0.000000e+00> : vector<2x128xf32>
    %516 = tpu.matmul %472, %21, %cst_175 {dimension_numbers = #tpu.dot_dimension_numbers<[1], [0], [0], [1], [0, 0, 1, 1], [], []>} : vector<2x32xf32>, vector<32x128xf32>, vector<2x128xf32> -> vector<2x128xf32>
    %517 = arith.addf %515, %516 : vector<2x128xf32>
    %518 = vector.extract_strided_slice %517 {offsets = [0, 0], sizes = [2, 32], strides = [1, 1]} : vector<2x128xf32> to vector<2x32xf32>
    %cst_176 = arith.constant 0.000000e+00 : f32
    %519 = vector.broadcast %cst_176 : f32 to vector<2x32xf32>
    %520 = arith.subf %519, %518 : vector<2x32xf32>
    %521 = math.exp %520 : vector<2x32xf32>
    %cst_177 = arith.constant 1.000000e+00 : f32
    %522 = vector.broadcast %cst_177 : f32 to vector<2x32xf32>
    %523 = arith.addf %522, %521 : vector<2x32xf32>
    %cst_178 = arith.constant 1.000000e+00 : f32
    %524 = vector.broadcast %cst_178 : f32 to vector<2x32xf32>
    %525 = arith.divf %524, %523 : vector<2x32xf32>
    %526 = vector.extract_strided_slice %517 {offsets = [0, 32], sizes = [2, 32], strides = [1, 1]} : vector<2x128xf32> to vector<2x32xf32>
    %cst_179 = arith.constant 0.000000e+00 : f32
    %527 = vector.broadcast %cst_179 : f32 to vector<2x32xf32>
    %528 = arith.subf %527, %526 : vector<2x32xf32>
    %529 = math.exp %528 : vector<2x32xf32>
    %cst_180 = arith.constant 1.000000e+00 : f32
    %530 = vector.broadcast %cst_180 : f32 to vector<2x32xf32>
    %531 = arith.addf %530, %529 : vector<2x32xf32>
    %cst_181 = arith.constant 1.000000e+00 : f32
    %532 = vector.broadcast %cst_181 : f32 to vector<2x32xf32>
    %533 = arith.divf %532, %531 : vector<2x32xf32>
    %534 = vector.extract_strided_slice %517 {offsets = [0, 64], sizes = [2, 32], strides = [1, 1]} : vector<2x128xf32> to vector<2x32xf32>
    %535 = math.tanh %534 : vector<2x32xf32>
    %536 = vector.extract_strided_slice %517 {offsets = [0, 96], sizes = [2, 32], strides = [1, 1]} : vector<2x128xf32> to vector<2x32xf32>
    %cst_182 = arith.constant 0.000000e+00 : f32
    %537 = vector.broadcast %cst_182 : f32 to vector<2x32xf32>
    %538 = arith.subf %537, %536 : vector<2x32xf32>
    %539 = math.exp %538 : vector<2x32xf32>
    %cst_183 = arith.constant 1.000000e+00 : f32
    %540 = vector.broadcast %cst_183 : f32 to vector<2x32xf32>
    %541 = arith.addf %540, %539 : vector<2x32xf32>
    %cst_184 = arith.constant 1.000000e+00 : f32
    %542 = vector.broadcast %cst_184 : f32 to vector<2x32xf32>
    %543 = arith.divf %542, %541 : vector<2x32xf32>
    %544 = arith.mulf %533, %470 : vector<2x32xf32>
    %545 = arith.mulf %525, %535 : vector<2x32xf32>
    %546 = arith.addf %544, %545 : vector<2x32xf32>
    %547 = math.tanh %546 : vector<2x32xf32>
    %548 = arith.mulf %543, %547 : vector<2x32xf32>
    %c6_185 = arith.constant 6 : index
    %c0_186 = arith.constant 0 : index
    %c0_187 = arith.constant 0 : index
    %549 = vector.load %arg7[%c6_185, %c0_186, %c0_187] : memref<8x2x64xf32, #tpu.memory_space<vmem>>, vector<1x2x32xf32>
    %550 = vector.shape_cast %549 : vector<1x2x32xf32> to vector<2x32xf32>
    %551 = vector.shape_cast %513 : vector<2x32xf32> to vector<1x2x32xf32>
    tpu.vector_store %arg7[%c6_185, %c0_186, %c0_187], %551 {strides = array<i32>} : memref<8x2x64xf32, #tpu.memory_space<vmem>>, vector<1x2x32xf32>,
    %c1_188 = arith.constant 1 : index
    %c0_189 = arith.constant 0 : index
    %c32_190 = arith.constant 32 : index
    %552 = vector.load %arg7[%c1_188, %c0_189, %c32_190] : memref<8x2x64xf32, #tpu.memory_space<vmem>>, vector<1x2x32xf32>
    %553 = vector.shape_cast %552 : vector<1x2x32xf32> to vector<2x32xf32>
    %554 = vector.shape_cast %548 : vector<2x32xf32> to vector<1x2x32xf32>
    tpu.vector_store %arg7[%c1_188, %c0_189, %c32_190], %554 {strides = array<i32>} : memref<8x2x64xf32, #tpu.memory_space<vmem>>, vector<1x2x32xf32>,
    %555 = vector.extract_strided_slice %9 {offsets = [7, 0, 0], sizes = [1, 2, 128], strides = [1, 1, 1]} : vector<8x2x128xf32> to vector<1x2x128xf32>
    %556 = vector.shape_cast %555 : vector<1x2x128xf32> to vector<2x128xf32>
    %cst_191 = arith.constant dense<0.000000e+00> : vector<2x128xf32>
    %557 = tpu.matmul %513, %20, %cst_191 {dimension_numbers = #tpu.dot_dimension_numbers<[1], [0], [0], [1], [0, 0, 1, 1], [], []>} : vector<2x32xf32>, vector<32x128xf32>, vector<2x128xf32> -> vector<2x128xf32>
    %558 = arith.addf %556, %557 : vector<2x128xf32>
    %559 = vector.extract_strided_slice %558 {offsets = [0, 0], sizes = [2, 32], strides = [1, 1]} : vector<2x128xf32> to vector<2x32xf32>
    %cst_192 = arith.constant 0.000000e+00 : f32
    %560 = vector.broadcast %cst_192 : f32 to vector<2x32xf32>
    %561 = arith.subf %560, %559 : vector<2x32xf32>
    %562 = math.exp %561 : vector<2x32xf32>
    %cst_193 = arith.constant 1.000000e+00 : f32
    %563 = vector.broadcast %cst_193 : f32 to vector<2x32xf32>
    %564 = arith.addf %563, %562 : vector<2x32xf32>
    %cst_194 = arith.constant 1.000000e+00 : f32
    %565 = vector.broadcast %cst_194 : f32 to vector<2x32xf32>
    %566 = arith.divf %565, %564 : vector<2x32xf32>
    %567 = vector.extract_strided_slice %558 {offsets = [0, 32], sizes = [2, 32], strides = [1, 1]} : vector<2x128xf32> to vector<2x32xf32>
    %cst_195 = arith.constant 0.000000e+00 : f32
    %568 = vector.broadcast %cst_195 : f32 to vector<2x32xf32>
    %569 = arith.subf %568, %567 : vector<2x32xf32>
    %570 = math.exp %569 : vector<2x32xf32>
    %cst_196 = arith.constant 1.000000e+00 : f32
    %571 = vector.broadcast %cst_196 : f32 to vector<2x32xf32>
    %572 = arith.addf %571, %570 : vector<2x32xf32>
    %cst_197 = arith.constant 1.000000e+00 : f32
    %573 = vector.broadcast %cst_197 : f32 to vector<2x32xf32>
    %574 = arith.divf %573, %572 : vector<2x32xf32>
    %575 = vector.extract_strided_slice %558 {offsets = [0, 64], sizes = [2, 32], strides = [1, 1]} : vector<2x128xf32> to vector<2x32xf32>
    %576 = math.tanh %575 : vector<2x32xf32>
    %577 = vector.extract_strided_slice %558 {offsets = [0, 96], sizes = [2, 32], strides = [1, 1]} : vector<2x128xf32> to vector<2x32xf32>
    %cst_198 = arith.constant 0.000000e+00 : f32
    %578 = vector.broadcast %cst_198 : f32 to vector<2x32xf32>
    %579 = arith.subf %578, %577 : vector<2x32xf32>
    %580 = math.exp %579 : vector<2x32xf32>
    %cst_199 = arith.constant 1.000000e+00 : f32
    %581 = vector.broadcast %cst_199 : f32 to vector<2x32xf32>
    %582 = arith.addf %581, %580 : vector<2x32xf32>
    %cst_200 = arith.constant 1.000000e+00 : f32
    %583 = vector.broadcast %cst_200 : f32 to vector<2x32xf32>
    %584 = arith.divf %583, %582 : vector<2x32xf32>
    %585 = arith.mulf %574, %511 : vector<2x32xf32>
    %586 = arith.mulf %566, %576 : vector<2x32xf32>
    %587 = arith.addf %585, %586 : vector<2x32xf32>
    %588 = math.tanh %587 : vector<2x32xf32>
    %589 = arith.mulf %584, %588 : vector<2x32xf32>
    %590 = vector.extract_strided_slice %19 {offsets = [0, 0, 0], sizes = [1, 2, 128], strides = [1, 1, 1]} : vector<8x2x128xf32> to vector<1x2x128xf32>
    %591 = vector.shape_cast %590 : vector<1x2x128xf32> to vector<2x128xf32>
    %cst_201 = arith.constant dense<0.000000e+00> : vector<2x128xf32>
    %592 = tpu.matmul %548, %21, %cst_201 {dimension_numbers = #tpu.dot_dimension_numbers<[1], [0], [0], [1], [0, 0, 1, 1], [], []>} : vector<2x32xf32>, vector<32x128xf32>, vector<2x128xf32> -> vector<2x128xf32>
    %593 = arith.addf %591, %592 : vector<2x128xf32>
    %594 = vector.extract_strided_slice %593 {offsets = [0, 0], sizes = [2, 32], strides = [1, 1]} : vector<2x128xf32> to vector<2x32xf32>
    %cst_202 = arith.constant 0.000000e+00 : f32
    %595 = vector.broadcast %cst_202 : f32 to vector<2x32xf32>
    %596 = arith.subf %595, %594 : vector<2x32xf32>
    %597 = math.exp %596 : vector<2x32xf32>
    %cst_203 = arith.constant 1.000000e+00 : f32
    %598 = vector.broadcast %cst_203 : f32 to vector<2x32xf32>
    %599 = arith.addf %598, %597 : vector<2x32xf32>
    %cst_204 = arith.constant 1.000000e+00 : f32
    %600 = vector.broadcast %cst_204 : f32 to vector<2x32xf32>
    %601 = arith.divf %600, %599 : vector<2x32xf32>
    %602 = vector.extract_strided_slice %593 {offsets = [0, 32], sizes = [2, 32], strides = [1, 1]} : vector<2x128xf32> to vector<2x32xf32>
    %cst_205 = arith.constant 0.000000e+00 : f32
    %603 = vector.broadcast %cst_205 : f32 to vector<2x32xf32>
    %604 = arith.subf %603, %602 : vector<2x32xf32>
    %605 = math.exp %604 : vector<2x32xf32>
    %cst_206 = arith.constant 1.000000e+00 : f32
    %606 = vector.broadcast %cst_206 : f32 to vector<2x32xf32>
    %607 = arith.addf %606, %605 : vector<2x32xf32>
    %cst_207 = arith.constant 1.000000e+00 : f32
    %608 = vector.broadcast %cst_207 : f32 to vector<2x32xf32>
    %609 = arith.divf %608, %607 : vector<2x32xf32>
    %610 = vector.extract_strided_slice %593 {offsets = [0, 64], sizes = [2, 32], strides = [1, 1]} : vector<2x128xf32> to vector<2x32xf32>
    %611 = math.tanh %610 : vector<2x32xf32>
    %612 = vector.extract_strided_slice %593 {offsets = [0, 96], sizes = [2, 32], strides = [1, 1]} : vector<2x128xf32> to vector<2x32xf32>
    %cst_208 = arith.constant 0.000000e+00 : f32
    %613 = vector.broadcast %cst_208 : f32 to vector<2x32xf32>
    %614 = arith.subf %613, %612 : vector<2x32xf32>
    %615 = math.exp %614 : vector<2x32xf32>
    %cst_209 = arith.constant 1.000000e+00 : f32
    %616 = vector.broadcast %cst_209 : f32 to vector<2x32xf32>
    %617 = arith.addf %616, %615 : vector<2x32xf32>
    %cst_210 = arith.constant 1.000000e+00 : f32
    %618 = vector.broadcast %cst_210 : f32 to vector<2x32xf32>
    %619 = arith.divf %618, %617 : vector<2x32xf32>
    %620 = arith.mulf %609, %546 : vector<2x32xf32>
    %621 = arith.mulf %601, %611 : vector<2x32xf32>
    %622 = arith.addf %620, %621 : vector<2x32xf32>
    %623 = math.tanh %622 : vector<2x32xf32>
    %624 = arith.mulf %619, %623 : vector<2x32xf32>
    %c7_211 = arith.constant 7 : index
    %c0_212 = arith.constant 0 : index
    %c0_213 = arith.constant 0 : index
    %625 = vector.load %arg7[%c7_211, %c0_212, %c0_213] : memref<8x2x64xf32, #tpu.memory_space<vmem>>, vector<1x2x32xf32>
    %626 = vector.shape_cast %625 : vector<1x2x32xf32> to vector<2x32xf32>
    %627 = vector.shape_cast %589 : vector<2x32xf32> to vector<1x2x32xf32>
    tpu.vector_store %arg7[%c7_211, %c0_212, %c0_213], %627 {strides = array<i32>} : memref<8x2x64xf32, #tpu.memory_space<vmem>>, vector<1x2x32xf32>,
    %c0_214 = arith.constant 0 : index
    %c0_215 = arith.constant 0 : index
    %c32_216 = arith.constant 32 : index
    %628 = vector.load %arg7[%c0_214, %c0_215, %c32_216] : memref<8x2x64xf32, #tpu.memory_space<vmem>>, vector<1x2x32xf32>
    %629 = vector.shape_cast %628 : vector<1x2x32xf32> to vector<2x32xf32>
    %630 = vector.shape_cast %624 : vector<2x32xf32> to vector<1x2x32xf32>
    tpu.vector_store %arg7[%c0_214, %c0_215, %c32_216], %630 {strides = array<i32>} : memref<8x2x64xf32, #tpu.memory_space<vmem>>, vector<1x2x32xf32>,
    return
  }
}

module attributes {stable_mosaic.version = 11 : i64} {
  func.func @_conv_stack_kernel(%arg0: i32, %arg1: memref<1x64x8xf32, #tpu.memory_space<vmem>>, %arg2: memref<64x1024xf32, #tpu.memory_space<vmem>>, %arg3: memref<64x1xf32, #tpu.memory_space<vmem>>, %arg4: memref<32x1024xf32, #tpu.memory_space<vmem>>, %arg5: memref<32x1xf32, #tpu.memory_space<vmem>>, %arg6: memref<16x512xf32, #tpu.memory_space<vmem>>, %arg7: memref<16x1xf32, #tpu.memory_space<vmem>>, %arg8: memref<8x256xf32, #tpu.memory_space<vmem>>, %arg9: memref<8x1xf32, #tpu.memory_space<vmem>>, %arg10: memref<1x128xf32, #tpu.memory_space<vmem>>, %arg11: memref<1x1xf32, #tpu.memory_space<vmem>>, %arg12: memref<8x16xf32, #tpu.memory_space<vmem>>, %arg13: memref<16x32xf32, #tpu.memory_space<vmem>>, %arg14: memref<1x1x32xf32, #tpu.memory_space<vmem>>, %arg15: memref<1024x8xf32, #tpu.memory_space<vmem>>, %arg16: memref<1024x8xf32, #tpu.memory_space<vmem>>, %arg17: memref<512x16xf32, #tpu.memory_space<vmem>>, %arg18: memref<256x16xf32, #tpu.memory_space<vmem>>, %arg19: memref<128x32xf32, #tpu.memory_space<vmem>>) attributes {dimension_semantics = [#tpu.dimension_semantics<parallel>], iteration_bounds = array<i64: 2>, scalar_prefetch = 0 : i64, scratch_operands = 5 : i64, tpu.core_type = #tpu.core_type<tc>, window_params = [{transform_indices = @transform_0, window_bounds = array<i64: 1, 64, 8>}, {pipeline_mode = #tpu.pipeline_mode<synchronous>, transform_indices = @transform_1, window_bounds = array<i64: 64, 1024>}, {pipeline_mode = #tpu.pipeline_mode<synchronous>, transform_indices = @transform_2, window_bounds = array<i64: 64, 1>}, {pipeline_mode = #tpu.pipeline_mode<synchronous>, transform_indices = @transform_3, window_bounds = array<i64: 32, 1024>}, {pipeline_mode = #tpu.pipeline_mode<synchronous>, transform_indices = @transform_4, window_bounds = array<i64: 32, 1>}, {pipeline_mode = #tpu.pipeline_mode<synchronous>, transform_indices = @transform_5, window_bounds = array<i64: 16, 512>}, {pipeline_mode = #tpu.pipeline_mode<synchronous>, transform_indices = @transform_6, window_bounds = array<i64: 16, 1>}, {pipeline_mode = #tpu.pipeline_mode<synchronous>, transform_indices = @transform_7, window_bounds = array<i64: 8, 256>}, {pipeline_mode = #tpu.pipeline_mode<synchronous>, transform_indices = @transform_8, window_bounds = array<i64: 8, 1>}, {pipeline_mode = #tpu.pipeline_mode<synchronous>, transform_indices = @transform_9, window_bounds = array<i64: 1, 128>}, {pipeline_mode = #tpu.pipeline_mode<synchronous>, transform_indices = @transform_10, window_bounds = array<i64: 1, 1>}, {pipeline_mode = #tpu.pipeline_mode<synchronous>, transform_indices = @transform_11, window_bounds = array<i64: 8, 16>}, {pipeline_mode = #tpu.pipeline_mode<synchronous>, transform_indices = @transform_12, window_bounds = array<i64: 16, 32>}, {transform_indices = @transform_13, window_bounds = array<i64: 1, 1, 32>}]} {
    %c0 = arith.constant 0 : index
    %c0_0 = arith.constant 0 : index
    %c0_1 = arith.constant 0 : index
    %0 = vector.load %arg1[%c0, %c0_0, %c0_1] : memref<1x64x8xf32, #tpu.memory_space<vmem>>, vector<1x64x8xf32>
    %1 = vector.shape_cast %0 : vector<1x64x8xf32> to vector<64x8xf32>
    %cst = arith.constant 0.000000e+00 : f32
    %2 = vector.broadcast %cst : f32 to vector<1024x8xf32>
    %c0_2 = arith.constant 0 : index
    %c0_3 = arith.constant 0 : index
    %3 = vector.load %arg15[%c0_2, %c0_3] : memref<1024x8xf32, #tpu.memory_space<vmem>>, vector<1024x8xf32>
    tpu.vector_store %arg15[%c0_2, %c0_3], %2 {strides = array<i32>} : memref<1024x8xf32, #tpu.memory_space<vmem>>, vector<1024x8xf32>,
    %4 = vector.extract_strided_slice %1 {offsets = [0, 0], sizes = [64, 1], strides = [1, 1]} : vector<64x8xf32> to vector<64x1xf32>
    %c0_4 = arith.constant 0 : index
    %c7 = arith.constant 7 : index
    %5 = vector.load %arg15[%c0_4, %c7] : memref<1024x8xf32, #tpu.memory_space<vmem>>, vector<64x1xf32>
    tpu.vector_store %arg15[%c0_4, %c7], %4 {strides = array<i32>} : memref<1024x8xf32, #tpu.memory_space<vmem>>, vector<64x1xf32>,
    %6 = vector.extract_strided_slice %1 {offsets = [0, 0], sizes = [64, 2], strides = [1, 1]} : vector<64x8xf32> to vector<64x2xf32>
    %c64 = arith.constant 64 : index
    %c6 = arith.constant 6 : index
    %7 = vector.load %arg15[%c64, %c6] : memref<1024x8xf32, #tpu.memory_space<vmem>>, vector<64x2xf32>
    tpu.vector_store %arg15[%c64, %c6], %6 {strides = array<i32>} : memref<1024x8xf32, #tpu.memory_space<vmem>>, vector<64x2xf32>,
    %8 = vector.extract_strided_slice %1 {offsets = [0, 0], sizes = [64, 3], strides = [1, 1]} : vector<64x8xf32> to vector<64x3xf32>
    %c128 = arith.constant 128 : index
    %c5 = arith.constant 5 : index
    %9 = vector.load %arg15[%c128, %c5] : memref<1024x8xf32, #tpu.memory_space<vmem>>, vector<64x3xf32>
    tpu.vector_store %arg15[%c128, %c5], %8 {strides = array<i32>} : memref<1024x8xf32, #tpu.memory_space<vmem>>, vector<64x3xf32>,
    %10 = vector.extract_strided_slice %1 {offsets = [0, 0], sizes = [64, 4], strides = [1, 1]} : vector<64x8xf32> to vector<64x4xf32>
    %c192 = arith.constant 192 : index
    %c4 = arith.constant 4 : index
    %11 = vector.load %arg15[%c192, %c4] : memref<1024x8xf32, #tpu.memory_space<vmem>>, vector<64x4xf32>
    tpu.vector_store %arg15[%c192, %c4], %10 {strides = array<i32>} : memref<1024x8xf32, #tpu.memory_space<vmem>>, vector<64x4xf32>,
    %12 = vector.extract_strided_slice %1 {offsets = [0, 0], sizes = [64, 5], strides = [1, 1]} : vector<64x8xf32> to vector<64x5xf32>
    %c256 = arith.constant 256 : index
    %c3 = arith.constant 3 : index
    %13 = vector.load %arg15[%c256, %c3] : memref<1024x8xf32, #tpu.memory_space<vmem>>, vector<64x5xf32>
    tpu.vector_store %arg15[%c256, %c3], %12 {strides = array<i32>} : memref<1024x8xf32, #tpu.memory_space<vmem>>, vector<64x5xf32>,
    %14 = vector.extract_strided_slice %1 {offsets = [0, 0], sizes = [64, 6], strides = [1, 1]} : vector<64x8xf32> to vector<64x6xf32>
    %c320 = arith.constant 320 : index
    %c2 = arith.constant 2 : index
    %15 = vector.load %arg15[%c320, %c2] : memref<1024x8xf32, #tpu.memory_space<vmem>>, vector<64x6xf32>
    tpu.vector_store %arg15[%c320, %c2], %14 {strides = array<i32>} : memref<1024x8xf32, #tpu.memory_space<vmem>>, vector<64x6xf32>,
    %16 = vector.extract_strided_slice %1 {offsets = [0, 0], sizes = [64, 7], strides = [1, 1]} : vector<64x8xf32> to vector<64x7xf32>
    %c384 = arith.constant 384 : index
    %c1 = arith.constant 1 : index
    %17 = vector.load %arg15[%c384, %c1] : memref<1024x8xf32, #tpu.memory_space<vmem>>, vector<64x7xf32>
    tpu.vector_store %arg15[%c384, %c1], %16 {strides = array<i32>} : memref<1024x8xf32, #tpu.memory_space<vmem>>, vector<64x7xf32>,
    %c448 = arith.constant 448 : index
    %c0_5 = arith.constant 0 : index
    %18 = vector.load %arg15[%c448, %c0_5] : memref<1024x8xf32, #tpu.memory_space<vmem>>, vector<64x8xf32>
    tpu.vector_store %arg15[%c448, %c0_5], %1 {strides = array<i32>} : memref<1024x8xf32, #tpu.memory_space<vmem>>, vector<64x8xf32>,
    %19 = vector.extract_strided_slice %1 {offsets = [0, 1], sizes = [64, 7], strides = [1, 1]} : vector<64x8xf32> to vector<64x7xf32>
    %c512 = arith.constant 512 : index
    %c0_6 = arith.constant 0 : index
    %20 = vector.load %arg15[%c512, %c0_6] : memref<1024x8xf32, #tpu.memory_space<vmem>>, vector<64x7xf32>
    tpu.vector_store %arg15[%c512, %c0_6], %19 {strides = array<i32>} : memref<1024x8xf32, #tpu.memory_space<vmem>>, vector<64x7xf32>,
    %21 = vector.extract_strided_slice %1 {offsets = [0, 2], sizes = [64, 6], strides = [1, 1]} : vector<64x8xf32> to vector<64x6xf32>
    %c576 = arith.constant 576 : index
    %c0_7 = arith.constant 0 : index
    %22 = vector.load %arg15[%c576, %c0_7] : memref<1024x8xf32, #tpu.memory_space<vmem>>, vector<64x6xf32>
    tpu.vector_store %arg15[%c576, %c0_7], %21 {strides = array<i32>} : memref<1024x8xf32, #tpu.memory_space<vmem>>, vector<64x6xf32>,
    %23 = vector.extract_strided_slice %1 {offsets = [0, 3], sizes = [64, 5], strides = [1, 1]} : vector<64x8xf32> to vector<64x5xf32>
    %c640 = arith.constant 640 : index
    %c0_8 = arith.constant 0 : index
    %24 = vector.load %arg15[%c640, %c0_8] : memref<1024x8xf32, #tpu.memory_space<vmem>>, vector<64x5xf32>
    tpu.vector_store %arg15[%c640, %c0_8], %23 {strides = array<i32>} : memref<1024x8xf32, #tpu.memory_space<vmem>>, vector<64x5xf32>,
    %25 = vector.extract_strided_slice %1 {offsets = [0, 4], sizes = [64, 4], strides = [1, 1]} : vector<64x8xf32> to vector<64x4xf32>
    %c704 = arith.constant 704 : index
    %c0_9 = arith.constant 0 : index
    %26 = vector.load %arg15[%c704, %c0_9] : memref<1024x8xf32, #tpu.memory_space<vmem>>, vector<64x4xf32>
    tpu.vector_store %arg15[%c704, %c0_9], %25 {strides = array<i32>} : memref<1024x8xf32, #tpu.memory_space<vmem>>, vector<64x4xf32>,
    %27 = vector.extract_strided_slice %1 {offsets = [0, 5], sizes = [64, 3], strides = [1, 1]} : vector<64x8xf32> to vector<64x3xf32>
    %c768 = arith.constant 768 : index
    %c0_10 = arith.constant 0 : index
    %28 = vector.load %arg15[%c768, %c0_10] : memref<1024x8xf32, #tpu.memory_space<vmem>>, vector<64x3xf32>
    tpu.vector_store %arg15[%c768, %c0_10], %27 {strides = array<i32>} : memref<1024x8xf32, #tpu.memory_space<vmem>>, vector<64x3xf32>,
    %29 = vector.extract_strided_slice %1 {offsets = [0, 6], sizes = [64, 2], strides = [1, 1]} : vector<64x8xf32> to vector<64x2xf32>
    %c832 = arith.constant 832 : index
    %c0_11 = arith.constant 0 : index
    %30 = vector.load %arg15[%c832, %c0_11] : memref<1024x8xf32, #tpu.memory_space<vmem>>, vector<64x2xf32>
    tpu.vector_store %arg15[%c832, %c0_11], %29 {strides = array<i32>} : memref<1024x8xf32, #tpu.memory_space<vmem>>, vector<64x2xf32>,
    %31 = vector.extract_strided_slice %1 {offsets = [0, 7], sizes = [64, 1], strides = [1, 1]} : vector<64x8xf32> to vector<64x1xf32>
    %c896 = arith.constant 896 : index
    %c0_12 = arith.constant 0 : index
    %32 = vector.load %arg15[%c896, %c0_12] : memref<1024x8xf32, #tpu.memory_space<vmem>>, vector<64x1xf32>
    tpu.vector_store %arg15[%c896, %c0_12], %31 {strides = array<i32>} : memref<1024x8xf32, #tpu.memory_space<vmem>>, vector<64x1xf32>,
    %c0_13 = arith.constant 0 : index
    %c0_14 = arith.constant 0 : index
    %33 = vector.load %arg2[%c0_13, %c0_14] : memref<64x1024xf32, #tpu.memory_space<vmem>>, vector<64x1024xf32>
    %c0_15 = arith.constant 0 : index
    %c0_16 = arith.constant 0 : index
    %34 = vector.load %arg15[%c0_15, %c0_16] : memref<1024x8xf32, #tpu.memory_space<vmem>>, vector<1024x8xf32>
    %cst_17 = arith.constant dense<0.000000e+00> : vector<64x8xf32>
    %35 = tpu.matmul %33, %34, %cst_17 {dimension_numbers = #tpu.dot_dimension_numbers<[1], [0], [0], [1], [0, 0, 1, 1], [], []>} : vector<64x1024xf32>, vector<1024x8xf32>, vector<64x8xf32> -> vector<64x8xf32>
    %c0_18 = arith.constant 0 : index
    %c0_19 = arith.constant 0 : index
    %36 = vector.load %arg3[%c0_18, %c0_19] : memref<64x1xf32, #tpu.memory_space<vmem>>, vector<64x1xf32>
    %37 = vector.broadcast %36 : vector<64x1xf32> to vector<64x8xf32>
    %38 = arith.addf %35, %37 : vector<64x8xf32>
    %cst_20 = arith.constant 0.000000e+00 : f32
    %39 = vector.broadcast %cst_20 : f32 to vector<64x8xf32>
    %40 = arith.cmpf oge, %38, %39 : vector<64x8xf32>
    %cst_21 = arith.constant 0.00999999977 : f32
    %41 = vector.broadcast %cst_21 : f32 to vector<64x8xf32>
    %42 = arith.mulf %41, %38 : vector<64x8xf32>
    %43 = arith.select %40, %38, %42 : vector<64x8xi1>, vector<64x8xf32>
    %cst_22 = arith.constant 0.000000e+00 : f32
    %44 = vector.broadcast %cst_22 : f32 to vector<1024x8xf32>
    %c0_23 = arith.constant 0 : index
    %c0_24 = arith.constant 0 : index
    %45 = vector.load %arg16[%c0_23, %c0_24] : memref<1024x8xf32, #tpu.memory_space<vmem>>, vector<1024x8xf32>
    tpu.vector_store %arg16[%c0_23, %c0_24], %44 {strides = array<i32>} : memref<1024x8xf32, #tpu.memory_space<vmem>>, vector<1024x8xf32>,
    %46 = vector.extract_strided_slice %43 {offsets = [0, 0], sizes = [64, 1], strides = [1, 1]} : vector<64x8xf32> to vector<64x1xf32>
    %c0_25 = arith.constant 0 : index
    %c7_26 = arith.constant 7 : index
    %47 = vector.load %arg16[%c0_25, %c7_26] : memref<1024x8xf32, #tpu.memory_space<vmem>>, vector<64x1xf32>
    tpu.vector_store %arg16[%c0_25, %c7_26], %46 {strides = array<i32>} : memref<1024x8xf32, #tpu.memory_space<vmem>>, vector<64x1xf32>,
    %48 = vector.extract_strided_slice %43 {offsets = [0, 0], sizes = [64, 2], strides = [1, 1]} : vector<64x8xf32> to vector<64x2xf32>
    %c64_27 = arith.constant 64 : index
    %c6_28 = arith.constant 6 : index
    %49 = vector.load %arg16[%c64_27, %c6_28] : memref<1024x8xf32, #tpu.memory_space<vmem>>, vector<64x2xf32>
    tpu.vector_store %arg16[%c64_27, %c6_28], %48 {strides = array<i32>} : memref<1024x8xf32, #tpu.memory_space<vmem>>, vector<64x2xf32>,
    %50 = vector.extract_strided_slice %43 {offsets = [0, 0], sizes = [64, 3], strides = [1, 1]} : vector<64x8xf32> to vector<64x3xf32>
    %c128_29 = arith.constant 128 : index
    %c5_30 = arith.constant 5 : index
    %51 = vector.load %arg16[%c128_29, %c5_30] : memref<1024x8xf32, #tpu.memory_space<vmem>>, vector<64x3xf32>
    tpu.vector_store %arg16[%c128_29, %c5_30], %50 {strides = array<i32>} : memref<1024x8xf32, #tpu.memory_space<vmem>>, vector<64x3xf32>,
    %52 = vector.extract_strided_slice %43 {offsets = [0, 0], sizes = [64, 4], strides = [1, 1]} : vector<64x8xf32> to vector<64x4xf32>
    %c192_31 = arith.constant 192 : index
    %c4_32 = arith.constant 4 : index
    %53 = vector.load %arg16[%c192_31, %c4_32] : memref<1024x8xf32, #tpu.memory_space<vmem>>, vector<64x4xf32>
    tpu.vector_store %arg16[%c192_31, %c4_32], %52 {strides = array<i32>} : memref<1024x8xf32, #tpu.memory_space<vmem>>, vector<64x4xf32>,
    %54 = vector.extract_strided_slice %43 {offsets = [0, 0], sizes = [64, 5], strides = [1, 1]} : vector<64x8xf32> to vector<64x5xf32>
    %c256_33 = arith.constant 256 : index
    %c3_34 = arith.constant 3 : index
    %55 = vector.load %arg16[%c256_33, %c3_34] : memref<1024x8xf32, #tpu.memory_space<vmem>>, vector<64x5xf32>
    tpu.vector_store %arg16[%c256_33, %c3_34], %54 {strides = array<i32>} : memref<1024x8xf32, #tpu.memory_space<vmem>>, vector<64x5xf32>,
    %56 = vector.extract_strided_slice %43 {offsets = [0, 0], sizes = [64, 6], strides = [1, 1]} : vector<64x8xf32> to vector<64x6xf32>
    %c320_35 = arith.constant 320 : index
    %c2_36 = arith.constant 2 : index
    %57 = vector.load %arg16[%c320_35, %c2_36] : memref<1024x8xf32, #tpu.memory_space<vmem>>, vector<64x6xf32>
    tpu.vector_store %arg16[%c320_35, %c2_36], %56 {strides = array<i32>} : memref<1024x8xf32, #tpu.memory_space<vmem>>, vector<64x6xf32>,
    %58 = vector.extract_strided_slice %43 {offsets = [0, 0], sizes = [64, 7], strides = [1, 1]} : vector<64x8xf32> to vector<64x7xf32>
    %c384_37 = arith.constant 384 : index
    %c1_38 = arith.constant 1 : index
    %59 = vector.load %arg16[%c384_37, %c1_38] : memref<1024x8xf32, #tpu.memory_space<vmem>>, vector<64x7xf32>
    tpu.vector_store %arg16[%c384_37, %c1_38], %58 {strides = array<i32>} : memref<1024x8xf32, #tpu.memory_space<vmem>>, vector<64x7xf32>,
    %c448_39 = arith.constant 448 : index
    %c0_40 = arith.constant 0 : index
    %60 = vector.load %arg16[%c448_39, %c0_40] : memref<1024x8xf32, #tpu.memory_space<vmem>>, vector<64x8xf32>
    tpu.vector_store %arg16[%c448_39, %c0_40], %43 {strides = array<i32>} : memref<1024x8xf32, #tpu.memory_space<vmem>>, vector<64x8xf32>,
    %61 = vector.extract_strided_slice %43 {offsets = [0, 1], sizes = [64, 7], strides = [1, 1]} : vector<64x8xf32> to vector<64x7xf32>
    %c512_41 = arith.constant 512 : index
    %c0_42 = arith.constant 0 : index
    %62 = vector.load %arg16[%c512_41, %c0_42] : memref<1024x8xf32, #tpu.memory_space<vmem>>, vector<64x7xf32>
    tpu.vector_store %arg16[%c512_41, %c0_42], %61 {strides = array<i32>} : memref<1024x8xf32, #tpu.memory_space<vmem>>, vector<64x7xf32>,
    %63 = vector.extract_strided_slice %43 {offsets = [0, 2], sizes = [64, 6], strides = [1, 1]} : vector<64x8xf32> to vector<64x6xf32>
    %c576_43 = arith.constant 576 : index
    %c0_44 = arith.constant 0 : index
    %64 = vector.load %arg16[%c576_43, %c0_44] : memref<1024x8xf32, #tpu.memory_space<vmem>>, vector<64x6xf32>
    tpu.vector_store %arg16[%c576_43, %c0_44], %63 {strides = array<i32>} : memref<1024x8xf32, #tpu.memory_space<vmem>>, vector<64x6xf32>,
    %65 = vector.extract_strided_slice %43 {offsets = [0, 3], sizes = [64, 5], strides = [1, 1]} : vector<64x8xf32> to vector<64x5xf32>
    %c640_45 = arith.constant 640 : index
    %c0_46 = arith.constant 0 : index
    %66 = vector.load %arg16[%c640_45, %c0_46] : memref<1024x8xf32, #tpu.memory_space<vmem>>, vector<64x5xf32>
    tpu.vector_store %arg16[%c640_45, %c0_46], %65 {strides = array<i32>} : memref<1024x8xf32, #tpu.memory_space<vmem>>, vector<64x5xf32>,
    %67 = vector.extract_strided_slice %43 {offsets = [0, 4], sizes = [64, 4], strides = [1, 1]} : vector<64x8xf32> to vector<64x4xf32>
    %c704_47 = arith.constant 704 : index
    %c0_48 = arith.constant 0 : index
    %68 = vector.load %arg16[%c704_47, %c0_48] : memref<1024x8xf32, #tpu.memory_space<vmem>>, vector<64x4xf32>
    tpu.vector_store %arg16[%c704_47, %c0_48], %67 {strides = array<i32>} : memref<1024x8xf32, #tpu.memory_space<vmem>>, vector<64x4xf32>,
    %69 = vector.extract_strided_slice %43 {offsets = [0, 5], sizes = [64, 3], strides = [1, 1]} : vector<64x8xf32> to vector<64x3xf32>
    %c768_49 = arith.constant 768 : index
    %c0_50 = arith.constant 0 : index
    %70 = vector.load %arg16[%c768_49, %c0_50] : memref<1024x8xf32, #tpu.memory_space<vmem>>, vector<64x3xf32>
    tpu.vector_store %arg16[%c768_49, %c0_50], %69 {strides = array<i32>} : memref<1024x8xf32, #tpu.memory_space<vmem>>, vector<64x3xf32>,
    %71 = vector.extract_strided_slice %43 {offsets = [0, 6], sizes = [64, 2], strides = [1, 1]} : vector<64x8xf32> to vector<64x2xf32>
    %c832_51 = arith.constant 832 : index
    %c0_52 = arith.constant 0 : index
    %72 = vector.load %arg16[%c832_51, %c0_52] : memref<1024x8xf32, #tpu.memory_space<vmem>>, vector<64x2xf32>
    tpu.vector_store %arg16[%c832_51, %c0_52], %71 {strides = array<i32>} : memref<1024x8xf32, #tpu.memory_space<vmem>>, vector<64x2xf32>,
    %73 = vector.extract_strided_slice %43 {offsets = [0, 7], sizes = [64, 1], strides = [1, 1]} : vector<64x8xf32> to vector<64x1xf32>
    %c896_53 = arith.constant 896 : index
    %c0_54 = arith.constant 0 : index
    %74 = vector.load %arg16[%c896_53, %c0_54] : memref<1024x8xf32, #tpu.memory_space<vmem>>, vector<64x1xf32>
    tpu.vector_store %arg16[%c896_53, %c0_54], %73 {strides = array<i32>} : memref<1024x8xf32, #tpu.memory_space<vmem>>, vector<64x1xf32>,
    %c0_55 = arith.constant 0 : index
    %c0_56 = arith.constant 0 : index
    %75 = vector.load %arg4[%c0_55, %c0_56] : memref<32x1024xf32, #tpu.memory_space<vmem>>, vector<32x1024xf32>
    %c0_57 = arith.constant 0 : index
    %c0_58 = arith.constant 0 : index
    %76 = vector.load %arg16[%c0_57, %c0_58] : memref<1024x8xf32, #tpu.memory_space<vmem>>, vector<1024x8xf32>
    %cst_59 = arith.constant dense<0.000000e+00> : vector<32x8xf32>
    %77 = tpu.matmul %75, %76, %cst_59 {dimension_numbers = #tpu.dot_dimension_numbers<[1], [0], [0], [1], [0, 0, 1, 1], [], []>} : vector<32x1024xf32>, vector<1024x8xf32>, vector<32x8xf32> -> vector<32x8xf32>
    %c0_60 = arith.constant 0 : index
    %c0_61 = arith.constant 0 : index
    %78 = vector.load %arg5[%c0_60, %c0_61] : memref<32x1xf32, #tpu.memory_space<vmem>>, vector<32x1xf32>
    %79 = vector.broadcast %78 : vector<32x1xf32> to vector<32x8xf32>
    %80 = arith.addf %77, %79 : vector<32x8xf32>
    %cst_62 = arith.constant 0.000000e+00 : f32
    %81 = vector.broadcast %cst_62 : f32 to vector<32x8xf32>
    %82 = arith.cmpf oge, %80, %81 : vector<32x8xf32>
    %cst_63 = arith.constant 0.00999999977 : f32
    %83 = vector.broadcast %cst_63 : f32 to vector<32x8xf32>
    %84 = arith.mulf %83, %80 : vector<32x8xf32>
    %85 = arith.select %82, %80, %84 : vector<32x8xi1>, vector<32x8xf32>
    %c0_64 = arith.constant 0 : index
    %c0_65 = arith.constant 0 : index
    %86 = vector.load %arg12[%c0_64, %c0_65] : memref<8x16xf32, #tpu.memory_space<vmem>>, vector<8x16xf32>
    %cst_66 = arith.constant dense<0.000000e+00> : vector<32x16xf32>
    %87 = tpu.matmul %85, %86, %cst_66 {dimension_numbers = #tpu.dot_dimension_numbers<[1], [0], [0], [1], [0, 0, 1, 1], [], []>} : vector<32x8xf32>, vector<8x16xf32>, vector<32x16xf32> -> vector<32x16xf32>
    %cst_67 = arith.constant 0.000000e+00 : f32
    %88 = vector.broadcast %cst_67 : f32 to vector<512x16xf32>
    %c0_68 = arith.constant 0 : index
    %c0_69 = arith.constant 0 : index
    %89 = vector.load %arg17[%c0_68, %c0_69] : memref<512x16xf32, #tpu.memory_space<vmem>>, vector<512x16xf32>
    tpu.vector_store %arg17[%c0_68, %c0_69], %88 {strides = array<i32>} : memref<512x16xf32, #tpu.memory_space<vmem>>, vector<512x16xf32>,
    %90 = vector.extract_strided_slice %87 {offsets = [0, 0], sizes = [32, 9], strides = [1, 1]} : vector<32x16xf32> to vector<32x9xf32>
    %c0_70 = arith.constant 0 : index
    %c7_71 = arith.constant 7 : index
    %91 = vector.load %arg17[%c0_70, %c7_71] : memref<512x16xf32, #tpu.memory_space<vmem>>, vector<32x9xf32>
    tpu.vector_store %arg17[%c0_70, %c7_71], %90 {strides = array<i32>} : memref<512x16xf32, #tpu.memory_space<vmem>>, vector<32x9xf32>,
    %92 = vector.extract_strided_slice %87 {offsets = [0, 0], sizes = [32, 10], strides = [1, 1]} : vector<32x16xf32> to vector<32x10xf32>
    %c32 = arith.constant 32 : index
    %c6_72 = arith.constant 6 : index
    %93 = vector.load %arg17[%c32, %c6_72] : memref<512x16xf32, #tpu.memory_space<vmem>>, vector<32x10xf32>
    tpu.vector_store %arg17[%c32, %c6_72], %92 {strides = array<i32>} : memref<512x16xf32, #tpu.memory_space<vmem>>, vector<32x10xf32>,
    %94 = vector.extract_strided_slice %87 {offsets = [0, 0], sizes = [32, 11], strides = [1, 1]} : vector<32x16xf32> to vector<32x11xf32>
    %c64_73 = arith.constant 64 : index
    %c5_74 = arith.constant 5 : index
    %95 = vector.load %arg17[%c64_73, %c5_74] : memref<512x16xf32, #tpu.memory_space<vmem>>, vector<32x11xf32>
    tpu.vector_store %arg17[%c64_73, %c5_74], %94 {strides = array<i32>} : memref<512x16xf32, #tpu.memory_space<vmem>>, vector<32x11xf32>,
    %96 = vector.extract_strided_slice %87 {offsets = [0, 0], sizes = [32, 12], strides = [1, 1]} : vector<32x16xf32> to vector<32x12xf32>
    %c96 = arith.constant 96 : index
    %c4_75 = arith.constant 4 : index
    %97 = vector.load %arg17[%c96, %c4_75] : memref<512x16xf32, #tpu.memory_space<vmem>>, vector<32x12xf32>
    tpu.vector_store %arg17[%c96, %c4_75], %96 {strides = array<i32>} : memref<512x16xf32, #tpu.memory_space<vmem>>, vector<32x12xf32>,
    %98 = vector.extract_strided_slice %87 {offsets = [0, 0], sizes = [32, 13], strides = [1, 1]} : vector<32x16xf32> to vector<32x13xf32>
    %c128_76 = arith.constant 128 : index
    %c3_77 = arith.constant 3 : index
    %99 = vector.load %arg17[%c128_76, %c3_77] : memref<512x16xf32, #tpu.memory_space<vmem>>, vector<32x13xf32>
    tpu.vector_store %arg17[%c128_76, %c3_77], %98 {strides = array<i32>} : memref<512x16xf32, #tpu.memory_space<vmem>>, vector<32x13xf32>,
    %100 = vector.extract_strided_slice %87 {offsets = [0, 0], sizes = [32, 14], strides = [1, 1]} : vector<32x16xf32> to vector<32x14xf32>
    %c160 = arith.constant 160 : index
    %c2_78 = arith.constant 2 : index
    %101 = vector.load %arg17[%c160, %c2_78] : memref<512x16xf32, #tpu.memory_space<vmem>>, vector<32x14xf32>
    tpu.vector_store %arg17[%c160, %c2_78], %100 {strides = array<i32>} : memref<512x16xf32, #tpu.memory_space<vmem>>, vector<32x14xf32>,
    %102 = vector.extract_strided_slice %87 {offsets = [0, 0], sizes = [32, 15], strides = [1, 1]} : vector<32x16xf32> to vector<32x15xf32>
    %c192_79 = arith.constant 192 : index
    %c1_80 = arith.constant 1 : index
    %103 = vector.load %arg17[%c192_79, %c1_80] : memref<512x16xf32, #tpu.memory_space<vmem>>, vector<32x15xf32>
    tpu.vector_store %arg17[%c192_79, %c1_80], %102 {strides = array<i32>} : memref<512x16xf32, #tpu.memory_space<vmem>>, vector<32x15xf32>,
    %c224 = arith.constant 224 : index
    %c0_81 = arith.constant 0 : index
    %104 = vector.load %arg17[%c224, %c0_81] : memref<512x16xf32, #tpu.memory_space<vmem>>, vector<32x16xf32>
    tpu.vector_store %arg17[%c224, %c0_81], %87 {strides = array<i32>} : memref<512x16xf32, #tpu.memory_space<vmem>>, vector<32x16xf32>,
    %105 = vector.extract_strided_slice %87 {offsets = [0, 1], sizes = [32, 15], strides = [1, 1]} : vector<32x16xf32> to vector<32x15xf32>
    %c256_82 = arith.constant 256 : index
    %c0_83 = arith.constant 0 : index
    %106 = vector.load %arg17[%c256_82, %c0_83] : memref<512x16xf32, #tpu.memory_space<vmem>>, vector<32x15xf32>
    tpu.vector_store %arg17[%c256_82, %c0_83], %105 {strides = array<i32>} : memref<512x16xf32, #tpu.memory_space<vmem>>, vector<32x15xf32>,
    %107 = vector.extract_strided_slice %87 {offsets = [0, 2], sizes = [32, 14], strides = [1, 1]} : vector<32x16xf32> to vector<32x14xf32>
    %c288 = arith.constant 288 : index
    %c0_84 = arith.constant 0 : index
    %108 = vector.load %arg17[%c288, %c0_84] : memref<512x16xf32, #tpu.memory_space<vmem>>, vector<32x14xf32>
    tpu.vector_store %arg17[%c288, %c0_84], %107 {strides = array<i32>} : memref<512x16xf32, #tpu.memory_space<vmem>>, vector<32x14xf32>,
    %109 = vector.extract_strided_slice %87 {offsets = [0, 3], sizes = [32, 13], strides = [1, 1]} : vector<32x16xf32> to vector<32x13xf32>
    %c320_85 = arith.constant 320 : index
    %c0_86 = arith.constant 0 : index
    %110 = vector.load %arg17[%c320_85, %c0_86] : memref<512x16xf32, #tpu.memory_space<vmem>>, vector<32x13xf32>
    tpu.vector_store %arg17[%c320_85, %c0_86], %109 {strides = array<i32>} : memref<512x16xf32, #tpu.memory_space<vmem>>, vector<32x13xf32>,
    %111 = vector.extract_strided_slice %87 {offsets = [0, 4], sizes = [32, 12], strides = [1, 1]} : vector<32x16xf32> to vector<32x12xf32>
    %c352 = arith.constant 352 : index
    %c0_87 = arith.constant 0 : index
    %112 = vector.load %arg17[%c352, %c0_87] : memref<512x16xf32, #tpu.memory_space<vmem>>, vector<32x12xf32>
    tpu.vector_store %arg17[%c352, %c0_87], %111 {strides = array<i32>} : memref<512x16xf32, #tpu.memory_space<vmem>>, vector<32x12xf32>,
    %113 = vector.extract_strided_slice %87 {offsets = [0, 5], sizes = [32, 11], strides = [1, 1]} : vector<32x16xf32> to vector<32x11xf32>
    %c384_88 = arith.constant 384 : index
    %c0_89 = arith.constant 0 : index
    %114 = vector.load %arg17[%c384_88, %c0_89] : memref<512x16xf32, #tpu.memory_space<vmem>>, vector<32x11xf32>
    tpu.vector_store %arg17[%c384_88, %c0_89], %113 {strides = array<i32>} : memref<512x16xf32, #tpu.memory_space<vmem>>, vector<32x11xf32>,
    %115 = vector.extract_strided_slice %87 {offsets = [0, 6], sizes = [32, 10], strides = [1, 1]} : vector<32x16xf32> to vector<32x10xf32>
    %c416 = arith.constant 416 : index
    %c0_90 = arith.constant 0 : index
    %116 = vector.load %arg17[%c416, %c0_90] : memref<512x16xf32, #tpu.memory_space<vmem>>, vector<32x10xf32>
    tpu.vector_store %arg17[%c416, %c0_90], %115 {strides = array<i32>} : memref<512x16xf32, #tpu.memory_space<vmem>>, vector<32x10xf32>,
    %117 = vector.extract_strided_slice %87 {offsets = [0, 7], sizes = [32, 9], strides = [1, 1]} : vector<32x16xf32> to vector<32x9xf32>
    %c448_91 = arith.constant 448 : index
    %c0_92 = arith.constant 0 : index
    %118 = vector.load %arg17[%c448_91, %c0_92] : memref<512x16xf32, #tpu.memory_space<vmem>>, vector<32x9xf32>
    tpu.vector_store %arg17[%c448_91, %c0_92], %117 {strides = array<i32>} : memref<512x16xf32, #tpu.memory_space<vmem>>, vector<32x9xf32>,
    %119 = vector.extract_strided_slice %87 {offsets = [0, 8], sizes = [32, 8], strides = [1, 1]} : vector<32x16xf32> to vector<32x8xf32>
    %c480 = arith.constant 480 : index
    %c0_93 = arith.constant 0 : index
    %120 = vector.load %arg17[%c480, %c0_93] : memref<512x16xf32, #tpu.memory_space<vmem>>, vector<32x8xf32>
    tpu.vector_store %arg17[%c480, %c0_93], %119 {strides = array<i32>} : memref<512x16xf32, #tpu.memory_space<vmem>>, vector<32x8xf32>,
    %c0_94 = arith.constant 0 : index
    %c0_95 = arith.constant 0 : index
    %121 = vector.load %arg6[%c0_94, %c0_95] : memref<16x512xf32, #tpu.memory_space<vmem>>, vector<16x512xf32>
    %c0_96 = arith.constant 0 : index
    %c0_97 = arith.constant 0 : index
    %122 = vector.load %arg17[%c0_96, %c0_97] : memref<512x16xf32, #tpu.memory_space<vmem>>, vector<512x16xf32>
    %cst_98 = arith.constant dense<0.000000e+00> : vector<16x16xf32>
    %123 = tpu.matmul %121, %122, %cst_98 {dimension_numbers = #tpu.dot_dimension_numbers<[1], [0], [0], [1], [0, 0, 1, 1], [], []>} : vector<16x512xf32>, vector<512x16xf32>, vector<16x16xf32> -> vector<16x16xf32>
    %c0_99 = arith.constant 0 : index
    %c0_100 = arith.constant 0 : index
    %124 = vector.load %arg7[%c0_99, %c0_100] : memref<16x1xf32, #tpu.memory_space<vmem>>, vector<16x1xf32>
    %125 = vector.broadcast %124 : vector<16x1xf32> to vector<16x16xf32>
    %126 = arith.addf %123, %125 : vector<16x16xf32>
    %cst_101 = arith.constant 0.000000e+00 : f32
    %127 = vector.broadcast %cst_101 : f32 to vector<16x16xf32>
    %128 = arith.cmpf oge, %126, %127 : vector<16x16xf32>
    %cst_102 = arith.constant 0.00999999977 : f32
    %129 = vector.broadcast %cst_102 : f32 to vector<16x16xf32>
    %130 = arith.mulf %129, %126 : vector<16x16xf32>
    %131 = arith.select %128, %126, %130 : vector<16x16xi1>, vector<16x16xf32>
    %cst_103 = arith.constant 0.000000e+00 : f32
    %132 = vector.broadcast %cst_103 : f32 to vector<256x16xf32>
    %c0_104 = arith.constant 0 : index
    %c0_105 = arith.constant 0 : index
    %133 = vector.load %arg18[%c0_104, %c0_105] : memref<256x16xf32, #tpu.memory_space<vmem>>, vector<256x16xf32>
    tpu.vector_store %arg18[%c0_104, %c0_105], %132 {strides = array<i32>} : memref<256x16xf32, #tpu.memory_space<vmem>>, vector<256x16xf32>,
    %134 = vector.extract_strided_slice %131 {offsets = [0, 0], sizes = [16, 9], strides = [1, 1]} : vector<16x16xf32> to vector<16x9xf32>
    %c0_106 = arith.constant 0 : index
    %c7_107 = arith.constant 7 : index
    %135 = vector.load %arg18[%c0_106, %c7_107] : memref<256x16xf32, #tpu.memory_space<vmem>>, vector<16x9xf32>
    tpu.vector_store %arg18[%c0_106, %c7_107], %134 {strides = array<i32>} : memref<256x16xf32, #tpu.memory_space<vmem>>, vector<16x9xf32>,
    %136 = vector.extract_strided_slice %131 {offsets = [0, 0], sizes = [16, 10], strides = [1, 1]} : vector<16x16xf32> to vector<16x10xf32>
    %c16 = arith.constant 16 : index
    %c6_108 = arith.constant 6 : index
    %137 = vector.load %arg18[%c16, %c6_108] : memref<256x16xf32, #tpu.memory_space<vmem>>, vector<16x10xf32>
    tpu.vector_store %arg18[%c16, %c6_108], %136 {strides = array<i32>} : memref<256x16xf32, #tpu.memory_space<vmem>>, vector<16x10xf32>,
    %138 = vector.extract_strided_slice %131 {offsets = [0, 0], sizes = [16, 11], strides = [1, 1]} : vector<16x16xf32> to vector<16x11xf32>
    %c32_109 = arith.constant 32 : index
    %c5_110 = arith.constant 5 : index
    %139 = vector.load %arg18[%c32_109, %c5_110] : memref<256x16xf32, #tpu.memory_space<vmem>>, vector<16x11xf32>
    tpu.vector_store %arg18[%c32_109, %c5_110], %138 {strides = array<i32>} : memref<256x16xf32, #tpu.memory_space<vmem>>, vector<16x11xf32>,
    %140 = vector.extract_strided_slice %131 {offsets = [0, 0], sizes = [16, 12], strides = [1, 1]} : vector<16x16xf32> to vector<16x12xf32>
    %c48 = arith.constant 48 : index
    %c4_111 = arith.constant 4 : index
    %141 = vector.load %arg18[%c48, %c4_111] : memref<256x16xf32, #tpu.memory_space<vmem>>, vector<16x12xf32>
    tpu.vector_store %arg18[%c48, %c4_111], %140 {strides = array<i32>} : memref<256x16xf32, #tpu.memory_space<vmem>>, vector<16x12xf32>,
    %142 = vector.extract_strided_slice %131 {offsets = [0, 0], sizes = [16, 13], strides = [1, 1]} : vector<16x16xf32> to vector<16x13xf32>
    %c64_112 = arith.constant 64 : index
    %c3_113 = arith.constant 3 : index
    %143 = vector.load %arg18[%c64_112, %c3_113] : memref<256x16xf32, #tpu.memory_space<vmem>>, vector<16x13xf32>
    tpu.vector_store %arg18[%c64_112, %c3_113], %142 {strides = array<i32>} : memref<256x16xf32, #tpu.memory_space<vmem>>, vector<16x13xf32>,
    %144 = vector.extract_strided_slice %131 {offsets = [0, 0], sizes = [16, 14], strides = [1, 1]} : vector<16x16xf32> to vector<16x14xf32>
    %c80 = arith.constant 80 : index
    %c2_114 = arith.constant 2 : index
    %145 = vector.load %arg18[%c80, %c2_114] : memref<256x16xf32, #tpu.memory_space<vmem>>, vector<16x14xf32>
    tpu.vector_store %arg18[%c80, %c2_114], %144 {strides = array<i32>} : memref<256x16xf32, #tpu.memory_space<vmem>>, vector<16x14xf32>,
    %146 = vector.extract_strided_slice %131 {offsets = [0, 0], sizes = [16, 15], strides = [1, 1]} : vector<16x16xf32> to vector<16x15xf32>
    %c96_115 = arith.constant 96 : index
    %c1_116 = arith.constant 1 : index
    %147 = vector.load %arg18[%c96_115, %c1_116] : memref<256x16xf32, #tpu.memory_space<vmem>>, vector<16x15xf32>
    tpu.vector_store %arg18[%c96_115, %c1_116], %146 {strides = array<i32>} : memref<256x16xf32, #tpu.memory_space<vmem>>, vector<16x15xf32>,
    %c112 = arith.constant 112 : index
    %c0_117 = arith.constant 0 : index
    %148 = vector.load %arg18[%c112, %c0_117] : memref<256x16xf32, #tpu.memory_space<vmem>>, vector<16x16xf32>
    tpu.vector_store %arg18[%c112, %c0_117], %131 {strides = array<i32>} : memref<256x16xf32, #tpu.memory_space<vmem>>, vector<16x16xf32>,
    %149 = vector.extract_strided_slice %131 {offsets = [0, 1], sizes = [16, 15], strides = [1, 1]} : vector<16x16xf32> to vector<16x15xf32>
    %c128_118 = arith.constant 128 : index
    %c0_119 = arith.constant 0 : index
    %150 = vector.load %arg18[%c128_118, %c0_119] : memref<256x16xf32, #tpu.memory_space<vmem>>, vector<16x15xf32>
    tpu.vector_store %arg18[%c128_118, %c0_119], %149 {strides = array<i32>} : memref<256x16xf32, #tpu.memory_space<vmem>>, vector<16x15xf32>,
    %151 = vector.extract_strided_slice %131 {offsets = [0, 2], sizes = [16, 14], strides = [1, 1]} : vector<16x16xf32> to vector<16x14xf32>
    %c144 = arith.constant 144 : index
    %c0_120 = arith.constant 0 : index
    %152 = vector.load %arg18[%c144, %c0_120] : memref<256x16xf32, #tpu.memory_space<vmem>>, vector<16x14xf32>
    tpu.vector_store %arg18[%c144, %c0_120], %151 {strides = array<i32>} : memref<256x16xf32, #tpu.memory_space<vmem>>, vector<16x14xf32>,
    %153 = vector.extract_strided_slice %131 {offsets = [0, 3], sizes = [16, 13], strides = [1, 1]} : vector<16x16xf32> to vector<16x13xf32>
    %c160_121 = arith.constant 160 : index
    %c0_122 = arith.constant 0 : index
    %154 = vector.load %arg18[%c160_121, %c0_122] : memref<256x16xf32, #tpu.memory_space<vmem>>, vector<16x13xf32>
    tpu.vector_store %arg18[%c160_121, %c0_122], %153 {strides = array<i32>} : memref<256x16xf32, #tpu.memory_space<vmem>>, vector<16x13xf32>,
    %155 = vector.extract_strided_slice %131 {offsets = [0, 4], sizes = [16, 12], strides = [1, 1]} : vector<16x16xf32> to vector<16x12xf32>
    %c176 = arith.constant 176 : index
    %c0_123 = arith.constant 0 : index
    %156 = vector.load %arg18[%c176, %c0_123] : memref<256x16xf32, #tpu.memory_space<vmem>>, vector<16x12xf32>
    tpu.vector_store %arg18[%c176, %c0_123], %155 {strides = array<i32>} : memref<256x16xf32, #tpu.memory_space<vmem>>, vector<16x12xf32>,
    %157 = vector.extract_strided_slice %131 {offsets = [0, 5], sizes = [16, 11], strides = [1, 1]} : vector<16x16xf32> to vector<16x11xf32>
    %c192_124 = arith.constant 192 : index
    %c0_125 = arith.constant 0 : index
    %158 = vector.load %arg18[%c192_124, %c0_125] : memref<256x16xf32, #tpu.memory_space<vmem>>, vector<16x11xf32>
    tpu.vector_store %arg18[%c192_124, %c0_125], %157 {strides = array<i32>} : memref<256x16xf32, #tpu.memory_space<vmem>>, vector<16x11xf32>,
    %159 = vector.extract_strided_slice %131 {offsets = [0, 6], sizes = [16, 10], strides = [1, 1]} : vector<16x16xf32> to vector<16x10xf32>
    %c208 = arith.constant 208 : index
    %c0_126 = arith.constant 0 : index
    %160 = vector.load %arg18[%c208, %c0_126] : memref<256x16xf32, #tpu.memory_space<vmem>>, vector<16x10xf32>
    tpu.vector_store %arg18[%c208, %c0_126], %159 {strides = array<i32>} : memref<256x16xf32, #tpu.memory_space<vmem>>, vector<16x10xf32>,
    %161 = vector.extract_strided_slice %131 {offsets = [0, 7], sizes = [16, 9], strides = [1, 1]} : vector<16x16xf32> to vector<16x9xf32>
    %c224_127 = arith.constant 224 : index
    %c0_128 = arith.constant 0 : index
    %162 = vector.load %arg18[%c224_127, %c0_128] : memref<256x16xf32, #tpu.memory_space<vmem>>, vector<16x9xf32>
    tpu.vector_store %arg18[%c224_127, %c0_128], %161 {strides = array<i32>} : memref<256x16xf32, #tpu.memory_space<vmem>>, vector<16x9xf32>,
    %163 = vector.extract_strided_slice %131 {offsets = [0, 8], sizes = [16, 8], strides = [1, 1]} : vector<16x16xf32> to vector<16x8xf32>
    %c240 = arith.constant 240 : index
    %c0_129 = arith.constant 0 : index
    %164 = vector.load %arg18[%c240, %c0_129] : memref<256x16xf32, #tpu.memory_space<vmem>>, vector<16x8xf32>
    tpu.vector_store %arg18[%c240, %c0_129], %163 {strides = array<i32>} : memref<256x16xf32, #tpu.memory_space<vmem>>, vector<16x8xf32>,
    %c0_130 = arith.constant 0 : index
    %c0_131 = arith.constant 0 : index
    %165 = vector.load %arg8[%c0_130, %c0_131] : memref<8x256xf32, #tpu.memory_space<vmem>>, vector<8x256xf32>
    %c0_132 = arith.constant 0 : index
    %c0_133 = arith.constant 0 : index
    %166 = vector.load %arg18[%c0_132, %c0_133] : memref<256x16xf32, #tpu.memory_space<vmem>>, vector<256x16xf32>
    %cst_134 = arith.constant dense<0.000000e+00> : vector<8x16xf32>
    %167 = tpu.matmul %165, %166, %cst_134 {dimension_numbers = #tpu.dot_dimension_numbers<[1], [0], [0], [1], [0, 0, 1, 1], [], []>} : vector<8x256xf32>, vector<256x16xf32>, vector<8x16xf32> -> vector<8x16xf32>
    %c0_135 = arith.constant 0 : index
    %c0_136 = arith.constant 0 : index
    %168 = vector.load %arg9[%c0_135, %c0_136] : memref<8x1xf32, #tpu.memory_space<vmem>>, vector<8x1xf32>
    %169 = vector.broadcast %168 : vector<8x1xf32> to vector<8x16xf32>
    %170 = arith.addf %167, %169 : vector<8x16xf32>
    %cst_137 = arith.constant 0.000000e+00 : f32
    %171 = vector.broadcast %cst_137 : f32 to vector<8x16xf32>
    %172 = arith.cmpf oge, %170, %171 : vector<8x16xf32>
    %cst_138 = arith.constant 0.00999999977 : f32
    %173 = vector.broadcast %cst_138 : f32 to vector<8x16xf32>
    %174 = arith.mulf %173, %170 : vector<8x16xf32>
    %175 = arith.select %172, %170, %174 : vector<8x16xi1>, vector<8x16xf32>
    %c0_139 = arith.constant 0 : index
    %c0_140 = arith.constant 0 : index
    %176 = vector.load %arg13[%c0_139, %c0_140] : memref<16x32xf32, #tpu.memory_space<vmem>>, vector<16x32xf32>
    %cst_141 = arith.constant dense<0.000000e+00> : vector<8x32xf32>
    %177 = tpu.matmul %175, %176, %cst_141 {dimension_numbers = #tpu.dot_dimension_numbers<[1], [0], [0], [1], [0, 0, 1, 1], [], []>} : vector<8x16xf32>, vector<16x32xf32>, vector<8x32xf32> -> vector<8x32xf32>
    %cst_142 = arith.constant 0.000000e+00 : f32
    %178 = vector.broadcast %cst_142 : f32 to vector<128x32xf32>
    %c0_143 = arith.constant 0 : index
    %c0_144 = arith.constant 0 : index
    %179 = vector.load %arg19[%c0_143, %c0_144] : memref<128x32xf32, #tpu.memory_space<vmem>>, vector<128x32xf32>
    tpu.vector_store %arg19[%c0_143, %c0_144], %178 {strides = array<i32>} : memref<128x32xf32, #tpu.memory_space<vmem>>, vector<128x32xf32>,
    %180 = vector.extract_strided_slice %177 {offsets = [0, 0], sizes = [8, 25], strides = [1, 1]} : vector<8x32xf32> to vector<8x25xf32>
    %c0_145 = arith.constant 0 : index
    %c7_146 = arith.constant 7 : index
    %181 = vector.load %arg19[%c0_145, %c7_146] : memref<128x32xf32, #tpu.memory_space<vmem>>, vector<8x25xf32>
    tpu.vector_store %arg19[%c0_145, %c7_146], %180 {strides = array<i32>} : memref<128x32xf32, #tpu.memory_space<vmem>>, vector<8x25xf32>,
    %182 = vector.extract_strided_slice %177 {offsets = [0, 0], sizes = [8, 26], strides = [1, 1]} : vector<8x32xf32> to vector<8x26xf32>
    %c8 = arith.constant 8 : index
    %c6_147 = arith.constant 6 : index
    %183 = vector.load %arg19[%c8, %c6_147] : memref<128x32xf32, #tpu.memory_space<vmem>>, vector<8x26xf32>
    tpu.vector_store %arg19[%c8, %c6_147], %182 {strides = array<i32>} : memref<128x32xf32, #tpu.memory_space<vmem>>, vector<8x26xf32>,
    %184 = vector.extract_strided_slice %177 {offsets = [0, 0], sizes = [8, 27], strides = [1, 1]} : vector<8x32xf32> to vector<8x27xf32>
    %c16_148 = arith.constant 16 : index
    %c5_149 = arith.constant 5 : index
    %185 = vector.load %arg19[%c16_148, %c5_149] : memref<128x32xf32, #tpu.memory_space<vmem>>, vector<8x27xf32>
    tpu.vector_store %arg19[%c16_148, %c5_149], %184 {strides = array<i32>} : memref<128x32xf32, #tpu.memory_space<vmem>>, vector<8x27xf32>,
    %186 = vector.extract_strided_slice %177 {offsets = [0, 0], sizes = [8, 28], strides = [1, 1]} : vector<8x32xf32> to vector<8x28xf32>
    %c24 = arith.constant 24 : index
    %c4_150 = arith.constant 4 : index
    %187 = vector.load %arg19[%c24, %c4_150] : memref<128x32xf32, #tpu.memory_space<vmem>>, vector<8x28xf32>
    tpu.vector_store %arg19[%c24, %c4_150], %186 {strides = array<i32>} : memref<128x32xf32, #tpu.memory_space<vmem>>, vector<8x28xf32>,
    %188 = vector.extract_strided_slice %177 {offsets = [0, 0], sizes = [8, 29], strides = [1, 1]} : vector<8x32xf32> to vector<8x29xf32>
    %c32_151 = arith.constant 32 : index
    %c3_152 = arith.constant 3 : index
    %189 = vector.load %arg19[%c32_151, %c3_152] : memref<128x32xf32, #tpu.memory_space<vmem>>, vector<8x29xf32>
    tpu.vector_store %arg19[%c32_151, %c3_152], %188 {strides = array<i32>} : memref<128x32xf32, #tpu.memory_space<vmem>>, vector<8x29xf32>,
    %190 = vector.extract_strided_slice %177 {offsets = [0, 0], sizes = [8, 30], strides = [1, 1]} : vector<8x32xf32> to vector<8x30xf32>
    %c40 = arith.constant 40 : index
    %c2_153 = arith.constant 2 : index
    %191 = vector.load %arg19[%c40, %c2_153] : memref<128x32xf32, #tpu.memory_space<vmem>>, vector<8x30xf32>
    tpu.vector_store %arg19[%c40, %c2_153], %190 {strides = array<i32>} : memref<128x32xf32, #tpu.memory_space<vmem>>, vector<8x30xf32>,
    %192 = vector.extract_strided_slice %177 {offsets = [0, 0], sizes = [8, 31], strides = [1, 1]} : vector<8x32xf32> to vector<8x31xf32>
    %c48_154 = arith.constant 48 : index
    %c1_155 = arith.constant 1 : index
    %193 = vector.load %arg19[%c48_154, %c1_155] : memref<128x32xf32, #tpu.memory_space<vmem>>, vector<8x31xf32>
    tpu.vector_store %arg19[%c48_154, %c1_155], %192 {strides = array<i32>} : memref<128x32xf32, #tpu.memory_space<vmem>>, vector<8x31xf32>,
    %c56 = arith.constant 56 : index
    %c0_156 = arith.constant 0 : index
    %194 = vector.load %arg19[%c56, %c0_156] : memref<128x32xf32, #tpu.memory_space<vmem>>, vector<8x32xf32>
    tpu.vector_store %arg19[%c56, %c0_156], %177 {strides = array<i32>} : memref<128x32xf32, #tpu.memory_space<vmem>>, vector<8x32xf32>,
    %195 = vector.extract_strided_slice %177 {offsets = [0, 1], sizes = [8, 31], strides = [1, 1]} : vector<8x32xf32> to vector<8x31xf32>
    %c64_157 = arith.constant 64 : index
    %c0_158 = arith.constant 0 : index
    %196 = vector.load %arg19[%c64_157, %c0_158] : memref<128x32xf32, #tpu.memory_space<vmem>>, vector<8x31xf32>
    tpu.vector_store %arg19[%c64_157, %c0_158], %195 {strides = array<i32>} : memref<128x32xf32, #tpu.memory_space<vmem>>, vector<8x31xf32>,
    %197 = vector.extract_strided_slice %177 {offsets = [0, 2], sizes = [8, 30], strides = [1, 1]} : vector<8x32xf32> to vector<8x30xf32>
    %c72 = arith.constant 72 : index
    %c0_159 = arith.constant 0 : index
    %198 = vector.load %arg19[%c72, %c0_159] : memref<128x32xf32, #tpu.memory_space<vmem>>, vector<8x30xf32>
    tpu.vector_store %arg19[%c72, %c0_159], %197 {strides = array<i32>} : memref<128x32xf32, #tpu.memory_space<vmem>>, vector<8x30xf32>,
    %199 = vector.extract_strided_slice %177 {offsets = [0, 3], sizes = [8, 29], strides = [1, 1]} : vector<8x32xf32> to vector<8x29xf32>
    %c80_160 = arith.constant 80 : index
    %c0_161 = arith.constant 0 : index
    %200 = vector.load %arg19[%c80_160, %c0_161] : memref<128x32xf32, #tpu.memory_space<vmem>>, vector<8x29xf32>
    tpu.vector_store %arg19[%c80_160, %c0_161], %199 {strides = array<i32>} : memref<128x32xf32, #tpu.memory_space<vmem>>, vector<8x29xf32>,
    %201 = vector.extract_strided_slice %177 {offsets = [0, 4], sizes = [8, 28], strides = [1, 1]} : vector<8x32xf32> to vector<8x28xf32>
    %c88 = arith.constant 88 : index
    %c0_162 = arith.constant 0 : index
    %202 = vector.load %arg19[%c88, %c0_162] : memref<128x32xf32, #tpu.memory_space<vmem>>, vector<8x28xf32>
    tpu.vector_store %arg19[%c88, %c0_162], %201 {strides = array<i32>} : memref<128x32xf32, #tpu.memory_space<vmem>>, vector<8x28xf32>,
    %203 = vector.extract_strided_slice %177 {offsets = [0, 5], sizes = [8, 27], strides = [1, 1]} : vector<8x32xf32> to vector<8x27xf32>
    %c96_163 = arith.constant 96 : index
    %c0_164 = arith.constant 0 : index
    %204 = vector.load %arg19[%c96_163, %c0_164] : memref<128x32xf32, #tpu.memory_space<vmem>>, vector<8x27xf32>
    tpu.vector_store %arg19[%c96_163, %c0_164], %203 {strides = array<i32>} : memref<128x32xf32, #tpu.memory_space<vmem>>, vector<8x27xf32>,
    %205 = vector.extract_strided_slice %177 {offsets = [0, 6], sizes = [8, 26], strides = [1, 1]} : vector<8x32xf32> to vector<8x26xf32>
    %c104 = arith.constant 104 : index
    %c0_165 = arith.constant 0 : index
    %206 = vector.load %arg19[%c104, %c0_165] : memref<128x32xf32, #tpu.memory_space<vmem>>, vector<8x26xf32>
    tpu.vector_store %arg19[%c104, %c0_165], %205 {strides = array<i32>} : memref<128x32xf32, #tpu.memory_space<vmem>>, vector<8x26xf32>,
    %207 = vector.extract_strided_slice %177 {offsets = [0, 7], sizes = [8, 25], strides = [1, 1]} : vector<8x32xf32> to vector<8x25xf32>
    %c112_166 = arith.constant 112 : index
    %c0_167 = arith.constant 0 : index
    %208 = vector.load %arg19[%c112_166, %c0_167] : memref<128x32xf32, #tpu.memory_space<vmem>>, vector<8x25xf32>
    tpu.vector_store %arg19[%c112_166, %c0_167], %207 {strides = array<i32>} : memref<128x32xf32, #tpu.memory_space<vmem>>, vector<8x25xf32>,
    %209 = vector.extract_strided_slice %177 {offsets = [0, 8], sizes = [8, 24], strides = [1, 1]} : vector<8x32xf32> to vector<8x24xf32>
    %c120 = arith.constant 120 : index
    %c0_168 = arith.constant 0 : index
    %210 = vector.load %arg19[%c120, %c0_168] : memref<128x32xf32, #tpu.memory_space<vmem>>, vector<8x24xf32>
    tpu.vector_store %arg19[%c120, %c0_168], %209 {strides = array<i32>} : memref<128x32xf32, #tpu.memory_space<vmem>>, vector<8x24xf32>,
    %c0_169 = arith.constant 0 : index
    %c0_170 = arith.constant 0 : index
    %211 = vector.load %arg10[%c0_169, %c0_170] : memref<1x128xf32, #tpu.memory_space<vmem>>, vector<1x128xf32>
    %c0_171 = arith.constant 0 : index
    %c0_172 = arith.constant 0 : index
    %212 = vector.load %arg19[%c0_171, %c0_172] : memref<128x32xf32, #tpu.memory_space<vmem>>, vector<128x32xf32>
    %cst_173 = arith.constant dense<0.000000e+00> : vector<1x32xf32>
    %213 = tpu.matmul %211, %212, %cst_173 {dimension_numbers = #tpu.dot_dimension_numbers<[1], [0], [0], [1], [0, 0, 1, 1], [], []>} : vector<1x128xf32>, vector<128x32xf32>, vector<1x32xf32> -> vector<1x32xf32>
    %c0_174 = arith.constant 0 : index
    %c0_175 = arith.constant 0 : index
    %214 = vector.load %arg11[%c0_174, %c0_175] : memref<1x1xf32, #tpu.memory_space<vmem>>, vector<1x1xf32>
    %215 = vector.broadcast %214 : vector<1x1xf32> to vector<1x32xf32>
    %216 = arith.addf %213, %215 : vector<1x32xf32>
    %217 = math.tanh %216 : vector<1x32xf32>
    %c0_176 = arith.constant 0 : index
    %c0_177 = arith.constant 0 : index
    %c0_178 = arith.constant 0 : index
    %218 = vector.load %arg14[%c0_176, %c0_177, %c0_178] : memref<1x1x32xf32, #tpu.memory_space<vmem>>, vector<1x1x32xf32>
    %219 = vector.shape_cast %218 : vector<1x1x32xf32> to vector<1x32xf32>
    %220 = vector.shape_cast %217 : vector<1x32xf32> to vector<1x1x32xf32>
    tpu.vector_store %arg14[%c0_176, %c0_177, %c0_178], %220 {strides = array<i32>} : memref<1x1x32xf32, #tpu.memory_space<vmem>>, vector<1x1x32xf32>,
    return
  }
  func.func @transform_0(%arg0: i32) -> (i32, i32, i32) {
    %c0_i32 = arith.constant 0 : i32
    %c0_i32_0 = arith.constant 0 : i32
    %c0_i32_1 = arith.constant 0 : i32
    return %arg0, %c0_i32, %c0_i32_0 : i32, i32, i32
  }
  func.func @transform_1(%arg0: i32) -> (i32, i32) {
    %c0_i32 = arith.constant 0 : i32
    %c0_i32_0 = arith.constant 0 : i32
    %c0_i32_1 = arith.constant 0 : i32
    return %c0_i32, %c0_i32_0 : i32, i32
  }
  func.func @transform_2(%arg0: i32) -> (i32, i32) {
    %c0_i32 = arith.constant 0 : i32
    %c0_i32_0 = arith.constant 0 : i32
    %c0_i32_1 = arith.constant 0 : i32
    return %c0_i32, %c0_i32_0 : i32, i32
  }
  func.func @transform_3(%arg0: i32) -> (i32, i32) {
    %c0_i32 = arith.constant 0 : i32
    %c0_i32_0 = arith.constant 0 : i32
    %c0_i32_1 = arith.constant 0 : i32
    return %c0_i32, %c0_i32_0 : i32, i32
  }
  func.func @transform_4(%arg0: i32) -> (i32, i32) {
    %c0_i32 = arith.constant 0 : i32
    %c0_i32_0 = arith.constant 0 : i32
    %c0_i32_1 = arith.constant 0 : i32
    return %c0_i32, %c0_i32_0 : i32, i32
  }
  func.func @transform_5(%arg0: i32) -> (i32, i32) {
    %c0_i32 = arith.constant 0 : i32
    %c0_i32_0 = arith.constant 0 : i32
    %c0_i32_1 = arith.constant 0 : i32
    return %c0_i32, %c0_i32_0 : i32, i32
  }
  func.func @transform_6(%arg0: i32) -> (i32, i32) {
    %c0_i32 = arith.constant 0 : i32
    %c0_i32_0 = arith.constant 0 : i32
    %c0_i32_1 = arith.constant 0 : i32
    return %c0_i32, %c0_i32_0 : i32, i32
  }
  func.func @transform_7(%arg0: i32) -> (i32, i32) {
    %c0_i32 = arith.constant 0 : i32
    %c0_i32_0 = arith.constant 0 : i32
    %c0_i32_1 = arith.constant 0 : i32
    return %c0_i32, %c0_i32_0 : i32, i32
  }
  func.func @transform_8(%arg0: i32) -> (i32, i32) {
    %c0_i32 = arith.constant 0 : i32
    %c0_i32_0 = arith.constant 0 : i32
    %c0_i32_1 = arith.constant 0 : i32
    return %c0_i32, %c0_i32_0 : i32, i32
  }
  func.func @transform_9(%arg0: i32) -> (i32, i32) {
    %c0_i32 = arith.constant 0 : i32
    %c0_i32_0 = arith.constant 0 : i32
    %c0_i32_1 = arith.constant 0 : i32
    return %c0_i32, %c0_i32_0 : i32, i32
  }
  func.func @transform_10(%arg0: i32) -> (i32, i32) {
    %c0_i32 = arith.constant 0 : i32
    %c0_i32_0 = arith.constant 0 : i32
    %c0_i32_1 = arith.constant 0 : i32
    return %c0_i32, %c0_i32_0 : i32, i32
  }
  func.func @transform_11(%arg0: i32) -> (i32, i32) {
    %c0_i32 = arith.constant 0 : i32
    %c0_i32_0 = arith.constant 0 : i32
    %c0_i32_1 = arith.constant 0 : i32
    return %c0_i32, %c0_i32_0 : i32, i32
  }
  func.func @transform_12(%arg0: i32) -> (i32, i32) {
    %c0_i32 = arith.constant 0 : i32
    %c0_i32_0 = arith.constant 0 : i32
    %c0_i32_1 = arith.constant 0 : i32
    return %c0_i32, %c0_i32_0 : i32, i32
  }
  func.func @transform_13(%arg0: i32) -> (i32, i32, i32) {
    %c0_i32 = arith.constant 0 : i32
    %c0_i32_0 = arith.constant 0 : i32
    %c0_i32_1 = arith.constant 0 : i32
    return %arg0, %c0_i32, %c0_i32_0 : i32, i32, i32
  }
}

</mosaic_0001>

<bundles_post_ra>
// kernel: rnn_decoder_forward.2
= control target key start
LH: loop header
LB: loop body
LE: loop exit
PB: predicated region body
PF: predicated region fallthrough
CT: control target
= control target key end

     0   :  { %12 = vsyncpa [#allocation3], 0  ;;  %s2363_s24 = smov [#allocation2]   ;;  %s2883_s0 = inlined_call_operand.vmem [shape: f32[8,2,1], index: 0, kind: input, shape index: {}]   ;;  %s2884_s1 = inlined_call_operand.vmem [shape: f32[1,128], index: 1, kind: input, shape index: {}]   ;;  %s2885_s2 = inlined_call_operand.vmem [shape: f32[32,128], index: 2, kind: input, shape index: {}]   ;;  %s2886_s3 = inlined_call_operand.vmem [shape: f32[1,128], index: 3, kind: input, shape index: {}]   ;;  %s2887_s4 = inlined_call_operand.vmem [shape: f32[1,128], index: 4, kind: input, shape index: {}]   ;;  %s2888_s5 = inlined_call_operand.hbm [shape: f32[32,128], index: 5, kind: input, shape index: {}]   ;;  %s2889_s6 = inlined_call_operand.vmem [shape: f32[1,128], index: 6, kind: input, shape index: {}]   ;;  %s2890_s7 = inlined_call_operand.vmem [shape: f32[8,2,64], index: 7, kind: output, shape index: {}]  }
   0x1   :  { %s28_s25 = sshll.u32 %s2363_s24, 4  ;;  %s2339_s28 = scalar_lea.hbm %s2888_s5, 512  ;;  %s29_s25 = int_to_ptr.vmem [resolvable:$true] %s28_s25 }
   0x2   :  { %p2340_p0 = scmp.ne.s32.totalorder %s2888_s5, %s2339_s28  ;;  %p2343_p1 = scmp.lt.u32.totalorder %s2339_s28, %s2888_s5 }
   0x4   :  { %p2345_p2 = pnand %p2343_p1, %p2340_p0 }
   0x6   :  { %2348 = shalt.err (!%p2345_p2)
}
   0x7   :  { %s2349_s10 = scalar_lea.vmem %s29_s25, 512  ;;  %p2354_p4 = scmp.lt.s32.totalorder %s29_s25, %s29_s25 }
   0x8   :  { %p2350_p3 = scmp.ne.s32.totalorder %s29_s25, %s2349_s10  ;;  %p2355_p5 = scmp.lt.s32.totalorder %s2349_s10, %s2349_s10 }
   0xa   :  { %p2356_p6 = por %p2355_p5, %p2354_p4 }
   0xc   :  { %p2357_p7 = pnand %p2356_p6, %p2350_p3 }
   0xe   :  { %2360 = shalt.err (!%p2357_p7)
}
   0xf   :  { %s2364_s11 = smov 128   ;;  %s2365_s12 = smov 8  }
  0x10   :  { %34 = dma.hbm_to_vmem [thread:$0]  %s2888_s5, 512, %s29_s25, [#allocation3], %s2364_s11, %s2364_s11, %s2365_s12  }
  0x11   :  { %2361 = dma.done.wait [#allocation3], 512  }
  0x12   :  { %2362 = vsyncadd [#allocation3], 4294966784  ;;  %v2366_v0 = vmov 0.0|0.0   ;;  %vm2367_vm0 = vmmov 0   ;;  %v2368_v1 = vmov 0.0   ;;  %v2369_v2 = vmov 0  }
  0x13   :  { %2104 = vmatprep.subr.bf16.mxu0 %v2366_v0  ;;  %2110 = vmatprep.subr.bf16.mxu1 %v2366_v0  ;;  %v148_v3 = vld [vmem:[%s2885_s2] sm:$0xff]  ;;  %v149_v4 = vld [vmem:[%s2885_s2 + $0x8] sm:$0xff]  ;;  %v150_v8 = vld [vmem:[%s2885_s2 + $0x10] sm:$0xff]  ;;  %vm354_vm1 = vcmask 254976   ;;  %vm156_vm2 = vcmask 261120   ;;  %vm361_vm3 = vcmask 517376  }
  0x14   :  { %1936 = vmatprep.mubr.msk.f32.mxu0 %vm2367_vm0, %v2368_v1  ;;  %1947 = vmatprep.mubr.msk.f32.mxu1 %vm2367_vm0, %v2368_v1  ;;  %v152_v5 = vld [vmem:[#allocation2] sm:$0xff]  ;;  %v2436_v6 = vpack.c.bf16 %v149_v4, %v148_v3  ;;  %v153_v7 = vld [vmem:[#allocation2 + $0x8] sm:$0xff]  ;;  %v151_v9 = vld [vmem:[%s2885_s2 + $0x18] sm:$0xff] }
  0x15   :  { %2209 = vset.pattern.permute.xlu0 %v2369_v2  ;;  %2210 = vset.pattern.permute.xlu1 %v2369_v2  ;;  %v2444_v10 = vpack.c.bf16 %v153_v7, %v152_v5  ;;  %v154_v11 = vld [vmem:[#allocation2 + $0x10] sm:$0xff]  ;;  %v155_v12 = vld [vmem:[#allocation2 + $0x18] sm:$0xff]  ;;  %v40_v13 = vld [vmem:[%s2883_s0] sm:$0x3]  ;;  %v2450_v14 = vpack.c.bf16 %v151_v9, %v150_v8 }
  0x16   :  { %2106 = vmatpush3.bf16.msra.mxu0 %v2436_v6  ;;  %51 = vperm.xlu0 %2209, %v40_v13   ;;  %v2454_v15 = vpack.c.bf16 %v155_v12, %v154_v11  ;;  %v47_v16 = vld [vmem:[%s2883_s0 + $0xe] sm:$0x3]  ;;  %v2483_v18 = vld [vmem:[%s2884_s1] ss:$0 sm:$0xff]  ;;  %v41_v60 = vld [vmem:[%s2883_s0 + $0x2] sm:$0x3] }
  0x17   :  { %2112 = vmatpush3.bf16.msra.mxu1 %v2444_v10  ;;  %2107 = vmatprep.subr.bf16.mxu0 %v2366_v0  ;;  %v2488_v19 = vld [vmem:[%s2887_s4] ss:$0 sm:$0xff]  ;;  %s2371_s4 = smov 32   ;;  %v46_v62 = vld [vmem:[%s2883_s0 + $0xc] sm:$0x3] }
  0x18   :  { %2113 = vmatprep.subr.bf16.mxu1 %v2366_v0  ;;  %v2497_v22 = vld [vmem:[%s2886_s3] ss:$0 sm:$0xff]  ;;  %s2370_s3 = smov 64  }
  0x19   :  { %v2504_v24 = vld [vmem:[%s2889_s6] ss:$0 sm:$0xff] }
  0x1a   :  { %2109 = vmatpush3.bf16.msra.mxu0 %v2450_v14  ;;  %86 = vperm.xlu0 %2209, %v47_v16  }
  0x1b   :  { %2115 = vmatpush3.bf16.msra.mxu1 %v2454_v15  ;;  %2116 = vmatprep.subr.bf16.mxu0 %v2366_v0 }
  0x1c   :  { %2122 = vmatprep.subr.bf16.mxu1 %v2366_v0 }
  0x1d   :  { %1937 = vmatmul.mubr.f32.vlgmr.msra.gmra.mrb[0].mxu0 %v2368_v1 }
  0x1e   :  { %1948 = vmatmul.mubr.f32.vlgmr.msra.gmra.mrb[0].mxu1 %v2368_v1  ;;  %2118 = vmatpush3.bf16.msra.mxu0 %v2436_v6 }
  0x1f   :  { %2119 = vmatprep.subr.bf16.mxu0 %v2366_v0  ;;  %2124 = vmatpush3.bf16.msra.mxu1 %v2444_v10 }
  0x20   :  { %1958 = vmatprep.mubr.msk.f32.mxu0 %vm2367_vm0, %v2368_v1  ;;  %2125 = vmatprep.subr.bf16.mxu1 %v2366_v0 }
  0x21   :  { %1969 = vmatprep.mubr.msk.f32.mxu1 %vm2367_vm0, %v2368_v1 }
  0x22   :  { %2121 = vmatpush3.bf16.msra.mxu0 %v2450_v14 }
  0x23   :  { %2127 = vmatpush3.bf16.msra.mxu1 %v2454_v15  ;;  %2128 = vmatprep.subr.bf16.mxu0 %v2366_v0 }
  0x24   :  { %2134 = vmatprep.subr.bf16.mxu1 %v2366_v0 }
  0x95   :  { %v2478_v17 = vpop.permute.xlu0 %51 }
  0x96   :  { %v95_v21 = vmul.f32 %v2483_v18, %v2478_v17 }
  0x98   :  { %v110_v25 = vadd.f32 %v2497_v22, %v95_v21 }
  0x99   :  { %v2490_v20 = vpop.permute.xlu0 %86 }
  0x9a   :  { %v132_v23 = vmul.f32 %v2488_v19, %v2490_v20 }
  0x9c   :  { %v147_v26 = vadd.f32 %v2504_v24, %v132_v23 }
  0xf0   :  { %v226_v27 = vpop.f32.mrb[0].mxu0 }
  0xf1   :  { %v230_v28 = vadd.f32 %v226_v27, %v110_v25  ;;  %v321_v29 = vpop.f32.mrb[0].mxu1  ;;  %v1938_v30 = vpop.f32.mrb[1].mxu0 }
  0xf2   :  { %v1949_v31 = vpop.f32.mrb[1].mxu1  ;;  %v325_v32 = vadd.f32 %v321_v29, %v147_v26 }
  0xf3   :  { %2211 = vtanh.f32 %v230_v28  ;;  %v231_v35 = vsub.f32 0.0, %v230_v28 }
  0xf4   :  { %2213 = vtanh.f32 %v325_v32  ;;  %v326_v37 = vsub.f32 0.0, %v325_v32 }
  0xf5   :  { %v232_v36 = vmul.f32 1.442695, %v231_v35 }
  0xf6   :  { %v327_v38 = vmul.f32 1.442695, %v326_v37 }
  0xf7   :  { %2215 = vpow2.f32 %v232_v36 }
  0xf8   :  { %2217 = vpow2.f32 %v327_v38 }
  0xfd   :  { %v2212_v33 = vpop.eup %2211 }
  0xfe   :  { %240 = vrot.lane.b32.xlu1 %v2212_v33, %s2370_s3  ;;  %v2214_v34 = vpop.eup %2213 }
 0x101   :  { %v2216_v39 = vpop.eup %2215 }
 0x102   :  { %335 = vrot.lane.b32.xlu1 %v2214_v34, %s2370_s3  ;;  %v234_v40 = vadd.f32 1.0, %v2216_v39  ;;  %v2218_v41 = vpop.eup %2217 }
 0x103   :  { %v329_v42 = vadd.f32 1.0, %v2218_v41 }
 0x104   :  { %2219 = vrcp.f32 %v234_v40 }
 0x105   :  { %2221 = vrcp.f32 %v329_v42 }
 0x10e   :  { %v2220_v43 = vpop.eup %2219 }
 0x10f   :  { %v2222_v46 = vpop.eup %2221  ;;  %v238_v49 = vmul.f32 0.0, %v2220_v43 }
 0x110   :  { %v333_v52 = vmul.f32 0.0, %v2222_v46 }
 0x170   :  { %v241_v44 = vpop.permute.xlu1 %240 }
 0x171   :  { %v243_v45 = vmul.f32 %v2220_v43, %v241_v44 }
 0x173   :  { %245 = vrot.lane.b32.xlu0 %v243_v45, %s2371_s4 }
 0x174   :  { %v336_v47 = vpop.permute.xlu1 %335 }
 0x175   :  { %v338_v48 = vmul.f32 %v2222_v46, %v336_v47 }
 0x177   :  { %340 = vrot.lane.b32.xlu1 %v338_v48, %s2371_s4 }
 0x1e5   :  { %v246_v50 = vpop.permute.xlu0 %245 }
 0x1e6   :  { %v2512_v51 = vadd.f32 %v246_v50, %v238_v49 }
 0x1e8   :  { %2223 = vtanh.f32 %v2512_v51 }
 0x1e9   :  { %v341_v53 = vpop.permute.xlu1 %340 }
 0x1ea   :  { %v2515_v54 = vadd.f32 %v341_v53, %v333_v52 }
 0x1ec   :  { %2225 = vtanh.f32 %v2515_v54 }
 0x1f2   :  { %v2224_v55 = vpop.eup %2223 }
 0x1f3   :  { %251 = vrot.lane.b32.xlu0 %v2224_v55, %s2370_s3 }
 0x1f6   :  { %v2226_v56 = vpop.eup %2225 }
 0x1f7   :  { %346 = vrot.lane.b32.xlu1 %v2226_v56, %s2370_s3 }
 0x265   :  { %v252_v57 = vpop.permute.xlu0 %251 }
 0x266   :  { %v254_v58 = vmul.f32 %v2220_v43, %v252_v57 }
 0x268   :  { %351 = vrot.lane.b32.xlu0 %v254_v58, %s2371_s4 }
 0x269   :  { %v347_v59 = vpop.permute.xlu1 %346 }
 0x26a   :  { %v2524_v61 = vmul.f32 %v2222_v46, %v347_v59 }
 0x26c   :  { %460 = vrot.lane.b32.xlu1 %v2524_v61, %s2371_s4  ;;  %56 = vperm.xlu0 %2209, %v41_v60  }
 0x270   :  { %81 = vperm.xlu1 %2210, %v46_v62  }
 0x2da   :  { %v352_v63 = vpop.permute.xlu0 %351 }
 0x2db   :  { %355 = vst.msk [vmem:[%s2890_s7] sm:$0x3] %vm354_vm1, %v352_v63  ;;  %1959 = vmatmul.mubr.msk.f32.vlgmr.msra.gmra.mrb[2].mxu0 %vm156_vm2, %v352_v63 }
 0x2dc   :  { %2130 = vmatpush3.bf16.msra.mxu0 %v2436_v6  ;;  %1980 = vmatprep.mubr.msk.f32.mxu0 %vm2367_vm0, %v2368_v1 }
 0x2dd   :  { %2131 = vmatprep.subr.bf16.mxu0 %v2366_v0 }
 0x2de   :  { %v461_v2 = vpop.permute.xlu1 %460 }
 0x2df   :  { %1970 = vmatmul.mubr.msk.f32.vlgmr.msra.gmra.mrb[2].mxu1 %vm156_vm2, %v461_v2 }
 0x2e0   :  { %2133 = vmatpush3.bf16.msra.mxu0 %v2450_v14  ;;  %2136 = vmatpush3.bf16.msra.mxu1 %v2444_v10 }
 0x2e1   :  { %2137 = vmatprep.subr.bf16.mxu1 %v2366_v0  ;;  %1991 = vmatprep.mubr.msk.f32.mxu1 %vm2367_vm0, %v2368_v1 }
 0x2e2   :  { %2140 = vmatprep.subr.bf16.mxu0 %v2366_v0 }
 0x2e4   :  { %2139 = vmatpush3.bf16.msra.mxu1 %v2454_v15 }
 0x2e5   :  { %2146 = vmatprep.subr.bf16.mxu1 %v2366_v0 }
 0x2eb   :  { %v2549_v3 = vpop.permute.xlu0 %56 }
 0x2ec   :  { %v96_v5 = vmul.f32 %v2483_v18, %v2549_v3 }
 0x2ee   :  { %v111_v8 = vadd.f32 %v2497_v22, %v96_v5 }
 0x2ef   :  { %v2551_v4 = vpop.permute.xlu1 %81 }
 0x2f0   :  { %v131_v7 = vmul.f32 %v2488_v19, %v2551_v4 }
 0x2f2   :  { %v146_v13 = vadd.f32 %v2504_v24, %v131_v7 }
 0x3ae   :  { %v431_v9 = vpop.f32.mrb[2].mxu0 }
 0x3af   :  { %v435_v11 = vadd.f32 %v431_v9, %v111_v8  ;;  %v1960_v12 = vpop.f32.mrb[3].mxu0 }
 0x3b1   :  { %2227 = vtanh.f32 %v435_v11  ;;  %v436_v27 = vsub.f32 0.0, %v435_v11 }
 0x3b2   :  { %v530_v16 = vpop.f32.mrb[2].mxu1 }
 0x3b3   :  { %v534_v21 = vadd.f32 %v530_v16, %v146_v13  ;;  %v1971_v23 = vpop.f32.mrb[3].mxu1  ;;  %v437_v28 = vmul.f32 1.442695, %v436_v27 }
 0x3b5   :  { %2229 = vtanh.f32 %v534_v21  ;;  %v535_v29 = vsub.f32 0.0, %v534_v21 }
 0x3b6   :  { %2231 = vpow2.f32 %v437_v28 }
 0x3b7   :  { %v536_v30 = vmul.f32 1.442695, %v535_v29 }
 0x3b9   :  { %2233 = vpow2.f32 %v536_v30 }
 0x3bb   :  { %v2228_v25 = vpop.eup %2227 }
 0x3bc   :  { %445 = vrot.lane.b32.xlu0 %v2228_v25, %s2370_s3 }
 0x3bf   :  { %v2230_v26 = vpop.eup %2229 }
 0x3c0   :  { %544 = vrot.lane.b32.xlu1 %v2230_v26, %s2370_s3  ;;  %v2232_v31 = vpop.eup %2231 }
 0x3c1   :  { %v439_v32 = vadd.f32 1.0, %v2232_v31 }
 0x3c3   :  { %v2234_v33 = vpop.eup %2233  ;;  %2235 = vrcp.f32 %v439_v32 }
 0x3c4   :  { %v538_v34 = vadd.f32 1.0, %v2234_v33 }
 0x3c6   :  { %2237 = vrcp.f32 %v538_v34 }
 0x3cd   :  { %v2236_v35 = vpop.eup %2235 }
 0x3ce   :  { %v443_v41 = vmul.f32 %v2236_v35, %v2512_v51  ;;  %v42_v51 = vld [vmem:[%s2883_s0 + $0x4] sm:$0x3] }
 0x3d0   :  { %v2238_v38 = vpop.eup %2237 }
 0x3d1   :  { %v542_v44 = vmul.f32 %v2238_v38, %v2515_v54  ;;  %v45_v54 = vld [vmem:[%s2883_s0 + $0xa] sm:$0x3] }
 0x42e   :  { %v446_v36 = vpop.permute.xlu0 %445 }
 0x42f   :  { %v448_v37 = vmul.f32 %v2236_v35, %v446_v36 }
 0x431   :  { %450 = vrot.lane.b32.xlu0 %v448_v37, %s2371_s4 }
 0x432   :  { %v545_v39 = vpop.permute.xlu1 %544 }
 0x433   :  { %v547_v40 = vmul.f32 %v2238_v38, %v545_v39 }
 0x435   :  { %549 = vrot.lane.b32.xlu1 %v547_v40, %s2371_s4 }
 0x4a3   :  { %v451_v42 = vpop.permute.xlu0 %450 }
 0x4a4   :  { %v2564_v43 = vadd.f32 %v451_v42, %v443_v41 }
 0x4a6   :  { %2239 = vtanh.f32 %v2564_v43 }
 0x4a7   :  { %v550_v45 = vpop.permute.xlu1 %549 }
 0x4a8   :  { %v2568_v46 = vadd.f32 %v550_v45, %v542_v44 }
 0x4aa   :  { %2241 = vtanh.f32 %v2568_v46 }
 0x4b0   :  { %v2240_v47 = vpop.eup %2239 }
 0x4b1   :  { %456 = vrot.lane.b32.xlu0 %v2240_v47, %s2370_s3  ;;  %v43_v47 = vld [vmem:[%s2883_s0 + $0x6] sm:$0x3] }
 0x4b4   :  { %v2242_v48 = vpop.eup %2241 }
 0x4b5   :  { %555 = vrot.lane.b32.xlu1 %v2242_v48, %s2370_s3 }
 0x523   :  { %v457_v49 = vpop.permute.xlu0 %456 }
 0x524   :  { %v459_v50 = vmul.f32 %v2236_v35, %v457_v49  ;;  %v44_v49 = vld [vmem:[%s2883_s0 + $0x8] sm:$0x3] }
 0x526   :  { %560 = vrot.lane.b32.xlu0 %v459_v50, %s2371_s4 }
 0x527   :  { %v556_v52 = vpop.permute.xlu1 %555 }
 0x528   :  { %v2577_v53 = vmul.f32 %v2238_v38, %v556_v52 }
 0x52a   :  { %61 = vperm.xlu0 %2209, %v42_v51   ;;  %668 = vrot.lane.b32.xlu1 %v2577_v53, %s2371_s4 }
 0x52e   :  { %76 = vperm.xlu1 %2210, %v45_v54  }
 0x598   :  { %v561_v55 = vpop.permute.xlu0 %560 }
 0x599   :  { %1823 = vst.msk [vmem:[%s2890_s7 + $0x2] sm:$0x3] %vm354_vm1, %v561_v55  ;;  %1981 = vmatmul.mubr.msk.f32.vlgmr.msra.gmra.mrb[4].mxu0 %vm156_vm2, %v561_v55 }
 0x59a   :  { %2142 = vmatpush3.bf16.msra.mxu0 %v2436_v6  ;;  %2002 = vmatprep.mubr.msk.f32.mxu0 %vm2367_vm0, %v2368_v1 }
 0x59b   :  { %2143 = vmatprep.subr.bf16.mxu0 %v2366_v0 }
 0x59c   :  { %v669_v56 = vpop.permute.xlu1 %668 }
 0x59d   :  { %1992 = vmatmul.mubr.msk.f32.vlgmr.msra.gmra.mrb[4].mxu1 %vm156_vm2, %v669_v56 }
 0x59e   :  { %2145 = vmatpush3.bf16.msra.mxu0 %v2450_v14  ;;  %2148 = vmatpush3.bf16.msra.mxu1 %v2444_v10 }
 0x59f   :  { %2013 = vmatprep.mubr.msk.f32.mxu1 %vm2367_vm0, %v2368_v1  ;;  %2149 = vmatprep.subr.bf16.mxu1 %v2366_v0 }
 0x5a0   :  { %2152 = vmatprep.subr.bf16.mxu0 %v2366_v0 }
 0x5a2   :  { %2151 = vmatpush3.bf16.msra.mxu1 %v2454_v15 }
 0x5a3   :  { %2158 = vmatprep.subr.bf16.mxu1 %v2366_v0 }
 0x5a9   :  { %v2602_v57 = vpop.permute.xlu0 %61 }
 0x5aa   :  { %v97_v58 = vmul.f32 %v2483_v18, %v2602_v57 }
 0x5ac   :  { %v112_v60 = vadd.f32 %v2497_v22, %v97_v58 }
 0x5ad   :  { %v2606_v59 = vpop.permute.xlu1 %76 }
 0x5ae   :  { %v130_v62 = vmul.f32 %v2488_v19, %v2606_v59 }
 0x5b0   :  { %v145_v7 = vadd.f32 %v2504_v24, %v130_v62 }
 0x66c   :  { %v639_v63 = vpop.f32.mrb[4].mxu0 }
 0x66d   :  { %v643_v2 = vadd.f32 %v639_v63, %v112_v60  ;;  %v1982_v5 = vpop.f32.mrb[5].mxu0 }
 0x66f   :  { %2243 = vtanh.f32 %v643_v2  ;;  %v644_v16 = vsub.f32 0.0, %v643_v2 }
 0x670   :  { %v738_v8 = vpop.f32.mrb[4].mxu1 }
 0x671   :  { %v742_v9 = vadd.f32 %v738_v8, %v145_v7  ;;  %v1993_v11 = vpop.f32.mrb[5].mxu1  ;;  %v645_v21 = vmul.f32 1.442695, %v644_v16 }
 0x673   :  { %2245 = vtanh.f32 %v742_v9  ;;  %v743_v23 = vsub.f32 0.0, %v742_v9 }
 0x674   :  { %2247 = vpow2.f32 %v645_v21 }
 0x675   :  { %v744_v25 = vmul.f32 1.442695, %v743_v23 }
 0x677   :  { %2249 = vpow2.f32 %v744_v25 }
 0x679   :  { %v2244_v12 = vpop.eup %2243 }
 0x67a   :  { %653 = vrot.lane.b32.xlu0 %v2244_v12, %s2370_s3 }
 0x67d   :  { %v2246_v13 = vpop.eup %2245 }
 0x67e   :  { %752 = vrot.lane.b32.xlu1 %v2246_v13, %s2370_s3  ;;  %v2248_v26 = vpop.eup %2247 }
 0x67f   :  { %v647_v27 = vadd.f32 1.0, %v2248_v26 }
 0x681   :  { %v2250_v28 = vpop.eup %2249  ;;  %2251 = vrcp.f32 %v647_v27 }
 0x682   :  { %v746_v29 = vadd.f32 1.0, %v2250_v28 }
 0x684   :  { %2253 = vrcp.f32 %v746_v29 }
 0x68b   :  { %v2252_v30 = vpop.eup %2251 }
 0x68c   :  { %v651_v36 = vmul.f32 %v2252_v30, %v2564_v43 }
 0x68e   :  { %v2254_v33 = vpop.eup %2253 }
 0x68f   :  { %v750_v39 = vmul.f32 %v2254_v33, %v2568_v46 }
 0x6ec   :  { %v654_v31 = vpop.permute.xlu0 %653 }
 0x6ed   :  { %v656_v32 = vmul.f32 %v2252_v30, %v654_v31 }
 0x6ef   :  { %658 = vrot.lane.b32.xlu0 %v656_v32, %s2371_s4 }
 0x6f0   :  { %v753_v34 = vpop.permute.xlu1 %752 }
 0x6f1   :  { %v755_v35 = vmul.f32 %v2254_v33, %v753_v34 }
 0x6f3   :  { %757 = vrot.lane.b32.xlu1 %v755_v35, %s2371_s4 }
 0x761   :  { %v659_v37 = vpop.permute.xlu0 %658 }
 0x762   :  { %v2617_v38 = vadd.f32 %v659_v37, %v651_v36 }
 0x764   :  { %2255 = vtanh.f32 %v2617_v38 }
 0x765   :  { %v758_v40 = vpop.permute.xlu1 %757 }
 0x766   :  { %v2621_v41 = vadd.f32 %v758_v40, %v750_v39 }
 0x768   :  { %2257 = vtanh.f32 %v2621_v41 }
 0x76e   :  { %v2256_v42 = vpop.eup %2255 }
 0x76f   :  { %664 = vrot.lane.b32.xlu0 %v2256_v42, %s2370_s3 }
 0x772   :  { %v2258_v44 = vpop.eup %2257 }
 0x773   :  { %763 = vrot.lane.b32.xlu1 %v2258_v44, %s2370_s3 }
 0x7e1   :  { %v665_v45 = vpop.permute.xlu0 %664 }
 0x7e2   :  { %v667_v43 = vmul.f32 %v2252_v30, %v665_v45 }
 0x7e4   :  { %768 = vrot.lane.b32.xlu0 %v667_v43, %s2371_s4 }
 0x7e5   :  { %v764_v46 = vpop.permute.xlu1 %763 }
 0x7e6   :  { %v2630_v48 = vmul.f32 %v2254_v33, %v764_v46 }
 0x7e8   :  { %66 = vperm.xlu0 %2209, %v43_v47   ;;  %876 = vrot.lane.b32.xlu1 %v2630_v48, %s2371_s4 }
 0x7ec   :  { %71 = vperm.xlu1 %2210, %v44_v49  }
 0x856   :  { %v769_v50 = vpop.permute.xlu0 %768 }
 0x857   :  { %1827 = vst.msk [vmem:[%s2890_s7 + $0x4] sm:$0x3] %vm354_vm1, %v769_v50  ;;  %2003 = vmatmul.mubr.msk.f32.vlgmr.msra.gmra.mrb[6].mxu0 %vm156_vm2, %v769_v50 }
 0x858   :  { %2154 = vmatpush3.bf16.msra.mxu0 %v2436_v6  ;;  %2024 = vmatprep.mubr.msk.f32.mxu0 %vm2367_vm0, %v2368_v1 }
 0x859   :  { %2155 = vmatprep.subr.bf16.mxu0 %v2366_v0 }
 0x85a   :  { %v877_v51 = vpop.permute.xlu1 %876 }
 0x85b   :  { %2014 = vmatmul.mubr.msk.f32.vlgmr.msra.gmra.mrb[6].mxu1 %vm156_vm2, %v877_v51 }
 0x85c   :  { %2157 = vmatpush3.bf16.msra.mxu0 %v2450_v14  ;;  %2160 = vmatpush3.bf16.msra.mxu1 %v2444_v10 }
 0x85d   :  { %2035 = vmatprep.mubr.msk.f32.mxu1 %vm2367_vm0, %v2368_v1  ;;  %2161 = vmatprep.subr.bf16.mxu1 %v2366_v0 }
 0x85e   :  { %2164 = vmatprep.subr.bf16.mxu0 %v2366_v0 }
 0x860   :  { %2163 = vmatpush3.bf16.msra.mxu1 %v2454_v15 }
 0x861   :  { %2170 = vmatprep.subr.bf16.mxu1 %v2366_v0 }
 0x867   :  { %v2655_v52 = vpop.permute.xlu0 %66 }
 0x868   :  { %v98_v54 = vmul.f32 %v2483_v18, %v2655_v52  ;;  %v128_v51 = vmul.f32 %v2488_v19, %v2655_v52 }
 0x86a   :  { %v113_v56 = vadd.f32 %v2497_v22, %v98_v54 }
 0x86b   :  { %v2659_v55 = vpop.permute.xlu1 %71 }
 0x86c   :  { %v129_v58 = vmul.f32 %v2488_v19, %v2659_v55  ;;  %v99_v49 = vmul.f32 %v2483_v18, %v2659_v55 }
 0x86e   :  { %v144_v2 = vadd.f32 %v2504_v24, %v129_v58  ;;  %v114_v50 = vadd.f32 %v2497_v22, %v99_v49 }
 0x92a   :  { %v847_v60 = vpop.f32.mrb[6].mxu0 }
 0x92b   :  { %v851_v62 = vadd.f32 %v847_v60, %v113_v56  ;;  %v2004_v63 = vpop.f32.mrb[7].mxu0  ;;  %v143_v60 = vadd.f32 %v2504_v24, %v128_v51 }
 0x92d   :  { %2259 = vtanh.f32 %v851_v62  ;;  %v852_v12 = vsub.f32 0.0, %v851_v62 }
 0x92e   :  { %v946_v5 = vpop.f32.mrb[6].mxu1 }
 0x92f   :  { %v950_v7 = vadd.f32 %v946_v5, %v144_v2  ;;  %v2015_v8 = vpop.f32.mrb[7].mxu1  ;;  %v853_v13 = vmul.f32 1.442695, %v852_v12 }
 0x931   :  { %2261 = vtanh.f32 %v950_v7  ;;  %v951_v16 = vsub.f32 0.0, %v950_v7 }
 0x932   :  { %2263 = vpow2.f32 %v853_v13 }
 0x933   :  { %v952_v21 = vmul.f32 1.442695, %v951_v16 }
 0x935   :  { %2265 = vpow2.f32 %v952_v21 }
 0x937   :  { %v2260_v9 = vpop.eup %2259 }
 0x938   :  { %861 = vrot.lane.b32.xlu0 %v2260_v9, %s2370_s3 }
 0x93b   :  { %v2262_v11 = vpop.eup %2261 }
 0x93c   :  { %960 = vrot.lane.b32.xlu1 %v2262_v11, %s2370_s3  ;;  %v2264_v23 = vpop.eup %2263 }
 0x93d   :  { %v855_v25 = vadd.f32 1.0, %v2264_v23 }
 0x93f   :  { %v2266_v26 = vpop.eup %2265  ;;  %2267 = vrcp.f32 %v855_v25 }
 0x940   :  { %v954_v27 = vadd.f32 1.0, %v2266_v26 }
 0x942   :  { %2269 = vrcp.f32 %v954_v27 }
 0x949   :  { %v2268_v28 = vpop.eup %2267 }
 0x94a   :  { %v859_v34 = vmul.f32 %v2268_v28, %v2617_v38 }
 0x94c   :  { %v2270_v31 = vpop.eup %2269 }
 0x94d   :  { %v958_v37 = vmul.f32 %v2270_v31, %v2621_v41 }
 0x9aa   :  { %v862_v29 = vpop.permute.xlu0 %861 }
 0x9ab   :  { %v864_v30 = vmul.f32 %v2268_v28, %v862_v29 }
 0x9ad   :  { %866 = vrot.lane.b32.xlu0 %v864_v30, %s2371_s4 }
 0x9ae   :  { %v961_v32 = vpop.permute.xlu1 %960 }
 0x9af   :  { %v963_v33 = vmul.f32 %v2270_v31, %v961_v32 }
 0x9b1   :  { %965 = vrot.lane.b32.xlu1 %v963_v33, %s2371_s4 }
 0xa1f   :  { %v867_v35 = vpop.permute.xlu0 %866 }
 0xa20   :  { %v2670_v36 = vadd.f32 %v867_v35, %v859_v34 }
 0xa22   :  { %2271 = vtanh.f32 %v2670_v36 }
 0xa23   :  { %v966_v39 = vpop.permute.xlu1 %965 }
 0xa24   :  { %v2674_v40 = vadd.f32 %v966_v39, %v958_v37 }
 0xa26   :  { %2273 = vtanh.f32 %v2674_v40 }
 0xa2c   :  { %v2272_v42 = vpop.eup %2271 }
 0xa2d   :  { %872 = vrot.lane.b32.xlu0 %v2272_v42, %s2370_s3 }
 0xa30   :  { %v2274_v44 = vpop.eup %2273 }
 0xa31   :  { %971 = vrot.lane.b32.xlu1 %v2274_v44, %s2370_s3 }
 0xa9f   :  { %v873_v45 = vpop.permute.xlu0 %872 }
 0xaa0   :  { %v875_v38 = vmul.f32 %v2268_v28, %v873_v45 }
 0xaa2   :  { %976 = vrot.lane.b32.xlu0 %v875_v38, %s2371_s4  ;;  %v100_v38 = vmul.f32 %v2483_v18, %v2606_v59 }
 0xaa3   :  { %v972_v43 = vpop.permute.xlu1 %971 }
 0xaa4   :  { %v2680_v47 = vmul.f32 %v2270_v31, %v972_v43  ;;  %v115_v43 = vadd.f32 %v2497_v22, %v100_v38 }
 0xaa6   :  { %1084 = vrot.lane.b32.xlu1 %v2680_v47, %s2371_s4 }
 0xb14   :  { %v977_v41 = vpop.permute.xlu0 %976 }
 0xb15   :  { %1831 = vst.msk [vmem:[%s2890_s7 + $0x6] sm:$0x3] %vm354_vm1, %v977_v41  ;;  %2025 = vmatmul.mubr.msk.f32.vlgmr.msra.gmra.mrb[8].mxu0 %vm156_vm2, %v977_v41  ;;  %v127_v41 = vmul.f32 %v2488_v19, %v2602_v57 }
 0xb16   :  { %2166 = vmatpush3.bf16.msra.mxu0 %v2436_v6  ;;  %2046 = vmatprep.mubr.msk.f32.mxu0 %vm2367_vm0, %v2368_v1 }
 0xb17   :  { %2167 = vmatprep.subr.bf16.mxu0 %v2366_v0  ;;  %v142_v51 = vadd.f32 %v2504_v24, %v127_v41 }
 0xb18   :  { %v1085_v46 = vpop.permute.xlu1 %1084 }
 0xb19   :  { %2036 = vmatmul.mubr.msk.f32.vlgmr.msra.gmra.mrb[8].mxu1 %vm156_vm2, %v1085_v46 }
 0xb1a   :  { %2169 = vmatpush3.bf16.msra.mxu0 %v2450_v14  ;;  %2172 = vmatpush3.bf16.msra.mxu1 %v2444_v10 }
 0xb1b   :  { %2057 = vmatprep.mubr.msk.f32.mxu1 %vm2367_vm0, %v2368_v1  ;;  %2173 = vmatprep.subr.bf16.mxu1 %v2366_v0 }
 0xb1c   :  { %2176 = vmatprep.subr.bf16.mxu0 %v2366_v0 }
 0xb1e   :  { %2175 = vmatpush3.bf16.msra.mxu1 %v2454_v15 }
 0xb1f   :  { %2182 = vmatprep.subr.bf16.mxu1 %v2366_v0 }
 0xbe8   :  { %v1055_v54 = vpop.f32.mrb[8].mxu0 }
 0xbe9   :  { %v1059_v56 = vadd.f32 %v1055_v54, %v114_v50  ;;  %v2026_v58 = vpop.f32.mrb[9].mxu0 }
 0xbeb   :  { %2275 = vtanh.f32 %v1059_v56  ;;  %v1060_v55 = vsub.f32 0.0, %v1059_v56 }
 0xbec   :  { %v1154_v62 = vpop.f32.mrb[8].mxu1 }
 0xbed   :  { %v1158_v63 = vadd.f32 %v1154_v62, %v143_v60  ;;  %v2037_v2 = vpop.f32.mrb[9].mxu1  ;;  %v1061_v8 = vmul.f32 1.442695, %v1060_v55 }
 0xbef   :  { %2277 = vtanh.f32 %v1158_v63  ;;  %v1159_v9 = vsub.f32 0.0, %v1158_v63 }
 0xbf0   :  { %2279 = vpow2.f32 %v1061_v8 }
 0xbf1   :  { %v1160_v52 = vmul.f32 1.442695, %v1159_v9 }
 0xbf3   :  { %2281 = vpow2.f32 %v1160_v52 }
 0xbf5   :  { %v2276_v5 = vpop.eup %2275 }
 0xbf6   :  { %1069 = vrot.lane.b32.xlu0 %v2276_v5, %s2370_s3 }
 0xbf9   :  { %v2278_v7 = vpop.eup %2277 }
 0xbfa   :  { %1168 = vrot.lane.b32.xlu1 %v2278_v7, %s2370_s3  ;;  %v2280_v11 = vpop.eup %2279 }
 0xbfb   :  { %v1063_v12 = vadd.f32 1.0, %v2280_v11 }
 0xbfd   :  { %v2282_v13 = vpop.eup %2281  ;;  %2283 = vrcp.f32 %v1063_v12 }
 0xbfe   :  { %v1162_v16 = vadd.f32 1.0, %v2282_v13 }
 0xc00   :  { %2285 = vrcp.f32 %v1162_v16 }
 0xc07   :  { %v2284_v21 = vpop.eup %2283 }
 0xc08   :  { %v1067_v29 = vmul.f32 %v2284_v21, %v2670_v36 }
 0xc0a   :  { %v2286_v26 = vpop.eup %2285 }
 0xc0b   :  { %v1166_v32 = vmul.f32 %v2286_v26, %v2674_v40 }
 0xc68   :  { %v1070_v23 = vpop.permute.xlu0 %1069 }
 0xc69   :  { %v1072_v25 = vmul.f32 %v2284_v21, %v1070_v23 }
 0xc6b   :  { %1074 = vrot.lane.b32.xlu0 %v1072_v25, %s2371_s4 }
 0xc6c   :  { %v1169_v27 = vpop.permute.xlu1 %1168 }
 0xc6d   :  { %v1171_v28 = vmul.f32 %v2286_v26, %v1169_v27 }
 0xc6f   :  { %1173 = vrot.lane.b32.xlu1 %v1171_v28, %s2371_s4 }
 0xcdd   :  { %v1075_v30 = vpop.permute.xlu0 %1074 }
 0xcde   :  { %v2713_v31 = vadd.f32 %v1075_v30, %v1067_v29 }
 0xce0   :  { %2287 = vtanh.f32 %v2713_v31 }
 0xce1   :  { %v1174_v33 = vpop.permute.xlu1 %1173 }
 0xce2   :  { %v2717_v34 = vadd.f32 %v1174_v33, %v1166_v32 }
 0xce4   :  { %2289 = vtanh.f32 %v2717_v34 }
 0xcea   :  { %v2288_v35 = vpop.eup %2287 }
 0xceb   :  { %1080 = vrot.lane.b32.xlu0 %v2288_v35, %s2370_s3 }
 0xcee   :  { %v2290_v37 = vpop.eup %2289 }
 0xcef   :  { %1179 = vrot.lane.b32.xlu1 %v2290_v37, %s2370_s3 }
 0xd5d   :  { %v1081_v39 = vpop.permute.xlu0 %1080 }
 0xd5e   :  { %v1083_v36 = vmul.f32 %v2284_v21, %v1081_v39 }
 0xd60   :  { %1184 = vrot.lane.b32.xlu0 %v1083_v36, %s2371_s4  ;;  %v126_v36 = vmul.f32 %v2488_v19, %v2549_v3 }
 0xd61   :  { %v1180_v42 = vpop.permute.xlu1 %1179 }
 0xd62   :  { %v2723_v44 = vmul.f32 %v2286_v26, %v1180_v42 }
 0xd64   :  { %1290 = vrot.lane.b32.xlu1 %v2723_v44, %s2371_s4 }
 0xdd2   :  { %v2727_v40 = vpop.permute.xlu0 %1184 }
 0xdd3   :  { %2047 = vmatmul.mubr.msk.f32.vlgmr.msra.gmra.mrb[10].mxu0 %vm156_vm2, %v2727_v40 }
 0xdd4   :  { %2178 = vmatpush3.bf16.msra.mxu0 %v2436_v6  ;;  %2068 = vmatprep.mubr.msk.f32.mxu0 %vm2367_vm0, %v2368_v1 }
 0xdd5   :  { %2179 = vmatprep.subr.bf16.mxu0 %v2366_v0 }
 0xdd6   :  { %v1291_v45 = vpop.permute.xlu1 %1290 }
 0xdd7   :  { %2058 = vmatmul.mubr.msk.f32.vlgmr.msra.gmra.mrb[10].mxu1 %vm156_vm2, %v1291_v45 }
 0xdd8   :  { %2181 = vmatpush3.bf16.msra.mxu0 %v2450_v14  ;;  %2184 = vmatpush3.bf16.msra.mxu1 %v2444_v10 }
 0xdd9   :  { %2079 = vmatprep.mubr.msk.f32.mxu1 %vm2367_vm0, %v2368_v1  ;;  %2185 = vmatprep.subr.bf16.mxu1 %v2366_v0 }
 0xdda   :  { %2188 = vmatprep.subr.bf16.mxu0 %v2366_v0 }
 0xddc   :  { %2187 = vmatpush3.bf16.msra.mxu1 %v2454_v15 }
 0xddd   :  { %2194 = vmatprep.subr.bf16.mxu1 %v2366_v0 }
 0xea6   :  { %v1261_v46 = vpop.f32.mrb[10].mxu0 }
 0xea7   :  { %v1265_v49 = vadd.f32 %v1261_v46, %v115_v43  ;;  %v2048_v50 = vpop.f32.mrb[11].mxu0 }
 0xea9   :  { %2291 = vtanh.f32 %v1265_v49  ;;  %v1266_v59 = vsub.f32 0.0, %v1265_v49 }
 0xeaa   :  { %v1360_v54 = vpop.f32.mrb[10].mxu1 }
 0xeab   :  { %v1364_v56 = vadd.f32 %v1360_v54, %v142_v51  ;;  %v2059_v58 = vpop.f32.mrb[11].mxu1  ;;  %v1267_v63 = vmul.f32 1.442695, %v1266_v59 }
 0xead   :  { %2293 = vtanh.f32 %v1364_v56  ;;  %v1365_v2 = vsub.f32 0.0, %v1364_v56 }
 0xeae   :  { %2295 = vpow2.f32 %v1267_v63 }
 0xeaf   :  { %v1366_v57 = vmul.f32 1.442695, %v1365_v2 }
 0xeb1   :  { %2297 = vpow2.f32 %v1366_v57 }
 0xeb3   :  { %v2292_v60 = vpop.eup %2291 }
 0xeb4   :  { %1275 = vrot.lane.b32.xlu0 %v2292_v60, %s2370_s3 }
 0xeb7   :  { %v2294_v62 = vpop.eup %2293 }
 0xeb8   :  { %1374 = vrot.lane.b32.xlu1 %v2294_v62, %s2370_s3  ;;  %v2296_v5 = vpop.eup %2295 }
 0xeb9   :  { %v1269_v7 = vadd.f32 1.0, %v2296_v5 }
 0xebb   :  { %v2298_v55 = vpop.eup %2297  ;;  %2299 = vrcp.f32 %v1269_v7 }
 0xebc   :  { %v1368_v8 = vadd.f32 1.0, %v2298_v55 }
 0xebe   :  { %2301 = vrcp.f32 %v1368_v8 }
 0xec5   :  { %v2300_v9 = vpop.eup %2299 }
 0xec6   :  { %v1273_v21 = vmul.f32 %v2300_v9, %v2713_v31 }
 0xec8   :  { %v2302_v12 = vpop.eup %2301 }
 0xec9   :  { %v1372_v26 = vmul.f32 %v2302_v12, %v2717_v34 }
 0xf26   :  { %v1276_v52 = vpop.permute.xlu0 %1275 }
 0xf27   :  { %v1278_v11 = vmul.f32 %v2300_v9, %v1276_v52 }
 0xf29   :  { %1280 = vrot.lane.b32.xlu0 %v1278_v11, %s2371_s4 }
 0xf2a   :  { %v1375_v13 = vpop.permute.xlu1 %1374 }
 0xf2b   :  { %v1377_v16 = vmul.f32 %v2302_v12, %v1375_v13 }
 0xf2d   :  { %1379 = vrot.lane.b32.xlu1 %v1377_v16, %s2371_s4 }
 0xf9b   :  { %v1281_v23 = vpop.permute.xlu0 %1280 }
 0xf9c   :  { %v2755_v25 = vadd.f32 %v1281_v23, %v1273_v21 }
 0xf9e   :  { %2303 = vtanh.f32 %v2755_v25 }
 0xf9f   :  { %v1380_v27 = vpop.permute.xlu1 %1379 }
 0xfa0   :  { %v2759_v28 = vadd.f32 %v1380_v27, %v1372_v26  ;;  %v125_v27 = vmul.f32 %v2488_v19, %v2478_v17 }
 0xfa2   :  { %2305 = vtanh.f32 %v2759_v28 }
 0xfa8   :  { %v2304_v29 = vpop.eup %2303 }
 0xfa9   :  { %1286 = vrot.lane.b32.xlu0 %v2304_v29, %s2370_s3 }
 0xfac   :  { %v2306_v30 = vpop.eup %2305 }
 0xfad   :  { %1385 = vrot.lane.b32.xlu1 %v2306_v30, %s2370_s3 }
0x101b   :  { %v1287_v32 = vpop.permute.xlu0 %1286 }
0x101c   :  { %v1289_v31 = vmul.f32 %v2300_v9, %v1287_v32  ;;  %v140_v32 = vadd.f32 %v2504_v24, %v125_v27 }
0x101e   :  { %1390 = vrot.lane.b32.xlu0 %v1289_v31, %s2371_s4 }
0x101f   :  { %v1386_v33 = vpop.permute.xlu1 %1385 }
0x1020   :  { %v2765_v35 = vmul.f32 %v2302_v12, %v1386_v33 }
0x1022   :  { %1496 = vrot.lane.b32.xlu1 %v2765_v35, %s2371_s4 }
0x1090   :  { %v2769_v34 = vpop.permute.xlu0 %1390 }
0x1091   :  { %2069 = vmatmul.mubr.msk.f32.vlgmr.msra.gmra.mrb[12].mxu0 %vm156_vm2, %v2769_v34 }
0x1092   :  { %2190 = vmatpush3.bf16.msra.mxu0 %v2436_v6  ;;  %2090 = vmatprep.mubr.msk.f32.mxu0 %vm2367_vm0, %v2368_v1  ;;  %v101_v6 = vmul.f32 %v2483_v18, %v2551_v4 }
0x1093   :  { %2191 = vmatprep.subr.bf16.mxu0 %v2366_v0 }
0x1094   :  { %v1497_v37 = vpop.permute.xlu1 %1496  ;;  %v116_v39 = vadd.f32 %v2497_v22, %v101_v6 }
0x1095   :  { %2080 = vmatmul.mubr.msk.f32.vlgmr.msra.gmra.mrb[12].mxu1 %vm156_vm2, %v1497_v37 }
0x1096   :  { %2193 = vmatpush3.bf16.msra.mxu0 %v2450_v14  ;;  %2196 = vmatpush3.bf16.msra.mxu1 %v2444_v10  ;;  %v141_v10 = vadd.f32 %v2504_v24, %v126_v36 }
0x1097   :  { %2101 = vmatprep.mubr.msk.f32.mxu1 %vm2367_vm0, %v2368_v1  ;;  %2197 = vmatprep.subr.bf16.mxu1 %v2366_v0 }
0x109a   :  { %2199 = vmatpush3.bf16.msra.mxu1 %v2454_v15 }
0x1164   :  { %v1467_v42 = vpop.f32.mrb[12].mxu0 }
0x1165   :  { %v1471_v45 = vadd.f32 %v1467_v42, %v116_v39  ;;  %v2070_v14 = vpop.f32.mrb[13].mxu0 }
0x1167   :  { %2307 = vtanh.f32 %v1471_v45  ;;  %v1472_v4 = vsub.f32 0.0, %v1471_v45 }
0x1168   :  { %v1566_v38 = vpop.f32.mrb[12].mxu1 }
0x1169   :  { %v1570_v1 = vadd.f32 %v1566_v38, %v141_v10  ;;  %v2081_v43 = vpop.f32.mrb[13].mxu1  ;;  %v1473_v41 = vmul.f32 1.442695, %v1472_v4 }
0x116b   :  { %2309 = vtanh.f32 %v1570_v1  ;;  %v1571_v46 = vsub.f32 0.0, %v1570_v1 }
0x116c   :  { %2311 = vpow2.f32 %v1473_v41 }
0x116d   :  { %v1572_v3 = vmul.f32 1.442695, %v1571_v46 }
0x116f   :  { %2313 = vpow2.f32 %v1572_v3 }
0x1171   :  { %v2308_v0 = vpop.eup %2307 }
0x1172   :  { %1481 = vrot.lane.b32.xlu0 %v2308_v0, %s2370_s3 }
0x1175   :  { %v2310_v15 = vpop.eup %2309 }
0x1176   :  { %1580 = vrot.lane.b32.xlu1 %v2310_v15, %s2370_s3  ;;  %v2312_v49 = vpop.eup %2311 }
0x1177   :  { %v1475_v50 = vadd.f32 1.0, %v2312_v49 }
0x1179   :  { %v2314_v51 = vpop.eup %2313  ;;  %2315 = vrcp.f32 %v1475_v50 }
0x117a   :  { %v1574_v54 = vadd.f32 1.0, %v2314_v51 }
0x117c   :  { %2317 = vrcp.f32 %v1574_v54 }
0x1183   :  { %v2316_v56 = vpop.eup %2315 }
0x1184   :  { %v1479_v2 = vmul.f32 %v2316_v56, %v2755_v25  ;;  %v102_v25 = vmul.f32 %v2483_v18, %v2490_v20 }
0x1186   :  { %v2318_v62 = vpop.eup %2317  ;;  %v117_v26 = vadd.f32 %v2497_v22, %v102_v25 }
0x1187   :  { %v1578_v7 = vmul.f32 %v2318_v62, %v2759_v28 }
0x11e4   :  { %v1482_v58 = vpop.permute.xlu0 %1481 }
0x11e5   :  { %v1484_v60 = vmul.f32 %v2316_v56, %v1482_v58 }
0x11e7   :  { %1486 = vrot.lane.b32.xlu0 %v1484_v60, %s2371_s4 }
0x11e8   :  { %v1581_v59 = vpop.permute.xlu1 %1580 }
0x11e9   :  { %v1583_v63 = vmul.f32 %v2318_v62, %v1581_v59 }
0x11eb   :  { %1585 = vrot.lane.b32.xlu1 %v1583_v63, %s2371_s4 }
0x1259   :  { %v1487_v57 = vpop.permute.xlu0 %1486 }
0x125a   :  { %v1489_v5 = vadd.f32 %v1487_v57, %v1479_v2 }
0x125c   :  { %2319 = vtanh.f32 %v1489_v5 }
0x125d   :  { %v1586_v55 = vpop.permute.xlu1 %1585 }
0x125e   :  { %v1588_v8 = vadd.f32 %v1586_v55, %v1578_v7 }
0x1260   :  { %2321 = vtanh.f32 %v1588_v8 }
0x1266   :  { %v2320_v9 = vpop.eup %2319 }
0x1267   :  { %1492 = vrot.lane.b32.xlu0 %v2320_v9, %s2370_s3 }
0x126a   :  { %v2322_v52 = vpop.eup %2321 }
0x126b   :  { %1591 = vrot.lane.b32.xlu1 %v2322_v52, %s2370_s3 }
0x12d9   :  { %v1493_v11 = vpop.permute.xlu0 %1492 }
0x12da   :  { %v1495_v12 = vmul.f32 %v2316_v56, %v1493_v11 }
0x12dc   :  { %1596 = vrot.lane.b32.xlu0 %v1495_v12, %s2371_s4 }
0x12dd   :  { %v1592_v13 = vpop.permute.xlu1 %1591 }
0x12de   :  { %v1594_v16 = vmul.f32 %v2318_v62, %v1592_v13 }
0x12e0   :  { %1702 = vrot.lane.b32.xlu1 %v1594_v16, %s2371_s4 }
0x134e   :  { %v2800_v21 = vpop.permute.xlu0 %1596 }
0x134f   :  { %2091 = vmatmul.mubr.msk.f32.vlgmr.msra.gmra.mrb[14].mxu0 %vm156_vm2, %v2800_v21 }
0x1352   :  { %v1703_v23 = vpop.permute.xlu1 %1702 }
0x1353   :  { %2102 = vmatmul.mubr.msk.f32.vlgmr.msra.gmra.mrb[14].mxu1 %vm156_vm2, %v1703_v23 }
0x1422   :  { %v1673_v28 = vpop.f32.mrb[14].mxu0 }
0x1423   :  { %v1677_v29 = vadd.f32 %v1673_v28, %v117_v26  ;;  %v2092_v30 = vpop.f32.mrb[15].mxu0 }
0x1425   :  { %2323 = vtanh.f32 %v1677_v29  ;;  %v1678_v18 = vsub.f32 0.0, %v1677_v29 }
0x1426   :  { %v1772_v31 = vpop.f32.mrb[14].mxu1 }
0x1427   :  { %v1776_v33 = vadd.f32 %v1772_v31, %v140_v32  ;;  %v2103_v37 = vpop.f32.mrb[15].mxu1  ;;  %v1679_v20 = vmul.f32 1.442695, %v1678_v18 }
0x1429   :  { %2325 = vtanh.f32 %v1776_v33  ;;  %v1777_v22 = vsub.f32 0.0, %v1776_v33 }
0x142a   :  { %2327 = vpow2.f32 %v1679_v20 }
0x142b   :  { %v1778_v17 = vmul.f32 1.442695, %v1777_v22 }
0x142d   :  { %2329 = vpow2.f32 %v1778_v17 }
0x142f   :  { %v2324_v6 = vpop.eup %2323 }
0x1430   :  { %1687 = vrot.lane.b32.xlu0 %v2324_v6, %s2370_s3 }
0x1433   :  { %v2326_v39 = vpop.eup %2325 }
0x1434   :  { %1786 = vrot.lane.b32.xlu1 %v2326_v39, %s2370_s3  ;;  %v2328_v19 = vpop.eup %2327 }
0x1435   :  { %v1681_v36 = vadd.f32 1.0, %v2328_v19 }
0x1437   :  { %v2330_v42 = vpop.eup %2329  ;;  %2331 = vrcp.f32 %v1681_v36 }
0x1438   :  { %v1780_v24 = vadd.f32 1.0, %v2330_v42 }
0x143a   :  { %2333 = vrcp.f32 %v1780_v24 }
0x1441   :  { %v2332_v45 = vpop.eup %2331 }
0x1442   :  { %v1685_v0 = vmul.f32 %v2332_v45, %v1489_v5 }
0x1444   :  { %v2334_v38 = vpop.eup %2333 }
0x1445   :  { %v1784_v41 = vmul.f32 %v2334_v38, %v1588_v8 }
0x14a2   :  { %v1688_v14 = vpop.permute.xlu0 %1687 }
0x14a3   :  { %v1690_v10 = vmul.f32 %v2332_v45, %v1688_v14 }
0x14a5   :  { %1692 = vrot.lane.b32.xlu0 %v1690_v10, %s2371_s4 }
0x14a6   :  { %v1787_v1 = vpop.permute.xlu1 %1786 }
0x14a7   :  { %v1789_v43 = vmul.f32 %v2334_v38, %v1787_v1 }
0x14a9   :  { %1791 = vrot.lane.b32.xlu1 %v1789_v43, %s2371_s4 }
0x1517   :  { %v1693_v15 = vpop.permute.xlu0 %1692 }
0x1518   :  { %v1695_v4 = vadd.f32 %v1693_v15, %v1685_v0 }
0x151a   :  { %2335 = vtanh.f32 %v1695_v4 }
0x151b   :  { %v1792_v46 = vpop.permute.xlu1 %1791 }
0x151c   :  { %v1794_v3 = vadd.f32 %v1792_v46, %v1784_v41 }
0x151e   :  { %2337 = vtanh.f32 %v1794_v3 }
0x1524   :  { %v2336_v49 = vpop.eup %2335 }
0x1525   :  { %1698 = vrot.lane.b32.xlu0 %v2336_v49, %s2370_s3 }
0x1528   :  { %v2338_v50 = vpop.eup %2337 }
0x1529   :  { %357 = vrot.lane.b32.xlu0 %v2524_v61, %s2370_s3  ;;  %1797 = vrot.lane.b32.xlu1 %v2338_v50, %s2370_s3 }
0x152d   :  { %774 = vrot.lane.b32.xlu0 %v2630_v48, %s2370_s3  ;;  %566 = vrot.lane.b32.xlu1 %v2577_v53, %s2370_s3 }
0x1531   :  { %1189 = vrot.lane.b32.xlu0 %v2723_v44, %s2370_s3  ;;  %982 = vrot.lane.b32.xlu1 %v2680_v47, %s2370_s3 }
0x1535   :  { %1601 = vrot.lane.b32.xlu0 %v1594_v16, %s2370_s3  ;;  %1395 = vrot.lane.b32.xlu1 %v2765_v35, %s2370_s3 }
0x1597   :  { %v1699_v61 = vpop.permute.xlu0 %1698 }
0x1598   :  { %v1701_v51 = vmul.f32 %v2332_v45, %v1699_v61 }
0x159a   :  { %1802 = vrot.lane.b32.xlu1 %v1701_v51, %s2371_s4 }
0x159b   :  { %v358_v48 = vpop.permute.xlu0 %357  ;;  %v1798_v54 = vpop.permute.xlu1 %1797 }
0x159c   :  { %1820 = vst.msk [vmem:[%s2890_s7 + $0xe] sm:$0x3] %vm361_vm3, %v358_v48  ;;  %v1800_v53 = vmul.f32 %v2334_v38, %v1798_v54 }
0x159e   :  { %1807 = vrot.lane.b32.xlu0 %v1800_v53, %s2370_s3 }
0x159f   :  { %v775_v47 = vpop.permute.xlu0 %774  ;;  %v567_v44 = vpop.permute.xlu1 %566 }
0x15a0   :  { %1828 = vst.msk [vmem:[%s2890_s7 + $0xa] sm:$0x3] %vm361_vm3, %v775_v47  ;;  %1824 = vst.msk [vmem:[%s2890_s7 + $0xc] sm:$0x3] %vm361_vm3, %v567_v44 }
0x15a1   :  { %1839 = vst.msk [vmem:[%s2890_s7 + $0xa] sm:$0x3] %vm354_vm1, %v2769_v34  ;;  %1843 = vst.msk [vmem:[%s2890_s7 + $0xc] sm:$0x3] %vm354_vm1, %v2800_v21 }
0x15a3   :  { %v1190_v35 = vpop.permute.xlu0 %1189  ;;  %v983_v56 = vpop.permute.xlu1 %982 }
0x15a4   :  { %1836 = vst.msk [vmem:[%s2890_s7 + $0x6] sm:$0x3] %vm361_vm3, %v1190_v35  ;;  %1832 = vst.msk [vmem:[%s2890_s7 + $0x8] sm:$0x3] %vm361_vm3, %v983_v56 }
0x15a5   :  { %1835 = vst.msk [vmem:[%s2890_s7 + $0x8] sm:$0x3] %vm354_vm1, %v2727_v40 }
0x15a7   :  { %v1602_v34 = vpop.permute.xlu0 %1601  ;;  %v1396_v58 = vpop.permute.xlu1 %1395 }
0x15a8   :  { %1844 = vst.msk [vmem:[%s2890_s7 + $0x2] sm:$0x3] %vm361_vm3, %v1602_v34  ;;  %1840 = vst.msk [vmem:[%s2890_s7 + $0x4] sm:$0x3] %vm361_vm3, %v1396_v58 }
0x160c   :  { %v1803_v60 = vpop.permute.xlu1 %1802 }
0x160d   :  { %1847 = vst.msk [vmem:[%s2890_s7 + $0xe] sm:$0x3] %vm354_vm1, %v1803_v60 }
0x1610   :  { %v1808_v62 = vpop.permute.xlu0 %1807 }
0x1611   :  { %1810 = vst.msk [vmem:[%s2890_s7] sm:$0x3] %vm361_vm3, %v1808_v62 }
0x1612   :  { %1815 = vsyncpa [#allocation3], 1 }

// kernel: rnn_decoder_forward.3
= control target key start
LH: loop header
LB: loop body
LE: loop exit
PB: predicated region body
PF: predicated region fallthrough
CT: control target
= control target key end

     0   :  { %s7753_s0 = inlined_call_operand.vmem [shape: f32[2,64,8], index: 0, kind: input, shape index: {}]   ;;  %s7754_s1 = inlined_call_operand.vmem [shape: f32[64,1024], index: 1, kind: input, shape index: {}]   ;;  %s7755_s2 = inlined_call_operand.vmem [shape: f32[64,1], index: 2, kind: input, shape index: {}]   ;;  %s7756_s3 = inlined_call_operand.hbm [shape: f32[32,1024], index: 3, kind: input, shape index: {}]   ;;  %s7757_s4 = inlined_call_operand.vmem [shape: f32[32,1], index: 4, kind: input, shape index: {}]   ;;  %s7758_s5 = inlined_call_operand.vmem [shape: f32[16,512], index: 5, kind: input, shape index: {}]   ;;  %s7759_s6 = inlined_call_operand.vmem [shape: f32[16,1], index: 6, kind: input, shape index: {}]   ;;  %s7760_s7 = inlined_call_operand.hbm [shape: f32[8,256], index: 7, kind: input, shape index: {}]   ;;  %s7761_s8 = inlined_call_operand.vmem [shape: f32[8,1], index: 8, kind: input, shape index: {}]   ;;  %s7762_s9 = inlined_call_operand.hbm [shape: f32[1,128], index: 9, kind: input, shape index: {}]   ;;  %s7763_s10 = inlined_call_operand.<no memory space> [shape: f32[1,1], index: 10, kind: input, shape index: {}]   ;;  %s7764_s11 = inlined_call_operand.vmem [shape: f32[8,16], index: 11, kind: input, shape index: {}]   ;;  %s7765_s12 = inlined_call_operand.vmem [shape: f32[16,32], index: 12, kind: input, shape index: {}]   ;;  %s7766_s13 = inlined_call_operand.hbm [shape: f32[2,1,32], index: 13, kind: output, shape index: {}]  }
   0x1   :  { %7809 = sst [smem:[#allocation24_spill]] %s7753_s0  ;;  %v18_v0 = vstv %s7763_s10 }
   0x2   :  { %7810 = sst [smem:[#allocation25_spill]] %s7754_s1  ;;  %19 = vst [vmem:[#allocation7] sm:$0x1] %v18_v0 }
   0x3   :  { %7811 = sst [smem:[#allocation26_spill]] %s7755_s2 }
   0x4   :  { %7812 = sst [smem:[#allocation27_spill]] %s7756_s3 }
   0x5   :  { %7813 = sst [smem:[#allocation28_spill]] %s7760_s7 }
   0x6   :  { %20 = vsyncpa [#allocation9], 0 }
   0x7   :  { %21 = vsyncpa [#allocation12], 0 }
   0x8   :  { %22 = vsyncpa [#allocation10], 0 }
   0x9   :  { %24 = vsyncpa [#allocation10 + $0x1], 0  ;;  %s5544_s27 = smov 0   ;;  %s5546_s28 = smov 0  }
   0xa   :  { %s5548_s29 = smov 0   ;;  %s5550_s30 = smov 0  }
   0xb LB: > { %7814 = sst [smem:[#allocation18_spill]] %s5432_s27  ;;  %s5565_s10 = sadd.s32 4294967295, %s5444_s30   ;;  %s5444_s30 = sphi %s5550_s30, %s7866_s30   ;;  %s5440_s29 = sphi %s5548_s29, %s7868_s29   ;;  %s5436_s28 = sphi %s5546_s28, %s7870_s28   ;;  %s5432_s27 = sphi %s5544_s27, %s7869_s27  }
   0xc   : > { %7815 = sst [smem:[#allocation19_spill]] %s5440_s29  ;;  %s4209_s14 = sadd.s32 4294967294, %s5444_s30  }
   0xd   : > { %7816 = sst [smem:[#allocation20_spill]] %s5444_s30  ;;  %s5569_s15 = sadd.s32 1, %s5444_s30  }
   0xe   : > { %7817 = sst [smem:[#allocation21_spill]] %s5569_s15  ;;  %s315_s16 = sadd.s32 1, %s5440_s29 }
   0xf   : > { %s312_s17 = ssub.s32 %s5444_s30, %s5569_s15  ;;  %p325_p0 = scmp.ne.s32.totalorder %s5440_s29, %s5436_s28 }
  0x10   : > { %p313_p1 = scmp.eq.s32.totalorder %s312_s17, 0  ;;  %p326_p2 = scmp.eq.s32.totalorder %s5565_s10, 1 }
  0x11   : > { %p331_p3 = scmp.ne.s32.totalorder %s5436_s28, %s5432_s27  ;;  %p332_p4 = scmp.eq.s32.totalorder %s4209_s14, 1 }
  0x12   : > { %s5580_s18 = scalar_select %p313_p1, %s5440_s29, %s315_s16  }
  0x13   : > { %p5582_p5 = por %p326_p2, %p325_p0  ;;  %p5586_p6 = por %p332_p4, %p331_p3 }
  0x14   : > { %7818 = sst [smem:[#allocation22_spill]] %s5580_s18  ;;  %p4210_p7 = scmp.ge.s32.totalorder %s5444_s30, 1 }
  0x15   : > { %s7819_s19 = scalar_select %p5582_p5, 1, 0 }
  0x16   : > { %s7820_s20 = scalar_select %p5586_p6, 1, 0 }
  0x17   : > { %p339_p8 = scmp.lt.s32.totalorder %s5444_s30, 3  ;;  %p7771_p9 = scmp.eq.s32.totalorder %s5565_s10, 0 }
  0x18   : > { %7821 = sst [smem:[#allocation23_spill]] %s7820_s20  ;;  %s5446_s22 = smov [#allocation11]  }
  0x19   : > { %p5593_p10 = pnand %p4210_p7, %p339_p8  ;;  %s380_s23 = sshll.u32 %s5446_s22, 4  ;;  %s381_s23 = int_to_ptr.vmem [resolvable:$true] %s380_s23 }
  0x1a   : > { %s5447_s24 = smov [#allocation8]   ;;  %s5448_s14 = smov [#allocation13]  }
  0x1b   : > { %s7822_s21 = scalar_select %p5593_p10, 1, 0 }
  0x1c   : > { %p5209_p11 = pneg %p5593_p10  ;;  %s357_s25 = sshll.u32 %s5447_s24, 4  ;;  %s5605_s25 = int_to_ptr.vmem [resolvable:$true] %s357_s25 }
  0x1d   : > { %s5607_s16 = sshll.u32 %s5448_s14, 4  ;;  %s7824_s7 = sld [smem:[#allocation28_spill]]  ;;  %s395_s16 = int_to_ptr.vmem [resolvable:$true] %s5607_s16 }
  0x1e   : > { %p5601_p12 = pnand %p7771_p9, %p5209_p11 }
  0x20   : > { %p5617_p0 = pneg %p5601_p12 }
  0x23   : > { %s5290_s22 = scalar_lea.hbm %s7824_s7, 256 }
  0x24   : > { %p5291_p13 = scmp.ne.s32.totalorder %s7824_s7, %s5290_s22  ;;  %p5297_p3 = scmp.lt.u32.totalorder %s5290_s22, %s7824_s7 }
  0x26   : > { %p5293_p1 = pnand %p5617_p0, %p5291_p13 }
  0x28   : > { %p5294_p2 = pneg %p5293_p1 }
  0x2a   : > { %p5299_p4 = pnand %p5297_p3, %p5294_p2 }
  0x2c   : > { %5302 = shalt.err (!%p5299_p4)
}
  0x2d   : > { %s5303_s18 = scalar_lea.vmem %s381_s23, 256  ;;  %p5311_p9 = scmp.lt.s32.totalorder %s381_s23, %s381_s23 }
  0x2e   : > { %p5304_p7 = scmp.ne.s32.totalorder %s381_s23, %s5303_s18  ;;  %p5312_p6 = scmp.lt.s32.totalorder %s5303_s18, %s5303_s18 }
  0x30   : > { %p5306_p8 = pnand %p5304_p7, %p5617_p0  ;;  %p5313_p5 = por %p5312_p6, %p5311_p9 }
  0x32   : > { %p5307_p11 = pneg %p5306_p8 }
  0x34   : > { %p5314_p10 = pnand %p5313_p5, %p5307_p11 }
  0x36   : > { %5317 = shalt.err (!%p5314_p10)
}
  0x37   : > { %5215 = dma.hbm_to_vmem [thread:$0]  (!%p5601_p12), %s7824_s7, 256, %s381_s23, [#allocation12]  }
  0x38   : > { %s7826_s3 = sld [smem:[#allocation27_spill]] }
  0x3e   : > { %s5318_s22 = scalar_lea.hbm %s7826_s3, 4096 }
  0x3f   : > { %p5319_p13 = scmp.ne.s32.totalorder %s7826_s3, %s5318_s22  ;;  %p5325_p5 = scmp.lt.u32.totalorder %s5318_s22, %s7826_s3 }
  0x41   : > { %p5321_p1 = pnand %p5319_p13, %p5617_p0 }
  0x43   : > { %p5322_p6 = pneg %p5321_p1 }
  0x45   : > { %p5327_p9 = pnand %p5325_p5, %p5322_p6 }
  0x47   : > { %5330 = shalt.err (!%p5327_p9)
}
  0x48   : > { %s5331_s23 = scalar_lea.vmem %s5605_s25, 4096  ;;  %p5339_p4 = scmp.lt.s32.totalorder %s5605_s25, %s5605_s25 }
  0x49   : > { %p5332_p10 = scmp.ne.s32.totalorder %s5605_s25, %s5331_s23  ;;  %p5340_p7 = scmp.lt.s32.totalorder %s5331_s23, %s5331_s23 }
  0x4b   : > { %p5334_p2 = pnand %p5332_p10, %p5617_p0  ;;  %p5341_p8 = por %p5340_p7, %p5339_p4 }
  0x4d   : > { %p5335_p3 = pneg %p5334_p2 }
  0x4f   : > { %p5342_p11 = pnand %p5341_p8, %p5335_p3 }
  0x51   : > { %5345 = shalt.err (!%p5342_p11)
}
  0x52   : > { %s5449_s27 = smov 1024   ;;  %s5450_s30 = smov 64  }
  0x53   : > { %5212 = dma.hbm_to_vmem [thread:$0]  (!%p5601_p12), %s7826_s3, 4096, %s5605_s25, [#allocation9], %s5449_s27, %s5449_s27, %s5450_s30  }
  0x54   : > { %s5346_s22 = scalar_lea.hbm %s7762_s9, 16 }
  0x55   : > { %p5347_p13 = scmp.ne.s32.totalorder %s7762_s9, %s5346_s22  ;;  %p5353_p5 = scmp.lt.u32.totalorder %s5346_s22, %s7762_s9 }
  0x57   : > { %p5349_p1 = pnand %p5347_p13, %p5617_p0 }
  0x59   : > { %p5350_p6 = pneg %p5349_p1 }
  0x5b   : > { %p5355_p9 = pnand %p5353_p5, %p5350_p6 }
  0x5d   : > { %5358 = shalt.err (!%p5355_p9)
}
  0x5e   : > { %s5359_s29 = scalar_lea.vmem %s395_s16, 16  ;;  %s5366_s25 = scalar_lea.vmem %s395_s16, 32 }
  0x5f   : > { %p5360_p10 = scmp.ne.s32.totalorder %s395_s16, %s5359_s29  ;;  %p5367_p4 = scmp.lt.s32.totalorder %s395_s16, %s395_s16 }
  0x60   : > { %p5368_p7 = scmp.lt.s32.totalorder %s5366_s25, %s5359_s29 }
  0x61   : > { %p5362_p2 = pnand %p5360_p10, %p5617_p0 }
  0x62   : > { %p5369_p8 = por %p5368_p7, %p5367_p4 }
  0x63   : > { %p5363_p3 = pneg %p5362_p2 }
  0x65   : > { %p5370_p11 = pnand %p5369_p8, %p5363_p3 }
  0x67   : > { %5373 = shalt.err (!%p5370_p11)
}
  0x68   : > { %5218 = dma.hbm_to_vmem [thread:$0]  (!%p5601_p12), %s7762_s9, 16, %s395_s16, [#allocation12]  }
  0x69   : > { %p7827_p13 = scmp.ne.s32.totalorder %s7822_s21, 0 }
  0x6a   : > { %p7828_p1 = scmp.eq.s32.totalorder (!%p7827_p13), %s5565_s10, 0 }
  0x6b   : > { %424 = sbr.rel (%p7827_p13) target bundleno = 2967 (0xb97), region = 72 }
  0x72   : > { %5419 = dma.done.wait (%p7828_p1), [#allocation9], 4096   ;;  %p7829_p0 = pmov %p7828_p1 }
  0x74   : > { %5421 = vsyncadd (%p7829_p0), [#allocation9], 4294963200  ;;  %p7830_p6 = pmov %p7829_p0 }
  0x75   : > { %p7831_p5 = pmov %p7829_p0 }
  0x76   : > { %5423 = dma.done.wait (%p7830_p6), [#allocation12], 272  }
  0x77   : > { %5425 = vsyncadd (%p7831_p5), [#allocation12], 4294967024  ;;  %p475_p9 = scmp.lt.s32.totalorder %s5565_s10, 1  ;;  %vm7807_vm0 = vcmask 64512   ;;  %v5451_v1 = vmov 0.0   ;;  %s7832_s0 = sld [smem:[#allocation24_spill]] }
  0x78   : > { %489 = vst.msk [vmem:[#allocation2] sm:$0xff] %vm7807_vm0, %v5451_v1  ;;  %490 = vst.msk [vmem:[#allocation2 + $0x8] sm:$0xff] %vm7807_vm0, %v5451_v1  ;;  %s7803_s15 = smov 7   ;;  %s7795_s20 = smov 5   ;;  %vm649_vm1 = vcmask 64568   ;;  %vm715_vm2 = vcmask 64552  }
  0x79   : > { %491 = vst.msk [vmem:[#allocation2 + $0x10] sm:$0xff] %vm7807_vm0, %v5451_v1  ;;  %492 = vst.msk [vmem:[#allocation2 + $0x18] sm:$0xff] %vm7807_vm0, %v5451_v1  ;;  %s476_s7 = scalar_select %p475_p9, %s5565_s10, 1  ;;  %vm847_vm3 = vcmask 64520   ;;  %vm781_vm4 = vcmask 64536   ;;  %vm748_vm5 = vcmask 64544  }
  0x7a   : > { %493 = vst.msk [vmem:[#allocation2 + $0x20] sm:$0xff] %vm7807_vm0, %v5451_v1  ;;  %494 = vst.msk [vmem:[#allocation2 + $0x28] sm:$0xff] %vm7807_vm0, %v5451_v1  ;;  %s7797_s17 = smov 1   ;;  %s7801_s22 = smov 3   ;;  %vm682_vm6 = vcmask 64560   ;;  %vm814_vm7 = vcmask 64528  }
  0x7b   : > { %495 = vst.msk [vmem:[#allocation2 + $0x30] sm:$0xff] %vm7807_vm0, %v5451_v1  ;;  %496 = vst.msk [vmem:[#allocation2 + $0x38] sm:$0xff] %vm7807_vm0, %v5451_v1  ;;  %s4229_s21 = sshll.u32 %s476_s7, 6  ;;  %s7793_s14 = smov 4   ;;  %vm954_vm8 = vcmask 39936   ;;  %vm888_vm9 = vcmask 56320  }
  0x7c   : > { %497 = vst.msk [vmem:[#allocation2 + $0x40] sm:$0xff] %vm7807_vm0, %v5451_v1  ;;  %498 = vst.msk [vmem:[#allocation2 + $0x48] sm:$0xff] %vm7807_vm0, %v5451_v1  ;;  %s7799_s18 = smov 6   ;;  %s7790_s23 = smov 2   ;;  %vm1086_vm10 = vcmask 7168   ;;  %vm1020_vm11 = vcmask 23552  }
  0x7d   : > { %499 = vst.msk [vmem:[#allocation2 + $0x50] sm:$0xff] %vm7807_vm0, %v5451_v1  ;;  %500 = vst.msk [vmem:[#allocation2 + $0x58] sm:$0xff] %vm7807_vm0, %v5451_v1  ;;  %s479_s24 = scalar_lea.vmem %s7832_s0, %s4229_s21  ;;  %s7833_s1 = sld [smem:[#allocation25_spill]]  ;;  %vm987_vm12 = vcmask 31744   ;;  %vm921_vm13 = vcmask 48128   ;;  %vm7792_vm14 = vcmask 15360  }
  0x7e   : > { %501 = vst.msk [vmem:[#allocation2 + $0x60] sm:$0xff] %vm7807_vm0, %v5451_v1  ;;  %502 = vst.msk [vmem:[#allocation2 + $0x68] sm:$0xff] %vm7807_vm0, %v5451_v1  ;;  %v6204_v2 = vld [vmem:[%s479_s24] sm:$0xff]  ;;  %v6206_v3 = vld [vmem:[%s479_s24 + $0x8] sm:$0xff]  ;;  %s7788_s27 = smov 125   ;;  %s7786_s30 = smov 127  }
  0x7f   : > { %503 = vst.msk [vmem:[#allocation2 + $0x70] sm:$0xff] %vm7807_vm0, %v5451_v1  ;;  %504 = vst.msk [vmem:[#allocation2 + $0x78] sm:$0xff] %vm7807_vm0, %v5451_v1  ;;  %v6208_v4 = vld [vmem:[%s479_s24 + $0x18] sm:$0xff]  ;;  %625 = vrot.lane.b32.xlu1 %v6204_v2, %s7803_s15  ;;  %691 = vrot.lane.b32.xlu0 %v6204_v2, %s7795_s20  ;;  %v6214_v5 = vld [vmem:[%s479_s24 + $0x10] sm:$0xff]  ;;  %s7784_s26 = smov 121   ;;  %s7782_s16 = smov 123  }
  0x80   : > { %505 = vst.msk [vmem:[#allocation2 + $0x80] sm:$0xff] %vm7807_vm0, %v5451_v1  ;;  %506 = vst.msk [vmem:[#allocation2 + $0x88] sm:$0xff] %vm7807_vm0, %v5451_v1  ;;  %v6216_v6 = vld [vmem:[%s479_s24 + $0x28] sm:$0xff]  ;;  %v6224_v7 = vld [vmem:[%s479_s24 + $0x20] sm:$0xff]  ;;  %s7778_s29 = smov 126   ;;  %s7776_s25 = smov 122  }
  0x81   : > { %507 = vst.msk [vmem:[#allocation2 + $0x90] sm:$0xff] %vm7807_vm0, %v5451_v1  ;;  %508 = vst.msk [vmem:[#allocation2 + $0x98] sm:$0xff] %vm7807_vm0, %v5451_v1  ;;  %v6226_v8 = vld [vmem:[%s479_s24 + $0x38] sm:$0xff]  ;;  %v6228_v9 = vld [vmem:[%s479_s24 + $0x30] sm:$0xff]  ;;  %s7780_s24 = smov 124   ;;  %s7834_s2 = sld [smem:[#allocation26_spill]] }
  0x82   : > { %509 = vst.msk [vmem:[#allocation2 + $0xa0] sm:$0xff] %vm7807_vm0, %v5451_v1  ;;  %510 = vst.msk [vmem:[#allocation2 + $0xa8] sm:$0xff] %vm7807_vm0, %v5451_v1  ;;  %s7838_s7 = smov 121   ;;  %s7839_s21 = smov 123  }
  0x83   : > { %511 = vst.msk [vmem:[#allocation2 + $0xb0] sm:$0xff] %vm7807_vm0, %v5451_v1  ;;  %512 = vst.msk [vmem:[#allocation2 + $0xb8] sm:$0xff] %vm7807_vm0, %v5451_v1  ;;  %627 = vrot.lane.b32.xlu1 %v6206_v3, %s7803_s15  ;;  %693 = vrot.lane.b32.xlu0 %v6206_v3, %s7795_s20  ;;  %v1096_v10 = vld [vmem:[%s7833_s1 + $0x8] sm:$0xff]  ;;  %v1098_v15 = vld [vmem:[%s7833_s1 + $0x18] sm:$0xff]  ;;  %s7856_s3 = smov 120   ;;  %p7861_p10 = scmp.ne.s32.totalorder %s7819_s19, 0 }
  0x84   : > { %513 = vst.msk [vmem:[#allocation2 + $0xc0] sm:$0xff] %vm7807_vm0, %v5451_v1  ;;  %514 = vst.msk [vmem:[#allocation2 + $0xc8] sm:$0xff] %vm7807_vm0, %v5451_v1  ;;  %1399 = vmatprep.mubr.f32.mxu0 %v1096_v10  ;;  %1504 = vmatprep.mubr.f32.mxu1 %v1098_v15 }
  0x85   : > { %515 = vst.msk [vmem:[#allocation2 + $0xd0] sm:$0xff] %vm7807_vm0, %v5451_v1  ;;  %516 = vst.msk [vmem:[#allocation2 + $0xd8] sm:$0xff] %vm7807_vm0, %v5451_v1 }
  0x86   : > { %517 = vst.msk [vmem:[#allocation2 + $0xe0] sm:$0xff] %vm7807_vm0, %v5451_v1  ;;  %518 = vst.msk [vmem:[#allocation2 + $0xe8] sm:$0xff] %vm7807_vm0, %v5451_v1 }
  0x87   : > { %519 = vst.msk [vmem:[#allocation2 + $0xf0] sm:$0xff] %vm7807_vm0, %v5451_v1  ;;  %520 = vst.msk [vmem:[#allocation2 + $0xf8] sm:$0xff] %vm7807_vm0, %v5451_v1  ;;  %825 = vrot.lane.b32.xlu1 %v6206_v3, %s7797_s17  ;;  %823 = vrot.lane.b32.xlu0 %v6204_v2, %s7797_s17 }
  0x88   : > { %521 = vst.msk [vmem:[#allocation2 + $0x100] sm:$0xff] %vm7807_vm0, %v5451_v1  ;;  %522 = vst.msk [vmem:[#allocation2 + $0x108] sm:$0xff] %vm7807_vm0, %v5451_v1 }
  0x89   : > { %523 = vst.msk [vmem:[#allocation2 + $0x110] sm:$0xff] %vm7807_vm0, %v5451_v1  ;;  %524 = vst.msk [vmem:[#allocation2 + $0x118] sm:$0xff] %vm7807_vm0, %v5451_v1 }
  0x8a   : > { %525 = vst.msk [vmem:[#allocation2 + $0x120] sm:$0xff] %vm7807_vm0, %v5451_v1  ;;  %526 = vst.msk [vmem:[#allocation2 + $0x128] sm:$0xff] %vm7807_vm0, %v5451_v1 }
  0x8b   : > { %527 = vst.msk [vmem:[#allocation2 + $0x130] sm:$0xff] %vm7807_vm0, %v5451_v1  ;;  %528 = vst.msk [vmem:[#allocation2 + $0x138] sm:$0xff] %vm7807_vm0, %v5451_v1  ;;  %759 = vrot.lane.b32.xlu1 %v6206_v3, %s7801_s22  ;;  %757 = vrot.lane.b32.xlu0 %v6204_v2, %s7801_s22 }
  0x8c   : > { %529 = vst.msk [vmem:[#allocation2 + $0x140] sm:$0xff] %vm7807_vm0, %v5451_v1  ;;  %530 = vst.msk [vmem:[#allocation2 + $0x148] sm:$0xff] %vm7807_vm0, %v5451_v1 }
  0x8d   : > { %531 = vst.msk [vmem:[#allocation2 + $0x150] sm:$0xff] %vm7807_vm0, %v5451_v1  ;;  %532 = vst.msk [vmem:[#allocation2 + $0x158] sm:$0xff] %vm7807_vm0, %v5451_v1 }
  0x8e   : > { %533 = vst.msk [vmem:[#allocation2 + $0x160] sm:$0xff] %vm7807_vm0, %v5451_v1  ;;  %534 = vst.msk [vmem:[#allocation2 + $0x168] sm:$0xff] %vm7807_vm0, %v5451_v1 }
  0x8f   : > { %535 = vst.msk [vmem:[#allocation2 + $0x170] sm:$0xff] %vm7807_vm0, %v5451_v1  ;;  %536 = vst.msk [vmem:[#allocation2 + $0x178] sm:$0xff] %vm7807_vm0, %v5451_v1  ;;  %697 = vrot.lane.b32.xlu1 %v6208_v4, %s7795_s20  ;;  %695 = vrot.lane.b32.xlu0 %v6214_v5, %s7795_s20 }
  0x90   : > { %537 = vst.msk [vmem:[#allocation2 + $0x180] sm:$0xff] %vm7807_vm0, %v5451_v1  ;;  %538 = vst.msk [vmem:[#allocation2 + $0x188] sm:$0xff] %vm7807_vm0, %v5451_v1 }
  0x91   : > { %539 = vst.msk [vmem:[#allocation2 + $0x190] sm:$0xff] %vm7807_vm0, %v5451_v1  ;;  %540 = vst.msk [vmem:[#allocation2 + $0x198] sm:$0xff] %vm7807_vm0, %v5451_v1 }
  0x92   : > { %541 = vst.msk [vmem:[#allocation2 + $0x1a0] sm:$0xff] %vm7807_vm0, %v5451_v1  ;;  %542 = vst.msk [vmem:[#allocation2 + $0x1a8] sm:$0xff] %vm7807_vm0, %v5451_v1 }
  0x93   : > { %543 = vst.msk [vmem:[#allocation2 + $0x1b0] sm:$0xff] %vm7807_vm0, %v5451_v1  ;;  %544 = vst.msk [vmem:[#allocation2 + $0x1b8] sm:$0xff] %vm7807_vm0, %v5451_v1  ;;  %631 = vrot.lane.b32.xlu1 %v6208_v4, %s7803_s15  ;;  %629 = vrot.lane.b32.xlu0 %v6214_v5, %s7803_s15 }
  0x94   : > { %545 = vst.msk [vmem:[#allocation2 + $0x1c0] sm:$0xff] %vm7807_vm0, %v5451_v1  ;;  %546 = vst.msk [vmem:[#allocation2 + $0x1c8] sm:$0xff] %vm7807_vm0, %v5451_v1 }
  0x95   : > { %547 = vst.msk [vmem:[#allocation2 + $0x1d0] sm:$0xff] %vm7807_vm0, %v5451_v1  ;;  %548 = vst.msk [vmem:[#allocation2 + $0x1d8] sm:$0xff] %vm7807_vm0, %v5451_v1 }
  0x96   : > { %549 = vst.msk [vmem:[#allocation2 + $0x1e0] sm:$0xff] %vm7807_vm0, %v5451_v1  ;;  %550 = vst.msk [vmem:[#allocation2 + $0x1e8] sm:$0xff] %vm7807_vm0, %v5451_v1 }
  0x97   : > { %551 = vst.msk [vmem:[#allocation2 + $0x1f0] sm:$0xff] %vm7807_vm0, %v5451_v1  ;;  %552 = vst.msk [vmem:[#allocation2 + $0x1f8] sm:$0xff] %vm7807_vm0, %v5451_v1  ;;  %829 = vrot.lane.b32.xlu1 %v6208_v4, %s7797_s17  ;;  %827 = vrot.lane.b32.xlu0 %v6214_v5, %s7797_s17 }
  0x98   : > { %553 = vst.msk [vmem:[#allocation2 + $0x200] sm:$0xff] %vm7807_vm0, %v5451_v1  ;;  %554 = vst.msk [vmem:[#allocation2 + $0x208] sm:$0xff] %vm7807_vm0, %v5451_v1 }
  0x99   : > { %555 = vst.msk [vmem:[#allocation2 + $0x210] sm:$0xff] %vm7807_vm0, %v5451_v1  ;;  %556 = vst.msk [vmem:[#allocation2 + $0x218] sm:$0xff] %vm7807_vm0, %v5451_v1 }
  0x9a   : > { %557 = vst.msk [vmem:[#allocation2 + $0x220] sm:$0xff] %vm7807_vm0, %v5451_v1  ;;  %558 = vst.msk [vmem:[#allocation2 + $0x228] sm:$0xff] %vm7807_vm0, %v5451_v1 }
  0x9b   : > { %559 = vst.msk [vmem:[#allocation2 + $0x230] sm:$0xff] %vm7807_vm0, %v5451_v1  ;;  %560 = vst.msk [vmem:[#allocation2 + $0x238] sm:$0xff] %vm7807_vm0, %v5451_v1  ;;  %763 = vrot.lane.b32.xlu1 %v6208_v4, %s7801_s22  ;;  %761 = vrot.lane.b32.xlu0 %v6214_v5, %s7801_s22 }
  0x9c   : > { %561 = vst.msk [vmem:[#allocation2 + $0x240] sm:$0xff] %vm7807_vm0, %v5451_v1  ;;  %562 = vst.msk [vmem:[#allocation2 + $0x248] sm:$0xff] %vm7807_vm0, %v5451_v1 }
  0x9d   : > { %563 = vst.msk [vmem:[#allocation2 + $0x250] sm:$0xff] %vm7807_vm0, %v5451_v1  ;;  %564 = vst.msk [vmem:[#allocation2 + $0x258] sm:$0xff] %vm7807_vm0, %v5451_v1 }
  0x9e   : > { %565 = vst.msk [vmem:[#allocation2 + $0x260] sm:$0xff] %vm7807_vm0, %v5451_v1  ;;  %566 = vst.msk [vmem:[#allocation2 + $0x268] sm:$0xff] %vm7807_vm0, %v5451_v1 }
  0x9f   : > { %567 = vst.msk [vmem:[#allocation2 + $0x270] sm:$0xff] %vm7807_vm0, %v5451_v1  ;;  %568 = vst.msk [vmem:[#allocation2 + $0x278] sm:$0xff] %vm7807_vm0, %v5451_v1  ;;  %701 = vrot.lane.b32.xlu1 %v6216_v6, %s7795_s20  ;;  %699 = vrot.lane.b32.xlu0 %v6224_v7, %s7795_s20 }
  0xa0   : > { %569 = vst.msk [vmem:[#allocation2 + $0x280] sm:$0xff] %vm7807_vm0, %v5451_v1  ;;  %570 = vst.msk [vmem:[#allocation2 + $0x288] sm:$0xff] %vm7807_vm0, %v5451_v1 }
  0xa1   : > { %571 = vst.msk [vmem:[#allocation2 + $0x290] sm:$0xff] %vm7807_vm0, %v5451_v1  ;;  %572 = vst.msk [vmem:[#allocation2 + $0x298] sm:$0xff] %vm7807_vm0, %v5451_v1 }
  0xa2   : > { %573 = vst.msk [vmem:[#allocation2 + $0x2a0] sm:$0xff] %vm7807_vm0, %v5451_v1  ;;  %574 = vst.msk [vmem:[#allocation2 + $0x2a8] sm:$0xff] %vm7807_vm0, %v5451_v1 }
  0xa3   : > { %575 = vst.msk [vmem:[#allocation2 + $0x2b0] sm:$0xff] %vm7807_vm0, %v5451_v1  ;;  %576 = vst.msk [vmem:[#allocation2 + $0x2b8] sm:$0xff] %vm7807_vm0, %v5451_v1  ;;  %635 = vrot.lane.b32.xlu1 %v6216_v6, %s7803_s15  ;;  %633 = vrot.lane.b32.xlu0 %v6224_v7, %s7803_s15 }
  0xa4   : > { %577 = vst.msk [vmem:[#allocation2 + $0x2c0] sm:$0xff] %vm7807_vm0, %v5451_v1  ;;  %578 = vst.msk [vmem:[#allocation2 + $0x2c8] sm:$0xff] %vm7807_vm0, %v5451_v1 }
  0xa5   : > { %579 = vst.msk [vmem:[#allocation2 + $0x2d0] sm:$0xff] %vm7807_vm0, %v5451_v1  ;;  %580 = vst.msk [vmem:[#allocation2 + $0x2d8] sm:$0xff] %vm7807_vm0, %v5451_v1 }
  0xa6   : > { %581 = vst.msk [vmem:[#allocation2 + $0x2e0] sm:$0xff] %vm7807_vm0, %v5451_v1  ;;  %582 = vst.msk [vmem:[#allocation2 + $0x2e8] sm:$0xff] %vm7807_vm0, %v5451_v1 }
  0xa7   : > { %583 = vst.msk [vmem:[#allocation2 + $0x2f0] sm:$0xff] %vm7807_vm0, %v5451_v1  ;;  %584 = vst.msk [vmem:[#allocation2 + $0x2f8] sm:$0xff] %vm7807_vm0, %v5451_v1  ;;  %833 = vrot.lane.b32.xlu1 %v6216_v6, %s7797_s17  ;;  %831 = vrot.lane.b32.xlu0 %v6224_v7, %s7797_s17 }
  0xa8   : > { %585 = vst.msk [vmem:[#allocation2 + $0x300] sm:$0xff] %vm7807_vm0, %v5451_v1  ;;  %586 = vst.msk [vmem:[#allocation2 + $0x308] sm:$0xff] %vm7807_vm0, %v5451_v1 }
  0xa9   : > { %587 = vst.msk [vmem:[#allocation2 + $0x310] sm:$0xff] %vm7807_vm0, %v5451_v1  ;;  %588 = vst.msk [vmem:[#allocation2 + $0x318] sm:$0xff] %vm7807_vm0, %v5451_v1 }
  0xaa   : > { %589 = vst.msk [vmem:[#allocation2 + $0x320] sm:$0xff] %vm7807_vm0, %v5451_v1  ;;  %590 = vst.msk [vmem:[#allocation2 + $0x328] sm:$0xff] %vm7807_vm0, %v5451_v1 }
  0xab   : > { %591 = vst.msk [vmem:[#allocation2 + $0x330] sm:$0xff] %vm7807_vm0, %v5451_v1  ;;  %592 = vst.msk [vmem:[#allocation2 + $0x338] sm:$0xff] %vm7807_vm0, %v5451_v1  ;;  %767 = vrot.lane.b32.xlu1 %v6216_v6, %s7801_s22  ;;  %765 = vrot.lane.b32.xlu0 %v6224_v7, %s7801_s22 }
  0xac   : > { %593 = vst.msk [vmem:[#allocation2 + $0x340] sm:$0xff] %vm7807_vm0, %v5451_v1  ;;  %594 = vst.msk [vmem:[#allocation2 + $0x348] sm:$0xff] %vm7807_vm0, %v5451_v1 }
  0xad   : > { %595 = vst.msk [vmem:[#allocation2 + $0x350] sm:$0xff] %vm7807_vm0, %v5451_v1  ;;  %596 = vst.msk [vmem:[#allocation2 + $0x358] sm:$0xff] %vm7807_vm0, %v5451_v1 }
  0xae   : > { %597 = vst.msk [vmem:[#allocation2 + $0x360] sm:$0xff] %vm7807_vm0, %v5451_v1  ;;  %598 = vst.msk [vmem:[#allocation2 + $0x368] sm:$0xff] %vm7807_vm0, %v5451_v1 }
  0xaf   : > { %599 = vst.msk [vmem:[#allocation2 + $0x370] sm:$0xff] %vm7807_vm0, %v5451_v1  ;;  %600 = vst.msk [vmem:[#allocation2 + $0x378] sm:$0xff] %vm7807_vm0, %v5451_v1  ;;  %705 = vrot.lane.b32.xlu1 %v6226_v8, %s7795_s20  ;;  %703 = vrot.lane.b32.xlu0 %v6228_v9, %s7795_s20 }
  0xb0   : > { %601 = vst.msk [vmem:[#allocation2 + $0x380] sm:$0xff] %vm7807_vm0, %v5451_v1  ;;  %602 = vst.msk [vmem:[#allocation2 + $0x388] sm:$0xff] %vm7807_vm0, %v5451_v1 }
  0xb1   : > { %603 = vst.msk [vmem:[#allocation2 + $0x390] sm:$0xff] %vm7807_vm0, %v5451_v1  ;;  %604 = vst.msk [vmem:[#allocation2 + $0x398] sm:$0xff] %vm7807_vm0, %v5451_v1 }
  0xb2   : > { %605 = vst.msk [vmem:[#allocation2 + $0x3a0] sm:$0xff] %vm7807_vm0, %v5451_v1  ;;  %606 = vst.msk [vmem:[#allocation2 + $0x3a8] sm:$0xff] %vm7807_vm0, %v5451_v1 }
  0xb3   : > { %607 = vst.msk [vmem:[#allocation2 + $0x3b0] sm:$0xff] %vm7807_vm0, %v5451_v1  ;;  %608 = vst.msk [vmem:[#allocation2 + $0x3b8] sm:$0xff] %vm7807_vm0, %v5451_v1  ;;  %639 = vrot.lane.b32.xlu1 %v6226_v8, %s7803_s15  ;;  %637 = vrot.lane.b32.xlu0 %v6228_v9, %s7803_s15 }
  0xb4   : > { %609 = vst.msk [vmem:[#allocation2 + $0x3c0] sm:$0xff] %vm7807_vm0, %v5451_v1  ;;  %610 = vst.msk [vmem:[#allocation2 + $0x3c8] sm:$0xff] %vm7807_vm0, %v5451_v1 }
  0xb5   : > { %611 = vst.msk [vmem:[#allocation2 + $0x3d0] sm:$0xff] %vm7807_vm0, %v5451_v1  ;;  %612 = vst.msk [vmem:[#allocation2 + $0x3d8] sm:$0xff] %vm7807_vm0, %v5451_v1 }
  0xb6   : > { %613 = vst.msk [vmem:[#allocation2 + $0x3e0] sm:$0xff] %vm7807_vm0, %v5451_v1  ;;  %614 = vst.msk [vmem:[#allocation2 + $0x3e8] sm:$0xff] %vm7807_vm0, %v5451_v1 }
  0xb7   : > { %615 = vst.msk [vmem:[#allocation2 + $0x3f0] sm:$0xff] %vm7807_vm0, %v5451_v1  ;;  %616 = vst.msk [vmem:[#allocation2 + $0x3f8] sm:$0xff] %vm7807_vm0, %v5451_v1  ;;  %837 = vrot.lane.b32.xlu1 %v6226_v8, %s7797_s17  ;;  %835 = vrot.lane.b32.xlu0 %v6228_v9, %s7797_s17 }
  0xb8   : > { %1779 = vst.msk [vmem:[#allocation3] sm:$0xff] %vm7807_vm0, %v5451_v1  ;;  %1780 = vst.msk [vmem:[#allocation3 + $0x8] sm:$0xff] %vm7807_vm0, %v5451_v1 }
  0xb9   : > { %1781 = vst.msk [vmem:[#allocation3 + $0x10] sm:$0xff] %vm7807_vm0, %v5451_v1  ;;  %1782 = vst.msk [vmem:[#allocation3 + $0x18] sm:$0xff] %vm7807_vm0, %v5451_v1 }
  0xba   : > { %1783 = vst.msk [vmem:[#allocation3 + $0x20] sm:$0xff] %vm7807_vm0, %v5451_v1  ;;  %1784 = vst.msk [vmem:[#allocation3 + $0x28] sm:$0xff] %vm7807_vm0, %v5451_v1 }
  0xbb   : > { %1785 = vst.msk [vmem:[#allocation3 + $0x30] sm:$0xff] %vm7807_vm0, %v5451_v1  ;;  %1786 = vst.msk [vmem:[#allocation3 + $0x38] sm:$0xff] %vm7807_vm0, %v5451_v1  ;;  %771 = vrot.lane.b32.xlu1 %v6226_v8, %s7801_s22  ;;  %769 = vrot.lane.b32.xlu0 %v6228_v9, %s7801_s22 }
  0xbc   : > { %1787 = vst.msk [vmem:[#allocation3 + $0x40] sm:$0xff] %vm7807_vm0, %v5451_v1  ;;  %1788 = vst.msk [vmem:[#allocation3 + $0x48] sm:$0xff] %vm7807_vm0, %v5451_v1 }
  0xbd   : > { %1789 = vst.msk [vmem:[#allocation3 + $0x50] sm:$0xff] %vm7807_vm0, %v5451_v1  ;;  %1790 = vst.msk [vmem:[#allocation3 + $0x58] sm:$0xff] %vm7807_vm0, %v5451_v1 }
  0xbe   : > { %1791 = vst.msk [vmem:[#allocation3 + $0x60] sm:$0xff] %vm7807_vm0, %v5451_v1  ;;  %1792 = vst.msk [vmem:[#allocation3 + $0x68] sm:$0xff] %vm7807_vm0, %v5451_v1 }
  0xbf   : > { %1793 = vst.msk [vmem:[#allocation3 + $0x70] sm:$0xff] %vm7807_vm0, %v5451_v1  ;;  %1794 = vst.msk [vmem:[#allocation3 + $0x78] sm:$0xff] %vm7807_vm0, %v5451_v1  ;;  %726 = vrot.lane.b32.xlu1 %v6206_v3, %s7793_s14  ;;  %724 = vrot.lane.b32.xlu0 %v6204_v2, %s7793_s14 }
  0xc0   : > { %1795 = vst.msk [vmem:[#allocation3 + $0x80] sm:$0xff] %vm7807_vm0, %v5451_v1  ;;  %1796 = vst.msk [vmem:[#allocation3 + $0x88] sm:$0xff] %vm7807_vm0, %v5451_v1 }
  0xc1   : > { %1797 = vst.msk [vmem:[#allocation3 + $0x90] sm:$0xff] %vm7807_vm0, %v5451_v1  ;;  %1798 = vst.msk [vmem:[#allocation3 + $0x98] sm:$0xff] %vm7807_vm0, %v5451_v1 }
  0xc2   : > { %1799 = vst.msk [vmem:[#allocation3 + $0xa0] sm:$0xff] %vm7807_vm0, %v5451_v1  ;;  %1800 = vst.msk [vmem:[#allocation3 + $0xa8] sm:$0xff] %vm7807_vm0, %v5451_v1 }
  0xc3   : > { %1801 = vst.msk [vmem:[#allocation3 + $0xb0] sm:$0xff] %vm7807_vm0, %v5451_v1  ;;  %1802 = vst.msk [vmem:[#allocation3 + $0xb8] sm:$0xff] %vm7807_vm0, %v5451_v1  ;;  %660 = vrot.lane.b32.xlu1 %v6206_v3, %s7799_s18  ;;  %658 = vrot.lane.b32.xlu0 %v6204_v2, %s7799_s18 }
  0xc4   : > { %1803 = vst.msk [vmem:[#allocation3 + $0xc0] sm:$0xff] %vm7807_vm0, %v5451_v1  ;;  %1804 = vst.msk [vmem:[#allocation3 + $0xc8] sm:$0xff] %vm7807_vm0, %v5451_v1 }
  0xc5   : > { %1805 = vst.msk [vmem:[#allocation3 + $0xd0] sm:$0xff] %vm7807_vm0, %v5451_v1  ;;  %1806 = vst.msk [vmem:[#allocation3 + $0xd8] sm:$0xff] %vm7807_vm0, %v5451_v1 }
  0xc6   : > { %1807 = vst.msk [vmem:[#allocation3 + $0xe0] sm:$0xff] %vm7807_vm0, %v5451_v1  ;;  %1808 = vst.msk [vmem:[#allocation3 + $0xe8] sm:$0xff] %vm7807_vm0, %v5451_v1 }
  0xc7   : > { %1809 = vst.msk [vmem:[#allocation3 + $0xf0] sm:$0xff] %vm7807_vm0, %v5451_v1  ;;  %1810 = vst.msk [vmem:[#allocation3 + $0xf8] sm:$0xff] %vm7807_vm0, %v5451_v1  ;;  %792 = vrot.lane.b32.xlu1 %v6206_v3, %s7790_s23  ;;  %790 = vrot.lane.b32.xlu0 %v6204_v2, %s7790_s23 }
  0xc8   : > { %1811 = vst.msk [vmem:[#allocation3 + $0x100] sm:$0xff] %vm7807_vm0, %v5451_v1  ;;  %1812 = vst.msk [vmem:[#allocation3 + $0x108] sm:$0xff] %vm7807_vm0, %v5451_v1 }
  0xc9   : > { %1813 = vst.msk [vmem:[#allocation3 + $0x110] sm:$0xff] %vm7807_vm0, %v5451_v1  ;;  %1814 = vst.msk [vmem:[#allocation3 + $0x118] sm:$0xff] %vm7807_vm0, %v5451_v1 }
  0xca   : > { %1815 = vst.msk [vmem:[#allocation3 + $0x120] sm:$0xff] %vm7807_vm0, %v5451_v1  ;;  %1816 = vst.msk [vmem:[#allocation3 + $0x128] sm:$0xff] %vm7807_vm0, %v5451_v1 }
  0xcb   : > { %1817 = vst.msk [vmem:[#allocation3 + $0x130] sm:$0xff] %vm7807_vm0, %v5451_v1  ;;  %1818 = vst.msk [vmem:[#allocation3 + $0x138] sm:$0xff] %vm7807_vm0, %v5451_v1  ;;  %730 = vrot.lane.b32.xlu1 %v6208_v4, %s7793_s14  ;;  %728 = vrot.lane.b32.xlu0 %v6214_v5, %s7793_s14 }
  0xcc   : > { %1819 = vst.msk [vmem:[#allocation3 + $0x140] sm:$0xff] %vm7807_vm0, %v5451_v1  ;;  %1820 = vst.msk [vmem:[#allocation3 + $0x148] sm:$0xff] %vm7807_vm0, %v5451_v1 }
  0xcd   : > { %1821 = vst.msk [vmem:[#allocation3 + $0x150] sm:$0xff] %vm7807_vm0, %v5451_v1  ;;  %1822 = vst.msk [vmem:[#allocation3 + $0x158] sm:$0xff] %vm7807_vm0, %v5451_v1 }
  0xce   : > { %1823 = vst.msk [vmem:[#allocation3 + $0x160] sm:$0xff] %vm7807_vm0, %v5451_v1  ;;  %1824 = vst.msk [vmem:[#allocation3 + $0x168] sm:$0xff] %vm7807_vm0, %v5451_v1 }
  0xcf   : > { %1825 = vst.msk [vmem:[#allocation3 + $0x170] sm:$0xff] %vm7807_vm0, %v5451_v1  ;;  %1826 = vst.msk [vmem:[#allocation3 + $0x178] sm:$0xff] %vm7807_vm0, %v5451_v1  ;;  %664 = vrot.lane.b32.xlu1 %v6208_v4, %s7799_s18  ;;  %662 = vrot.lane.b32.xlu0 %v6214_v5, %s7799_s18 }
  0xd0   : > { %1827 = vst.msk [vmem:[#allocation3 + $0x180] sm:$0xff] %vm7807_vm0, %v5451_v1  ;;  %1828 = vst.msk [vmem:[#allocation3 + $0x188] sm:$0xff] %vm7807_vm0, %v5451_v1 }
  0xd1   : > { %1829 = vst.msk [vmem:[#allocation3 + $0x190] sm:$0xff] %vm7807_vm0, %v5451_v1  ;;  %1830 = vst.msk [vmem:[#allocation3 + $0x198] sm:$0xff] %vm7807_vm0, %v5451_v1 }
  0xd2   : > { %1831 = vst.msk [vmem:[#allocation3 + $0x1a0] sm:$0xff] %vm7807_vm0, %v5451_v1  ;;  %1832 = vst.msk [vmem:[#allocation3 + $0x1a8] sm:$0xff] %vm7807_vm0, %v5451_v1 }
  0xd3   : > { %1833 = vst.msk [vmem:[#allocation3 + $0x1b0] sm:$0xff] %vm7807_vm0, %v5451_v1  ;;  %1834 = vst.msk [vmem:[#allocation3 + $0x1b8] sm:$0xff] %vm7807_vm0, %v5451_v1  ;;  %796 = vrot.lane.b32.xlu1 %v6208_v4, %s7790_s23  ;;  %794 = vrot.lane.b32.xlu0 %v6214_v5, %s7790_s23 }
  0xd4   : > { %1835 = vst.msk [vmem:[#allocation3 + $0x1c0] sm:$0xff] %vm7807_vm0, %v5451_v1  ;;  %1836 = vst.msk [vmem:[#allocation3 + $0x1c8] sm:$0xff] %vm7807_vm0, %v5451_v1 }
  0xd5   : > { %1837 = vst.msk [vmem:[#allocation3 + $0x1d0] sm:$0xff] %vm7807_vm0, %v5451_v1  ;;  %1838 = vst.msk [vmem:[#allocation3 + $0x1d8] sm:$0xff] %vm7807_vm0, %v5451_v1 }
  0xd6   : > { %1839 = vst.msk [vmem:[#allocation3 + $0x1e0] sm:$0xff] %vm7807_vm0, %v5451_v1  ;;  %1840 = vst.msk [vmem:[#allocation3 + $0x1e8] sm:$0xff] %vm7807_vm0, %v5451_v1 }
  0xd7   : > { %1841 = vst.msk [vmem:[#allocation3 + $0x1f0] sm:$0xff] %vm7807_vm0, %v5451_v1  ;;  %1842 = vst.msk [vmem:[#allocation3 + $0x1f8] sm:$0xff] %vm7807_vm0, %v5451_v1  ;;  %734 = vrot.lane.b32.xlu1 %v6216_v6, %s7793_s14  ;;  %732 = vrot.lane.b32.xlu0 %v6224_v7, %s7793_s14 }
  0xd8   : > { %1843 = vst.msk [vmem:[#allocation3 + $0x200] sm:$0xff] %vm7807_vm0, %v5451_v1  ;;  %1844 = vst.msk [vmem:[#allocation3 + $0x208] sm:$0xff] %vm7807_vm0, %v5451_v1 }
  0xd9   : > { %1845 = vst.msk [vmem:[#allocation3 + $0x210] sm:$0xff] %vm7807_vm0, %v5451_v1  ;;  %1846 = vst.msk [vmem:[#allocation3 + $0x218] sm:$0xff] %vm7807_vm0, %v5451_v1 }
  0xda   : > { %1847 = vst.msk [vmem:[#allocation3 + $0x220] sm:$0xff] %vm7807_vm0, %v5451_v1  ;;  %1848 = vst.msk [vmem:[#allocation3 + $0x228] sm:$0xff] %vm7807_vm0, %v5451_v1 }
  0xdb   : > { %1849 = vst.msk [vmem:[#allocation3 + $0x230] sm:$0xff] %vm7807_vm0, %v5451_v1  ;;  %1850 = vst.msk [vmem:[#allocation3 + $0x238] sm:$0xff] %vm7807_vm0, %v5451_v1  ;;  %668 = vrot.lane.b32.xlu1 %v6216_v6, %s7799_s18  ;;  %666 = vrot.lane.b32.xlu0 %v6224_v7, %s7799_s18 }
  0xdc   : > { %1851 = vst.msk [vmem:[#allocation3 + $0x240] sm:$0xff] %vm7807_vm0, %v5451_v1  ;;  %1852 = vst.msk [vmem:[#allocation3 + $0x248] sm:$0xff] %vm7807_vm0, %v5451_v1 }
  0xdd   : > { %1853 = vst.msk [vmem:[#allocation3 + $0x250] sm:$0xff] %vm7807_vm0, %v5451_v1  ;;  %1854 = vst.msk [vmem:[#allocation3 + $0x258] sm:$0xff] %vm7807_vm0, %v5451_v1 }
  0xde   : > { %1855 = vst.msk [vmem:[#allocation3 + $0x260] sm:$0xff] %vm7807_vm0, %v5451_v1  ;;  %1856 = vst.msk [vmem:[#allocation3 + $0x268] sm:$0xff] %vm7807_vm0, %v5451_v1 }
  0xdf   : > { %1857 = vst.msk [vmem:[#allocation3 + $0x270] sm:$0xff] %vm7807_vm0, %v5451_v1  ;;  %1858 = vst.msk [vmem:[#allocation3 + $0x278] sm:$0xff] %vm7807_vm0, %v5451_v1  ;;  %800 = vrot.lane.b32.xlu1 %v6216_v6, %s7790_s23  ;;  %798 = vrot.lane.b32.xlu0 %v6224_v7, %s7790_s23 }
  0xe0   : > { %1859 = vst.msk [vmem:[#allocation3 + $0x280] sm:$0xff] %vm7807_vm0, %v5451_v1  ;;  %1860 = vst.msk [vmem:[#allocation3 + $0x288] sm:$0xff] %vm7807_vm0, %v5451_v1 }
  0xe1   : > { %1861 = vst.msk [vmem:[#allocation3 + $0x290] sm:$0xff] %vm7807_vm0, %v5451_v1  ;;  %1862 = vst.msk [vmem:[#allocation3 + $0x298] sm:$0xff] %vm7807_vm0, %v5451_v1 }
  0xe2   : > { %1863 = vst.msk [vmem:[#allocation3 + $0x2a0] sm:$0xff] %vm7807_vm0, %v5451_v1  ;;  %1864 = vst.msk [vmem:[#allocation3 + $0x2a8] sm:$0xff] %vm7807_vm0, %v5451_v1 }
  0xe3   : > { %1865 = vst.msk [vmem:[#allocation3 + $0x2b0] sm:$0xff] %vm7807_vm0, %v5451_v1  ;;  %1866 = vst.msk [vmem:[#allocation3 + $0x2b8] sm:$0xff] %vm7807_vm0, %v5451_v1  ;;  %738 = vrot.lane.b32.xlu1 %v6226_v8, %s7793_s14  ;;  %736 = vrot.lane.b32.xlu0 %v6228_v9, %s7793_s14 }
  0xe4   : > { %1867 = vst.msk [vmem:[#allocation3 + $0x2c0] sm:$0xff] %vm7807_vm0, %v5451_v1  ;;  %1868 = vst.msk [vmem:[#allocation3 + $0x2c8] sm:$0xff] %vm7807_vm0, %v5451_v1 }
  0xe5   : > { %1869 = vst.msk [vmem:[#allocation3 + $0x2d0] sm:$0xff] %vm7807_vm0, %v5451_v1  ;;  %1870 = vst.msk [vmem:[#allocation3 + $0x2d8] sm:$0xff] %vm7807_vm0, %v5451_v1 }
  0xe6   : > { %1871 = vst.msk [vmem:[#allocation3 + $0x2e0] sm:$0xff] %vm7807_vm0, %v5451_v1  ;;  %1872 = vst.msk [vmem:[#allocation3 + $0x2e8] sm:$0xff] %vm7807_vm0, %v5451_v1 }
  0xe7   : > { %1873 = vst.msk [vmem:[#allocation3 + $0x2f0] sm:$0xff] %vm7807_vm0, %v5451_v1  ;;  %1874 = vst.msk [vmem:[#allocation3 + $0x2f8] sm:$0xff] %vm7807_vm0, %v5451_v1  ;;  %672 = vrot.lane.b32.xlu1 %v6226_v8, %s7799_s18  ;;  %670 = vrot.lane.b32.xlu0 %v6228_v9, %s7799_s18 }
  0xe8   : > { %1875 = vst.msk [vmem:[#allocation3 + $0x300] sm:$0xff] %vm7807_vm0, %v5451_v1  ;;  %1876 = vst.msk [vmem:[#allocation3 + $0x308] sm:$0xff] %vm7807_vm0, %v5451_v1 }
  0xe9   : > { %1877 = vst.msk [vmem:[#allocation3 + $0x310] sm:$0xff] %vm7807_vm0, %v5451_v1  ;;  %1878 = vst.msk [vmem:[#allocation3 + $0x318] sm:$0xff] %vm7807_vm0, %v5451_v1 }
  0xea   : > { %1879 = vst.msk [vmem:[#allocation3 + $0x320] sm:$0xff] %vm7807_vm0, %v5451_v1  ;;  %1880 = vst.msk [vmem:[#allocation3 + $0x328] sm:$0xff] %vm7807_vm0, %v5451_v1 }
  0xeb   : > { %1881 = vst.msk [vmem:[#allocation3 + $0x330] sm:$0xff] %vm7807_vm0, %v5451_v1  ;;  %1882 = vst.msk [vmem:[#allocation3 + $0x338] sm:$0xff] %vm7807_vm0, %v5451_v1  ;;  %804 = vrot.lane.b32.xlu1 %v6226_v8, %s7790_s23  ;;  %802 = vrot.lane.b32.xlu0 %v6228_v9, %s7790_s23  ;;  %s7835_s23 = smov 2  }
  0xec   : > { %1883 = vst.msk [vmem:[#allocation3 + $0x340] sm:$0xff] %vm7807_vm0, %v5451_v1  ;;  %1884 = vst.msk [vmem:[#allocation3 + $0x348] sm:$0xff] %vm7807_vm0, %v5451_v1 }
  0xed   : > { %1885 = vst.msk [vmem:[#allocation3 + $0x350] sm:$0xff] %vm7807_vm0, %v5451_v1  ;;  %1886 = vst.msk [vmem:[#allocation3 + $0x358] sm:$0xff] %vm7807_vm0, %v5451_v1 }
  0xee   : > { %1887 = vst.msk [vmem:[#allocation3 + $0x360] sm:$0xff] %vm7807_vm0, %v5451_v1  ;;  %1888 = vst.msk [vmem:[#allocation3 + $0x368] sm:$0xff] %vm7807_vm0, %v5451_v1 }
  0xef   : > { %1889 = vst.msk [vmem:[#allocation3 + $0x370] sm:$0xff] %vm7807_vm0, %v5451_v1  ;;  %1890 = vst.msk [vmem:[#allocation3 + $0x378] sm:$0xff] %vm7807_vm0, %v5451_v1  ;;  %932 = vrot.lane.b32.xlu1 %v6206_v3, %s7788_s27  ;;  %930 = vrot.lane.b32.xlu0 %v6204_v2, %s7788_s27 }
  0xf0   : > { %1891 = vst.msk [vmem:[#allocation3 + $0x380] sm:$0xff] %vm7807_vm0, %v5451_v1  ;;  %1892 = vst.msk [vmem:[#allocation3 + $0x388] sm:$0xff] %vm7807_vm0, %v5451_v1 }
  0xf1   : > { %1893 = vst.msk [vmem:[#allocation3 + $0x390] sm:$0xff] %vm7807_vm0, %v5451_v1  ;;  %1894 = vst.msk [vmem:[#allocation3 + $0x398] sm:$0xff] %vm7807_vm0, %v5451_v1  ;;  %v626_v11 = vpop.permute.xlu1 %625  ;;  %v692_v12 = vpop.permute.xlu0 %691 }
  0xf2   : > { %1895 = vst.msk [vmem:[#allocation3 + $0x3a0] sm:$0xff] %vm7807_vm0, %v5451_v1  ;;  %1896 = vst.msk [vmem:[#allocation3 + $0x3a8] sm:$0xff] %vm7807_vm0, %v5451_v1 }
  0xf3   : > { %1897 = vst.msk [vmem:[#allocation3 + $0x3b0] sm:$0xff] %vm7807_vm0, %v5451_v1  ;;  %1898 = vst.msk [vmem:[#allocation3 + $0x3b8] sm:$0xff] %vm7807_vm0, %v5451_v1  ;;  %866 = vrot.lane.b32.xlu1 %v6206_v3, %s7786_s30  ;;  %864 = vrot.lane.b32.xlu0 %v6204_v2, %s7786_s30 }
  0xf4   : > { %1899 = vst.msk [vmem:[#allocation3 + $0x3c0] sm:$0xff] %vm7807_vm0, %v5451_v1  ;;  %1900 = vst.msk [vmem:[#allocation3 + $0x3c8] sm:$0xff] %vm7807_vm0, %v5451_v1 }
  0xf5   : > { %1901 = vst.msk [vmem:[#allocation3 + $0x3d0] sm:$0xff] %vm7807_vm0, %v5451_v1  ;;  %1902 = vst.msk [vmem:[#allocation3 + $0x3d8] sm:$0xff] %vm7807_vm0, %v5451_v1  ;;  %v628_v13 = vpop.permute.xlu1 %627  ;;  %v694_v14 = vpop.permute.xlu0 %693 }
  0xf6   : > { %1903 = vst.msk [vmem:[#allocation3 + $0x3e0] sm:$0xff] %vm7807_vm0, %v5451_v1  ;;  %1904 = vst.msk [vmem:[#allocation3 + $0x3e8] sm:$0xff] %vm7807_vm0, %v5451_v1 }
  0xf7   : > { %1905 = vst.msk [vmem:[#allocation3 + $0x3f0] sm:$0xff] %vm7807_vm0, %v5451_v1  ;;  %1906 = vst.msk [vmem:[#allocation3 + $0x3f8] sm:$0xff] %vm7807_vm0, %v5451_v1  ;;  %1064 = vrot.lane.b32.xlu1 %v6206_v3, %s7784_s26  ;;  %1062 = vrot.lane.b32.xlu0 %v6204_v2, %s7784_s26 }
  0xf8   : > { %856 = vst.msk [vmem:[#allocation2 + $0x1c0] sm:$0xff] %vm7807_vm0, %v6204_v2  ;;  %857 = vst.msk [vmem:[#allocation2 + $0x1c8] sm:$0xff] %vm7807_vm0, %v6206_v3 }
  0xf9   : > { %859 = vst.msk [vmem:[#allocation2 + $0x1d8] sm:$0xff] %vm7807_vm0, %v6208_v4  ;;  %858 = vst.msk [vmem:[#allocation2 + $0x1d0] sm:$0xff] %vm7807_vm0, %v6214_v5  ;;  %v826_v16 = vpop.permute.xlu1 %825  ;;  %v824_v17 = vpop.permute.xlu0 %823 }
  0xfa   : > { %861 = vst.msk [vmem:[#allocation2 + $0x1e8] sm:$0xff] %vm7807_vm0, %v6216_v6  ;;  %860 = vst.msk [vmem:[#allocation2 + $0x1e0] sm:$0xff] %vm7807_vm0, %v6224_v7 }
  0xfb   : > { %862 = vst.msk [vmem:[#allocation2 + $0x1f0] sm:$0xff] %vm7807_vm0, %v6228_v9  ;;  %863 = vst.msk [vmem:[#allocation2 + $0x1f8] sm:$0xff] %vm7807_vm0, %v6226_v8  ;;  %998 = vrot.lane.b32.xlu1 %v6206_v3, %s7782_s16  ;;  %996 = vrot.lane.b32.xlu0 %v6204_v2, %s7782_s16 }
  0xfc   : > { %650 = vst.msk [vmem:[#allocation2] sm:$0xff] %vm649_vm1, %v626_v11  ;;  %651 = vst.msk [vmem:[#allocation2 + $0x8] sm:$0xff] %vm649_vm1, %v628_v13 }
  0xfd   : > { %716 = vst.msk [vmem:[#allocation2 + $0x80] sm:$0xff] %vm715_vm2, %v692_v12  ;;  %717 = vst.msk [vmem:[#allocation2 + $0x88] sm:$0xff] %vm715_vm2, %v694_v14  ;;  %v760_v19 = vpop.permute.xlu1 %759  ;;  %v758_v20 = vpop.permute.xlu0 %757 }
  0xfe   : > { %849 = vst.msk [vmem:[#allocation2 + $0x188] sm:$0xff] %vm847_vm3, %v826_v16  ;;  %848 = vst.msk [vmem:[#allocation2 + $0x180] sm:$0xff] %vm847_vm3, %v824_v17 }
  0xff   : > { %783 = vst.msk [vmem:[#allocation2 + $0x108] sm:$0xff] %vm781_vm4, %v760_v19  ;;  %782 = vst.msk [vmem:[#allocation2 + $0x100] sm:$0xff] %vm781_vm4, %v758_v20  ;;  %936 = vrot.lane.b32.xlu1 %v6208_v4, %s7788_s27  ;;  %934 = vrot.lane.b32.xlu0 %v6214_v5, %s7788_s27 }
 0x101   : > { %v698_v26 = vpop.permute.xlu1 %697  ;;  %v696_v27 = vpop.permute.xlu0 %695 }
 0x102   : > { %719 = vst.msk [vmem:[#allocation2 + $0x98] sm:$0xff] %vm715_vm2, %v698_v26  ;;  %718 = vst.msk [vmem:[#allocation2 + $0x90] sm:$0xff] %vm715_vm2, %v696_v27 }
 0x103   : > { %v1159_v22 = vld [vmem:[#allocation2] sm:$0xff]  ;;  %v1160_v23 = vld [vmem:[#allocation2 + $0x8] sm:$0xff]  ;;  %870 = vrot.lane.b32.xlu1 %v6208_v4, %s7786_s30  ;;  %868 = vrot.lane.b32.xlu0 %v6214_v5, %s7786_s30 }
 0x104   : > { %v1175_v18 = vld [vmem:[#allocation2 + $0x80] sm:$0xff]  ;;  %v1176_v21 = vld [vmem:[#allocation2 + $0x88] sm:$0xff]  ;;  %v4818_v25 = vpack.c.bf16 %v1160_v23, %v1159_v22 }
 0x105   : > { %v4816_v24 = vpack.c.bf16 %v1176_v21, %v1175_v18  ;;  %v1207_v28 = vld [vmem:[#allocation2 + $0x180] sm:$0xff]  ;;  %v1208_v29 = vld [vmem:[#allocation2 + $0x188] sm:$0xff]  ;;  %v632_v31 = vpop.permute.xlu1 %631  ;;  %v630_v32 = vpop.permute.xlu0 %629 }
 0x106   : > { %v4848_v30 = vpack.c.bf16 %v1208_v29, %v1207_v28  ;;  %v1191_v33 = vld [vmem:[#allocation2 + $0x100] sm:$0xff]  ;;  %v1192_v34 = vld [vmem:[#allocation2 + $0x108] sm:$0xff]  ;;  %653 = vst.msk [vmem:[#allocation2 + $0x18] sm:$0xff] %vm649_vm1, %v632_v31  ;;  %652 = vst.msk [vmem:[#allocation2 + $0x10] sm:$0xff] %vm649_vm1, %v630_v32 }
 0x107   : > { %4817 = vmatprep.subr.bf16.mxu0 %v4816_v24  ;;  %v4850_v35 = vpack.c.bf16 %v1192_v34, %v1191_v33  ;;  %1068 = vrot.lane.b32.xlu1 %v6208_v4, %s7784_s26 }
 0x108   : > { %4819 = vmatpush3.bf16.msra.mxu0 %v4818_v25  ;;  %4849 = vmatprep.subr.bf16.mxu1 %v4848_v30 }
 0x109   : > { %1066 = vrot.lane.b32.xlu0 %v6214_v5, %s7784_s26  ;;  %4851 = vmatpush3.bf16.msra.mxu1 %v4850_v35  ;;  %v830_v36 = vpop.permute.xlu1 %829  ;;  %v828_v37 = vpop.permute.xlu0 %827  ;;  %v1177_v38 = vld [vmem:[#allocation2 + $0x90] sm:$0xff]  ;;  %v1178_v39 = vld [vmem:[#allocation2 + $0x98] sm:$0xff] }
 0x10a   : > { %851 = vst.msk [vmem:[#allocation2 + $0x198] sm:$0xff] %vm847_vm3, %v830_v36  ;;  %850 = vst.msk [vmem:[#allocation2 + $0x190] sm:$0xff] %vm847_vm3, %v828_v37  ;;  %v4820_v40 = vpack.c.bf16 %v1178_v39, %v1177_v38  ;;  %v1215_v36 = vld [vmem:[#allocation2 + $0x1c0] sm:$0xff]  ;;  %v1216_v37 = vld [vmem:[#allocation2 + $0x1c8] sm:$0xff] }
 0x10b   : > { %1002 = vrot.lane.b32.xlu1 %v6208_v4, %s7782_s16 }
 0x10c   : > { %4821 = vmatprep.subr.bf16.mxu0 %v4820_v40 }
 0x10d   : > { %1000 = vrot.lane.b32.xlu0 %v6214_v5, %s7782_s16  ;;  %v764_v41 = vpop.permute.xlu1 %763  ;;  %v762_v42 = vpop.permute.xlu0 %761  ;;  %v1161_v43 = vld [vmem:[#allocation2 + $0x10] sm:$0xff]  ;;  %v1162_v44 = vld [vmem:[#allocation2 + $0x18] sm:$0xff] }
 0x10e   : > { %785 = vst.msk [vmem:[#allocation2 + $0x118] sm:$0xff] %vm781_vm4, %v764_v41  ;;  %784 = vst.msk [vmem:[#allocation2 + $0x110] sm:$0xff] %vm781_vm4, %v762_v42  ;;  %v4822_v45 = vpack.c.bf16 %v1162_v44, %v1161_v43  ;;  %v4864_v42 = vpack.c.bf16 %v1216_v37, %v1215_v36 }
 0x10f   : > { %940 = vrot.lane.b32.xlu1 %v6216_v6, %s7788_s27 }
 0x110   : > { %4823 = vmatpush3.bf16.msra.mxu0 %v4822_v45 }
 0x111   : > { %938 = vrot.lane.b32.xlu0 %v6224_v7, %s7788_s27  ;;  %v702_v46 = vpop.permute.xlu1 %701  ;;  %v700_v47 = vpop.permute.xlu0 %699  ;;  %v1209_v48 = vld [vmem:[#allocation2 + $0x190] sm:$0xff]  ;;  %v1210_v49 = vld [vmem:[#allocation2 + $0x198] sm:$0xff] }
 0x112   : > { %721 = vst.msk [vmem:[#allocation2 + $0xa8] sm:$0xff] %vm715_vm2, %v702_v46  ;;  %720 = vst.msk [vmem:[#allocation2 + $0xa0] sm:$0xff] %vm715_vm2, %v700_v47  ;;  %v4852_v50 = vpack.c.bf16 %v1210_v49, %v1209_v48 }
 0x113   : > { %874 = vrot.lane.b32.xlu1 %v6216_v6, %s7786_s30 }
 0x114   : > { %4853 = vmatprep.subr.bf16.mxu1 %v4852_v50 }
 0x115   : > { %872 = vrot.lane.b32.xlu0 %v6224_v7, %s7786_s30  ;;  %v636_v51 = vpop.permute.xlu1 %635  ;;  %v634_v52 = vpop.permute.xlu0 %633  ;;  %v1193_v53 = vld [vmem:[#allocation2 + $0x110] sm:$0xff]  ;;  %v1194_v54 = vld [vmem:[#allocation2 + $0x118] sm:$0xff] }
 0x116   : > { %655 = vst.msk [vmem:[#allocation2 + $0x28] sm:$0xff] %vm649_vm1, %v636_v51  ;;  %654 = vst.msk [vmem:[#allocation2 + $0x20] sm:$0xff] %vm649_vm1, %v634_v52  ;;  %v4854_v55 = vpack.c.bf16 %v1194_v54, %v1193_v53  ;;  %v1217_v52 = vld [vmem:[#allocation2 + $0x1d0] sm:$0xff]  ;;  %v1218_v53 = vld [vmem:[#allocation2 + $0x1d8] sm:$0xff] }
 0x117   : > { %1072 = vrot.lane.b32.xlu1 %v6216_v6, %s7784_s26 }
 0x118   : > { %4855 = vmatpush3.bf16.msra.mxu1 %v4854_v55 }
 0x119   : > { %1070 = vrot.lane.b32.xlu0 %v6224_v7, %s7784_s26  ;;  %v834_v56 = vpop.permute.xlu1 %833  ;;  %v832_v57 = vpop.permute.xlu0 %831  ;;  %v1179_v58 = vld [vmem:[#allocation2 + $0xa0] sm:$0xff]  ;;  %v1180_v59 = vld [vmem:[#allocation2 + $0xa8] sm:$0xff] }
 0x11a   : > { %853 = vst.msk [vmem:[#allocation2 + $0x1a8] sm:$0xff] %vm847_vm3, %v834_v56  ;;  %852 = vst.msk [vmem:[#allocation2 + $0x1a0] sm:$0xff] %vm847_vm3, %v832_v57  ;;  %v4824_v60 = vpack.c.bf16 %v1180_v59, %v1179_v58  ;;  %v4868_v58 = vpack.c.bf16 %v1218_v53, %v1217_v52 }
 0x11b   : > { %1006 = vrot.lane.b32.xlu1 %v6216_v6, %s7782_s16 }
 0x11c   : > { %4825 = vmatprep.subr.bf16.mxu0 %v4824_v60 }
 0x11d   : > { %1004 = vrot.lane.b32.xlu0 %v6224_v7, %s7782_s16  ;;  %v768_v61 = vpop.permute.xlu1 %767  ;;  %v766_v62 = vpop.permute.xlu0 %765  ;;  %v1163_v63 = vld [vmem:[#allocation2 + $0x20] sm:$0xff]  ;;  %v1164_v0 = vld [vmem:[#allocation2 + $0x28] sm:$0xff] }
 0x11e   : > { %787 = vst.msk [vmem:[#allocation2 + $0x128] sm:$0xff] %vm781_vm4, %v768_v61  ;;  %786 = vst.msk [vmem:[#allocation2 + $0x120] sm:$0xff] %vm781_vm4, %v766_v62  ;;  %v4826_v10 = vpack.c.bf16 %v1164_v0, %v1163_v63 }
 0x11f   : > { %944 = vrot.lane.b32.xlu1 %v6226_v8, %s7788_s27 }
 0x120   : > { %4827 = vmatpush3.bf16.msra.mxu0 %v4826_v10 }
 0x121   : > { %942 = vrot.lane.b32.xlu0 %v6228_v9, %s7788_s27  ;;  %v706_v11 = vpop.permute.xlu1 %705  ;;  %v704_v12 = vpop.permute.xlu0 %703  ;;  %v1211_v13 = vld [vmem:[#allocation2 + $0x1a0] sm:$0xff]  ;;  %v1212_v14 = vld [vmem:[#allocation2 + $0x1a8] sm:$0xff]  ;;  %s7852_s27 = smov 5  }
 0x122   : > { %723 = vst.msk [vmem:[#allocation2 + $0xb8] sm:$0xff] %vm715_vm2, %v706_v11  ;;  %722 = vst.msk [vmem:[#allocation2 + $0xb0] sm:$0xff] %vm715_vm2, %v704_v12  ;;  %v4856_v15 = vpack.c.bf16 %v1212_v14, %v1211_v13  ;;  %v1219_v13 = vld [vmem:[#allocation2 + $0x1e0] sm:$0xff]  ;;  %v1220_v14 = vld [vmem:[#allocation2 + $0x1e8] sm:$0xff] }
 0x123   : > { %878 = vrot.lane.b32.xlu1 %v6226_v8, %s7786_s30 }
 0x124   : > { %4857 = vmatprep.subr.bf16.mxu1 %v4856_v15 }
 0x125   : > { %876 = vrot.lane.b32.xlu0 %v6228_v9, %s7786_s30  ;;  %v640_v16 = vpop.permute.xlu1 %639  ;;  %v638_v17 = vpop.permute.xlu0 %637  ;;  %v1195_v18 = vld [vmem:[#allocation2 + $0x120] sm:$0xff]  ;;  %v1196_v19 = vld [vmem:[#allocation2 + $0x128] sm:$0xff]  ;;  %s7836_s30 = smov 125  }
 0x126   : > { %657 = vst.msk [vmem:[#allocation2 + $0x38] sm:$0xff] %vm649_vm1, %v640_v16  ;;  %656 = vst.msk [vmem:[#allocation2 + $0x30] sm:$0xff] %vm649_vm1, %v638_v17  ;;  %v4858_v20 = vpack.c.bf16 %v1196_v19, %v1195_v18  ;;  %v4872_v19 = vpack.c.bf16 %v1220_v14, %v1219_v13 }
 0x127   : > { %1076 = vrot.lane.b32.xlu1 %v6226_v8, %s7784_s26 }
 0x128   : > { %4859 = vmatpush3.bf16.msra.mxu1 %v4858_v20 }
 0x129   : > { %1074 = vrot.lane.b32.xlu0 %v6228_v9, %s7784_s26  ;;  %v838_v21 = vpop.permute.xlu1 %837  ;;  %v836_v22 = vpop.permute.xlu0 %835  ;;  %v1181_v23 = vld [vmem:[#allocation2 + $0xb0] sm:$0xff]  ;;  %v1182_v24 = vld [vmem:[#allocation2 + $0xb8] sm:$0xff]  ;;  %s7841_s26 = smov 126  }
 0x12a   : > { %855 = vst.msk [vmem:[#allocation2 + $0x1b8] sm:$0xff] %vm847_vm3, %v838_v21  ;;  %854 = vst.msk [vmem:[#allocation2 + $0x1b0] sm:$0xff] %vm847_vm3, %v836_v22  ;;  %v4828_v25 = vpack.c.bf16 %v1182_v24, %v1181_v23 }
 0x12b   : > { %1010 = vrot.lane.b32.xlu1 %v6226_v8, %s7782_s16 }
 0x12c   : > { %4829 = vmatprep.subr.bf16.mxu0 %v4828_v25 }
 0x12d   : > { %1008 = vrot.lane.b32.xlu0 %v6228_v9, %s7782_s16  ;;  %v772_v26 = vpop.permute.xlu1 %771  ;;  %v770_v27 = vpop.permute.xlu0 %769  ;;  %v1165_v28 = vld [vmem:[#allocation2 + $0x30] sm:$0xff]  ;;  %v1166_v29 = vld [vmem:[#allocation2 + $0x38] sm:$0xff]  ;;  %s7853_s16 = smov 4  }
 0x12e   : > { %789 = vst.msk [vmem:[#allocation2 + $0x138] sm:$0xff] %vm781_vm4, %v772_v26  ;;  %788 = vst.msk [vmem:[#allocation2 + $0x130] sm:$0xff] %vm781_vm4, %v770_v27  ;;  %v4830_v30 = vpack.c.bf16 %v1166_v29, %v1165_v28  ;;  %v1221_v29 = vld [vmem:[#allocation2 + $0x1f0] sm:$0xff] }
 0x12f   : > { %965 = vrot.lane.b32.xlu1 %v6206_v3, %s7780_s24 }
 0x130   : > { %4831 = vmatpush3.bf16.msra.mxu0 %v4830_v30  ;;  %v1222_v30 = vld [vmem:[#allocation2 + $0x1f8] sm:$0xff] }
 0x131   : > { %963 = vrot.lane.b32.xlu0 %v6204_v2, %s7780_s24  ;;  %v727_v31 = vpop.permute.xlu1 %726  ;;  %v725_v32 = vpop.permute.xlu0 %724  ;;  %v1213_v33 = vld [vmem:[#allocation2 + $0x1b0] sm:$0xff]  ;;  %v1214_v34 = vld [vmem:[#allocation2 + $0x1b8] sm:$0xff] }
 0x132   : > { %750 = vst.msk [vmem:[#allocation2 + $0xc8] sm:$0xff] %vm748_vm5, %v727_v31  ;;  %749 = vst.msk [vmem:[#allocation2 + $0xc0] sm:$0xff] %vm748_vm5, %v725_v32  ;;  %v4860_v35 = vpack.c.bf16 %v1214_v34, %v1213_v33 }
 0x133   : > { %899 = vrot.lane.b32.xlu1 %v6206_v3, %s7778_s29 }
 0x134   : > { %4861 = vmatprep.subr.bf16.mxu1 %v4860_v35  ;;  %v4876_v35 = vpack.c.bf16 %v1222_v30, %v1221_v29  ;;  %v1129_v29 = vld [vmem:[%s7833_s1 + $0x110] sm:$0xff] }
 0x135   : > { %897 = vrot.lane.b32.xlu0 %v6204_v2, %s7778_s29  ;;  %v661_v38 = vpop.permute.xlu1 %660  ;;  %v659_v39 = vpop.permute.xlu0 %658  ;;  %v1197_v40 = vld [vmem:[#allocation2 + $0x130] sm:$0xff]  ;;  %v1198_v41 = vld [vmem:[#allocation2 + $0x138] sm:$0xff] }
 0x136   : > { %684 = vst.msk [vmem:[#allocation2 + $0x48] sm:$0xff] %vm682_vm6, %v661_v38  ;;  %683 = vst.msk [vmem:[#allocation2 + $0x40] sm:$0xff] %vm682_vm6, %v659_v39  ;;  %v4862_v43 = vpack.c.bf16 %v1198_v41, %v1197_v40 }
 0x137   : > { %1031 = vrot.lane.b32.xlu1 %v6206_v3, %s7776_s25 }
 0x138   : > { %4863 = vmatpush3.bf16.msra.mxu1 %v4862_v43 }
 0x139   : > { %1029 = vrot.lane.b32.xlu0 %v6204_v2, %s7776_s25  ;;  %v793_v44 = vpop.permute.xlu1 %792  ;;  %v791_v45 = vpop.permute.xlu0 %790  ;;  %v1183_v46 = vld [vmem:[#allocation2 + $0xc0] sm:$0xff]  ;;  %v1184_v47 = vld [vmem:[#allocation2 + $0xc8] sm:$0xff]  ;;  %4865 = vmatprep.subr.bf16.mxu1 %v4864_v42 }
 0x13a   : > { %816 = vst.msk [vmem:[#allocation2 + $0x148] sm:$0xff] %vm814_vm7, %v793_v44  ;;  %815 = vst.msk [vmem:[#allocation2 + $0x140] sm:$0xff] %vm814_vm7, %v791_v45  ;;  %v4832_v48 = vpack.c.bf16 %v1184_v47, %v1183_v46  ;;  %v1095_v45 = vld [vmem:[%s7833_s1] sm:$0xff] }
 0x13b   : > { %969 = vrot.lane.b32.xlu1 %v6208_v4, %s7780_s24 }
 0x13c   : > { %4833 = vmatprep.subr.bf16.mxu0 %v4832_v48 }
 0x13d   : > { %967 = vrot.lane.b32.xlu0 %v6214_v5, %s7780_s24  ;;  %v731_v2 = vpop.permute.xlu1 %730  ;;  %v729_v3 = vpop.permute.xlu0 %728  ;;  %v1167_v49 = vld [vmem:[#allocation2 + $0x40] sm:$0xff]  ;;  %v1168_v50 = vld [vmem:[#allocation2 + $0x48] sm:$0xff] }
 0x13e   : > { %752 = vst.msk [vmem:[#allocation2 + $0xd8] sm:$0xff] %vm748_vm5, %v731_v2  ;;  %751 = vst.msk [vmem:[#allocation2 + $0xd0] sm:$0xff] %vm748_vm5, %v729_v3  ;;  %v4834_v51 = vpack.c.bf16 %v1168_v50, %v1167_v49  ;;  %v1104_v3 = vld [vmem:[%s7833_s1 + $0x48] sm:$0xff]  ;;  %v1097_v50 = vld [vmem:[%s7833_s1 + $0x10] sm:$0xff] }
 0x13f   : > { %903 = vrot.lane.b32.xlu1 %v6208_v4, %s7778_s29 }
 0x140   : > { %4835 = vmatpush3.bf16.msra.mxu0 %v4834_v51  ;;  %v1103_v51 = vld [vmem:[%s7833_s1 + $0x40] sm:$0xff] }
 0x141   : > { %901 = vrot.lane.b32.xlu0 %v6214_v5, %s7778_s29  ;;  %v665_v54 = vpop.permute.xlu1 %664  ;;  %v663_v55 = vpop.permute.xlu0 %662  ;;  %v1199_v56 = vld [vmem:[#allocation2 + $0x140] sm:$0xff]  ;;  %v1200_v57 = vld [vmem:[#allocation2 + $0x148] sm:$0xff] }
 0x142   : > { %686 = vst.msk [vmem:[#allocation2 + $0x58] sm:$0xff] %vm682_vm6, %v665_v54  ;;  %685 = vst.msk [vmem:[#allocation2 + $0x50] sm:$0xff] %vm682_vm6, %v663_v55  ;;  %v4866_v59 = vpack.c.bf16 %v1200_v57, %v1199_v56  ;;  %v1112_v56 = vld [vmem:[%s7833_s1 + $0x88] sm:$0xff] }
 0x143   : > { %1035 = vrot.lane.b32.xlu1 %v6208_v4, %s7776_s25 }
 0x144   : > { %4867 = vmatpush3.bf16.msra.mxu1 %v4866_v59  ;;  %v1111_v59 = vld [vmem:[%s7833_s1 + $0x80] sm:$0xff] }
 0x145   : > { %1033 = vrot.lane.b32.xlu0 %v6214_v5, %s7776_s25  ;;  %v797_v60 = vpop.permute.xlu1 %796  ;;  %v795_v61 = vpop.permute.xlu0 %794  ;;  %v1185_v62 = vld [vmem:[#allocation2 + $0xd0] sm:$0xff]  ;;  %v1186_v63 = vld [vmem:[#allocation2 + $0xd8] sm:$0xff]  ;;  %4869 = vmatprep.subr.bf16.mxu1 %v4868_v58 }
 0x146   : > { %818 = vst.msk [vmem:[#allocation2 + $0x158] sm:$0xff] %vm814_vm7, %v797_v60  ;;  %817 = vst.msk [vmem:[#allocation2 + $0x150] sm:$0xff] %vm814_vm7, %v795_v61  ;;  %v4836_v0 = vpack.c.bf16 %v1186_v63, %v1185_v62  ;;  %v1106_v58 = vld [vmem:[%s7833_s1 + $0x58] sm:$0xff]  ;;  %v1105_v60 = vld [vmem:[%s7833_s1 + $0x50] sm:$0xff] }
 0x147   : > { %973 = vrot.lane.b32.xlu1 %v6216_v6, %s7780_s24 }
 0x148   : > { %4837 = vmatprep.subr.bf16.mxu0 %v4836_v0 }
 0x149   : > { %971 = vrot.lane.b32.xlu0 %v6224_v7, %s7780_s24  ;;  %v735_v4 = vpop.permute.xlu1 %734  ;;  %v733_v5 = vpop.permute.xlu0 %732  ;;  %v1169_v10 = vld [vmem:[#allocation2 + $0x50] sm:$0xff]  ;;  %v1170_v11 = vld [vmem:[#allocation2 + $0x58] sm:$0xff] }
 0x14a   : > { %754 = vst.msk [vmem:[#allocation2 + $0xe8] sm:$0xff] %vm748_vm5, %v735_v4  ;;  %753 = vst.msk [vmem:[#allocation2 + $0xe0] sm:$0xff] %vm748_vm5, %v733_v5  ;;  %v4838_v12 = vpack.c.bf16 %v1170_v11, %v1169_v10  ;;  %v1120_v4 = vld [vmem:[%s7833_s1 + $0xc8] sm:$0xff]  ;;  %v1114_v10 = vld [vmem:[%s7833_s1 + $0x98] sm:$0xff] }
 0x14b   : > { %907 = vrot.lane.b32.xlu1 %v6216_v6, %s7778_s29  ;;  %v1119_v11 = vld [vmem:[%s7833_s1 + $0xc0] sm:$0xff] }
 0x14c   : > { %4839 = vmatpush3.bf16.msra.mxu0 %v4838_v12  ;;  %v1113_v12 = vld [vmem:[%s7833_s1 + $0x90] sm:$0xff] }
 0x14d   : > { %905 = vrot.lane.b32.xlu0 %v6224_v7, %s7778_s29  ;;  %v669_v15 = vpop.permute.xlu1 %668  ;;  %v667_v16 = vpop.permute.xlu0 %666  ;;  %v1201_v17 = vld [vmem:[#allocation2 + $0x150] sm:$0xff]  ;;  %v1202_v18 = vld [vmem:[#allocation2 + $0x158] sm:$0xff] }
 0x14e   : > { %688 = vst.msk [vmem:[#allocation2 + $0x68] sm:$0xff] %vm682_vm6, %v669_v15  ;;  %687 = vst.msk [vmem:[#allocation2 + $0x60] sm:$0xff] %vm682_vm6, %v667_v16  ;;  %v4870_v20 = vpack.c.bf16 %v1202_v18, %v1201_v17  ;;  %v1128_v17 = vld [vmem:[%s7833_s1 + $0x108] sm:$0xff] }
 0x14f   : > { %1039 = vrot.lane.b32.xlu1 %v6216_v6, %s7776_s25 }
 0x150   : > { %4871 = vmatpush3.bf16.msra.mxu1 %v4870_v20  ;;  %v1127_v20 = vld [vmem:[%s7833_s1 + $0x100] sm:$0xff] }
 0x151   : > { %1037 = vrot.lane.b32.xlu0 %v6224_v7, %s7776_s25  ;;  %v801_v21 = vpop.permute.xlu1 %800  ;;  %v799_v22 = vpop.permute.xlu0 %798  ;;  %v1187_v23 = vld [vmem:[#allocation2 + $0xe0] sm:$0xff]  ;;  %v1188_v24 = vld [vmem:[#allocation2 + $0xe8] sm:$0xff]  ;;  %4873 = vmatprep.subr.bf16.mxu1 %v4872_v19  ;;  %v1122_v19 = vld [vmem:[%s7833_s1 + $0xd8] sm:$0xff] }
 0x152   : > { %820 = vst.msk [vmem:[#allocation2 + $0x168] sm:$0xff] %vm814_vm7, %v801_v21  ;;  %819 = vst.msk [vmem:[#allocation2 + $0x160] sm:$0xff] %vm814_vm7, %v799_v22  ;;  %v4840_v25 = vpack.c.bf16 %v1188_v24, %v1187_v23  ;;  %v1121_v21 = vld [vmem:[%s7833_s1 + $0xd0] sm:$0xff] }
 0x153   : > { %977 = vrot.lane.b32.xlu1 %v6226_v8, %s7780_s24 }
 0x154   : > { %4841 = vmatprep.subr.bf16.mxu0 %v4840_v25 }
 0x155   : > { %975 = vrot.lane.b32.xlu0 %v6228_v9, %s7780_s24  ;;  %v739_v6 = vpop.permute.xlu1 %738  ;;  %v737_v7 = vpop.permute.xlu0 %736  ;;  %v1171_v26 = vld [vmem:[#allocation2 + $0x60] sm:$0xff]  ;;  %v1172_v27 = vld [vmem:[#allocation2 + $0x68] sm:$0xff]  ;;  %s7837_s24 = smov 127  }
 0x156   : > { %756 = vst.msk [vmem:[#allocation2 + $0xf8] sm:$0xff] %vm748_vm5, %v739_v6  ;;  %755 = vst.msk [vmem:[#allocation2 + $0xf0] sm:$0xff] %vm748_vm5, %v737_v7  ;;  %v4842_v28 = vpack.c.bf16 %v1172_v27, %v1171_v26  ;;  %v1136_v6 = vld [vmem:[%s7833_s1 + $0x148] sm:$0xff]  ;;  %v1130_v26 = vld [vmem:[%s7833_s1 + $0x118] sm:$0xff] }
 0x157   : > { %911 = vrot.lane.b32.xlu1 %v6226_v8, %s7778_s29  ;;  %v1287_v27 = vld [vmem:[%s7834_s2] sm:$0xff] }
 0x158   : > { %4843 = vmatpush3.bf16.msra.mxu0 %v4842_v28  ;;  %v1135_v28 = vld [vmem:[%s7833_s1 + $0x140] sm:$0xff] }
 0x159   : > { %909 = vrot.lane.b32.xlu0 %v6228_v9, %s7778_s29  ;;  %v673_v31 = vpop.permute.xlu1 %672  ;;  %v671_v32 = vpop.permute.xlu0 %670  ;;  %v1203_v33 = vld [vmem:[#allocation2 + $0x160] sm:$0xff]  ;;  %v1204_v34 = vld [vmem:[#allocation2 + $0x168] sm:$0xff]  ;;  %s7840_s29 = smov 124  }
 0x15a   : > { %690 = vst.msk [vmem:[#allocation2 + $0x78] sm:$0xff] %vm682_vm6, %v673_v31  ;;  %689 = vst.msk [vmem:[#allocation2 + $0x70] sm:$0xff] %vm682_vm6, %v671_v32  ;;  %v4874_v36 = vpack.c.bf16 %v1204_v34, %v1203_v33  ;;  %v1144_v34 = vld [vmem:[%s7833_s1 + $0x188] sm:$0xff] }
 0x15b   : > { %1043 = vrot.lane.b32.xlu1 %v6226_v8, %s7776_s25 }
 0x15c   : > { %4875 = vmatpush3.bf16.msra.mxu1 %v4874_v36 }
 0x15d   : > { %1041 = vrot.lane.b32.xlu0 %v6228_v9, %s7776_s25  ;;  %v805_v37 = vpop.permute.xlu1 %804  ;;  %v803_v38 = vpop.permute.xlu0 %802  ;;  %v1189_v39 = vld [vmem:[#allocation2 + $0xf0] sm:$0xff]  ;;  %v1190_v40 = vld [vmem:[#allocation2 + $0xf8] sm:$0xff]  ;;  %4877 = vmatprep.subr.bf16.mxu1 %v4876_v35  ;;  %v5466_v35 = vmov 0   ;;  %s7842_s25 = smov 122  }
 0x15e   : > { %822 = vst.msk [vmem:[#allocation2 + $0x178] sm:$0xff] %vm814_vm7, %v805_v37  ;;  %821 = vst.msk [vmem:[#allocation2 + $0x170] sm:$0xff] %vm814_vm7, %v803_v38  ;;  %v4844_v41 = vpack.c.bf16 %v1190_v40, %v1189_v39  ;;  %5286 = vset.pattern.permute.xlu0 %v5466_v35  ;;  %v1138_v37 = vld [vmem:[%s7833_s1 + $0x158] sm:$0xff]  ;;  %5287 = vset.pattern.permute.xlu1 %v5466_v35  ;;  %v1288_v38 = vld [vmem:[%s7834_s2 + $0x8] sm:$0xff] }
 0x15f   : > { %v1290_v39 = vld [vmem:[%s7834_s2 + $0x18] sm:$0xff]  ;;  %v1143_v40 = vld [vmem:[%s7833_s1 + $0x180] sm:$0xff]  ;;  %1302 = vperm.xlu1 %5287, %v1288_v38  }
 0x160   : > { %4845 = vmatprep.subr.bf16.mxu0 %v4844_v41  ;;  %v1137_v41 = vld [vmem:[%s7833_s1 + $0x150] sm:$0xff] }
 0x161   : > { %v933_v42 = vpop.permute.xlu1 %932  ;;  %v931_v43 = vpop.permute.xlu0 %930  ;;  %v1173_v44 = vld [vmem:[#allocation2 + $0x70] sm:$0xff]  ;;  %v1174_v8 = vld [vmem:[#allocation2 + $0x78] sm:$0xff]  ;;  %1297 = vperm.xlu0 %5286, %v1287_v27  }
 0x162   : > { %956 = vst.msk [vmem:[#allocation2 + $0x288] sm:$0xff] %vm954_vm8, %v933_v42  ;;  %955 = vst.msk [vmem:[#allocation2 + $0x280] sm:$0xff] %vm954_vm8, %v931_v43  ;;  %v4846_v9 = vpack.c.bf16 %v1174_v8, %v1173_v44 }
 0x164   : > { %4847 = vmatpush3.bf16.msra.mxu0 %v4846_v9  ;;  %v1152_v9 = vld [vmem:[%s7833_s1 + $0x1c8] sm:$0xff] }
 0x165   : > { %v867_v46 = vpop.permute.xlu1 %866  ;;  %v865_v47 = vpop.permute.xlu0 %864  ;;  %v1205_v48 = vld [vmem:[#allocation2 + $0x170] sm:$0xff]  ;;  %v1206_v2 = vld [vmem:[#allocation2 + $0x178] sm:$0xff]  ;;  %1312 = vperm.xlu0 %5286, %v1290_v39  }
 0x166   : > { %890 = vst.msk [vmem:[#allocation2 + $0x208] sm:$0xff] %vm888_vm9, %v867_v46  ;;  %889 = vst.msk [vmem:[#allocation2 + $0x200] sm:$0xff] %vm888_vm9, %v865_v47  ;;  %v4878_v49 = vpack.c.bf16 %v1206_v2, %v1205_v48  ;;  %v1146_v46 = vld [vmem:[%s7833_s1 + $0x198] sm:$0xff]  ;;  %v1289_v47 = vld [vmem:[%s7834_s2 + $0x10] sm:$0xff] }
 0x167   : > { %1400 = vmatmul.mubr.f32.vlgmr.msra.gmra.mrb[0].mxu0 %v1095_v45  ;;  %v1292_v48 = vld [vmem:[%s7834_s2 + $0x28] sm:$0xff]  ;;  %v1151_v2 = vld [vmem:[%s7833_s1 + $0x1c0] sm:$0xff]  ;;  %1307 = vperm.xlu1 %5287, %v1289_v47  }
 0x168   : > { %4879 = vmatpush3.bf16.msra.mxu1 %v4878_v49  ;;  %1404 = vmatprep.mubr.f32.mxu0 %v1104_v3  ;;  %v1145_v3 = vld [vmem:[%s7833_s1 + $0x190] sm:$0xff] }
 0x169   : > { %v1065_v52 = vpop.permute.xlu1 %1064  ;;  %v1063_v53 = vpop.permute.xlu0 %1062  ;;  %v1239_v54 = vld [vmem:[#allocation2 + $0x280] sm:$0xff]  ;;  %v1240_v55 = vld [vmem:[#allocation2 + $0x288] sm:$0xff]  ;;  %1322 = vperm.xlu0 %5286, %v1292_v48  }
 0x16a   : > { %1088 = vst.msk [vmem:[#allocation2 + $0x388] sm:$0xff] %vm1086_vm10, %v1065_v52  ;;  %1087 = vst.msk [vmem:[#allocation2 + $0x380] sm:$0xff] %vm1086_vm10, %v1063_v53  ;;  %v4880_v57 = vpack.c.bf16 %v1240_v55, %v1239_v54  ;;  %v1154_v53 = vld [vmem:[%s7833_s1 + $0x1d8] sm:$0xff]  ;;  %v1100_v55 = vld [vmem:[%s7833_s1 + $0x28] sm:$0xff] }
 0x16b   : > { %1505 = vmatmul.mubr.f32.vlgmr.msra.gmra.mrb[0].mxu1 %v1097_v50  ;;  %1405 = vmatmul.mubr.f32.gmra.mrb[2].mxu0 %v1103_v51 }
 0x16c   : > { %4881 = vmatprep.subr.bf16.mxu0 %v4880_v57  ;;  %1409 = vmatprep.mubr.f32.mxu0 %v1112_v56  ;;  %v1291_v56 = vld [vmem:[%s7834_s2 + $0x20] sm:$0xff]  ;;  %v1294_v57 = vld [vmem:[%s7834_s2 + $0x38] sm:$0xff] }
 0x16d   : > { %v999_v61 = vpop.permute.xlu1 %998  ;;  %v997_v62 = vpop.permute.xlu0 %996  ;;  %v1223_v63 = vld [vmem:[#allocation2 + $0x200] sm:$0xff]  ;;  %v1224_v0 = vld [vmem:[#allocation2 + $0x208] sm:$0xff]  ;;  %1509 = vmatprep.mubr.f32.mxu1 %v1106_v58  ;;  %v1153_v58 = vld [vmem:[%s7833_s1 + $0x1d0] sm:$0xff]  ;;  %1317 = vperm.xlu1 %5287, %v1291_v56  }
 0x16e   : > { %1022 = vst.msk [vmem:[#allocation2 + $0x308] sm:$0xff] %vm1020_vm11, %v999_v61  ;;  %1021 = vst.msk [vmem:[#allocation2 + $0x300] sm:$0xff] %vm1020_vm11, %v997_v62  ;;  %v4882_v5 = vpack.c.bf16 %v1224_v0, %v1223_v63  ;;  %v1102_v63 = vld [vmem:[%s7833_s1 + $0x38] sm:$0xff]  ;;  %1332 = vperm.xlu0 %5286, %v1294_v57   ;;  %v1281_v56 = vld [vmem:[#allocation2 + $0x3d0] sm:$0xff] }
 0x16f   : > { %1410 = vmatmul.mubr.f32.gmra.mrb[4].mxu0 %v1111_v59  ;;  %1510 = vmatmul.mubr.f32.gmra.mrb[2].mxu1 %v1105_v60  ;;  %v1282_v57 = vld [vmem:[#allocation2 + $0x3d8] sm:$0xff] }
 0x170   : > { %4883 = vmatpush3.bf16.msra.mxu0 %v4882_v5  ;;  %1414 = vmatprep.mubr.f32.mxu0 %v1120_v4  ;;  %v1293_v4 = vld [vmem:[%s7834_s2 + $0x30] sm:$0xff]  ;;  %s7855_s2 = smov 3  }
 0x171   : > { %v937_v13 = vpop.permute.xlu1 %936  ;;  %v935_v14 = vpop.permute.xlu0 %934  ;;  %v1271_v15 = vld [vmem:[#allocation2 + $0x380] sm:$0xff]  ;;  %v1272_v16 = vld [vmem:[#allocation2 + $0x388] sm:$0xff]  ;;  %1514 = vmatprep.mubr.f32.mxu1 %v1114_v10  ;;  %1327 = vperm.xlu1 %5287, %v1293_v4  }
 0x172   : > { %958 = vst.msk [vmem:[#allocation2 + $0x298] sm:$0xff] %vm954_vm8, %v937_v13  ;;  %957 = vst.msk [vmem:[#allocation2 + $0x290] sm:$0xff] %vm954_vm8, %v935_v14  ;;  %v4912_v18 = vpack.c.bf16 %v1272_v16, %v1271_v15 }
 0x173   : > { %1415 = vmatmul.mubr.f32.gmra.mrb[6].mxu0 %v1119_v11  ;;  %1515 = vmatmul.mubr.f32.gmra.mrb[4].mxu1 %v1113_v12 }
 0x174   : > { %4913 = vmatprep.subr.bf16.mxu1 %v4912_v18  ;;  %1419 = vmatprep.mubr.f32.mxu0 %v1128_v17 }
 0x175   : > { %v871_v22 = vpop.permute.xlu1 %870  ;;  %v869_v23 = vpop.permute.xlu0 %868  ;;  %v1255_v24 = vld [vmem:[#allocation2 + $0x300] sm:$0xff]  ;;  %v1256_v25 = vld [vmem:[#allocation2 + $0x308] sm:$0xff]  ;;  %1519 = vmatprep.mubr.f32.mxu1 %v1122_v19 }
 0x176   : > { %892 = vst.msk [vmem:[#allocation2 + $0x218] sm:$0xff] %vm888_vm9, %v871_v22  ;;  %891 = vst.msk [vmem:[#allocation2 + $0x210] sm:$0xff] %vm888_vm9, %v869_v23  ;;  %v4914_v7 = vpack.c.bf16 %v1256_v25, %v1255_v24 }
 0x177   : > { %1420 = vmatmul.mubr.f32.gmra.mrb[8].mxu0 %v1127_v20  ;;  %1520 = vmatmul.mubr.f32.gmra.mrb[6].mxu1 %v1121_v21 }
 0x178   : > { %4915 = vmatpush3.bf16.msra.mxu1 %v4914_v7  ;;  %1424 = vmatprep.mubr.f32.mxu0 %v1136_v6 }
 0x179   : > { %v1069_v30 = vpop.permute.xlu1 %1068  ;;  %v1241_v32 = vld [vmem:[#allocation2 + $0x290] sm:$0xff]  ;;  %v1242_v33 = vld [vmem:[#allocation2 + $0x298] sm:$0xff]  ;;  %1524 = vmatprep.mubr.f32.mxu1 %v1130_v26 }
 0x17a   : > { %1090 = vst.msk [vmem:[#allocation2 + $0x398] sm:$0xff] %vm1086_vm10, %v1069_v30  ;;  %v4884_v36 = vpack.c.bf16 %v1242_v33, %v1241_v32 }
 0x17b   : > { %v1067_v31 = vpop.permute.xlu0 %1066  ;;  %1425 = vmatmul.mubr.f32.gmra.mrb[10].mxu0 %v1135_v28  ;;  %1525 = vmatmul.mubr.f32.gmra.mrb[8].mxu1 %v1129_v29 }
 0x17c   : > { %1089 = vst.msk [vmem:[#allocation2 + $0x390] sm:$0xff] %vm1086_vm10, %v1067_v31  ;;  %4885 = vmatprep.subr.bf16.mxu0 %v4884_v36  ;;  %1429 = vmatprep.mubr.f32.mxu0 %v1144_v34 }
 0x17d   : > { %v1003_v42 = vpop.permute.xlu1 %1002  ;;  %v1225_v44 = vld [vmem:[#allocation2 + $0x210] sm:$0xff]  ;;  %v1226_v8 = vld [vmem:[#allocation2 + $0x218] sm:$0xff]  ;;  %1529 = vmatprep.mubr.f32.mxu1 %v1138_v37 }
 0x17e   : > { %1024 = vst.msk [vmem:[#allocation2 + $0x318] sm:$0xff] %vm1020_vm11, %v1003_v42  ;;  %v4886_v45 = vpack.c.bf16 %v1226_v8, %v1225_v44  ;;  %v1279_v42 = vld [vmem:[#allocation2 + $0x3c0] sm:$0xff] }
 0x17f   : > { %v1001_v43 = vpop.permute.xlu0 %1000  ;;  %1430 = vmatmul.mubr.f32.gmra.mrb[12].mxu0 %v1143_v40  ;;  %1530 = vmatmul.mubr.f32.gmra.mrb[10].mxu1 %v1137_v41 }
 0x180   : > { %1023 = vst.msk [vmem:[#allocation2 + $0x310] sm:$0xff] %vm1020_vm11, %v1001_v43  ;;  %4887 = vmatpush3.bf16.msra.mxu0 %v4886_v45  ;;  %1434 = vmatprep.mubr.f32.mxu0 %v1152_v9  ;;  %v1280_v43 = vld [vmem:[#allocation2 + $0x3c8] sm:$0xff] }
 0x181   : > { %v941_v49 = vpop.permute.xlu1 %940  ;;  %v1274_v52 = vld [vmem:[#allocation2 + $0x398] sm:$0xff]  ;;  %1534 = vmatprep.mubr.f32.mxu1 %v1146_v46  ;;  %v4928_v46 = vpack.c.bf16 %v1280_v43, %v1279_v42 }
 0x182   : > { %960 = vst.msk [vmem:[#allocation2 + $0x2a8] sm:$0xff] %vm954_vm8, %v941_v49 }
 0x183   : > { %v939_v50 = vpop.permute.xlu0 %938  ;;  %v1273_v51 = vld [vmem:[#allocation2 + $0x390] sm:$0xff]  ;;  %1435 = vmatmul.mubr.f32.gmra.mrb[14].mxu0 %v1151_v2  ;;  %1535 = vmatmul.mubr.f32.gmra.mrb[12].mxu1 %v1145_v3 }
 0x184   : > { %959 = vst.msk [vmem:[#allocation2 + $0x2a0] sm:$0xff] %vm954_vm8, %v939_v50  ;;  %v4916_v54 = vpack.c.bf16 %v1274_v52, %v1273_v51  ;;  %1539 = vmatprep.mubr.f32.mxu1 %v1154_v53  ;;  %1609 = vmatprep.mubr.f32.mxu0 %v1100_v55 }
 0x185   : > { %v875_v59 = vpop.permute.xlu1 %874  ;;  %v1258_v62 = vld [vmem:[#allocation2 + $0x318] sm:$0xff] }
 0x186   : > { %4917 = vmatprep.subr.bf16.mxu1 %v4916_v54  ;;  %894 = vst.msk [vmem:[#allocation2 + $0x228] sm:$0xff] %vm888_vm9, %v875_v59 }
 0x187   : > { %v873_v60 = vpop.permute.xlu0 %872  ;;  %v1257_v61 = vld [vmem:[#allocation2 + $0x310] sm:$0xff]  ;;  %1540 = vmatmul.mubr.f32.gmra.mrb[14].mxu1 %v1153_v58 }
 0x188   : > { %893 = vst.msk [vmem:[#allocation2 + $0x220] sm:$0xff] %vm888_vm9, %v873_v60  ;;  %v4918_v0 = vpack.c.bf16 %v1258_v62, %v1257_v61  ;;  %1714 = vmatprep.mubr.f32.mxu1 %v1102_v63  ;;  %v4932_v62 = vpack.c.bf16 %v1282_v57, %v1281_v56  ;;  %v1124_v56 = vld [vmem:[%s7833_s1 + $0xe8] sm:$0xff]  ;;  %v1118_v57 = vld [vmem:[%s7833_s1 + $0xb8] sm:$0xff] }
 0x189   : > { %v1073_v5 = vpop.permute.xlu1 %1072  ;;  %v1244_v12 = vld [vmem:[#allocation2 + $0x2a8] sm:$0xff] }
 0x18a   : > { %4919 = vmatpush3.bf16.msra.mxu1 %v4918_v0  ;;  %1092 = vst.msk [vmem:[#allocation2 + $0x3a8] sm:$0xff] %vm1086_vm10, %v1073_v5 }
 0x18b   : > { %v1071_v10 = vpop.permute.xlu0 %1070  ;;  %v1243_v11 = vld [vmem:[#allocation2 + $0x2a0] sm:$0xff] }
 0x18c   : > { %1091 = vst.msk [vmem:[#allocation2 + $0x3a0] sm:$0xff] %vm1086_vm10, %v1071_v10  ;;  %v4888_v13 = vpack.c.bf16 %v1244_v12, %v1243_v11 }
 0x18d   : > { %v1007_v14 = vpop.permute.xlu1 %1006  ;;  %v1228_v17 = vld [vmem:[#allocation2 + $0x228] sm:$0xff] }
 0x18e   : > { %4889 = vmatprep.subr.bf16.mxu0 %v4888_v13  ;;  %1026 = vst.msk [vmem:[#allocation2 + $0x328] sm:$0xff] %vm1020_vm11, %v1007_v14 }
 0x18f   : > { %v1005_v15 = vpop.permute.xlu0 %1004  ;;  %v1227_v16 = vld [vmem:[#allocation2 + $0x220] sm:$0xff] }
 0x190   : > { %1025 = vst.msk [vmem:[#allocation2 + $0x320] sm:$0xff] %vm1020_vm11, %v1005_v15  ;;  %v4890_v18 = vpack.c.bf16 %v1228_v17, %v1227_v16  ;;  %v1283_v17 = vld [vmem:[#allocation2 + $0x3e0] sm:$0xff] }
 0x191   : > { %v945_v19 = vpop.permute.xlu1 %944  ;;  %v1276_v22 = vld [vmem:[#allocation2 + $0x3a8] sm:$0xff] }
 0x192   : > { %4891 = vmatpush3.bf16.msra.mxu0 %v4890_v18  ;;  %962 = vst.msk [vmem:[#allocation2 + $0x2b8] sm:$0xff] %vm954_vm8, %v945_v19  ;;  %v1284_v18 = vld [vmem:[#allocation2 + $0x3e8] sm:$0xff] }
 0x193   : > { %v943_v20 = vpop.permute.xlu0 %942  ;;  %v1275_v21 = vld [vmem:[#allocation2 + $0x3a0] sm:$0xff] }
 0x194   : > { %961 = vst.msk [vmem:[#allocation2 + $0x2b0] sm:$0xff] %vm954_vm8, %v943_v20  ;;  %v4920_v23 = vpack.c.bf16 %v1276_v22, %v1275_v21 }
 0x195   : > { %v879_v24 = vpop.permute.xlu1 %878  ;;  %v1260_v7 = vld [vmem:[#allocation2 + $0x328] sm:$0xff] }
 0x196   : > { %4921 = vmatprep.subr.bf16.mxu1 %v4920_v23  ;;  %896 = vst.msk [vmem:[#allocation2 + $0x238] sm:$0xff] %vm888_vm9, %v879_v24  ;;  %v4936_v23 = vpack.c.bf16 %v1284_v18, %v1283_v17  ;;  %v1155_v17 = vld [vmem:[%s7833_s1 + $0x1e0] sm:$0xff]  ;;  %v1149_v18 = vld [vmem:[%s7833_s1 + $0x1b0] sm:$0xff] }
 0x197   : > { %v877_v25 = vpop.permute.xlu0 %876  ;;  %v1259_v6 = vld [vmem:[#allocation2 + $0x320] sm:$0xff] }
 0x198   : > { %895 = vst.msk [vmem:[#allocation2 + $0x230] sm:$0xff] %vm888_vm9, %v877_v25  ;;  %v4922_v26 = vpack.c.bf16 %v1260_v7, %v1259_v6 }
 0x199   : > { %v1077_v27 = vpop.permute.xlu1 %1076  ;;  %v1246_v30 = vld [vmem:[#allocation2 + $0x2b8] sm:$0xff] }
 0x19a   : > { %4923 = vmatpush3.bf16.msra.mxu1 %v4922_v26  ;;  %1094 = vst.msk [vmem:[#allocation2 + $0x3b8] sm:$0xff] %vm1086_vm10, %v1077_v27 }
 0x19b   : > { %v1075_v28 = vpop.permute.xlu0 %1074  ;;  %v1245_v29 = vld [vmem:[#allocation2 + $0x2b0] sm:$0xff] }
 0x19c   : > { %1093 = vst.msk [vmem:[#allocation2 + $0x3b0] sm:$0xff] %vm1086_vm10, %v1075_v28  ;;  %v4892_v31 = vpack.c.bf16 %v1246_v30, %v1245_v29 }
 0x19d   : > { %v1011_v32 = vpop.permute.xlu1 %1010  ;;  %v1230_v35 = vld [vmem:[#allocation2 + $0x238] sm:$0xff] }
 0x19e   : > { %4893 = vmatprep.subr.bf16.mxu0 %v4892_v31  ;;  %1028 = vst.msk [vmem:[#allocation2 + $0x338] sm:$0xff] %vm1020_vm11, %v1011_v32 }
 0x19f   : > { %v1009_v33 = vpop.permute.xlu0 %1008  ;;  %v1229_v34 = vld [vmem:[#allocation2 + $0x230] sm:$0xff] }
 0x1a0   : > { %1027 = vst.msk [vmem:[#allocation2 + $0x330] sm:$0xff] %vm1020_vm11, %v1009_v33  ;;  %v4894_v36 = vpack.c.bf16 %v1230_v35, %v1229_v34  ;;  %v1285_v33 = vld [vmem:[#allocation2 + $0x3f0] sm:$0xff]  ;;  %v1286_v34 = vld [vmem:[#allocation2 + $0x3f8] sm:$0xff] }
 0x1a1   : > { %v966_v37 = vpop.permute.xlu1 %965  ;;  %v1278_v40 = vld [vmem:[#allocation2 + $0x3b8] sm:$0xff] }
 0x1a2   : > { %4895 = vmatpush3.bf16.msra.mxu0 %v4894_v36  ;;  %989 = vst.msk [vmem:[#allocation2 + $0x2c8] sm:$0xff] %vm987_vm12, %v966_v37 }
 0x1a3   : > { %v964_v38 = vpop.permute.xlu0 %963  ;;  %v1277_v39 = vld [vmem:[#allocation2 + $0x3b0] sm:$0xff] }
 0x1a4   : > { %988 = vst.msk [vmem:[#allocation2 + $0x2c0] sm:$0xff] %vm987_vm12, %v964_v38  ;;  %v4924_v41 = vpack.c.bf16 %v1278_v40, %v1277_v39  ;;  %v4940_v39 = vpack.c.bf16 %v1286_v34, %v1285_v33 }
 0x1a5   : > { %v900_v44 = vpop.permute.xlu1 %899  ;;  %v1262_v45 = vld [vmem:[#allocation2 + $0x338] sm:$0xff] }
 0x1a6   : > { %4925 = vmatprep.subr.bf16.mxu1 %v4924_v41  ;;  %923 = vst.msk [vmem:[#allocation2 + $0x248] sm:$0xff] %vm921_vm13, %v900_v44 }
 0x1a7   : > { %v898_v8 = vpop.permute.xlu0 %897  ;;  %v1261_v9 = vld [vmem:[#allocation2 + $0x330] sm:$0xff] }
 0x1a8   : > { %922 = vst.msk [vmem:[#allocation2 + $0x240] sm:$0xff] %vm921_vm13, %v898_v8  ;;  %v4926_v47 = vpack.c.bf16 %v1262_v45, %v1261_v9 }
 0x1a9   : > { %v1032_v48 = vpop.permute.xlu1 %1031  ;;  %v1248_v49 = vld [vmem:[#allocation2 + $0x2c8] sm:$0xff] }
 0x1aa   : > { %4927 = vmatpush3.bf16.msra.mxu1 %v4926_v47  ;;  %1055 = vst.msk [vmem:[#allocation2 + $0x348] sm:$0xff] %vm7792_vm14, %v1032_v48  ;;  %v1099_v47 = vld [vmem:[%s7833_s1 + $0x20] sm:$0xff] }
 0x1ab   : > { %v1030_v2 = vpop.permute.xlu0 %1029  ;;  %v1247_v3 = vld [vmem:[#allocation2 + $0x2c0] sm:$0xff]  ;;  %4929 = vmatprep.subr.bf16.mxu1 %v4928_v46 }
 0x1ac   : > { %1054 = vst.msk [vmem:[#allocation2 + $0x340] sm:$0xff] %vm7792_vm14, %v1030_v2  ;;  %v4896_v50 = vpack.c.bf16 %v1248_v49, %v1247_v3  ;;  %v1108_v3 = vld [vmem:[%s7833_s1 + $0x68] sm:$0xff] }
 0x1ad   : > { %v970_v51 = vpop.permute.xlu1 %969  ;;  %v1232_v54 = vld [vmem:[#allocation2 + $0x248] sm:$0xff] }
 0x1ae   : > { %4897 = vmatprep.subr.bf16.mxu0 %v4896_v50  ;;  %991 = vst.msk [vmem:[#allocation2 + $0x2d8] sm:$0xff] %vm987_vm12, %v970_v51  ;;  %v1107_v50 = vld [vmem:[%s7833_s1 + $0x60] sm:$0xff]  ;;  %v1101_v51 = vld [vmem:[%s7833_s1 + $0x30] sm:$0xff] }
 0x1af   : > { %v968_v52 = vpop.permute.xlu0 %967  ;;  %v1231_v53 = vld [vmem:[#allocation2 + $0x240] sm:$0xff] }
 0x1b0   : > { %990 = vst.msk [vmem:[#allocation2 + $0x2d0] sm:$0xff] %vm987_vm12, %v968_v52  ;;  %v4898_v55 = vpack.c.bf16 %v1232_v54, %v1231_v53  ;;  %v1116_v52 = vld [vmem:[%s7833_s1 + $0xa8] sm:$0xff]  ;;  %v1110_v53 = vld [vmem:[%s7833_s1 + $0x78] sm:$0xff]  ;;  %v1115_v54 = vld [vmem:[%s7833_s1 + $0xa0] sm:$0xff] }
 0x1b1   : > { %v904_v58 = vpop.permute.xlu1 %903  ;;  %v1264_v61 = vld [vmem:[#allocation2 + $0x348] sm:$0xff] }
 0x1b2   : > { %4899 = vmatpush3.bf16.msra.mxu0 %v4898_v55  ;;  %925 = vst.msk [vmem:[#allocation2 + $0x258] sm:$0xff] %vm921_vm13, %v904_v58  ;;  %v1109_v55 = vld [vmem:[%s7833_s1 + $0x70] sm:$0xff]  ;;  %v1123_v58 = vld [vmem:[%s7833_s1 + $0xe0] sm:$0xff] }
 0x1b3   : > { %v902_v59 = vpop.permute.xlu0 %901  ;;  %v1263_v60 = vld [vmem:[#allocation2 + $0x340] sm:$0xff] }
 0x1b4   : > { %924 = vst.msk [vmem:[#allocation2 + $0x250] sm:$0xff] %vm921_vm13, %v902_v59  ;;  %v4930_v63 = vpack.c.bf16 %v1264_v61, %v1263_v60  ;;  %v1117_v59 = vld [vmem:[%s7833_s1 + $0xb0] sm:$0xff]  ;;  %v1132_v60 = vld [vmem:[%s7833_s1 + $0x128] sm:$0xff]  ;;  %v1126_v61 = vld [vmem:[%s7833_s1 + $0xf8] sm:$0xff] }
 0x1b5   : > { %v1036_v0 = vpop.permute.xlu1 %1035  ;;  %v1250_v10 = vld [vmem:[#allocation2 + $0x2d8] sm:$0xff] }
 0x1b6   : > { %4931 = vmatpush3.bf16.msra.mxu1 %v4930_v63  ;;  %1057 = vst.msk [vmem:[#allocation2 + $0x358] sm:$0xff] %vm7792_vm14, %v1036_v0  ;;  %v1125_v63 = vld [vmem:[%s7833_s1 + $0xf0] sm:$0xff]  ;;  %v1140_v0 = vld [vmem:[%s7833_s1 + $0x168] sm:$0xff] }
 0x1b7   : > { %v1034_v4 = vpop.permute.xlu0 %1033  ;;  %v1249_v5 = vld [vmem:[#allocation2 + $0x2d0] sm:$0xff]  ;;  %4933 = vmatprep.subr.bf16.mxu1 %v4932_v62  ;;  %v1131_v62 = vld [vmem:[%s7833_s1 + $0x120] sm:$0xff] }
 0x1b8   : > { %1056 = vst.msk [vmem:[#allocation2 + $0x350] sm:$0xff] %vm7792_vm14, %v1034_v4  ;;  %v4900_v11 = vpack.c.bf16 %v1250_v10, %v1249_v5  ;;  %v1134_v4 = vld [vmem:[%s7833_s1 + $0x138] sm:$0xff]  ;;  %v1139_v5 = vld [vmem:[%s7833_s1 + $0x160] sm:$0xff]  ;;  %v1133_v10 = vld [vmem:[%s7833_s1 + $0x130] sm:$0xff] }
 0x1b9   : > { %v974_v12 = vpop.permute.xlu1 %973  ;;  %v1234_v15 = vld [vmem:[#allocation2 + $0x258] sm:$0xff] }
 0x1ba   : > { %4901 = vmatprep.subr.bf16.mxu0 %v4900_v11  ;;  %993 = vst.msk [vmem:[#allocation2 + $0x2e8] sm:$0xff] %vm987_vm12, %v974_v12  ;;  %v1148_v11 = vld [vmem:[%s7833_s1 + $0x1a8] sm:$0xff]  ;;  %v1142_v12 = vld [vmem:[%s7833_s1 + $0x178] sm:$0xff] }
 0x1bb   : > { %v972_v13 = vpop.permute.xlu0 %971  ;;  %v1233_v14 = vld [vmem:[#allocation2 + $0x250] sm:$0xff] }
 0x1bc   : > { %992 = vst.msk [vmem:[#allocation2 + $0x2e0] sm:$0xff] %vm987_vm12, %v972_v13  ;;  %v4902_v16 = vpack.c.bf16 %v1234_v15, %v1233_v14  ;;  %v1147_v13 = vld [vmem:[%s7833_s1 + $0x1a0] sm:$0xff]  ;;  %v1141_v14 = vld [vmem:[%s7833_s1 + $0x170] sm:$0xff]  ;;  %v1156_v15 = vld [vmem:[%s7833_s1 + $0x1e8] sm:$0xff] }
 0x1bd   : > { %v908_v19 = vpop.permute.xlu1 %907  ;;  %v1266_v22 = vld [vmem:[#allocation2 + $0x358] sm:$0xff] }
 0x1be   : > { %4903 = vmatpush3.bf16.msra.mxu0 %v4902_v16  ;;  %927 = vst.msk [vmem:[#allocation2 + $0x268] sm:$0xff] %vm921_vm13, %v908_v19  ;;  %v1150_v16 = vld [vmem:[%s7833_s1 + $0x1b8] sm:$0xff] }
 0x1bf   : > { %v906_v20 = vpop.permute.xlu0 %905  ;;  %v1265_v21 = vld [vmem:[#allocation2 + $0x350] sm:$0xff]  ;;  %v1158_v19 = vld [vmem:[%s7833_s1 + $0x1f8] sm:$0xff] }
 0x1c0   : > { %926 = vst.msk [vmem:[#allocation2 + $0x260] sm:$0xff] %vm921_vm13, %v906_v20  ;;  %v4934_v24 = vpack.c.bf16 %v1266_v22, %v1265_v21  ;;  %v1157_v20 = vld [vmem:[%s7833_s1 + $0x1f0] sm:$0xff]  ;;  %s7854_s1 = smov 7  }
 0x1c1   : > { %v1040_v25 = vpop.permute.xlu1 %1039  ;;  %v1252_v26 = vld [vmem:[#allocation2 + $0x2e8] sm:$0xff] }
 0x1c2   : > { %4935 = vmatpush3.bf16.msra.mxu1 %v4934_v24  ;;  %1059 = vst.msk [vmem:[#allocation2 + $0x368] sm:$0xff] %vm7792_vm14, %v1040_v25 }
 0x1c3   : > { %v1038_v6 = vpop.permute.xlu0 %1037  ;;  %v1251_v7 = vld [vmem:[#allocation2 + $0x2e0] sm:$0xff]  ;;  %4937 = vmatprep.subr.bf16.mxu1 %v4936_v23 }
 0x1c4   : > { %1058 = vst.msk [vmem:[#allocation2 + $0x360] sm:$0xff] %vm7792_vm14, %v1038_v6  ;;  %v4904_v27 = vpack.c.bf16 %v1252_v26, %v1251_v7 }
 0x1c5   : > { %v978_v28 = vpop.permute.xlu1 %977  ;;  %v1236_v31 = vld [vmem:[#allocation2 + $0x268] sm:$0xff] }
 0x1c6   : > { %4905 = vmatprep.subr.bf16.mxu0 %v4904_v27  ;;  %995 = vst.msk [vmem:[#allocation2 + $0x2f8] sm:$0xff] %vm987_vm12, %v978_v28 }
 0x1c7   : > { %v976_v29 = vpop.permute.xlu0 %975  ;;  %v1235_v30 = vld [vmem:[#allocation2 + $0x260] sm:$0xff] }
 0x1c8   : > { %994 = vst.msk [vmem:[#allocation2 + $0x2f0] sm:$0xff] %vm987_vm12, %v976_v29  ;;  %v4906_v32 = vpack.c.bf16 %v1236_v31, %v1235_v30 }
 0x1c9   : > { %v912_v35 = vpop.permute.xlu1 %911  ;;  %v1268_v38 = vld [vmem:[#allocation2 + $0x368] sm:$0xff] }
 0x1ca   : > { %4907 = vmatpush3.bf16.msra.mxu0 %v4906_v32  ;;  %929 = vst.msk [vmem:[#allocation2 + $0x278] sm:$0xff] %vm921_vm13, %v912_v35 }
 0x1cb   : > { %v910_v36 = vpop.permute.xlu0 %909  ;;  %v1267_v37 = vld [vmem:[#allocation2 + $0x360] sm:$0xff] }
 0x1cc   : > { %928 = vst.msk [vmem:[#allocation2 + $0x270] sm:$0xff] %vm921_vm13, %v910_v36  ;;  %v4938_v40 = vpack.c.bf16 %v1268_v38, %v1267_v37 }
 0x1cd   : > { %v1044_v41 = vpop.permute.xlu1 %1043  ;;  %v1254_v44 = vld [vmem:[#allocation2 + $0x2f8] sm:$0xff] }
 0x1ce   : > { %4939 = vmatpush3.bf16.msra.mxu1 %v4938_v40  ;;  %1061 = vst.msk [vmem:[#allocation2 + $0x378] sm:$0xff] %vm7792_vm14, %v1044_v41 }
 0x1cf   : > { %v1042_v42 = vpop.permute.xlu0 %1041  ;;  %v1253_v43 = vld [vmem:[#allocation2 + $0x2f0] sm:$0xff]  ;;  %4941 = vmatprep.subr.bf16.mxu1 %v4940_v39 }
 0x1d0   : > { %1060 = vst.msk [vmem:[#allocation2 + $0x370] sm:$0xff] %vm7792_vm14, %v1042_v42  ;;  %v4908_v8 = vpack.c.bf16 %v1254_v44, %v1253_v43 }
 0x1d1   : > { %v1238_v45 = vld [vmem:[#allocation2 + $0x278] sm:$0xff] }
 0x1d2   : > { %4909 = vmatprep.subr.bf16.mxu0 %v4908_v8 }
 0x1d3   : > { %v1237_v9 = vld [vmem:[#allocation2 + $0x270] sm:$0xff] }
 0x1d4   : > { %v4910_v46 = vpack.c.bf16 %v1238_v45, %v1237_v9 }
 0x1d5   : > { %v1270_v2 = vld [vmem:[#allocation2 + $0x378] sm:$0xff] }
 0x1d6   : > { %4911 = vmatpush3.bf16.msra.mxu0 %v4910_v46 }
 0x1d7   : > { %v1269_v48 = vld [vmem:[#allocation2 + $0x370] sm:$0xff] }
 0x1d8   : > { %v4942_v49 = vpack.c.bf16 %v1270_v2, %v1269_v48 }
 0x1d9   : > { %1610 = vmatmul.mubr.f32.vlgmr.msra.gmra.mrb[16].mxu0 %v1099_v47 }
 0x1da   : > { %4943 = vmatpush3.bf16.msra.mxu1 %v4942_v49  ;;  %1614 = vmatprep.mubr.f32.mxu0 %v1108_v3 }
 0x1dd   : > { %1615 = vmatmul.mubr.f32.gmra.mrb[18].mxu0 %v1107_v50  ;;  %1715 = vmatmul.mubr.f32.vlgmr.msra.gmra.mrb[16].mxu1 %v1101_v51 }
 0x1de   : > { %1619 = vmatprep.mubr.f32.mxu0 %v1116_v52  ;;  %1719 = vmatprep.mubr.f32.mxu1 %v1110_v53  ;;  %v1303_v24 = vpop.permute.xlu1 %1302 }
 0x1e0   : > { %v1298_v22 = vpop.permute.xlu0 %1297 }
 0x1e1   : > { %1620 = vmatmul.mubr.f32.gmra.mrb[20].mxu0 %v1115_v54  ;;  %1720 = vmatmul.mubr.f32.gmra.mrb[18].mxu1 %v1109_v55 }
 0x1e2   : > { %1624 = vmatprep.mubr.f32.mxu0 %v1124_v56  ;;  %1724 = vmatprep.mubr.f32.mxu1 %v1118_v57 }
 0x1e4   : > { %v1313_v40 = vpop.permute.xlu0 %1312 }
 0x1e5   : > { %1625 = vmatmul.mubr.f32.gmra.mrb[22].mxu0 %v1123_v58  ;;  %1725 = vmatmul.mubr.f32.gmra.mrb[20].mxu1 %v1117_v59 }
 0x1e6   : > { %1629 = vmatprep.mubr.f32.mxu0 %v1132_v60  ;;  %1729 = vmatprep.mubr.f32.mxu1 %v1126_v61  ;;  %v1308_v31 = vpop.permute.xlu1 %1307 }
 0x1e8   : > { %v1323_v54 = vpop.permute.xlu0 %1322 }
 0x1e9   : > { %1630 = vmatmul.mubr.f32.gmra.mrb[24].mxu0 %v1131_v62  ;;  %1730 = vmatmul.mubr.f32.gmra.mrb[22].mxu1 %v1125_v63 }
 0x1ea   : > { %1634 = vmatprep.mubr.f32.mxu0 %v1140_v0  ;;  %1734 = vmatprep.mubr.f32.mxu1 %v1134_v4 }
 0x1ec   : > { %v1318_v47 = vpop.permute.xlu1 %1317 }
 0x1ed   : > { %1635 = vmatmul.mubr.f32.gmra.mrb[26].mxu0 %v1139_v5  ;;  %1735 = vmatmul.mubr.f32.gmra.mrb[24].mxu1 %v1133_v10 }
 0x1ee   : > { %1639 = vmatprep.mubr.f32.mxu0 %v1148_v11  ;;  %1739 = vmatprep.mubr.f32.mxu1 %v1142_v12 }
 0x1f0   : > { %v1328_v63 = vpop.permute.xlu1 %1327 }
 0x1f1   : > { %1640 = vmatmul.mubr.f32.gmra.mrb[28].mxu0 %v1147_v13  ;;  %1740 = vmatmul.mubr.f32.gmra.mrb[26].mxu1 %v1141_v14 }
 0x1f2   : > { %1644 = vmatprep.mubr.f32.mxu0 %v1156_v15  ;;  %1744 = vmatprep.mubr.f32.mxu1 %v1150_v16  ;;  %v1333_v15 = vpop.permute.xlu0 %1332 }
 0x1f5   : > { %1645 = vmatmul.mubr.f32.gmra.mrb[30].mxu0 %v1155_v17  ;;  %1745 = vmatmul.mubr.f32.gmra.mrb[28].mxu1 %v1149_v18 }
 0x1f6   : > { %1749 = vmatprep.mubr.f32.mxu1 %v1158_v19 }
 0x1f9   : > { %1750 = vmatmul.mubr.f32.gmra.mrb[30].mxu1 %v1157_v20 }
 0x23a   : > { %v4262_v21 = vpop.f32.mrb[0].mxu0 }
 0x23b   : > { %v4263_v23 = vpop.f32.mrb[1].mxu0 }
 0x23c   : > { %v4264_v25 = vadd.f32 %v4263_v23, %v4262_v21 }
 0x23e   : > { %v4318_v6 = vpop.f32.mrb[0].mxu1  ;;  %v1402_v7 = vadd.f32 %v4264_v25, %v1298_v22  ;;  %v4265_v26 = vpop.f32.mrb[2].mxu0 }
 0x23f   : > { %v4319_v27 = vpop.f32.mrb[1].mxu1  ;;  %v4266_v28 = vpop.f32.mrb[3].mxu0 }
 0x240   : > { %v4320_v29 = vadd.f32 %v4319_v27, %v4318_v6  ;;  %v4267_v30 = vadd.f32 %v4266_v28, %v4265_v26 }
 0x242   : > { %v1507_v32 = vadd.f32 %v4320_v29, %v1402_v7  ;;  %v4321_v33 = vpop.f32.mrb[2].mxu1  ;;  %v1407_v34 = vadd.f32 %v4267_v30, %v1303_v24  ;;  %v4268_v35 = vpop.f32.mrb[4].mxu0 }
 0x243   : > { %v4322_v36 = vpop.f32.mrb[3].mxu1  ;;  %v4269_v37 = vpop.f32.mrb[5].mxu0 }
 0x244   : > { %v4323_v38 = vadd.f32 %v4322_v36, %v4321_v33  ;;  %v4270_v39 = vadd.f32 %v4269_v37, %v4268_v35 }
 0x246   : > { %v1512_v41 = vadd.f32 %v4323_v38, %v1407_v34  ;;  %v4324_v42 = vpop.f32.mrb[4].mxu1  ;;  %v1412_v43 = vadd.f32 %v4270_v39, %v1308_v31  ;;  %v4271_v44 = vpop.f32.mrb[6].mxu0 }
 0x247   : > { %v4325_v8 = vpop.f32.mrb[5].mxu1  ;;  %v4272_v9 = vpop.f32.mrb[7].mxu0 }
 0x248   : > { %v4326_v45 = vadd.f32 %v4325_v8, %v4324_v42  ;;  %v4273_v46 = vadd.f32 %v4272_v9, %v4271_v44 }
 0x24a   : > { %v6788_v48 = vadd.f32 %v4326_v45, %v1412_v43  ;;  %v4327_v2 = vpop.f32.mrb[6].mxu1  ;;  %v1417_v3 = vadd.f32 %v4273_v46, %v1313_v40  ;;  %v4274_v49 = vpop.f32.mrb[8].mxu0 }
 0x24b   : > { %v4328_v50 = vpop.f32.mrb[7].mxu1  ;;  %v4275_v51 = vpop.f32.mrb[9].mxu0 }
 0x24c   : > { %v4329_v52 = vadd.f32 %v4328_v50, %v4327_v2  ;;  %v4276_v53 = vadd.f32 %v4275_v51, %v4274_v49 }
 0x24e   : > { %v6790_v55 = vadd.f32 %v4329_v52, %v1417_v3  ;;  %v4330_v56 = vpop.f32.mrb[8].mxu1  ;;  %v1422_v57 = vadd.f32 %v4276_v53, %v1318_v47  ;;  %v4277_v58 = vpop.f32.mrb[10].mxu0 }
 0x24f   : > { %v4331_v59 = vpop.f32.mrb[9].mxu1  ;;  %v4278_v60 = vpop.f32.mrb[11].mxu0 }
 0x250   : > { %v4332_v61 = vadd.f32 %v4331_v59, %v4330_v56  ;;  %v4279_v62 = vadd.f32 %v4278_v60, %v4277_v58 }
 0x252   : > { %v6792_v0 = vadd.f32 %v4332_v61, %v1422_v57  ;;  %v4333_v4 = vpop.f32.mrb[10].mxu1  ;;  %v1427_v5 = vadd.f32 %v4279_v62, %v1323_v54  ;;  %v4280_v10 = vpop.f32.mrb[12].mxu0 }
 0x253   : > { %v4334_v11 = vpop.f32.mrb[11].mxu1  ;;  %v4281_v12 = vpop.f32.mrb[13].mxu0 }
 0x254   : > { %v4335_v13 = vadd.f32 %v4334_v11, %v4333_v4  ;;  %v4282_v14 = vadd.f32 %v4281_v12, %v4280_v10 }
 0x256   : > { %v6794_v16 = vadd.f32 %v4335_v13, %v1427_v5  ;;  %v4336_v17 = vpop.f32.mrb[12].mxu1  ;;  %v1432_v18 = vadd.f32 %v4282_v14, %v1328_v63  ;;  %v4283_v19 = vpop.f32.mrb[14].mxu0 }
 0x257   : > { %v4337_v20 = vpop.f32.mrb[13].mxu1  ;;  %v4284_v21 = vpop.f32.mrb[15].mxu0 }
 0x258   : > { %v4338_v22 = vadd.f32 %v4337_v20, %v4336_v17  ;;  %v4285_v23 = vadd.f32 %v4284_v21, %v4283_v19 }
 0x25a   : > { %v6796_v24 = vadd.f32 %v4338_v22, %v1432_v18  ;;  %v4339_v25 = vpop.f32.mrb[14].mxu1  ;;  %v1437_v6 = vadd.f32 %v4285_v23, %v1333_v15 }
 0x25b   : > { %v4340_v7 = vpop.f32.mrb[15].mxu1 }
 0x25c   : > { %v4341_v26 = vadd.f32 %v4340_v7, %v4339_v25 }
 0x25e   : > { %v6798_v27 = vadd.f32 %v4341_v26, %v1437_v6 }
 0x2ac   : > { %v4374_v28 = vpop.f32.mrb[16].mxu0 }
 0x2ad   : > { %v4375_v29 = vpop.f32.mrb[17].mxu0 }
 0x2ae   : > { %v4376_v30 = vadd.f32 %v4375_v29, %v4374_v28 }
 0x2b0   : > { %v1612_v31 = vadd.f32 %v4376_v30, %v1507_v32  ;;  %v4377_v33 = vpop.f32.mrb[18].mxu0  ;;  %v4430_v34 = vpop.f32.mrb[16].mxu1 }
 0x2b1   : > { %v4378_v35 = vpop.f32.mrb[19].mxu0  ;;  %v4431_v36 = vpop.f32.mrb[17].mxu1 }
 0x2b2   : > { %v4379_v37 = vadd.f32 %v4378_v35, %v4377_v33  ;;  %v4432_v38 = vadd.f32 %v4431_v36, %v4430_v34 }
 0x2b4   : > { %v1617_v39 = vadd.f32 %v4379_v37, %v1512_v41  ;;  %v1717_v40 = vadd.f32 %v4432_v38, %v1612_v31  ;;  %v4380_v42 = vpop.f32.mrb[20].mxu0  ;;  %v4433_v43 = vpop.f32.mrb[18].mxu1 }
 0x2b5   : > { %v4381_v44 = vpop.f32.mrb[21].mxu0  ;;  %v4434_v8 = vpop.f32.mrb[19].mxu1 }
 0x2b6   : > { %vm1755_vm15 = vcmp.ge.f32.partialorder %v1717_v40, 0.0  ;;  %v1763_v9 = vmul.f32 0.01, %v1717_v40  ;;  %v4382_v45 = vadd.f32 %v4381_v44, %v4380_v42  ;;  %v4435_v46 = vadd.f32 %v4434_v8, %v4433_v43 }
 0x2b8   : > { %v6800_v47 = vsel %vm1755_vm15, %v1717_v40, %v1763_v9  ;;  %v1622_v32 = vadd.f32 %v4382_v45, %v6788_v48  ;;  %v1722_v2 = vadd.f32 %v4435_v46, %v1617_v39  ;;  %v4383_v3 = vpop.f32.mrb[22].mxu0  ;;  %v4436_v49 = vpop.f32.mrb[20].mxu1 }
 0x2b9   : > { %2139 = vst.msk [vmem:[#allocation3 + $0x1c0] sm:$0xff] %vm7807_vm0, %v6800_v47  ;;  %v4384_v41 = vpop.f32.mrb[23].mxu0  ;;  %v4437_v50 = vpop.f32.mrb[21].mxu1  ;;  %1979 = vrot.lane.b32.xlu1 %v6800_v47, %s7795_s20 }
 0x2ba   : > { %vm1756_vm14 = vcmp.ge.f32.partialorder %v1722_v2, 0.0  ;;  %v1764_v51 = vmul.f32 0.01, %v1722_v2  ;;  %v4385_v52 = vadd.f32 %v4384_v41, %v4383_v3  ;;  %v4438_v53 = vadd.f32 %v4437_v50, %v4436_v49 }
 0x2bc   : > { %v6807_v54 = vsel %vm1756_vm14, %v1722_v2, %v1764_v51  ;;  %v1627_v56 = vadd.f32 %v4385_v52, %v6790_v55  ;;  %v1727_v48 = vadd.f32 %v4438_v53, %v1622_v32  ;;  %v4386_v57 = vpop.f32.mrb[24].mxu0  ;;  %v4439_v58 = vpop.f32.mrb[22].mxu1 }
 0x2bd   : > { %2140 = vst.msk [vmem:[#allocation3 + $0x1c8] sm:$0xff] %vm7807_vm0, %v6807_v54  ;;  %v4387_v59 = vpop.f32.mrb[25].mxu0  ;;  %v4440_v60 = vpop.f32.mrb[23].mxu1  ;;  %1981 = vrot.lane.b32.xlu0 %v6807_v54, %s7795_s20  ;;  %1915 = vrot.lane.b32.xlu1 %v6800_v47, %s7803_s15 }
 0x2be   : > { %vm1757_vm15 = vcmp.ge.f32.partialorder %v1727_v48, 0.0  ;;  %v1765_v61 = vmul.f32 0.01, %v1727_v48  ;;  %v4388_v62 = vadd.f32 %v4387_v59, %v4386_v57  ;;  %v4441_v63 = vadd.f32 %v4440_v60, %v4439_v58 }
 0x2c0   : > { %v6816_v4 = vsel %vm1757_vm15, %v1727_v48, %v1765_v61  ;;  %v1632_v55 = vadd.f32 %v4388_v62, %v6792_v0  ;;  %v1732_v5 = vadd.f32 %v4441_v63, %v1627_v56  ;;  %v4389_v10 = vpop.f32.mrb[26].mxu0  ;;  %v4442_v11 = vpop.f32.mrb[24].mxu1 }
 0x2c1   : > { %2141 = vst.msk [vmem:[#allocation3 + $0x1d0] sm:$0xff] %vm7807_vm0, %v6816_v4  ;;  %v4390_v12 = vpop.f32.mrb[27].mxu0  ;;  %v4443_v13 = vpop.f32.mrb[25].mxu1  ;;  %1917 = vrot.lane.b32.xlu0 %v6807_v54, %s7803_s15  ;;  %2107 = vrot.lane.b32.xlu1 %v6800_v47, %s7797_s17 }
 0x2c2   : > { %vm1758_vm14 = vcmp.ge.f32.partialorder %v1732_v5, 0.0  ;;  %v1766_v14 = vmul.f32 0.01, %v1732_v5  ;;  %v4391_v15 = vadd.f32 %v4390_v12, %v4389_v10  ;;  %v4444_v17 = vadd.f32 %v4443_v13, %v4442_v11 }
 0x2c4   : > { %v6825_v18 = vsel %vm1758_vm14, %v1732_v5, %v1766_v14  ;;  %v1637_v0 = vadd.f32 %v4391_v15, %v6794_v16  ;;  %v1737_v19 = vadd.f32 %v4444_v17, %v1632_v55  ;;  %v4392_v20 = vpop.f32.mrb[28].mxu0  ;;  %v4445_v21 = vpop.f32.mrb[26].mxu1 }
 0x2c5   : > { %2142 = vst.msk [vmem:[#allocation3 + $0x1d8] sm:$0xff] %vm7807_vm0, %v6825_v18  ;;  %v4393_v22 = vpop.f32.mrb[29].mxu0  ;;  %v4446_v23 = vpop.f32.mrb[27].mxu1  ;;  %2109 = vrot.lane.b32.xlu0 %v6807_v54, %s7797_s17  ;;  %2043 = vrot.lane.b32.xlu1 %v6800_v47, %s7801_s22 }
 0x2c6   : > { %vm1759_vm15 = vcmp.ge.f32.partialorder %v1737_v19, 0.0  ;;  %v1767_v25 = vmul.f32 0.01, %v1737_v19  ;;  %v4394_v6 = vadd.f32 %v4393_v22, %v4392_v20  ;;  %v4447_v7 = vadd.f32 %v4446_v23, %v4445_v21 }
 0x2c8   : > { %v6834_v26 = vsel %vm1759_vm15, %v1737_v19, %v1767_v25  ;;  %v1642_v16 = vadd.f32 %v4394_v6, %v6796_v24  ;;  %v1742_v28 = vadd.f32 %v4447_v7, %v1637_v0  ;;  %v4395_v29 = vpop.f32.mrb[30].mxu0  ;;  %v4448_v30 = vpop.f32.mrb[28].mxu1 }
 0x2c9   : > { %2143 = vst.msk [vmem:[#allocation3 + $0x1e0] sm:$0xff] %vm7807_vm0, %v6834_v26  ;;  %v4396_v31 = vpop.f32.mrb[31].mxu0  ;;  %v4449_v33 = vpop.f32.mrb[29].mxu1  ;;  %2045 = vrot.lane.b32.xlu0 %v6807_v54, %s7801_s22  ;;  %2011 = vrot.lane.b32.xlu1 %v6800_v47, %s7793_s14 }
 0x2ca   : > { %vm1760_vm14 = vcmp.ge.f32.partialorder %v1742_v28, 0.0  ;;  %v1768_v34 = vmul.f32 0.01, %v1742_v28  ;;  %v4397_v35 = vadd.f32 %v4396_v31, %v4395_v29  ;;  %v4450_v36 = vadd.f32 %v4449_v33, %v4448_v30 }
 0x2cc   : > { %v6843_v37 = vsel %vm1760_vm14, %v1742_v28, %v1768_v34  ;;  %v1647_v24 = vadd.f32 %v4397_v35, %v6798_v27  ;;  %v1747_v38 = vadd.f32 %v4450_v36, %v1642_v16  ;;  %v4451_v39 = vpop.f32.mrb[30].mxu1  ;;  %v2372_v35 = vld [vmem:[#allocation8 + $0x8] sm:$0xff] }
 0x2cd   : > { %2144 = vst.msk [vmem:[#allocation3 + $0x1e8] sm:$0xff] %vm7807_vm0, %v6843_v37  ;;  %v4452_v40 = vpop.f32.mrb[31].mxu1  ;;  %2013 = vrot.lane.b32.xlu0 %v6807_v54, %s7793_s14  ;;  %1947 = vrot.lane.b32.xlu1 %v6800_v47, %s7799_s18 }
 0x2ce   : > { %vm1761_vm15 = vcmp.ge.f32.partialorder %v1747_v38, 0.0  ;;  %v1769_v42 = vmul.f32 0.01, %v1747_v38  ;;  %v4453_v43 = vadd.f32 %v4452_v40, %v4451_v39  ;;  %2619 = vmatprep.mubr.f32.mxu0 %v2372_v35 }
 0x2d0   : > { %v6852_v44 = vsel %vm1761_vm15, %v1747_v38, %v1769_v42  ;;  %v1752_v8 = vadd.f32 %v4453_v43, %v1647_v24  ;;  %vm7843_vm15 = vcmask 15360  }
 0x2d1   : > { %2145 = vst.msk [vmem:[#allocation3 + $0x1f0] sm:$0xff] %vm7807_vm0, %v6852_v44  ;;  %1949 = vrot.lane.b32.xlu0 %v6807_v54, %s7799_s18  ;;  %2075 = vrot.lane.b32.xlu1 %v6800_v47, %s7835_s23 }
 0x2d2   : > { %vm1762_vm14 = vcmp.ge.f32.partialorder %v1752_v8, 0.0  ;;  %v1770_v27 = vmul.f32 0.01, %v1752_v8 }
 0x2d4   : > { %v6860_v9 = vsel %vm1762_vm14, %v1752_v8, %v1770_v27  ;;  %vm7844_vm14 = vmmov %vm7843_vm15 }
 0x2d5   : > { %2146 = vst.msk [vmem:[#allocation3 + $0x1f8] sm:$0xff] %vm7807_vm0, %v6860_v9  ;;  %2077 = vrot.lane.b32.xlu0 %v6807_v54, %s7835_s23  ;;  %2211 = vrot.lane.b32.xlu1 %v6800_v47, %s7836_s30 }
 0x2d9   : > { %2213 = vrot.lane.b32.xlu0 %v6807_v54, %s7836_s30  ;;  %2147 = vrot.lane.b32.xlu1 %v6800_v47, %s7837_s24 }
 0x2dd   : > { %2149 = vrot.lane.b32.xlu0 %v6807_v54, %s7837_s24  ;;  %2339 = vrot.lane.b32.xlu1 %v6800_v47, %s7838_s7 }
 0x2e1   : > { %2341 = vrot.lane.b32.xlu0 %v6807_v54, %s7838_s7  ;;  %2275 = vrot.lane.b32.xlu1 %v6800_v47, %s7839_s21 }
 0x2e5   : > { %2277 = vrot.lane.b32.xlu0 %v6807_v54, %s7839_s21  ;;  %2243 = vrot.lane.b32.xlu1 %v6800_v47, %s7840_s29 }
 0x2e9   : > { %2245 = vrot.lane.b32.xlu0 %v6807_v54, %s7840_s29  ;;  %2179 = vrot.lane.b32.xlu1 %v6800_v47, %s7841_s26 }
 0x2ed   : > { %2181 = vrot.lane.b32.xlu0 %v6807_v54, %s7841_s26  ;;  %2307 = vrot.lane.b32.xlu1 %v6800_v47, %s7842_s25 }
 0x2f1   : > { %2309 = vrot.lane.b32.xlu0 %v6807_v54, %s7842_s25  ;;  %1983 = vrot.lane.b32.xlu1 %v6816_v4, %s7795_s20 }
 0x2f5   : > { %1985 = vrot.lane.b32.xlu0 %v6825_v18, %s7795_s20  ;;  %1919 = vrot.lane.b32.xlu1 %v6816_v4, %s7803_s15 }
 0x2f9   : > { %1921 = vrot.lane.b32.xlu0 %v6825_v18, %s7803_s15  ;;  %2111 = vrot.lane.b32.xlu1 %v6816_v4, %s7797_s17 }
 0x2fd   : > { %2113 = vrot.lane.b32.xlu0 %v6825_v18, %s7797_s17  ;;  %2047 = vrot.lane.b32.xlu1 %v6816_v4, %s7801_s22 }
 0x301   : > { %2049 = vrot.lane.b32.xlu0 %v6825_v18, %s7801_s22  ;;  %2015 = vrot.lane.b32.xlu1 %v6816_v4, %s7793_s14 }
 0x305   : > { %2017 = vrot.lane.b32.xlu0 %v6825_v18, %s7793_s14  ;;  %1951 = vrot.lane.b32.xlu1 %v6816_v4, %s7799_s18 }
 0x309   : > { %1953 = vrot.lane.b32.xlu0 %v6825_v18, %s7799_s18  ;;  %2079 = vrot.lane.b32.xlu1 %v6816_v4, %s7835_s23 }
 0x30d   : > { %2081 = vrot.lane.b32.xlu0 %v6825_v18, %s7835_s23  ;;  %2215 = vrot.lane.b32.xlu1 %v6816_v4, %s7836_s30 }
 0x311   : > { %2217 = vrot.lane.b32.xlu0 %v6825_v18, %s7836_s30  ;;  %2151 = vrot.lane.b32.xlu1 %v6816_v4, %s7837_s24 }
 0x315   : > { %2153 = vrot.lane.b32.xlu0 %v6825_v18, %s7837_s24  ;;  %2343 = vrot.lane.b32.xlu1 %v6816_v4, %s7838_s7 }
 0x319   : > { %2345 = vrot.lane.b32.xlu0 %v6825_v18, %s7838_s7  ;;  %2279 = vrot.lane.b32.xlu1 %v6816_v4, %s7839_s21 }
 0x31d   : > { %2281 = vrot.lane.b32.xlu0 %v6825_v18, %s7839_s21  ;;  %2247 = vrot.lane.b32.xlu1 %v6816_v4, %s7840_s29 }
 0x321   : > { %2249 = vrot.lane.b32.xlu0 %v6825_v18, %s7840_s29  ;;  %2183 = vrot.lane.b32.xlu1 %v6816_v4, %s7841_s26 }
 0x325   : > { %2185 = vrot.lane.b32.xlu0 %v6825_v18, %s7841_s26  ;;  %2311 = vrot.lane.b32.xlu1 %v6816_v4, %s7842_s25 }
 0x329   : > { %2313 = vrot.lane.b32.xlu0 %v6825_v18, %s7842_s25  ;;  %1987 = vrot.lane.b32.xlu1 %v6834_v26, %s7795_s20 }
 0x32b   : > { %v1980_v45 = vpop.permute.xlu1 %1979 }
 0x32c   : > { %2003 = vst.msk [vmem:[#allocation3 + $0x80] sm:$0xff] %vm715_vm2, %v1980_v45 }
 0x32d   : > { %1989 = vrot.lane.b32.xlu0 %v6843_v37, %s7795_s20  ;;  %1923 = vrot.lane.b32.xlu1 %v6834_v26, %s7803_s15 }
 0x32f   : > { %v1982_v46 = vpop.permute.xlu0 %1981  ;;  %v1916_v47 = vpop.permute.xlu1 %1915 }
 0x330   : > { %2004 = vst.msk [vmem:[#allocation3 + $0x88] sm:$0xff] %vm715_vm2, %v1982_v46 }
 0x331   : > { %1939 = vst.msk [vmem:[#allocation3] sm:$0xff] %vm649_vm1, %v1916_v47  ;;  %1925 = vrot.lane.b32.xlu0 %v6843_v37, %s7803_s15  ;;  %2115 = vrot.lane.b32.xlu1 %v6834_v26, %s7797_s17  ;;  %v2374_v47 = vld [vmem:[#allocation8 + $0x18] sm:$0xff] }
 0x332   : > { %2704 = vmatprep.mubr.f32.mxu1 %v2374_v47 }
 0x333   : > { %v1918_v32 = vpop.permute.xlu0 %1917  ;;  %v2108_v2 = vpop.permute.xlu1 %2107  ;;  %v2419_v41 = vld [vmem:[#allocation3 + $0x80] sm:$0xff] }
 0x334   : > { %1940 = vst.msk [vmem:[#allocation3 + $0x8] sm:$0xff] %vm649_vm1, %v1918_v32 }
 0x335   : > { %2131 = vst.msk [vmem:[#allocation3 + $0x180] sm:$0xff] %vm847_vm3, %v2108_v2  ;;  %2117 = vrot.lane.b32.xlu0 %v6843_v37, %s7797_s17  ;;  %2051 = vrot.lane.b32.xlu1 %v6834_v26, %s7801_s22 }
 0x337   : > { %v2110_v3 = vpop.permute.xlu0 %2109  ;;  %v2044_v49 = vpop.permute.xlu1 %2043  ;;  %v2420_v50 = vld [vmem:[#allocation3 + $0x88] sm:$0xff] }
 0x338   : > { %2132 = vst.msk [vmem:[#allocation3 + $0x188] sm:$0xff] %vm847_vm3, %v2110_v3  ;;  %v4944_v51 = vpack.c.bf16 %v2420_v50, %v2419_v41  ;;  %v2403_v54 = vld [vmem:[#allocation3] sm:$0xff] }
 0x339   : > { %2067 = vst.msk [vmem:[#allocation3 + $0x100] sm:$0xff] %vm781_vm4, %v2044_v49  ;;  %2053 = vrot.lane.b32.xlu0 %v6843_v37, %s7801_s22  ;;  %2019 = vrot.lane.b32.xlu1 %v6834_v26, %s7793_s14 }
 0x33a   : > { %4945 = vmatprep.subr.bf16.mxu0 %v4944_v51 }
 0x33b   : > { %v2046_v52 = vpop.permute.xlu0 %2045  ;;  %v2012_v53 = vpop.permute.xlu1 %2011  ;;  %v2404_v56 = vld [vmem:[#allocation3 + $0x8] sm:$0xff] }
 0x33c   : > { %2068 = vst.msk [vmem:[#allocation3 + $0x108] sm:$0xff] %vm781_vm4, %v2046_v52  ;;  %v4946_v48 = vpack.c.bf16 %v2404_v56, %v2403_v54  ;;  %v2451_v59 = vld [vmem:[#allocation3 + $0x180] sm:$0xff] }
 0x33d   : > { %2035 = vst.msk [vmem:[#allocation3 + $0xc0] sm:$0xff] %vm748_vm5, %v2012_v53  ;;  %2021 = vrot.lane.b32.xlu0 %v6843_v37, %s7793_s14  ;;  %1955 = vrot.lane.b32.xlu1 %v6834_v26, %s7799_s18 }
 0x33e   : > { %4947 = vmatpush3.bf16.msra.mxu0 %v4946_v48 }
 0x33f   : > { %v2014_v57 = vpop.permute.xlu0 %2013  ;;  %v1948_v58 = vpop.permute.xlu1 %1947  ;;  %v2452_v60 = vld [vmem:[#allocation3 + $0x188] sm:$0xff] }
 0x340   : > { %2036 = vst.msk [vmem:[#allocation3 + $0xc8] sm:$0xff] %vm748_vm5, %v2014_v57  ;;  %v4976_v61 = vpack.c.bf16 %v2452_v60, %v2451_v59  ;;  %v2435_v4 = vld [vmem:[#allocation3 + $0x100] sm:$0xff] }
 0x341   : > { %1971 = vst.msk [vmem:[#allocation3 + $0x40] sm:$0xff] %vm682_vm6, %v1948_v58  ;;  %1957 = vrot.lane.b32.xlu0 %v6843_v37, %s7799_s18  ;;  %2083 = vrot.lane.b32.xlu1 %v6834_v26, %s7835_s23 }
 0x342   : > { %4977 = vmatprep.subr.bf16.mxu1 %v4976_v61 }
 0x343   : > { %v1950_v62 = vpop.permute.xlu0 %1949  ;;  %v2076_v63 = vpop.permute.xlu1 %2075  ;;  %v2436_v55 = vld [vmem:[#allocation3 + $0x108] sm:$0xff] }
 0x344   : > { %1972 = vst.msk [vmem:[#allocation3 + $0x48] sm:$0xff] %vm682_vm6, %v1950_v62  ;;  %v4978_v5 = vpack.c.bf16 %v2436_v55, %v2435_v4 }
 0x345   : > { %2099 = vst.msk [vmem:[#allocation3 + $0x140] sm:$0xff] %vm814_vm7, %v2076_v63  ;;  %2085 = vrot.lane.b32.xlu0 %v6843_v37, %s7835_s23  ;;  %2219 = vrot.lane.b32.xlu1 %v6834_v26, %s7836_s30  ;;  %v2532_v63 = vld [vmem:[%s7757_s4 + $0x8] sm:$0xff] }
 0x346   : > { %4979 = vmatpush3.bf16.msra.mxu1 %v4978_v5 }
 0x347   : > { %v2078_v10 = vpop.permute.xlu0 %2077  ;;  %v2212_v11 = vpop.permute.xlu1 %2211 }
 0x348   : > { %2100 = vst.msk [vmem:[#allocation3 + $0x148] sm:$0xff] %vm814_vm7, %v2078_v10 }
 0x349   : > { %2235 = vst.msk [vmem:[#allocation3 + $0x280] sm:$0xff] %vm954_vm8, %v2212_v11  ;;  %2221 = vrot.lane.b32.xlu0 %v6843_v37, %s7836_s30  ;;  %2155 = vrot.lane.b32.xlu1 %v6834_v26, %s7837_s24 }
 0x34b   : > { %v2214_v12 = vpop.permute.xlu0 %2213  ;;  %v2148_v13 = vpop.permute.xlu1 %2147 }
 0x34c   : > { %2236 = vst.msk [vmem:[#allocation3 + $0x288] sm:$0xff] %vm954_vm8, %v2214_v12 }
 0x34d   : > { %2171 = vst.msk [vmem:[#allocation3 + $0x200] sm:$0xff] %vm888_vm9, %v2148_v13  ;;  %2157 = vrot.lane.b32.xlu0 %v6843_v37, %s7837_s24  ;;  %2347 = vrot.lane.b32.xlu1 %v6834_v26, %s7838_s7 }
 0x34f   : > { %v2150_v14 = vpop.permute.xlu0 %2149  ;;  %v2340_v15 = vpop.permute.xlu1 %2339 }
 0x350   : > { %2172 = vst.msk [vmem:[#allocation3 + $0x208] sm:$0xff] %vm888_vm9, %v2150_v14 }
 0x351   : > { %2363 = vst.msk [vmem:[#allocation3 + $0x380] sm:$0xff] %vm1086_vm10, %v2340_v15  ;;  %2349 = vrot.lane.b32.xlu0 %v6843_v37, %s7838_s7  ;;  %2283 = vrot.lane.b32.xlu1 %v6834_v26, %s7839_s21 }
 0x353   : > { %v2342_v17 = vpop.permute.xlu0 %2341  ;;  %v2276_v18 = vpop.permute.xlu1 %2275 }
 0x354   : > { %2364 = vst.msk [vmem:[#allocation3 + $0x388] sm:$0xff] %vm1086_vm10, %v2342_v17 }
 0x355   : > { %2299 = vst.msk [vmem:[#allocation3 + $0x300] sm:$0xff] %vm1020_vm11, %v2276_v18  ;;  %2285 = vrot.lane.b32.xlu0 %v6843_v37, %s7839_s21  ;;  %2251 = vrot.lane.b32.xlu1 %v6834_v26, %s7840_s29 }
 0x357   : > { %v2278_v0 = vpop.permute.xlu0 %2277  ;;  %v2244_v19 = vpop.permute.xlu1 %2243 }
 0x358   : > { %2300 = vst.msk [vmem:[#allocation3 + $0x308] sm:$0xff] %vm1020_vm11, %v2278_v0 }
 0x359   : > { %2267 = vst.msk [vmem:[#allocation3 + $0x2c0] sm:$0xff] %vm987_vm12, %v2244_v19  ;;  %2253 = vrot.lane.b32.xlu0 %v6843_v37, %s7840_s29  ;;  %1991 = vrot.lane.b32.xlu1 %v6852_v44, %s7795_s20 }
 0x35b   : > { %v2246_v20 = vpop.permute.xlu0 %2245  ;;  %v2180_v21 = vpop.permute.xlu1 %2179 }
 0x35c   : > { %2268 = vst.msk [vmem:[#allocation3 + $0x2c8] sm:$0xff] %vm987_vm12, %v2246_v20 }
 0x35d   : > { %2203 = vst.msk [vmem:[#allocation3 + $0x240] sm:$0xff] %vm921_vm13, %v2180_v21  ;;  %1993 = vrot.lane.b32.xlu0 %v6860_v9, %s7795_s20  ;;  %1927 = vrot.lane.b32.xlu1 %v6852_v44, %s7803_s15  ;;  %s7805_s20 = smov 120  }
 0x35f   : > { %v2182_v22 = vpop.permute.xlu0 %2181  ;;  %v2308_v23 = vpop.permute.xlu1 %2307 }
 0x360   : > { %2204 = vst.msk [vmem:[#allocation3 + $0x248] sm:$0xff] %vm921_vm13, %v2182_v22 }
 0x361   : > { %2331 = vst.msk [vmem:[#allocation3 + $0x340] sm:$0xff] %vm7843_vm15, %v2308_v23  ;;  %1929 = vrot.lane.b32.xlu0 %v6860_v9, %s7803_s15  ;;  %2119 = vrot.lane.b32.xlu1 %v6852_v44, %s7797_s17  ;;  %vm7845_vm15 = vmmov %vm7844_vm14 }
 0x363   : > { %v2310_v25 = vpop.permute.xlu0 %2309  ;;  %v1984_v6 = vpop.permute.xlu1 %1983 }
 0x364   : > { %2332 = vst.msk [vmem:[#allocation3 + $0x348] sm:$0xff] %vm7844_vm14, %v2310_v25 }
 0x365   : > { %2005 = vst.msk [vmem:[#allocation3 + $0x90] sm:$0xff] %vm715_vm2, %v1984_v6  ;;  %2121 = vrot.lane.b32.xlu0 %v6860_v9, %s7797_s17  ;;  %2055 = vrot.lane.b32.xlu1 %v6852_v44, %s7801_s22 }
 0x367   : > { %v1986_v7 = vpop.permute.xlu0 %1985  ;;  %v1920_v16 = vpop.permute.xlu1 %1919 }
 0x368   : > { %2006 = vst.msk [vmem:[#allocation3 + $0x98] sm:$0xff] %vm715_vm2, %v1986_v7 }
 0x369   : > { %1941 = vst.msk [vmem:[#allocation3 + $0x10] sm:$0xff] %vm649_vm1, %v1920_v16  ;;  %2057 = vrot.lane.b32.xlu0 %v6860_v9, %s7801_s22  ;;  %2023 = vrot.lane.b32.xlu1 %v6852_v44, %s7793_s14 }
 0x36b   : > { %v1922_v28 = vpop.permute.xlu0 %1921  ;;  %v2112_v29 = vpop.permute.xlu1 %2111 }
 0x36c   : > { %1942 = vst.msk [vmem:[#allocation3 + $0x18] sm:$0xff] %vm649_vm1, %v1922_v28  ;;  %v2421_v33 = vld [vmem:[#allocation3 + $0x90] sm:$0xff] }
 0x36d   : > { %2133 = vst.msk [vmem:[#allocation3 + $0x190] sm:$0xff] %vm847_vm3, %v2112_v29  ;;  %2025 = vrot.lane.b32.xlu0 %v6860_v9, %s7793_s14  ;;  %1959 = vrot.lane.b32.xlu1 %v6852_v44, %s7799_s18  ;;  %s7850_s14 = smov 6  }
 0x36f   : > { %v2114_v30 = vpop.permute.xlu0 %2113  ;;  %v2048_v31 = vpop.permute.xlu1 %2047  ;;  %v2422_v34 = vld [vmem:[#allocation3 + $0x98] sm:$0xff] }
 0x370   : > { %2134 = vst.msk [vmem:[#allocation3 + $0x198] sm:$0xff] %vm847_vm3, %v2114_v30  ;;  %v4948_v36 = vpack.c.bf16 %v2422_v34, %v2421_v33  ;;  %v2405_v39 = vld [vmem:[#allocation3 + $0x10] sm:$0xff] }
 0x371   : > { %2069 = vst.msk [vmem:[#allocation3 + $0x110] sm:$0xff] %vm781_vm4, %v2048_v31  ;;  %1961 = vrot.lane.b32.xlu0 %v6860_v9, %s7799_s18  ;;  %2087 = vrot.lane.b32.xlu1 %v6852_v44, %s7835_s23  ;;  %s7851_s18 = smov 1  }
 0x372   : > { %4949 = vmatprep.subr.bf16.mxu0 %v4948_v36 }
 0x373   : > { %v2050_v24 = vpop.permute.xlu0 %2049  ;;  %v2016_v38 = vpop.permute.xlu1 %2015  ;;  %v2406_v40 = vld [vmem:[#allocation3 + $0x18] sm:$0xff] }
 0x374   : > { %2070 = vst.msk [vmem:[#allocation3 + $0x118] sm:$0xff] %vm781_vm4, %v2050_v24  ;;  %v4950_v42 = vpack.c.bf16 %v2406_v40, %v2405_v39  ;;  %v2453_v27 = vld [vmem:[#allocation3 + $0x190] sm:$0xff] }
 0x375   : > { %2037 = vst.msk [vmem:[#allocation3 + $0xd0] sm:$0xff] %vm748_vm5, %v2016_v38  ;;  %2089 = vrot.lane.b32.xlu0 %v6860_v9, %s7835_s23  ;;  %2223 = vrot.lane.b32.xlu1 %v6852_v44, %s7836_s30 }
 0x376   : > { %4951 = vmatpush3.bf16.msra.mxu0 %v4950_v42 }
 0x377   : > { %v2018_v43 = vpop.permute.xlu0 %2017  ;;  %v1952_v8 = vpop.permute.xlu1 %1951  ;;  %v2454_v45 = vld [vmem:[#allocation3 + $0x198] sm:$0xff] }
 0x378   : > { %2038 = vst.msk [vmem:[#allocation3 + $0xd8] sm:$0xff] %vm748_vm5, %v2018_v43  ;;  %v4980_v46 = vpack.c.bf16 %v2454_v45, %v2453_v27  ;;  %v2437_v3 = vld [vmem:[#allocation3 + $0x110] sm:$0xff] }
 0x379   : > { %1973 = vst.msk [vmem:[#allocation3 + $0x50] sm:$0xff] %vm682_vm6, %v1952_v8  ;;  %2225 = vrot.lane.b32.xlu0 %v6860_v9, %s7836_s30  ;;  %2159 = vrot.lane.b32.xlu1 %v6852_v44, %s7837_s24 }
 0x37a   : > { %4981 = vmatprep.subr.bf16.mxu1 %v4980_v46 }
 0x37b   : > { %v1954_v32 = vpop.permute.xlu0 %1953  ;;  %v2080_v2 = vpop.permute.xlu1 %2079  ;;  %v2438_v49 = vld [vmem:[#allocation3 + $0x118] sm:$0xff] }
 0x37c   : > { %1974 = vst.msk [vmem:[#allocation3 + $0x58] sm:$0xff] %vm682_vm6, %v1954_v32  ;;  %v4982_v41 = vpack.c.bf16 %v2438_v49, %v2437_v3 }
 0x37d   : > { %2101 = vst.msk [vmem:[#allocation3 + $0x150] sm:$0xff] %vm814_vm7, %v2080_v2  ;;  %2161 = vrot.lane.b32.xlu0 %v6860_v9, %s7837_s24  ;;  %2351 = vrot.lane.b32.xlu1 %v6852_v44, %s7838_s7 }
 0x37e   : > { %4983 = vmatpush3.bf16.msra.mxu1 %v4982_v41 }
 0x37f   : > { %v2082_v50 = vpop.permute.xlu0 %2081  ;;  %v2216_v51 = vpop.permute.xlu1 %2215 }
 0x380   : > { %2102 = vst.msk [vmem:[#allocation3 + $0x158] sm:$0xff] %vm814_vm7, %v2082_v50 }
 0x381   : > { %2237 = vst.msk [vmem:[#allocation3 + $0x290] sm:$0xff] %vm954_vm8, %v2216_v51  ;;  %2353 = vrot.lane.b32.xlu0 %v6860_v9, %s7838_s7  ;;  %2287 = vrot.lane.b32.xlu1 %v6852_v44, %s7839_s21 }
 0x383   : > { %v2218_v52 = vpop.permute.xlu0 %2217  ;;  %v2152_v53 = vpop.permute.xlu1 %2151 }
 0x384   : > { %2238 = vst.msk [vmem:[#allocation3 + $0x298] sm:$0xff] %vm954_vm8, %v2218_v52  ;;  %v2428_v52 = vld [vmem:[#allocation3 + $0xc8] sm:$0xff] }
 0x385   : > { %2173 = vst.msk [vmem:[#allocation3 + $0x210] sm:$0xff] %vm888_vm9, %v2152_v53  ;;  %2289 = vrot.lane.b32.xlu0 %v6860_v9, %s7839_s21  ;;  %2187 = vrot.lane.b32.xlu1 %v6834_v26, %s7841_s26 }
 0x387   : > { %v2154_v54 = vpop.permute.xlu0 %2153  ;;  %v2344_v56 = vpop.permute.xlu1 %2343 }
 0x388   : > { %2174 = vst.msk [vmem:[#allocation3 + $0x218] sm:$0xff] %vm888_vm9, %v2154_v54 }
 0x389   : > { %2365 = vst.msk [vmem:[#allocation3 + $0x390] sm:$0xff] %vm1086_vm10, %v2344_v56  ;;  %2189 = vrot.lane.b32.xlu0 %v6843_v37, %s7841_s26  ;;  %2315 = vrot.lane.b32.xlu1 %v6834_v26, %s7842_s25 }
 0x38b   : > { %v2346_v48 = vpop.permute.xlu0 %2345  ;;  %v2280_v57 = vpop.permute.xlu1 %2279 }
 0x38c   : > { %2366 = vst.msk [vmem:[#allocation3 + $0x398] sm:$0xff] %vm1086_vm10, %v2346_v48 }
 0x38d   : > { %2301 = vst.msk [vmem:[#allocation3 + $0x310] sm:$0xff] %vm1020_vm11, %v2280_v57  ;;  %2317 = vrot.lane.b32.xlu0 %v6843_v37, %s7842_s25  ;;  %2255 = vrot.lane.b32.xlu1 %v6852_v44, %s7840_s29  ;;  %v2531_v37 = vld [vmem:[%s7757_s4] sm:$0xff] }
 0x38f   : > { %v2282_v58 = vpop.permute.xlu0 %2281  ;;  %v2248_v59 = vpop.permute.xlu1 %2247 }
 0x390   : > { %2302 = vst.msk [vmem:[#allocation3 + $0x318] sm:$0xff] %vm1020_vm11, %v2282_v58  ;;  %v2427_v58 = vld [vmem:[#allocation3 + $0xc0] sm:$0xff] }
 0x391   : > { %2269 = vst.msk [vmem:[#allocation3 + $0x2d0] sm:$0xff] %vm987_vm12, %v2248_v59  ;;  %2257 = vrot.lane.b32.xlu0 %v6860_v9, %s7840_s29  ;;  %2191 = vrot.lane.b32.xlu1 %v6852_v44, %s7841_s26  ;;  %v4960_v59 = vpack.c.bf16 %v2428_v52, %v2427_v58  ;;  %v2371_v52 = vld [vmem:[#allocation8] sm:$0xff] }
 0x392   : > { %v2467_v58 = vld [vmem:[#allocation3 + $0x200] sm:$0xff] }
 0x393   : > { %v2250_v26 = vpop.permute.xlu0 %2249  ;;  %v2184_v60 = vpop.permute.xlu1 %2183 }
 0x394   : > { %2270 = vst.msk [vmem:[#allocation3 + $0x2d8] sm:$0xff] %vm987_vm12, %v2250_v26  ;;  %v2412_v26 = vld [vmem:[#allocation3 + $0x48] sm:$0xff] }
 0x395   : > { %2205 = vst.msk [vmem:[#allocation3 + $0x250] sm:$0xff] %vm921_vm13, %v2184_v60  ;;  %2193 = vrot.lane.b32.xlu0 %v6860_v9, %s7841_s26  ;;  %2319 = vrot.lane.b32.xlu1 %v6852_v44, %s7842_s25  ;;  %v2533_v44 = vld [vmem:[%s7757_s4 + $0x10] sm:$0xff]  ;;  %v2430_v60 = vld [vmem:[#allocation3 + $0xd8] sm:$0xff] }
 0x397   : > { %v2186_v61 = vpop.permute.xlu0 %2185  ;;  %v2312_v62 = vpop.permute.xlu1 %2311 }
 0x398   : > { %2206 = vst.msk [vmem:[#allocation3 + $0x258] sm:$0xff] %vm921_vm13, %v2186_v61 }
 0x399   : > { %2333 = vst.msk [vmem:[#allocation3 + $0x350] sm:$0xff] %vm7845_vm15, %v2312_v62  ;;  %2321 = vrot.lane.b32.xlu0 %v6860_v9, %s7842_s25  ;;  %2537 = vperm.xlu1 %5287, %v2531_v37   ;;  %v2534_v9 = vld [vmem:[%s7757_s4 + $0x18] sm:$0xff]  ;;  %v2411_v62 = vld [vmem:[#allocation3 + $0x40] sm:$0xff]  ;;  %vm3171_vm15 = vcmask 130064  }
 0x39b   : > { %v2314_v4 = vpop.permute.xlu0 %2313  ;;  %v1988_v55 = vpop.permute.xlu1 %1987 }
 0x39c   : > { %2334 = vst.msk [vmem:[#allocation3 + $0x358] sm:$0xff] %vm7844_vm14, %v2314_v4  ;;  %v4962_v4 = vpack.c.bf16 %v2412_v26, %v2411_v62 }
 0x39d   : > { %2007 = vst.msk [vmem:[#allocation3 + $0xa0] sm:$0xff] %vm715_vm2, %v1988_v55  ;;  %2542 = vperm.xlu0 %5286, %v2532_v63   ;;  %2547 = vperm.xlu1 %5287, %v2533_v44  }
 0x39f   : > { %v1990_v5 = vpop.permute.xlu0 %1989  ;;  %v1924_v10 = vpop.permute.xlu1 %1923 }
 0x3a0   : > { %2008 = vst.msk [vmem:[#allocation3 + $0xa8] sm:$0xff] %vm715_vm2, %v1990_v5 }
 0x3a1   : > { %1943 = vst.msk [vmem:[#allocation3 + $0x20] sm:$0xff] %vm649_vm1, %v1924_v10  ;;  %2552 = vperm.xlu0 %5286, %v2534_v9   ;;  %v2429_v9 = vld [vmem:[#allocation3 + $0xd0] sm:$0xff]  ;;  %v2414_v10 = vld [vmem:[#allocation3 + $0x58] sm:$0xff] }
 0x3a2   : > { %v4964_v5 = vpack.c.bf16 %v2430_v60, %v2429_v9  ;;  %v2485_v60 = vld [vmem:[#allocation3 + $0x290] sm:$0xff] }
 0x3a3   : > { %v1926_v11 = vpop.permute.xlu0 %1925  ;;  %v2116_v12 = vpop.permute.xlu1 %2115 }
 0x3a4   : > { %1944 = vst.msk [vmem:[#allocation3 + $0x28] sm:$0xff] %vm649_vm1, %v1926_v11  ;;  %v2423_v15 = vld [vmem:[#allocation3 + $0xa0] sm:$0xff] }
 0x3a5   : > { %2135 = vst.msk [vmem:[#allocation3 + $0x1a0] sm:$0xff] %vm847_vm3, %v2116_v12  ;;  %v2460_v12 = vld [vmem:[#allocation3 + $0x1c8] sm:$0xff] }
 0x3a7   : > { %v2118_v13 = vpop.permute.xlu0 %2117  ;;  %v2052_v14 = vpop.permute.xlu1 %2051  ;;  %v2424_v17 = vld [vmem:[#allocation3 + $0xa8] sm:$0xff] }
 0x3a8   : > { %2136 = vst.msk [vmem:[#allocation3 + $0x1a8] sm:$0xff] %vm847_vm3, %v2118_v13  ;;  %v4952_v18 = vpack.c.bf16 %v2424_v17, %v2423_v15  ;;  %v2407_v20 = vld [vmem:[#allocation3 + $0x20] sm:$0xff]  ;;  %v2413_v15 = vld [vmem:[#allocation3 + $0x50] sm:$0xff] }
 0x3a9   : > { %2071 = vst.msk [vmem:[#allocation3 + $0x120] sm:$0xff] %vm781_vm4, %v2052_v14 }
 0x3aa   : > { %4953 = vmatprep.subr.bf16.mxu0 %v4952_v18 }
 0x3ab   : > { %v2054_v0 = vpop.permute.xlu0 %2053  ;;  %v2020_v19 = vpop.permute.xlu1 %2019  ;;  %v2408_v21 = vld [vmem:[#allocation3 + $0x28] sm:$0xff] }
 0x3ac   : > { %2072 = vst.msk [vmem:[#allocation3 + $0x128] sm:$0xff] %vm781_vm4, %v2054_v0  ;;  %v4954_v22 = vpack.c.bf16 %v2408_v21, %v2407_v20  ;;  %v2455_v6 = vld [vmem:[#allocation3 + $0x1a0] sm:$0xff]  ;;  %v4966_v0 = vpack.c.bf16 %v2414_v10, %v2413_v15 }
 0x3ad   : > { %2039 = vst.msk [vmem:[#allocation3 + $0xe0] sm:$0xff] %vm748_vm5, %v2020_v19  ;;  %v2459_v21 = vld [vmem:[#allocation3 + $0x1c0] sm:$0xff] }
 0x3ae   : > { %4955 = vmatpush3.bf16.msra.mxu0 %v4954_v22 }
 0x3af   : > { %v2022_v23 = vpop.permute.xlu0 %2021  ;;  %v1956_v25 = vpop.permute.xlu1 %1955  ;;  %v2456_v7 = vld [vmem:[#allocation3 + $0x1a8] sm:$0xff] }
 0x3b0   : > { %2040 = vst.msk [vmem:[#allocation3 + $0xe8] sm:$0xff] %vm748_vm5, %v2022_v23  ;;  %v4984_v16 = vpack.c.bf16 %v2456_v7, %v2455_v6  ;;  %v2439_v30 = vld [vmem:[#allocation3 + $0x120] sm:$0xff]  ;;  %v4992_v23 = vpack.c.bf16 %v2460_v12, %v2459_v21  ;;  %v2444_v6 = vld [vmem:[#allocation3 + $0x148] sm:$0xff] }
 0x3b1   : > { %1975 = vst.msk [vmem:[#allocation3 + $0x60] sm:$0xff] %vm682_vm6, %v1956_v25  ;;  %v2443_v7 = vld [vmem:[#allocation3 + $0x140] sm:$0xff]  ;;  %v2388_v21 = vld [vmem:[#allocation8 + $0x88] sm:$0xff] }
 0x3b2   : > { %4985 = vmatprep.subr.bf16.mxu1 %v4984_v16  ;;  %v2462_v16 = vld [vmem:[#allocation3 + $0x1d8] sm:$0xff] }
 0x3b3   : > { %v1958_v28 = vpop.permute.xlu0 %1957  ;;  %v2084_v29 = vpop.permute.xlu1 %2083  ;;  %v2440_v31 = vld [vmem:[#allocation3 + $0x128] sm:$0xff] }
 0x3b4   : > { %1976 = vst.msk [vmem:[#allocation3 + $0x68] sm:$0xff] %vm682_vm6, %v1958_v28  ;;  %v4986_v33 = vpack.c.bf16 %v2440_v31, %v2439_v30  ;;  %v2431_v20 = vld [vmem:[#allocation3 + $0xe0] sm:$0xff] }
 0x3b5   : > { %2103 = vst.msk [vmem:[#allocation3 + $0x160] sm:$0xff] %vm814_vm7, %v2084_v29 }
 0x3b6   : > { %4987 = vmatpush3.bf16.msra.mxu1 %v4986_v33 }
 0x3b7   : > { %v2086_v34 = vpop.permute.xlu0 %2085  ;;  %v2220_v35 = vpop.permute.xlu1 %2219  ;;  %v2432_v11 = vld [vmem:[#allocation3 + $0xe8] sm:$0xff] }
 0x3b8   : > { %2104 = vst.msk [vmem:[#allocation3 + $0x168] sm:$0xff] %vm814_vm7, %v2086_v34  ;;  %v4968_v22 = vpack.c.bf16 %v2432_v11, %v2431_v20  ;;  %v2415_v30 = vld [vmem:[#allocation3 + $0x60] sm:$0xff] }
 0x3b9   : > { %2239 = vst.msk [vmem:[#allocation3 + $0x2a0] sm:$0xff] %vm954_vm8, %v2220_v35  ;;  %v4994_v35 = vpack.c.bf16 %v2444_v6, %v2443_v7  ;;  %v2518_v7 = vld [vmem:[#allocation3 + $0x398] sm:$0xff] }
 0x3bb   : > { %v2222_v36 = vpop.permute.xlu0 %2221  ;;  %v2156_v24 = vpop.permute.xlu1 %2155  ;;  %v2416_v25 = vld [vmem:[#allocation3 + $0x68] sm:$0xff] }
 0x3bc   : > { %2240 = vst.msk [vmem:[#allocation3 + $0x2a8] sm:$0xff] %vm954_vm8, %v2222_v36  ;;  %v4970_v34 = vpack.c.bf16 %v2416_v25, %v2415_v30  ;;  %v2373_v25 = vld [vmem:[#allocation8 + $0x10] sm:$0xff]  ;;  %v2499_v30 = vld [vmem:[#allocation3 + $0x300] sm:$0xff] }
 0x3bd   : > { %2175 = vst.msk [vmem:[#allocation3 + $0x220] sm:$0xff] %vm888_vm9, %v2156_v24  ;;  %v2461_v24 = vld [vmem:[#allocation3 + $0x1d0] sm:$0xff] }
 0x3bf   : > { %v2158_v38 = vpop.permute.xlu0 %2157  ;;  %v2348_v39 = vpop.permute.xlu1 %2347 }
 0x3c0   : > { %2176 = vst.msk [vmem:[#allocation3 + $0x228] sm:$0xff] %vm888_vm9, %v2158_v38  ;;  %v4996_v38 = vpack.c.bf16 %v2462_v16, %v2461_v24  ;;  %v2492_v24 = vld [vmem:[#allocation3 + $0x2c8] sm:$0xff] }
 0x3c1   : > { %2367 = vst.msk [vmem:[#allocation3 + $0x3a0] sm:$0xff] %vm1086_vm10, %v2348_v39  ;;  %v2446_v39 = vld [vmem:[#allocation3 + $0x158] sm:$0xff] }
 0x3c3   : > { %v2350_v40 = vpop.permute.xlu0 %2349  ;;  %v2284_v42 = vpop.permute.xlu1 %2283  ;;  %v2488_v9 = vld [vmem:[#allocation3 + $0x2a8] sm:$0xff] }
 0x3c4   : > { %2368 = vst.msk [vmem:[#allocation3 + $0x3a8] sm:$0xff] %vm1086_vm10, %v2350_v40  ;;  %v2484_v40 = vld [vmem:[#allocation3 + $0x288] sm:$0xff] }
 0x3c5   : > { %2303 = vst.msk [vmem:[#allocation3 + $0x320] sm:$0xff] %vm1020_vm11, %v2284_v42  ;;  %v2464_v42 = vld [vmem:[#allocation3 + $0x1e8] sm:$0xff] }
 0x3c7   : > { %v2286_v43 = vpop.permute.xlu0 %2285  ;;  %v2252_v8 = vpop.permute.xlu1 %2251 }
 0x3c8   : > { %2304 = vst.msk [vmem:[#allocation3 + $0x328] sm:$0xff] %vm1020_vm11, %v2286_v43 }
 0x3c9   : > { %2271 = vst.msk [vmem:[#allocation3 + $0x2e0] sm:$0xff] %vm987_vm12, %v2252_v8 }
 0x3cb   : > { %v2254_v27 = vpop.permute.xlu0 %2253  ;;  %v1992_v45 = vpop.permute.xlu1 %1991 }
 0x3cc   : > { %2272 = vst.msk [vmem:[#allocation3 + $0x2e8] sm:$0xff] %vm987_vm12, %v2254_v27 }
 0x3cd   : > { %2009 = vst.msk [vmem:[#allocation3 + $0xb0] sm:$0xff] %vm715_vm2, %v1992_v45 }
 0x3cf   : > { %v1994_v46 = vpop.permute.xlu0 %1993  ;;  %v1928_v47 = vpop.permute.xlu1 %1927 }
 0x3d0   : > { %2010 = vst.msk [vmem:[#allocation3 + $0xb8] sm:$0xff] %vm715_vm2, %v1994_v46  ;;  %v2445_v46 = vld [vmem:[#allocation3 + $0x150] sm:$0xff] }
 0x3d1   : > { %1945 = vst.msk [vmem:[#allocation3 + $0x30] sm:$0xff] %vm649_vm1, %v1928_v47 }
 0x3d3   : > { %v1930_v32 = vpop.permute.xlu0 %1929  ;;  %v2120_v2 = vpop.permute.xlu1 %2119 }
 0x3d4   : > { %1946 = vst.msk [vmem:[#allocation3 + $0x38] sm:$0xff] %vm649_vm1, %v1930_v32  ;;  %v2425_v41 = vld [vmem:[#allocation3 + $0xb0] sm:$0xff]  ;;  %v4998_v32 = vpack.c.bf16 %v2446_v39, %v2445_v46  ;;  %vm7846_vm1 = vmmov %vm7844_vm14  ;;  %vm3103_vm14 = vcmask 130096  }
 0x3d5   : > { %2137 = vst.msk [vmem:[#allocation3 + $0x1b0] sm:$0xff] %vm847_vm3, %v2120_v2  ;;  %v2483_v2 = vld [vmem:[#allocation3 + $0x280] sm:$0xff]  ;;  %vm7847_vm2 = vmmov %vm7846_vm1 }
 0x3d7   : > { %v2122_v3 = vpop.permute.xlu0 %2121  ;;  %v2056_v49 = vpop.permute.xlu1 %2055  ;;  %v2426_v50 = vld [vmem:[#allocation3 + $0xb8] sm:$0xff] }
 0x3d8   : > { %2138 = vst.msk [vmem:[#allocation3 + $0x1b8] sm:$0xff] %vm847_vm3, %v2122_v3  ;;  %v4956_v51 = vpack.c.bf16 %v2426_v50, %v2425_v41  ;;  %v2409_v56 = vld [vmem:[#allocation3 + $0x30] sm:$0xff]  ;;  %v2463_v3 = vld [vmem:[#allocation3 + $0x1e0] sm:$0xff]  ;;  %v2448_v50 = vld [vmem:[#allocation3 + $0x168] sm:$0xff] }
 0x3d9   : > { %2073 = vst.msk [vmem:[#allocation3 + $0x130] sm:$0xff] %vm781_vm4, %v2056_v49  ;;  %v5008_v49 = vpack.c.bf16 %v2484_v40, %v2483_v2  ;;  %v5000_v41 = vpack.c.bf16 %v2464_v42, %v2463_v3  ;;  %v2382_v40 = vld [vmem:[#allocation8 + $0x58] sm:$0xff]  ;;  %v2501_v2 = vld [vmem:[#allocation3 + $0x310] sm:$0xff]  ;;  %vm7848_vm3 = vmmov %vm7846_vm1 }
 0x3da   : > { %4957 = vmatprep.subr.bf16.mxu0 %v4956_v51  ;;  %v2468_v51 = vld [vmem:[#allocation3 + $0x208] sm:$0xff] }
 0x3db   : > { %v2058_v53 = vpop.permute.xlu0 %2057  ;;  %v2024_v54 = vpop.permute.xlu1 %2023  ;;  %v2410_v48 = vld [vmem:[#allocation3 + $0x38] sm:$0xff]  ;;  %v5010_v26 = vpack.c.bf16 %v2468_v51, %v2467_v58  ;;  %v2476_v51 = vld [vmem:[#allocation3 + $0x248] sm:$0xff] }
 0x3dc   : > { %2074 = vst.msk [vmem:[#allocation3 + $0x138] sm:$0xff] %vm781_vm4, %v2058_v53  ;;  %v4958_v57 = vpack.c.bf16 %v2410_v48, %v2409_v56  ;;  %v2457_v63 = vld [vmem:[#allocation3 + $0x1b0] sm:$0xff]  ;;  %v2486_v53 = vld [vmem:[#allocation3 + $0x298] sm:$0xff]  ;;  %vm7849_vm4 = vmmov %vm7846_vm1 }
 0x3dd   : > { %2041 = vst.msk [vmem:[#allocation3 + $0xf0] sm:$0xff] %vm748_vm5, %v2024_v54  ;;  %v2466_v54 = vld [vmem:[#allocation3 + $0x1f8] sm:$0xff] }
 0x3de   : > { %4959 = vmatpush3.bf16.msra.mxu0 %v4958_v57  ;;  %v2447_v57 = vld [vmem:[#allocation3 + $0x160] sm:$0xff]  ;;  %v2494_v58 = vld [vmem:[#allocation3 + $0x2d8] sm:$0xff] }
 0x3df   : > { %v2026_v37 = vpop.permute.xlu0 %2025  ;;  %4961 = vmatprep.subr.bf16.mxu0 %v4960_v59  ;;  %v1960_v61 = vpop.permute.xlu1 %1959  ;;  %v2458_v44 = vld [vmem:[#allocation3 + $0x1b8] sm:$0xff]  ;;  %v5002_v59 = vpack.c.bf16 %v2448_v50, %v2447_v57  ;;  %v2519_v50 = vld [vmem:[#allocation3 + $0x3a0] sm:$0xff] }
 0x3e0   : > { %2042 = vst.msk [vmem:[#allocation3 + $0xf8] sm:$0xff] %vm748_vm5, %v2026_v37  ;;  %v4988_v55 = vpack.c.bf16 %v2458_v44, %v2457_v63  ;;  %v2441_v17 = vld [vmem:[#allocation3 + $0x130] sm:$0xff] }
 0x3e1   : > { %1977 = vst.msk [vmem:[#allocation3 + $0x70] sm:$0xff] %vm682_vm6, %v1960_v61  ;;  %v2465_v37 = vld [vmem:[#allocation3 + $0x1f0] sm:$0xff]  ;;  %v5012_v61 = vpack.c.bf16 %v2486_v53, %v2485_v60 }
 0x3e2   : > { %4963 = vmatpush3.bf16.msra.mxu0 %v4962_v4  ;;  %4989 = vmatprep.subr.bf16.mxu1 %v4988_v55  ;;  %v5004_v62 = vpack.c.bf16 %v2466_v54, %v2465_v37  ;;  %v2380_v63 = vld [vmem:[#allocation8 + $0x48] sm:$0xff]  ;;  %v2470_v4 = vld [vmem:[#allocation3 + $0x218] sm:$0xff]  ;;  %v2379_v55 = vld [vmem:[#allocation8 + $0x40] sm:$0xff] }
 0x3e3   : > { %v1962_v13 = vpop.permute.xlu0 %1961  ;;  %4965 = vmatprep.subr.bf16.mxu0 %v4964_v5  ;;  %v2088_v14 = vpop.permute.xlu1 %2087  ;;  %v2442_v18 = vld [vmem:[#allocation3 + $0x138] sm:$0xff]  ;;  %v2516_v5 = vld [vmem:[#allocation3 + $0x388] sm:$0xff]  ;;  %v2475_v37 = vld [vmem:[#allocation3 + $0x240] sm:$0xff] }
 0x3e4   : > { %1978 = vst.msk [vmem:[#allocation3 + $0x78] sm:$0xff] %vm682_vm6, %v1962_v13  ;;  %v4990_v19 = vpack.c.bf16 %v2442_v18, %v2441_v17  ;;  %v2433_v31 = vld [vmem:[#allocation3 + $0xf0] sm:$0xff]  ;;  %v2487_v17 = vld [vmem:[#allocation3 + $0x2a0] sm:$0xff] }
 0x3e5   : > { %2105 = vst.msk [vmem:[#allocation3 + $0x170] sm:$0xff] %vm814_vm7, %v2088_v14  ;;  %v2469_v13 = vld [vmem:[#allocation3 + $0x210] sm:$0xff]  ;;  %v2515_v18 = vld [vmem:[#allocation3 + $0x380] sm:$0xff] }
 0x3e6   : > { %4967 = vmatpush3.bf16.msra.mxu0 %v4966_v0  ;;  %4991 = vmatpush3.bf16.msra.mxu1 %v4990_v19  ;;  %v5014_v15 = vpack.c.bf16 %v2470_v4, %v2469_v13  ;;  %v2500_v0 = vld [vmem:[#allocation3 + $0x308] sm:$0xff]  ;;  %v5016_v19 = vpack.c.bf16 %v2488_v9, %v2487_v17  ;;  %v5040_v20 = vpack.c.bf16 %v2516_v5, %v2515_v18  ;;  %v2390_v54 = vld [vmem:[#allocation8 + $0x98] sm:$0xff]  ;;  %v2389_v57 = vld [vmem:[#allocation8 + $0x90] sm:$0xff] }
 0x3e7   : > { %v2090_v28 = vpop.permute.xlu0 %2089  ;;  %4969 = vmatprep.subr.bf16.mxu0 %v4968_v22  ;;  %v2224_v29 = vpop.permute.xlu1 %2223  ;;  %4993 = vmatprep.subr.bf16.mxu1 %v4992_v23  ;;  %v2434_v33 = vld [vmem:[#allocation3 + $0xf8] sm:$0xff]  ;;  %v2387_v22 = vld [vmem:[#allocation8 + $0x80] sm:$0xff]  ;;  %v2493_v4 = vld [vmem:[#allocation3 + $0x2d0] sm:$0xff] }
 0x3e8   : > { %2106 = vst.msk [vmem:[#allocation3 + $0x178] sm:$0xff] %vm814_vm7, %v2090_v28  ;;  %v4972_v36 = vpack.c.bf16 %v2434_v33, %v2433_v31  ;;  %v2417_v27 = vld [vmem:[#allocation3 + $0x70] sm:$0xff]  ;;  %v2472_v23 = vld [vmem:[#allocation3 + $0x228] sm:$0xff]  ;;  %v5042_v33 = vpack.c.bf16 %v2500_v0, %v2499_v30  ;;  %v5028_v5 = vpack.c.bf16 %v2494_v58, %v2493_v4 }
 0x3e9   : > { %2241 = vst.msk [vmem:[#allocation3 + $0x2b0] sm:$0xff] %vm954_vm8, %v2224_v29  ;;  %v2471_v29 = vld [vmem:[#allocation3 + $0x220] sm:$0xff]  ;;  %v2524_v9 = vld [vmem:[#allocation3 + $0x3c8] sm:$0xff]  ;;  %v2477_v0 = vld [vmem:[#allocation3 + $0x250] sm:$0xff] }
 0x3ea   : > { %4971 = vmatpush3.bf16.msra.mxu0 %v4970_v34  ;;  %4995 = vmatpush3.bf16.msra.mxu1 %v4994_v35  ;;  %v5018_v31 = vpack.c.bf16 %v2472_v23, %v2471_v29  ;;  %v2517_v35 = vld [vmem:[#allocation3 + $0x390] sm:$0xff]  ;;  %v2495_v23 = vld [vmem:[#allocation3 + $0x2e0] sm:$0xff] }
 0x3eb   : > { %v2226_v43 = vpop.permute.xlu0 %2225  ;;  %4973 = vmatprep.subr.bf16.mxu0 %v4972_v36  ;;  %v2160_v8 = vpop.permute.xlu1 %2159  ;;  %4997 = vmatprep.subr.bf16.mxu1 %v4996_v38  ;;  %v2418_v45 = vld [vmem:[#allocation3 + $0x78] sm:$0xff]  ;;  %v2396_v36 = vld [vmem:[#allocation8 + $0xc8] sm:$0xff]  ;;  %v5044_v39 = vpack.c.bf16 %v2518_v7, %v2517_v35  ;;  %v2399_v4 = vld [vmem:[#allocation8 + $0xe0] sm:$0xff] }
 0x3ec   : > { %2242 = vst.msk [vmem:[#allocation3 + $0x2b8] sm:$0xff] %vm954_vm8, %v2226_v43  ;;  %v4974_v47 = vpack.c.bf16 %v2418_v45, %v2417_v27  ;;  %v2449_v12 = vld [vmem:[#allocation3 + $0x170] sm:$0xff]  ;;  %v2502_v43 = vld [vmem:[#allocation3 + $0x318] sm:$0xff]  ;;  %v2520_v45 = vld [vmem:[#allocation3 + $0x3a8] sm:$0xff] }
 0x3ed   : > { %2177 = vst.msk [vmem:[#allocation3 + $0x230] sm:$0xff] %vm888_vm9, %v2160_v8  ;;  %v2395_v8 = vld [vmem:[#allocation8 + $0xc0] sm:$0xff]  ;;  %v2381_v27 = vld [vmem:[#allocation8 + $0x50] sm:$0xff]  ;;  %v5048_v53 = vpack.c.bf16 %v2520_v45, %v2519_v50  ;;  %v2378_v29 = vld [vmem:[#allocation8 + $0x38] sm:$0xff] }
 0x3ee   : > { %4975 = vmatpush3.bf16.msra.mxu0 %v4974_v47  ;;  %4999 = vmatpush3.bf16.msra.mxu1 %v4998_v32 }
 0x3ef   : > { %v2162_v56 = vpop.permute.xlu0 %2161  ;;  %5009 = vmatprep.subr.bf16.mxu0 %v5008_v49  ;;  %v2352_v48 = vpop.permute.xlu1 %2351  ;;  %5001 = vmatprep.subr.bf16.mxu1 %v5000_v41  ;;  %v2450_v44 = vld [vmem:[#allocation3 + $0x178] sm:$0xff]  ;;  %v5046_v49 = vpack.c.bf16 %v2502_v43, %v2501_v2  ;;  %v2491_v41 = vld [vmem:[#allocation3 + $0x2c0] sm:$0xff] }
 0x3f0   : > { %2178 = vst.msk [vmem:[#allocation3 + $0x238] sm:$0xff] %vm888_vm9, %v2162_v56  ;;  %v5006_v14 = vpack.c.bf16 %v2450_v44, %v2449_v12  ;;  %v2489_v34 = vld [vmem:[#allocation3 + $0x2b0] sm:$0xff]  ;;  %v2504_v56 = vld [vmem:[#allocation3 + $0x328] sm:$0xff]  ;;  %v2478_v12 = vld [vmem:[#allocation3 + $0x258] sm:$0xff]  ;;  %vm3005_vm9 = vcmask 130048  }
 0x3f1   : > { %2369 = vst.msk [vmem:[#allocation3 + $0x3b0] sm:$0xff] %vm1086_vm10, %v2352_v48  ;;  %2620 = vmatmul.mubr.f32.vlgmr.msra.gmra.mrb[32].mxu0 %v2371_v52  ;;  %v5024_v52 = vpack.c.bf16 %v2492_v24, %v2491_v41  ;;  %v2376_v48 = vld [vmem:[#allocation8 + $0x28] sm:$0xff]  ;;  %v2530_v2 = vld [vmem:[#allocation3 + $0x3f8] sm:$0xff] }
 0x3f2   : > { %5003 = vmatpush3.bf16.msra.mxu1 %v5002_v59  ;;  %5011 = vmatpush3.bf16.msra.mxu0 %v5010_v26  ;;  %3023 = vst.msk [vmem:[#allocation4 + $0x88] sm:$0xff] %vm3005_vm9, %v5451_v1  ;;  %3006 = vst.msk [vmem:[#allocation4] sm:$0xff] %vm3005_vm9, %v5451_v1 }
 0x3f3   : > { %v2354_v10 = vpop.permute.xlu0 %2353  ;;  %5013 = vmatprep.subr.bf16.mxu0 %v5012_v61  ;;  %v2288_v11 = vpop.permute.xlu1 %2287  ;;  %5005 = vmatprep.subr.bf16.mxu1 %v5004_v62  ;;  %v2490_v6 = vld [vmem:[#allocation3 + $0x2b8] sm:$0xff]  ;;  %v2503_v61 = vld [vmem:[#allocation3 + $0x320] sm:$0xff]  ;;  %3007 = vst.msk [vmem:[#allocation4 + $0x8] sm:$0xff] %vm3005_vm9, %v5451_v1  ;;  %3008 = vst.msk [vmem:[#allocation4 + $0x10] sm:$0xff] %vm3005_vm9, %v5451_v1 }
 0x3f4   : > { %2370 = vst.msk [vmem:[#allocation3 + $0x3b8] sm:$0xff] %vm1086_vm10, %v2354_v10  ;;  %2624 = vmatprep.mubr.f32.mxu0 %v2380_v63  ;;  %v5020_v38 = vpack.c.bf16 %v2490_v6, %v2489_v34  ;;  %v2473_v32 = vld [vmem:[#allocation3 + $0x230] sm:$0xff]  ;;  %v2523_v62 = vld [vmem:[#allocation3 + $0x3c0] sm:$0xff]  ;;  %v5026_v63 = vpack.c.bf16 %v2476_v51, %v2475_v37  ;;  %v5050_v44 = vpack.c.bf16 %v2504_v56, %v2503_v61  ;;  %v2526_v6 = vld [vmem:[#allocation3 + $0x3d8] sm:$0xff]  ;;  %vm3154_vm10 = vcmask 130072  }
 0x3f5   : > { %2305 = vst.msk [vmem:[#allocation3 + $0x330] sm:$0xff] %vm1020_vm11, %v2288_v11  ;;  %2625 = vmatmul.mubr.f32.gmra.mrb[34].mxu0 %v2379_v55  ;;  %v2398_v11 = vld [vmem:[#allocation8 + $0xd8] sm:$0xff]  ;;  %v2391_v61 = vld [vmem:[#allocation8 + $0xa0] sm:$0xff] }
 0x3f6   : > { %5007 = vmatpush3.bf16.msra.mxu1 %v5006_v14  ;;  %5015 = vmatpush3.bf16.msra.mxu0 %v5014_v15  ;;  %v2397_v14 = vld [vmem:[#allocation8 + $0xd0] sm:$0xff]  ;;  %v2496_v15 = vld [vmem:[#allocation3 + $0x2e8] sm:$0xff]  ;;  %v2507_v34 = vld [vmem:[#allocation3 + $0x340] sm:$0xff]  ;;  %3009 = vst.msk [vmem:[#allocation4 + $0x18] sm:$0xff] %vm3005_vm9, %v5451_v1 }
 0x3f7   : > { %v2290_v16 = vpop.permute.xlu0 %2289  ;;  %5017 = vmatprep.subr.bf16.mxu0 %v5016_v19  ;;  %v2188_v28 = vpop.permute.xlu1 %2187  ;;  %5041 = vmatprep.subr.bf16.mxu1 %v5040_v20  ;;  %v2474_v42 = vld [vmem:[#allocation3 + $0x238] sm:$0xff]  ;;  %v5056_v20 = vpack.c.bf16 %v2524_v9, %v2523_v62  ;;  %v5032_v7 = vpack.c.bf16 %v2496_v15, %v2495_v23  ;;  %3010 = vst.msk [vmem:[#allocation4 + $0x20] sm:$0xff] %vm3005_vm9, %v5451_v1  ;;  %3011 = vst.msk [vmem:[#allocation4 + $0x28] sm:$0xff] %vm3005_vm9, %v5451_v1 }
 0x3f8   : > { %2306 = vst.msk [vmem:[#allocation3 + $0x338] sm:$0xff] %vm1020_vm11, %v2290_v16  ;;  %2629 = vmatprep.mubr.f32.mxu0 %v2388_v21  ;;  %v5022_v3 = vpack.c.bf16 %v2474_v42, %v2473_v32  ;;  %v2521_v55 = vld [vmem:[#allocation3 + $0x3b0] sm:$0xff]  ;;  %v5030_v21 = vpack.c.bf16 %v2478_v12, %v2477_v0  ;;  %v2386_v37 = vld [vmem:[#allocation8 + $0x78] sm:$0xff]  ;;  %vm3086_vm11 = vcmask 130104  }
 0x3f9   : > { %2207 = vst.msk [vmem:[#allocation3 + $0x260] sm:$0xff] %vm921_vm13, %v2188_v28  ;;  %2630 = vmatmul.mubr.f32.gmra.mrb[36].mxu0 %v2387_v22  ;;  %2705 = vmatmul.mubr.f32.vlgmr.msra.gmra.mrb[32].mxu1 %v2373_v25  ;;  %v2525_v25 = vld [vmem:[#allocation3 + $0x3d0] sm:$0xff]  ;;  %v2508_v28 = vld [vmem:[#allocation3 + $0x348] sm:$0xff]  ;;  %v2402_v9 = vld [vmem:[#allocation8 + $0xf8] sm:$0xff] }
 0x3fa   : > { %5019 = vmatpush3.bf16.msra.mxu0 %v5018_v31  ;;  %5043 = vmatpush3.bf16.msra.mxu1 %v5042_v33  ;;  %v5060_v35 = vpack.c.bf16 %v2526_v6, %v2525_v25  ;;  %v5058_v24 = vpack.c.bf16 %v2508_v28, %v2507_v34  ;;  %v2529_v32 = vld [vmem:[#allocation3 + $0x3f0] sm:$0xff]  ;;  %3012 = vst.msk [vmem:[#allocation4 + $0x30] sm:$0xff] %vm3005_vm9, %v5451_v1  ;;  %3013 = vst.msk [vmem:[#allocation4 + $0x38] sm:$0xff] %vm3005_vm9, %v5451_v1 }
 0x3fb   : > { %v2190_v46 = vpop.permute.xlu0 %2189  ;;  %5021 = vmatprep.subr.bf16.mxu0 %v5020_v38  ;;  %v2316_v47 = vpop.permute.xlu1 %2315  ;;  %5045 = vmatprep.subr.bf16.mxu1 %v5044_v39  ;;  %v2522_v59 = vld [vmem:[#allocation3 + $0x3b8] sm:$0xff]  ;;  %v2527_v38 = vld [vmem:[#allocation3 + $0x3e0] sm:$0xff]  ;;  %v2528_v39 = vld [vmem:[#allocation3 + $0x3e8] sm:$0xff]  ;;  %v5068_v51 = vpack.c.bf16 %v2530_v2, %v2529_v32  ;;  %3014 = vst.msk [vmem:[#allocation4 + $0x40] sm:$0xff] %vm3005_vm9, %v5451_v1 }
 0x3fc   : > { %2208 = vst.msk [vmem:[#allocation3 + $0x268] sm:$0xff] %vm921_vm13, %v2190_v46  ;;  %2634 = vmatprep.mubr.f32.mxu0 %v2396_v36  ;;  %2709 = vmatprep.mubr.f32.mxu1 %v2382_v40  ;;  %v5052_v10 = vpack.c.bf16 %v2522_v59, %v2521_v55  ;;  %v2505_v19 = vld [vmem:[#allocation3 + $0x330] sm:$0xff]  ;;  %v2510_v40 = vld [vmem:[#allocation3 + $0x358] sm:$0xff]  ;;  %v5064_v45 = vpack.c.bf16 %v2528_v39, %v2527_v38  ;;  %v2383_v59 = vld [vmem:[#allocation8 + $0x60] sm:$0xff] }
 0x3fd   : > { %2335 = vst.msk [vmem:[#allocation3 + $0x360] sm:$0xff] %vm7846_vm1, %v2316_v47  ;;  %2635 = vmatmul.mubr.f32.gmra.mrb[38].mxu0 %v2395_v8  ;;  %2710 = vmatmul.mubr.f32.gmra.mrb[34].mxu1 %v2381_v27  ;;  %v2509_v27 = vld [vmem:[#allocation3 + $0x350] sm:$0xff]  ;;  %vm3294_vm1 = vcmask 80896  }
 0x3fe   : > { %5023 = vmatpush3.bf16.msra.mxu0 %v5022_v3  ;;  %5047 = vmatpush3.bf16.msra.mxu1 %v5046_v49  ;;  %v5062_v47 = vpack.c.bf16 %v2510_v40, %v2509_v27  ;;  %v2385_v62 = vld [vmem:[#allocation8 + $0x70] sm:$0xff]  ;;  %3015 = vst.msk [vmem:[#allocation4 + $0x48] sm:$0xff] %vm3005_vm9, %v5451_v1  ;;  %3016 = vst.msk [vmem:[#allocation4 + $0x50] sm:$0xff] %vm3005_vm9, %v5451_v1 }
 0x3ff   : > { %v2318_v26 = vpop.permute.xlu0 %2317  ;;  %5025 = vmatprep.subr.bf16.mxu0 %v5024_v52  ;;  %v2256_v60 = vpop.permute.xlu1 %2255  ;;  %5049 = vmatprep.subr.bf16.mxu1 %v5048_v53  ;;  %v2506_v13 = vld [vmem:[#allocation3 + $0x338] sm:$0xff]  ;;  %3017 = vst.msk [vmem:[#allocation4 + $0x58] sm:$0xff] %vm3005_vm9, %v5451_v1  ;;  %3018 = vst.msk [vmem:[#allocation4 + $0x60] sm:$0xff] %vm3005_vm9, %v5451_v1 }
 0x400   : > { %2336 = vst.msk [vmem:[#allocation3 + $0x368] sm:$0xff] %vm7847_vm2, %v2318_v26  ;;  %2714 = vmatprep.mubr.f32.mxu1 %v2390_v54  ;;  %2789 = vmatprep.mubr.f32.mxu0 %v2376_v48  ;;  %v5054_v22 = vpack.c.bf16 %v2506_v13, %v2505_v19  ;;  %v2479_v33 = vld [vmem:[#allocation3 + $0x260] sm:$0xff]  ;;  %v2377_v26 = vld [vmem:[#allocation8 + $0x30] sm:$0xff]  ;;  %vm3226_vm2 = vcmask 113664  }
 0x401   : > { %2273 = vst.msk [vmem:[#allocation3 + $0x2f0] sm:$0xff] %vm987_vm12, %v2256_v60  ;;  %2715 = vmatmul.mubr.f32.gmra.mrb[36].mxu1 %v2389_v57  ;;  %v2375_v54 = vld [vmem:[#allocation8 + $0x20] sm:$0xff]  ;;  %v2384_v57 = vld [vmem:[#allocation8 + $0x68] sm:$0xff]  ;;  %v2393_v55 = vld [vmem:[#allocation8 + $0xb0] sm:$0xff] }
 0x402   : > { %5027 = vmatpush3.bf16.msra.mxu0 %v5026_v63  ;;  %5051 = vmatpush3.bf16.msra.mxu1 %v5050_v44  ;;  %v2392_v60 = vld [vmem:[#allocation8 + $0xa8] sm:$0xff]  ;;  %v2394_v44 = vld [vmem:[#allocation8 + $0xb8] sm:$0xff]  ;;  %3019 = vst.msk [vmem:[#allocation4 + $0x68] sm:$0xff] %vm3005_vm9, %v5451_v1  ;;  %3020 = vst.msk [vmem:[#allocation4 + $0x70] sm:$0xff] %vm3005_vm9, %v5451_v1 }
 0x403   : > { %v2258_v17 = vpop.permute.xlu0 %2257  ;;  %5029 = vmatprep.subr.bf16.mxu0 %v5028_v5  ;;  %v2192_v18 = vpop.permute.xlu1 %2191  ;;  %5053 = vmatprep.subr.bf16.mxu1 %v5052_v10  ;;  %v2480_v16 = vld [vmem:[#allocation3 + $0x268] sm:$0xff]  ;;  %v2401_v5 = vld [vmem:[#allocation8 + $0xf0] sm:$0xff]  ;;  %v2907_v10 = vld [vmem:[%s7764_s11] sm:$0xff]  ;;  %3021 = vst.msk [vmem:[#allocation4 + $0x78] sm:$0xff] %vm3005_vm9, %v5451_v1 }
 0x404   : > { %2274 = vst.msk [vmem:[#allocation3 + $0x2f8] sm:$0xff] %vm987_vm12, %v2258_v17  ;;  %2719 = vmatprep.mubr.f32.mxu1 %v2398_v11  ;;  %v5034_v36 = vpack.c.bf16 %v2480_v16, %v2479_v33  ;;  %v2511_v50 = vld [vmem:[#allocation3 + $0x360] sm:$0xff]  ;;  %v2400_v63 = vld [vmem:[#allocation8 + $0xe8] sm:$0xff]  ;;  %vm3277_vm12 = vcmask 89088  }
 0x405   : > { %2209 = vst.msk [vmem:[#allocation3 + $0x270] sm:$0xff] %vm921_vm13, %v2192_v18  ;;  %2720 = vmatmul.mubr.f32.gmra.mrb[38].mxu1 %v2397_v14 }
 0x406   : > { %5031 = vmatpush3.bf16.msra.mxu0 %v5030_v21  ;;  %5055 = vmatpush3.bf16.msra.mxu1 %v5054_v22  ;;  %3022 = vst.msk [vmem:[#allocation4 + $0x80] sm:$0xff] %vm3005_vm9, %v5451_v1  ;;  %3024 = vst.msk [vmem:[#allocation4 + $0x90] sm:$0xff] %vm3005_vm9, %v5451_v1 }
 0x407   : > { %v2194_v30 = vpop.permute.xlu0 %2193  ;;  %5033 = vmatprep.subr.bf16.mxu0 %v5032_v7  ;;  %v2320_v31 = vpop.permute.xlu1 %2319  ;;  %5057 = vmatprep.subr.bf16.mxu1 %v5056_v20  ;;  %v2512_v3 = vld [vmem:[#allocation3 + $0x368] sm:$0xff]  ;;  %3025 = vst.msk [vmem:[#allocation4 + $0x98] sm:$0xff] %vm3005_vm9, %v5451_v1  ;;  %3026 = vst.msk [vmem:[#allocation4 + $0xa0] sm:$0xff] %vm3005_vm9, %v5451_v1 }
 0x408   : > { %2210 = vst.msk [vmem:[#allocation3 + $0x278] sm:$0xff] %vm921_vm13, %v2194_v30  ;;  %2874 = vmatprep.mubr.f32.mxu1 %v2378_v29  ;;  %v2497_v43 = vld [vmem:[#allocation3 + $0x2f0] sm:$0xff]  ;;  %v5066_v53 = vpack.c.bf16 %v2512_v3, %v2511_v50  ;;  %vm3209_vm13 = vcmask 121856  }
 0x409   : > { %2337 = vst.msk [vmem:[#allocation3 + $0x370] sm:$0xff] %vm7848_vm3, %v2320_v31  ;;  %vm7808_vm3 = vcmask 130056  }
 0x40a   : > { %5035 = vmatpush3.bf16.msra.mxu0 %v5034_v36  ;;  %5059 = vmatpush3.bf16.msra.mxu1 %v5058_v24  ;;  %3027 = vst.msk [vmem:[#allocation4 + $0xa8] sm:$0xff] %vm3005_vm9, %v5451_v1  ;;  %3028 = vst.msk [vmem:[#allocation4 + $0xb0] sm:$0xff] %vm3005_vm9, %v5451_v1 }
 0x40b   : > { %v2322_v42 = vpop.permute.xlu0 %2321  ;;  %5061 = vmatprep.subr.bf16.mxu1 %v5060_v35  ;;  %v2498_v8 = vld [vmem:[#allocation3 + $0x2f8] sm:$0xff]  ;;  %3029 = vst.msk [vmem:[#allocation4 + $0xb8] sm:$0xff] %vm3005_vm9, %v5451_v1  ;;  %3030 = vst.msk [vmem:[#allocation4 + $0xc0] sm:$0xff] %vm3005_vm9, %v5451_v1 }
 0x40c   : > { %2338 = vst.msk [vmem:[#allocation3 + $0x378] sm:$0xff] %vm7849_vm4, %v2322_v42  ;;  %v5036_v46 = vpack.c.bf16 %v2498_v8, %v2497_v43  ;;  %v2481_v49 = vld [vmem:[#allocation3 + $0x270] sm:$0xff]  ;;  %vm3120_vm4 = vcmask 130088  }
 0x40d   : > { %3031 = vst.msk [vmem:[#allocation4 + $0xc8] sm:$0xff] %vm3005_vm9, %v5451_v1  ;;  %3032 = vst.msk [vmem:[#allocation4 + $0xd0] sm:$0xff] %vm3005_vm9, %v5451_v1 }
 0x40e   : > { %5037 = vmatprep.subr.bf16.mxu0 %v5036_v46  ;;  %5063 = vmatpush3.bf16.msra.mxu1 %v5062_v47  ;;  %3033 = vst.msk [vmem:[#allocation4 + $0xd8] sm:$0xff] %vm3005_vm9, %v5451_v1  ;;  %3034 = vst.msk [vmem:[#allocation4 + $0xe0] sm:$0xff] %vm3005_vm9, %v5451_v1 }
 0x40f   : > { %5065 = vmatprep.subr.bf16.mxu1 %v5064_v45  ;;  %v2482_v41 = vld [vmem:[#allocation3 + $0x278] sm:$0xff]  ;;  %3035 = vst.msk [vmem:[#allocation4 + $0xe8] sm:$0xff] %vm3005_vm9, %v5451_v1  ;;  %3036 = vst.msk [vmem:[#allocation4 + $0xf0] sm:$0xff] %vm3005_vm9, %v5451_v1 }
 0x410   : > { %v5038_v52 = vpack.c.bf16 %v2482_v41, %v2481_v49  ;;  %v2513_v56 = vld [vmem:[#allocation3 + $0x370] sm:$0xff]  ;;  %3037 = vst.msk [vmem:[#allocation4 + $0xf8] sm:$0xff] %vm3005_vm9, %v5451_v1  ;;  %3038 = vst.msk [vmem:[#allocation4 + $0x100] sm:$0xff] %vm3005_vm9, %v5451_v1 }
 0x411   : > { %3039 = vst.msk [vmem:[#allocation4 + $0x108] sm:$0xff] %vm3005_vm9, %v5451_v1  ;;  %3040 = vst.msk [vmem:[#allocation4 + $0x110] sm:$0xff] %vm3005_vm9, %v5451_v1 }
 0x412   : > { %5039 = vmatpush3.bf16.msra.mxu0 %v5038_v52  ;;  %5067 = vmatpush3.bf16.msra.mxu1 %v5066_v53  ;;  %3041 = vst.msk [vmem:[#allocation4 + $0x118] sm:$0xff] %vm3005_vm9, %v5451_v1  ;;  %3042 = vst.msk [vmem:[#allocation4 + $0x120] sm:$0xff] %vm3005_vm9, %v5451_v1 }
 0x413   : > { %5069 = vmatprep.subr.bf16.mxu1 %v5068_v51  ;;  %v2514_v48 = vld [vmem:[#allocation3 + $0x378] sm:$0xff]  ;;  %3043 = vst.msk [vmem:[#allocation4 + $0x128] sm:$0xff] %vm3005_vm9, %v5451_v1  ;;  %3044 = vst.msk [vmem:[#allocation4 + $0x130] sm:$0xff] %vm3005_vm9, %v5451_v1 }
 0x414   : > { %v5070_v58 = vpack.c.bf16 %v2514_v48, %v2513_v56  ;;  %3045 = vst.msk [vmem:[#allocation4 + $0x138] sm:$0xff] %vm3005_vm9, %v5451_v1  ;;  %3046 = vst.msk [vmem:[#allocation4 + $0x140] sm:$0xff] %vm3005_vm9, %v5451_v1 }
 0x415   : > { %2790 = vmatmul.mubr.f32.vlgmr.msra.gmra.mrb[40].mxu0 %v2375_v54  ;;  %3047 = vst.msk [vmem:[#allocation4 + $0x148] sm:$0xff] %vm3005_vm9, %v5451_v1  ;;  %3048 = vst.msk [vmem:[#allocation4 + $0x150] sm:$0xff] %vm3005_vm9, %v5451_v1 }
 0x416   : > { %5071 = vmatpush3.bf16.msra.mxu1 %v5070_v58  ;;  %2794 = vmatprep.mubr.f32.mxu0 %v2384_v57  ;;  %3049 = vst.msk [vmem:[#allocation4 + $0x158] sm:$0xff] %vm3005_vm9, %v5451_v1  ;;  %3050 = vst.msk [vmem:[#allocation4 + $0x160] sm:$0xff] %vm3005_vm9, %v5451_v1 }
 0x417   : > { %4766 = vmatprep.subr.mxu1 %v2907_v10  ;;  %3051 = vst.msk [vmem:[#allocation4 + $0x168] sm:$0xff] %vm3005_vm9, %v5451_v1  ;;  %3052 = vst.msk [vmem:[#allocation4 + $0x170] sm:$0xff] %vm3005_vm9, %v5451_v1 }
 0x418   : > { %v2538_v18 = vpop.permute.xlu1 %2537  ;;  %3053 = vst.msk [vmem:[#allocation4 + $0x178] sm:$0xff] %vm3005_vm9, %v5451_v1  ;;  %3054 = vst.msk [vmem:[#allocation4 + $0x180] sm:$0xff] %vm3005_vm9, %v5451_v1 }
 0x419   : > { %2795 = vmatmul.mubr.f32.gmra.mrb[42].mxu0 %v2383_v59  ;;  %2875 = vmatmul.mubr.f32.vlgmr.msra.gmra.mrb[40].mxu1 %v2377_v26  ;;  %3055 = vst.msk [vmem:[#allocation4 + $0x188] sm:$0xff] %vm3005_vm9, %v5451_v1  ;;  %3056 = vst.msk [vmem:[#allocation4 + $0x190] sm:$0xff] %vm3005_vm9, %v5451_v1 }
 0x41a   : > { %2799 = vmatprep.mubr.f32.mxu0 %v2392_v60  ;;  %2879 = vmatprep.mubr.f32.mxu1 %v2386_v37  ;;  %3057 = vst.msk [vmem:[#allocation4 + $0x198] sm:$0xff] %vm3005_vm9, %v5451_v1  ;;  %3058 = vst.msk [vmem:[#allocation4 + $0x1a0] sm:$0xff] %vm3005_vm9, %v5451_v1 }
 0x41b   : > { %4767 = vmatpush3.msra.mxu1 %v2907_v10  ;;  %3059 = vst.msk [vmem:[#allocation4 + $0x1a8] sm:$0xff] %vm3005_vm9, %v5451_v1  ;;  %3060 = vst.msk [vmem:[#allocation4 + $0x1b0] sm:$0xff] %vm3005_vm9, %v5451_v1 }
 0x41c   : > { %v2543_v6 = vpop.permute.xlu0 %2542  ;;  %v2548_v24 = vpop.permute.xlu1 %2547  ;;  %3061 = vst.msk [vmem:[#allocation4 + $0x1b8] sm:$0xff] %vm3005_vm9, %v5451_v1  ;;  %3062 = vst.msk [vmem:[#allocation4 + $0x1c0] sm:$0xff] %vm3005_vm9, %v5451_v1 }
 0x41d   : > { %2800 = vmatmul.mubr.f32.gmra.mrb[44].mxu0 %v2391_v61  ;;  %2880 = vmatmul.mubr.f32.gmra.mrb[42].mxu1 %v2385_v62  ;;  %3063 = vst.msk [vmem:[#allocation4 + $0x1c8] sm:$0xff] %vm3005_vm9, %v5451_v1  ;;  %3064 = vst.msk [vmem:[#allocation4 + $0x1d0] sm:$0xff] %vm3005_vm9, %v5451_v1 }
 0x41e   : > { %2804 = vmatprep.mubr.f32.mxu0 %v2400_v63  ;;  %2884 = vmatprep.mubr.f32.mxu1 %v2394_v44  ;;  %3065 = vst.msk [vmem:[#allocation4 + $0x1d8] sm:$0xff] %vm3005_vm9, %v5451_v1  ;;  %3066 = vst.msk [vmem:[#allocation4 + $0x1e0] sm:$0xff] %vm3005_vm9, %v5451_v1 }
 0x41f   : > { %3067 = vst.msk [vmem:[#allocation4 + $0x1e8] sm:$0xff] %vm3005_vm9, %v5451_v1  ;;  %3068 = vst.msk [vmem:[#allocation4 + $0x1f0] sm:$0xff] %vm3005_vm9, %v5451_v1 }
 0x420   : > { %v2553_v8 = vpop.permute.xlu0 %2552  ;;  %3069 = vst.msk [vmem:[#allocation4 + $0x1f8] sm:$0xff] %vm3005_vm9, %v5451_v1  ;;  %3572 = vst.msk [vmem:[#allocation5] sm:$0xff] %vm3005_vm9, %v5451_v1 }
 0x421   : > { %2805 = vmatmul.mubr.f32.gmra.mrb[46].mxu0 %v2399_v4  ;;  %2885 = vmatmul.mubr.f32.gmra.mrb[44].mxu1 %v2393_v55  ;;  %3573 = vst.msk [vmem:[#allocation5 + $0x8] sm:$0xff] %vm3005_vm9, %v5451_v1  ;;  %3574 = vst.msk [vmem:[#allocation5 + $0x10] sm:$0xff] %vm3005_vm9, %v5451_v1 }
 0x422   : > { %2889 = vmatprep.mubr.f32.mxu1 %v2402_v9  ;;  %3575 = vst.msk [vmem:[#allocation5 + $0x18] sm:$0xff] %vm3005_vm9, %v5451_v1  ;;  %3576 = vst.msk [vmem:[#allocation5 + $0x20] sm:$0xff] %vm3005_vm9, %v5451_v1 }
 0x423   : > { %3577 = vst.msk [vmem:[#allocation5 + $0x28] sm:$0xff] %vm3005_vm9, %v5451_v1  ;;  %3578 = vst.msk [vmem:[#allocation5 + $0x30] sm:$0xff] %vm3005_vm9, %v5451_v1 }
 0x424   : > { %3579 = vst.msk [vmem:[#allocation5 + $0x38] sm:$0xff] %vm3005_vm9, %v5451_v1  ;;  %3580 = vst.msk [vmem:[#allocation5 + $0x40] sm:$0xff] %vm3005_vm9, %v5451_v1 }
 0x425   : > { %2890 = vmatmul.mubr.f32.gmra.mrb[46].mxu1 %v2401_v5  ;;  %3581 = vst.msk [vmem:[#allocation5 + $0x48] sm:$0xff] %vm3005_vm9, %v5451_v1  ;;  %3582 = vst.msk [vmem:[#allocation5 + $0x50] sm:$0xff] %vm3005_vm9, %v5451_v1 }
 0x426   : > { %3583 = vst.msk [vmem:[#allocation5 + $0x58] sm:$0xff] %vm3005_vm9, %v5451_v1  ;;  %3584 = vst.msk [vmem:[#allocation5 + $0x60] sm:$0xff] %vm3005_vm9, %v5451_v1 }
 0x427   : > { %3585 = vst.msk [vmem:[#allocation5 + $0x68] sm:$0xff] %vm3005_vm9, %v5451_v1  ;;  %3586 = vst.msk [vmem:[#allocation5 + $0x70] sm:$0xff] %vm3005_vm9, %v5451_v1 }
 0x428   : > { %3587 = vst.msk [vmem:[#allocation5 + $0x78] sm:$0xff] %vm3005_vm9, %v5451_v1  ;;  %3588 = vst.msk [vmem:[#allocation5 + $0x80] sm:$0xff] %vm3005_vm9, %v5451_v1 }
 0x429   : > { %3589 = vst.msk [vmem:[#allocation5 + $0x88] sm:$0xff] %vm3005_vm9, %v5451_v1  ;;  %3590 = vst.msk [vmem:[#allocation5 + $0x90] sm:$0xff] %vm3005_vm9, %v5451_v1 }
 0x42a   : > { %3591 = vst.msk [vmem:[#allocation5 + $0x98] sm:$0xff] %vm3005_vm9, %v5451_v1  ;;  %3592 = vst.msk [vmem:[#allocation5 + $0xa0] sm:$0xff] %vm3005_vm9, %v5451_v1 }
 0x42b   : > { %3593 = vst.msk [vmem:[#allocation5 + $0xa8] sm:$0xff] %vm3005_vm9, %v5451_v1  ;;  %3594 = vst.msk [vmem:[#allocation5 + $0xb0] sm:$0xff] %vm3005_vm9, %v5451_v1 }
 0x42c   : > { %3595 = vst.msk [vmem:[#allocation5 + $0xb8] sm:$0xff] %vm3005_vm9, %v5451_v1  ;;  %3596 = vst.msk [vmem:[#allocation5 + $0xc0] sm:$0xff] %vm3005_vm9, %v5451_v1 }
 0x42d   : > { %3597 = vst.msk [vmem:[#allocation5 + $0xc8] sm:$0xff] %vm3005_vm9, %v5451_v1  ;;  %3598 = vst.msk [vmem:[#allocation5 + $0xd0] sm:$0xff] %vm3005_vm9, %v5451_v1 }
 0x42e   : > { %3599 = vst.msk [vmem:[#allocation5 + $0xd8] sm:$0xff] %vm3005_vm9, %v5451_v1  ;;  %3600 = vst.msk [vmem:[#allocation5 + $0xe0] sm:$0xff] %vm3005_vm9, %v5451_v1 }
 0x42f   : > { %3601 = vst.msk [vmem:[#allocation5 + $0xe8] sm:$0xff] %vm3005_vm9, %v5451_v1  ;;  %3602 = vst.msk [vmem:[#allocation5 + $0xf0] sm:$0xff] %vm3005_vm9, %v5451_v1 }
 0x430   : > { %3603 = vst.msk [vmem:[#allocation5 + $0xf8] sm:$0xff] %vm3005_vm9, %v5451_v1 }
 0x4c4   : > { %v4486_v11 = vpop.f32.mrb[32].mxu0 }
 0x4c5   : > { %v4487_v12 = vpop.f32.mrb[33].mxu0 }
 0x4c6   : > { %v4488_v13 = vadd.f32 %v4487_v12, %v4486_v11 }
 0x4c8   : > { %v4489_v14 = vpop.f32.mrb[34].mxu0  ;;  %v2622_v22 = vadd.f32 %v4488_v13, %v2538_v18 }
 0x4c9   : > { %v4490_v15 = vpop.f32.mrb[35].mxu0 }
 0x4ca   : > { %v4491_v17 = vadd.f32 %v4490_v15, %v4489_v14 }
 0x4cc   : > { %v4492_v0 = vpop.f32.mrb[36].mxu0  ;;  %v4530_v19 = vpop.f32.mrb[32].mxu1  ;;  %v2627_v31 = vadd.f32 %v4491_v17, %v2543_v6 }
 0x4cd   : > { %v4493_v20 = vpop.f32.mrb[37].mxu0  ;;  %v4531_v21 = vpop.f32.mrb[33].mxu1 }
 0x4ce   : > { %v4494_v23 = vadd.f32 %v4493_v20, %v4492_v0  ;;  %v4532_v25 = vadd.f32 %v4531_v21, %v4530_v19 }
 0x4d0   : > { %v2707_v7 = vadd.f32 %v4532_v25, %v2622_v22  ;;  %v4495_v16 = vpop.f32.mrb[38].mxu0  ;;  %v4533_v28 = vpop.f32.mrb[34].mxu1  ;;  %v2632_v39 = vadd.f32 %v4494_v23, %v2548_v24 }
 0x4d1   : > { %v4496_v29 = vpop.f32.mrb[39].mxu0  ;;  %v4534_v30 = vpop.f32.mrb[35].mxu1 }
 0x4d2   : > { %v4497_v33 = vadd.f32 %v4496_v29, %v4495_v16  ;;  %v4535_v34 = vadd.f32 %v4534_v30, %v4533_v28  ;;  %v3333_v28 = vld [vmem:[%s7758_s5 + $0x8] sm:$0xff]  ;;  %v3335_v30 = vld [vmem:[%s7758_s5 + $0x18] sm:$0xff] }
 0x4d3   : > { %3555 = vmatprep.mubr.f32.mxu0 %v3335_v30 }
 0x4d4   : > { %v2712_v35 = vadd.f32 %v4535_v34, %v2627_v31  ;;  %v4536_v36 = vpop.f32.mrb[36].mxu1  ;;  %v2637_v45 = vadd.f32 %v4497_v33, %v2553_v8  ;;  %v3405_v33 = vld [vmem:[%s7759_s6 + $0x8] sm:$0xff] }
 0x4d5   : > { %v4537_v38 = vpop.f32.mrb[37].mxu1 }
 0x4d6   : > { %v4538_v40 = vadd.f32 %v4537_v38, %v4536_v36 }
 0x4d8   : > { %v2717_v42 = vadd.f32 %v4538_v40, %v2632_v39  ;;  %v4539_v43 = vpop.f32.mrb[38].mxu1 }
 0x4d9   : > { %v4540_v27 = vpop.f32.mrb[39].mxu1 }
 0x4da   : > { %v4541_v46 = vadd.f32 %v4540_v27, %v4539_v43 }
 0x4dc   : > { %v2722_v47 = vadd.f32 %v4541_v46, %v2637_v45 }
 0x4e8   : > { %v4574_v32 = vpop.f32.mrb[40].mxu0 }
 0x4e9   : > { %v4575_v2 = vpop.f32.mrb[41].mxu0 }
 0x4ea   : > { %v4576_v3 = vadd.f32 %v4575_v2, %v4574_v32 }
 0x4ec   : > { %v2792_v49 = vadd.f32 %v4576_v3, %v2707_v7  ;;  %v4577_v41 = vpop.f32.mrb[42].mxu0  ;;  %v4618_v50 = vpop.f32.mrb[40].mxu1 }
 0x4ed   : > { %v4578_v51 = vpop.f32.mrb[43].mxu0  ;;  %v4619_v52 = vpop.f32.mrb[41].mxu1 }
 0x4ee   : > { %v4579_v53 = vadd.f32 %v4578_v51, %v4577_v41  ;;  %v4620_v54 = vadd.f32 %v4619_v52, %v4618_v50 }
 0x4f0   : > { %v2797_v56 = vadd.f32 %v4579_v53, %v2712_v35  ;;  %v2877_v48 = vadd.f32 %v4620_v54, %v2792_v49  ;;  %v4580_v57 = vpop.f32.mrb[44].mxu0  ;;  %v4621_v58 = vpop.f32.mrb[42].mxu1  ;;  %v3404_v35 = vld [vmem:[%s7759_s6] sm:$0xff] }
 0x4f1   : > { %v4581_v59 = vpop.f32.mrb[45].mxu0  ;;  %v4622_v26 = vpop.f32.mrb[43].mxu1 }
 0x4f2   : > { %v2899_v60 = vmul.f32 0.01, %v2877_v48  ;;  %v4582_v37 = vadd.f32 %v4581_v59, %v4580_v57  ;;  %v4623_v61 = vadd.f32 %v4622_v26, %v4621_v58  ;;  %vm2895_vm5 = vcmp.ge.f32.partialorder %v2877_v48, 0.0 }
 0x4f4   : > { %v2802_v62 = vadd.f32 %v4582_v37, %v2717_v42  ;;  %v2882_v63 = vadd.f32 %v4623_v61, %v2797_v56  ;;  %v4583_v44 = vpop.f32.mrb[46].mxu0  ;;  %v4624_v4 = vpop.f32.mrb[44].mxu1  ;;  %v2903_v55 = vsel %vm2895_vm5, %v2877_v48, %v2899_v60  ;;  %vm3311_vm5 = vcmask 72704  }
 0x4f5   : > { %v4584_v9 = vpop.f32.mrb[47].mxu0  ;;  %v4625_v5 = vpop.f32.mrb[45].mxu1  ;;  %4768 = vmatprep.mubr.msk.f32.mxu1 %vm7807_vm0, %v2903_v55 }
 0x4f6   : > { %vm2896_vm6 = vcmp.ge.f32.partialorder %v2882_v63, 0.0  ;;  %v2900_v10 = vmul.f32 0.01, %v2882_v63  ;;  %v4585_v11 = vadd.f32 %v4584_v9, %v4583_v44  ;;  %v4626_v12 = vadd.f32 %v4625_v5, %v4624_v4 }
 0x4f8   : > { %v2904_v13 = vsel %vm2896_vm6, %v2882_v63, %v2900_v10  ;;  %v2807_v14 = vadd.f32 %v4585_v11, %v2722_v47  ;;  %v2887_v15 = vadd.f32 %v4626_v12, %v2802_v62  ;;  %v4627_v17 = vpop.f32.mrb[46].mxu1  ;;  %vm3243_vm6 = vcmask 105472  }
 0x4f9   : > { %v4628_v18 = vpop.f32.mrb[47].mxu1  ;;  %4769 = vmatmul.mubr.msk.f32.vlgmr.msra.gmra.mrb[48].mxu1 %vm7807_vm0, %v2904_v13 }
 0x4fa   : > { %v2901_v0 = vmul.f32 0.01, %v2887_v15  ;;  %v4629_v19 = vadd.f32 %v4628_v18, %v4627_v17  ;;  %vm2897_vm7 = vcmp.ge.f32.partialorder %v2887_v15, 0.0 }
 0x4fc   : > { %v2892_v20 = vadd.f32 %v4629_v19, %v2807_v14  ;;  %v2905_v21 = vsel %vm2897_vm7, %v2887_v15, %v2901_v0  ;;  %vm3137_vm7 = vcmask 130080  }
 0x4fd   : > { %4771 = vmatprep.mubr.msk.f32.mxu1 %vm7807_vm0, %v2905_v21 }
 0x4fe   : > { %v2902_v22 = vmul.f32 0.01, %v2892_v20  ;;  %vm2898_vm8 = vcmp.ge.f32.partialorder %v2892_v20, 0.0 }
 0x500   : > { %v2906_v23 = vsel %vm2898_vm8, %v2892_v20, %v2902_v22  ;;  %vm3260_vm8 = vcmask 97280  }
 0x501   : > { %4772 = vmatmul.mubr.msk.f32.gmra.mrb[50].mxu1 %vm7807_vm0, %v2906_v23 }
 0x502   : > { %3480 = vmatprep.mubr.f32.mxu1 %v3333_v28 }
 0x5cc   : > { %v4770_v25 = vpop.f32.mrb[48].mxu1 }
 0x5cd   : > { %3144 = vrot.lane.b32.xlu0 %v4770_v25, %s7801_s22  ;;  %v2986_v6 = vpop.f32.mrb[49].mxu1  ;;  %3194 = vst.msk [vmem:[#allocation4 + $0xe8] sm:$0xff] %vm3005_vm9, %v4770_v25 }
 0x5ce   : > { %3142 = vrot.lane.b32.xlu1 %v2986_v6, %s7801_s22  ;;  %3193 = vst.msk [vmem:[#allocation4 + $0xe0] sm:$0xff] %vm3005_vm9, %v2986_v6 }
 0x5d1   : > { %3076 = vrot.lane.b32.xlu0 %v4770_v25, %s7803_s15 }
 0x5d2   : > { %3074 = vrot.lane.b32.xlu1 %v2986_v6, %s7803_s15 }
 0x5d4   : > { %v7391_v7 = vpop.f32.mrb[50].mxu1 }
 0x5d5   : > { %3267 = vrot.lane.b32.xlu0 %v4770_v25, %s7839_s21  ;;  %v7394_v16 = vpop.f32.mrb[51].mxu1  ;;  %3196 = vst.msk [vmem:[#allocation4 + $0xf8] sm:$0xff] %vm3005_vm9, %v7391_v7 }
 0x5d6   : > { %3265 = vrot.lane.b32.xlu1 %v2986_v6, %s7839_s21  ;;  %3195 = vst.msk [vmem:[#allocation4 + $0xf0] sm:$0xff] %vm3005_vm9, %v7394_v16 }
 0x5d9   : > { %3199 = vrot.lane.b32.xlu0 %v4770_v25, %s7837_s24 }
 0x5da   : > { %3197 = vrot.lane.b32.xlu1 %v2986_v6, %s7837_s24 }
 0x5dd   : > { %3161 = vrot.lane.b32.xlu0 %v4770_v25, %s7835_s23 }
 0x5de   : > { %3159 = vrot.lane.b32.xlu1 %v2986_v6, %s7835_s23 }
 0x5e1   : > { %3093 = vrot.lane.b32.xlu0 %v4770_v25, %s7850_s14 }
 0x5e2   : > { %3091 = vrot.lane.b32.xlu1 %v2986_v6, %s7850_s14 }
 0x5e5   : > { %3284 = vrot.lane.b32.xlu0 %v4770_v25, %s7842_s25 }
 0x5e6   : > { %3282 = vrot.lane.b32.xlu1 %v2986_v6, %s7842_s25 }
 0x5e9   : > { %3216 = vrot.lane.b32.xlu0 %v4770_v25, %s7841_s26 }
 0x5ea   : > { %3214 = vrot.lane.b32.xlu1 %v2986_v6, %s7841_s26 }
 0x5ed   : > { %3178 = vrot.lane.b32.xlu0 %v4770_v25, %s7851_s18 }
 0x5ee   : > { %3176 = vrot.lane.b32.xlu1 %v2986_v6, %s7851_s18 }
 0x5f1   : > { %3110 = vrot.lane.b32.xlu0 %v4770_v25, %s7852_s27 }
 0x5f2   : > { %3108 = vrot.lane.b32.xlu1 %v2986_v6, %s7852_s27 }
 0x5f5   : > { %3301 = vrot.lane.b32.xlu0 %v4770_v25, %s7838_s7 }
 0x5f6   : > { %3299 = vrot.lane.b32.xlu1 %v2986_v6, %s7838_s7 }
 0x5f9   : > { %3233 = vrot.lane.b32.xlu0 %v4770_v25, %s7836_s30 }
 0x5fa   : > { %3231 = vrot.lane.b32.xlu1 %v2986_v6, %s7836_s30 }
 0x5fd   : > { %3127 = vrot.lane.b32.xlu0 %v4770_v25, %s7853_s16 }
 0x5fe   : > { %3125 = vrot.lane.b32.xlu1 %v2986_v6, %s7853_s16 }
 0x601   : > { %3318 = vrot.lane.b32.xlu0 %v4770_v25, %s7805_s20 }
 0x602   : > { %3316 = vrot.lane.b32.xlu1 %v2986_v6, %s7805_s20 }
 0x605   : > { %3250 = vrot.lane.b32.xlu0 %v4770_v25, %s7840_s29 }
 0x606   : > { %3248 = vrot.lane.b32.xlu1 %v2986_v6, %s7840_s29 }
 0x609   : > { %3148 = vrot.lane.b32.xlu0 %v7391_v7, %s7801_s22 }
 0x60a   : > { %3146 = vrot.lane.b32.xlu1 %v7394_v16, %s7801_s22 }
 0x60d   : > { %3080 = vrot.lane.b32.xlu0 %v7391_v7, %s7803_s15 }
 0x60e   : > { %3078 = vrot.lane.b32.xlu1 %v7394_v16, %s7803_s15 }
 0x611   : > { %3271 = vrot.lane.b32.xlu0 %v7391_v7, %s7839_s21 }
 0x612   : > { %3269 = vrot.lane.b32.xlu1 %v7394_v16, %s7839_s21 }
 0x615   : > { %3203 = vrot.lane.b32.xlu0 %v7391_v7, %s7837_s24 }
 0x616   : > { %3201 = vrot.lane.b32.xlu1 %v7394_v16, %s7837_s24 }
 0x619   : > { %3165 = vrot.lane.b32.xlu0 %v7391_v7, %s7835_s23 }
 0x61a   : > { %3163 = vrot.lane.b32.xlu1 %v7394_v16, %s7835_s23 }
 0x61d   : > { %3097 = vrot.lane.b32.xlu0 %v7391_v7, %s7850_s14 }
 0x61e   : > { %3095 = vrot.lane.b32.xlu1 %v7394_v16, %s7850_s14 }
 0x621   : > { %3288 = vrot.lane.b32.xlu0 %v7391_v7, %s7842_s25 }
 0x622   : > { %3286 = vrot.lane.b32.xlu1 %v7394_v16, %s7842_s25 }
 0x625   : > { %3220 = vrot.lane.b32.xlu0 %v7391_v7, %s7841_s26 }
 0x626   : > { %3218 = vrot.lane.b32.xlu1 %v7394_v16, %s7841_s26 }
 0x629   : > { %3182 = vrot.lane.b32.xlu0 %v7391_v7, %s7851_s18 }
 0x62a   : > { %3180 = vrot.lane.b32.xlu1 %v7394_v16, %s7851_s18 }
 0x62d   : > { %3114 = vrot.lane.b32.xlu0 %v7391_v7, %s7852_s27 }
 0x62e   : > { %3112 = vrot.lane.b32.xlu1 %v7394_v16, %s7852_s27 }
 0x631   : > { %3305 = vrot.lane.b32.xlu0 %v7391_v7, %s7838_s7 }
 0x632   : > { %3303 = vrot.lane.b32.xlu1 %v7394_v16, %s7838_s7 }
 0x635   : > { %3237 = vrot.lane.b32.xlu0 %v7391_v7, %s7836_s30 }
 0x636   : > { %3235 = vrot.lane.b32.xlu1 %v7394_v16, %s7836_s30 }
 0x639   : > { %3131 = vrot.lane.b32.xlu0 %v7391_v7, %s7853_s16 }
 0x63a   : > { %3129 = vrot.lane.b32.xlu1 %v7394_v16, %s7853_s16 }
 0x63d   : > { %3322 = vrot.lane.b32.xlu0 %v7391_v7, %s7805_s20 }
 0x63e   : > { %3320 = vrot.lane.b32.xlu1 %v7394_v16, %s7805_s20 }
 0x63f   : > { %v3145_v29 = vpop.permute.xlu0 %3144 }
 0x640   : > { %3156 = vst.msk [vmem:[#allocation4 + $0x88] sm:$0xff] %vm3154_vm10, %v3145_v29  ;;  %v3143_v31 = vpop.permute.xlu1 %3142 }
 0x641   : > { %3155 = vst.msk [vmem:[#allocation4 + $0x80] sm:$0xff] %vm3154_vm10, %v3143_v31  ;;  %3254 = vrot.lane.b32.xlu0 %v7391_v7, %s7840_s29 }
 0x642   : > { %3252 = vrot.lane.b32.xlu1 %v7394_v16, %s7840_s29 }
 0x643   : > { %v3077_v34 = vpop.permute.xlu0 %3076 }
 0x644   : > { %3088 = vst.msk [vmem:[#allocation4 + $0x8] sm:$0xff] %vm3086_vm11, %v3077_v34  ;;  %v3075_v36 = vpop.permute.xlu1 %3074 }
 0x645   : > { %3087 = vst.msk [vmem:[#allocation4] sm:$0xff] %vm3086_vm11, %v3075_v36  ;;  %3413 = vperm.xlu0 %5286, %v3405_v33  }
 0x646   : > { %3408 = vperm.xlu1 %5287, %v3404_v35  }
 0x647   : > { %v3268_v24 = vpop.permute.xlu0 %3267  ;;  %v3357_v38 = vld [vmem:[#allocation4 + $0x88] sm:$0xff] }
 0x648   : > { %3279 = vst.msk [vmem:[#allocation4 + $0x188] sm:$0xff] %vm3277_vm12, %v3268_v24  ;;  %v3266_v39 = vpop.permute.xlu1 %3265  ;;  %v3356_v40 = vld [vmem:[#allocation4 + $0x80] sm:$0xff] }
 0x649   : > { %3278 = vst.msk [vmem:[#allocation4 + $0x180] sm:$0xff] %vm3277_vm12, %v3266_v39  ;;  %v5072_v42 = vpack.c.bf16 %v3357_v38, %v3356_v40 }
 0x64b   : > { %v3200_v43 = vpop.permute.xlu0 %3199  ;;  %5073 = vmatprep.subr.bf16.mxu1 %v5072_v42  ;;  %v3341_v8 = vld [vmem:[#allocation4 + $0x8] sm:$0xff] }
 0x64c   : > { %3211 = vst.msk [vmem:[#allocation4 + $0x108] sm:$0xff] %vm3209_vm13, %v3200_v43  ;;  %v3198_v27 = vpop.permute.xlu1 %3197  ;;  %v3340_v45 = vld [vmem:[#allocation4] sm:$0xff] }
 0x64d   : > { %3210 = vst.msk [vmem:[#allocation4 + $0x100] sm:$0xff] %vm3209_vm13, %v3198_v27  ;;  %v5074_v46 = vpack.c.bf16 %v3341_v8, %v3340_v45 }
 0x64f   : > { %v3162_v47 = vpop.permute.xlu0 %3161  ;;  %5075 = vmatpush3.bf16.msra.mxu1 %v5074_v46  ;;  %v3389_v32 = vld [vmem:[#allocation4 + $0x188] sm:$0xff] }
 0x650   : > { %3173 = vst.msk [vmem:[#allocation4 + $0xa8] sm:$0xff] %vm3171_vm15, %v3162_v47  ;;  %v3160_v2 = vpop.permute.xlu1 %3159  ;;  %v3388_v3 = vld [vmem:[#allocation4 + $0x180] sm:$0xff] }
 0x651   : > { %3172 = vst.msk [vmem:[#allocation4 + $0xa0] sm:$0xff] %vm3171_vm15, %v3160_v2  ;;  %v5104_v49 = vpack.c.bf16 %v3389_v32, %v3388_v3 }
 0x653   : > { %v3094_v41 = vpop.permute.xlu0 %3093  ;;  %5105 = vmatprep.subr.bf16.mxu0 %v5104_v49  ;;  %v3373_v50 = vld [vmem:[#allocation4 + $0x108] sm:$0xff] }
 0x654   : > { %3105 = vst.msk [vmem:[#allocation4 + $0x28] sm:$0xff] %vm3103_vm14, %v3094_v41  ;;  %v3092_v51 = vpop.permute.xlu1 %3091  ;;  %v3372_v52 = vld [vmem:[#allocation4 + $0x100] sm:$0xff] }
 0x655   : > { %3104 = vst.msk [vmem:[#allocation4 + $0x20] sm:$0xff] %vm3103_vm14, %v3092_v51  ;;  %v5106_v53 = vpack.c.bf16 %v3373_v50, %v3372_v52 }
 0x657   : > { %v3285_v54 = vpop.permute.xlu0 %3284  ;;  %5107 = vmatpush3.bf16.msra.mxu0 %v5106_v53  ;;  %v3361_v23 = vld [vmem:[#allocation4 + $0xa8] sm:$0xff] }
 0x658   : > { %3296 = vst.msk [vmem:[#allocation4 + $0x1a8] sm:$0xff] %vm3294_vm1, %v3285_v54  ;;  %v3283_v56 = vpop.permute.xlu1 %3282  ;;  %v3360_v22 = vld [vmem:[#allocation4 + $0xa0] sm:$0xff] }
 0x659   : > { %3295 = vst.msk [vmem:[#allocation4 + $0x1a0] sm:$0xff] %vm3294_vm1, %v3283_v56  ;;  %v5080_v16 = vpack.c.bf16 %v3361_v23, %v3360_v22  ;;  %v3368_v23 = vld [vmem:[#allocation4 + $0xe0] sm:$0xff] }
 0x65b   : > { %v3217_v48 = vpop.permute.xlu0 %3216  ;;  %v3345_v29 = vld [vmem:[#allocation4 + $0x28] sm:$0xff] }
 0x65c   : > { %3228 = vst.msk [vmem:[#allocation4 + $0x128] sm:$0xff] %vm3226_vm2, %v3217_v48  ;;  %v3215_v57 = vpop.permute.xlu1 %3214  ;;  %v3344_v28 = vld [vmem:[#allocation4 + $0x20] sm:$0xff] }
 0x65d   : > { %3227 = vst.msk [vmem:[#allocation4 + $0x120] sm:$0xff] %vm3226_vm2, %v3215_v57  ;;  %v5082_v35 = vpack.c.bf16 %v3345_v29, %v3344_v28 }
 0x65f   : > { %v3179_v58 = vpop.permute.xlu0 %3178  ;;  %v3393_v40 = vld [vmem:[#allocation4 + $0x1a8] sm:$0xff] }
 0x660   : > { %3190 = vst.msk [vmem:[#allocation4 + $0xc8] sm:$0xff] %vm7808_vm3, %v3179_v58  ;;  %v3177_v59 = vpop.permute.xlu1 %3176  ;;  %v3392_v39 = vld [vmem:[#allocation4 + $0x1a0] sm:$0xff] }
 0x661   : > { %3189 = vst.msk [vmem:[#allocation4 + $0xc0] sm:$0xff] %vm7808_vm3, %v3177_v59  ;;  %v5112_v27 = vpack.c.bf16 %v3393_v40, %v3392_v39 }
 0x663   : > { %v3111_v26 = vpop.permute.xlu0 %3110  ;;  %v3377_v46 = vld [vmem:[#allocation4 + $0x128] sm:$0xff] }
 0x664   : > { %3122 = vst.msk [vmem:[#allocation4 + $0x48] sm:$0xff] %vm3120_vm4, %v3111_v26  ;;  %v3109_v60 = vpop.permute.xlu1 %3108  ;;  %v3376_v45 = vld [vmem:[#allocation4 + $0x120] sm:$0xff] }
 0x665   : > { %3121 = vst.msk [vmem:[#allocation4 + $0x40] sm:$0xff] %vm3120_vm4, %v3109_v60  ;;  %v5114_v41 = vpack.c.bf16 %v3377_v46, %v3376_v45 }
 0x667   : > { %v3302_v37 = vpop.permute.xlu0 %3301  ;;  %v3365_v53 = vld [vmem:[#allocation4 + $0xc8] sm:$0xff] }
 0x668   : > { %3313 = vst.msk [vmem:[#allocation4 + $0x1c8] sm:$0xff] %vm3311_vm5, %v3302_v37  ;;  %v3300_v61 = vpop.permute.xlu1 %3299  ;;  %v3364_v52 = vld [vmem:[#allocation4 + $0xc0] sm:$0xff] }
 0x669   : > { %3312 = vst.msk [vmem:[#allocation4 + $0x1c0] sm:$0xff] %vm3311_vm5, %v3300_v61  ;;  %v5088_v57 = vpack.c.bf16 %v3365_v53, %v3364_v52 }
 0x66b   : > { %v3234_v62 = vpop.permute.xlu0 %3233  ;;  %v3349_v59 = vld [vmem:[#allocation4 + $0x48] sm:$0xff] }
 0x66c   : > { %3245 = vst.msk [vmem:[#allocation4 + $0x148] sm:$0xff] %vm3243_vm6, %v3234_v62  ;;  %v3232_v63 = vpop.permute.xlu1 %3231  ;;  %v3348_v58 = vld [vmem:[#allocation4 + $0x40] sm:$0xff] }
 0x66d   : > { %3244 = vst.msk [vmem:[#allocation4 + $0x140] sm:$0xff] %vm3243_vm6, %v3232_v63  ;;  %v5090_v62 = vpack.c.bf16 %v3349_v59, %v3348_v58  ;;  %v3336_v59 = vld [vmem:[%s7758_s5 + $0x20] sm:$0xff] }
 0x66f   : > { %v3128_v44 = vpop.permute.xlu0 %3127 }
 0x670   : > { %3139 = vst.msk [vmem:[#allocation4 + $0x68] sm:$0xff] %vm3137_vm7, %v3128_v44  ;;  %v3126_v4 = vpop.permute.xlu1 %3125 }
 0x671   : > { %3138 = vst.msk [vmem:[#allocation4 + $0x60] sm:$0xff] %vm3137_vm7, %v3126_v4 }
 0x673   : > { %v3319_v55 = vpop.permute.xlu0 %3318 }
 0x674   : > { %3329 = vst.msk [vmem:[#allocation4 + $0x1e8] sm:$0xff] %vm7807_vm0, %v3319_v55  ;;  %v3317_v9 = vpop.permute.xlu1 %3316  ;;  %v3396_v55 = vld [vmem:[#allocation4 + $0x1c0] sm:$0xff] }
 0x675   : > { %3328 = vst.msk [vmem:[#allocation4 + $0x1e0] sm:$0xff] %vm7807_vm0, %v3317_v9  ;;  %v3397_v9 = vld [vmem:[#allocation4 + $0x1c8] sm:$0xff] }
 0x677   : > { %v3251_v5 = vpop.permute.xlu0 %3250 }
 0x678   : > { %3262 = vst.msk [vmem:[#allocation4 + $0x168] sm:$0xff] %vm3260_vm8, %v3251_v5  ;;  %v3249_v10 = vpop.permute.xlu1 %3248  ;;  %v3352_v29 = vld [vmem:[#allocation4 + $0x60] sm:$0xff] }
 0x679   : > { %3261 = vst.msk [vmem:[#allocation4 + $0x160] sm:$0xff] %vm3260_vm8, %v3249_v10 }
 0x67b   : > { %v3149_v11 = vpop.permute.xlu0 %3148 }
 0x67c   : > { %3158 = vst.msk [vmem:[#allocation4 + $0x98] sm:$0xff] %vm3154_vm10, %v3149_v11  ;;  %v3147_v12 = vpop.permute.xlu1 %3146 }
 0x67d   : > { %3157 = vst.msk [vmem:[#allocation4 + $0x90] sm:$0xff] %vm3154_vm10, %v3147_v12  ;;  %v5120_v12 = vpack.c.bf16 %v3397_v9, %v3396_v55 }
 0x67f   : > { %v3081_v13 = vpop.permute.xlu0 %3080 }
 0x680   : > { %3090 = vst.msk [vmem:[#allocation4 + $0x18] sm:$0xff] %vm3086_vm11, %v3081_v13  ;;  %v3079_v14 = vpop.permute.xlu1 %3078  ;;  %v3380_v13 = vld [vmem:[#allocation4 + $0x140] sm:$0xff] }
 0x681   : > { %3089 = vst.msk [vmem:[#allocation4 + $0x10] sm:$0xff] %vm3086_vm11, %v3079_v14  ;;  %v3381_v14 = vld [vmem:[#allocation4 + $0x148] sm:$0xff] }
 0x683   : > { %v3272_v15 = vpop.permute.xlu0 %3271  ;;  %v3359_v17 = vld [vmem:[#allocation4 + $0x98] sm:$0xff] }
 0x684   : > { %3281 = vst.msk [vmem:[#allocation4 + $0x198] sm:$0xff] %vm3277_vm12, %v3272_v15  ;;  %v3270_v18 = vpop.permute.xlu1 %3269  ;;  %v3358_v0 = vld [vmem:[#allocation4 + $0x90] sm:$0xff] }
 0x685   : > { %3280 = vst.msk [vmem:[#allocation4 + $0x190] sm:$0xff] %vm3277_vm12, %v3270_v18  ;;  %v5076_v19 = vpack.c.bf16 %v3359_v17, %v3358_v0 }
 0x687   : > { %v3204_v20 = vpop.permute.xlu0 %3203  ;;  %5077 = vmatprep.subr.bf16.mxu1 %v5076_v19  ;;  %v3343_v21 = vld [vmem:[#allocation4 + $0x18] sm:$0xff] }
 0x688   : > { %3213 = vst.msk [vmem:[#allocation4 + $0x118] sm:$0xff] %vm3209_vm13, %v3204_v20  ;;  %v3202_v25 = vpop.permute.xlu1 %3201  ;;  %v3342_v6 = vld [vmem:[#allocation4 + $0x10] sm:$0xff]  ;;  %v5122_v20 = vpack.c.bf16 %v3381_v14, %v3380_v13 }
 0x689   : > { %3212 = vst.msk [vmem:[#allocation4 + $0x110] sm:$0xff] %vm3209_vm13, %v3202_v25  ;;  %v5078_v7 = vpack.c.bf16 %v3343_v21, %v3342_v6  ;;  %v3369_v25 = vld [vmem:[#allocation4 + $0xe8] sm:$0xff] }
 0x68a   : > { %v5096_v28 = vpack.c.bf16 %v3369_v25, %v3368_v23 }
 0x68b   : > { %v3166_v30 = vpop.permute.xlu0 %3165  ;;  %5079 = vmatpush3.bf16.msra.mxu1 %v5078_v7  ;;  %v3391_v31 = vld [vmem:[#allocation4 + $0x198] sm:$0xff] }
 0x68c   : > { %3175 = vst.msk [vmem:[#allocation4 + $0xb8] sm:$0xff] %vm3171_vm15, %v3166_v30  ;;  %5081 = vmatprep.subr.bf16.mxu1 %v5080_v16  ;;  %v3164_v33 = vpop.permute.xlu1 %3163  ;;  %v3390_v34 = vld [vmem:[#allocation4 + $0x190] sm:$0xff]  ;;  %v3353_v30 = vld [vmem:[#allocation4 + $0x68] sm:$0xff] }
 0x68d   : > { %3174 = vst.msk [vmem:[#allocation4 + $0xb0] sm:$0xff] %vm3171_vm15, %v3164_v33  ;;  %v5108_v36 = vpack.c.bf16 %v3391_v31, %v3390_v34  ;;  %v3370_v34 = vld [vmem:[#allocation4 + $0xf0] sm:$0xff] }
 0x68f   : > { %v3098_v24 = vpop.permute.xlu0 %3097  ;;  %5083 = vmatpush3.bf16.msra.mxu1 %v5082_v35  ;;  %5109 = vmatprep.subr.bf16.mxu0 %v5108_v36  ;;  %v3375_v38 = vld [vmem:[#allocation4 + $0x118] sm:$0xff] }
 0x690   : > { %3107 = vst.msk [vmem:[#allocation4 + $0x38] sm:$0xff] %vm3103_vm14, %v3098_v24  ;;  %v3096_v42 = vpop.permute.xlu1 %3095  ;;  %v3374_v43 = vld [vmem:[#allocation4 + $0x110] sm:$0xff]  ;;  %v3371_v35 = vld [vmem:[#allocation4 + $0xf8] sm:$0xff] }
 0x691   : > { %3106 = vst.msk [vmem:[#allocation4 + $0x30] sm:$0xff] %vm3103_vm14, %v3096_v42  ;;  %v5110_v8 = vpack.c.bf16 %v3375_v38, %v3374_v43  ;;  %v5098_v38 = vpack.c.bf16 %v3353_v30, %v3352_v29  ;;  %v5100_v40 = vpack.c.bf16 %v3371_v35, %v3370_v34 }
 0x693   : > { %v3289_v47 = vpop.permute.xlu0 %3288  ;;  %5111 = vmatpush3.bf16.msra.mxu0 %v5110_v8  ;;  %v3363_v32 = vld [vmem:[#allocation4 + $0xb8] sm:$0xff]  ;;  %v3400_v8 = vld [vmem:[#allocation4 + $0x1e0] sm:$0xff] }
 0x694   : > { %3298 = vst.msk [vmem:[#allocation4 + $0x1b8] sm:$0xff] %vm3294_vm1, %v3289_v47  ;;  %5113 = vmatprep.subr.bf16.mxu0 %v5112_v27  ;;  %v3287_v2 = vpop.permute.xlu1 %3286  ;;  %v3362_v3 = vld [vmem:[#allocation4 + $0xb0] sm:$0xff]  ;;  %v3401_v27 = vld [vmem:[#allocation4 + $0x1e8] sm:$0xff] }
 0x695   : > { %3297 = vst.msk [vmem:[#allocation4 + $0x1b0] sm:$0xff] %vm3294_vm1, %v3287_v2  ;;  %v5084_v49 = vpack.c.bf16 %v3363_v32, %v3362_v3  ;;  %v5128_v32 = vpack.c.bf16 %v3401_v27, %v3400_v8  ;;  %v3384_v2 = vld [vmem:[#allocation4 + $0x160] sm:$0xff]  ;;  %v3385_v3 = vld [vmem:[#allocation4 + $0x168] sm:$0xff] }
 0x696   : > { %v5130_v53 = vpack.c.bf16 %v3385_v3, %v3384_v2 }
 0x697   : > { %v3221_v50 = vpop.permute.xlu0 %3220  ;;  %5085 = vmatprep.subr.bf16.mxu1 %v5084_v49  ;;  %5115 = vmatpush3.bf16.msra.mxu0 %v5114_v41  ;;  %v3347_v51 = vld [vmem:[#allocation4 + $0x38] sm:$0xff] }
 0x698   : > { %3230 = vst.msk [vmem:[#allocation4 + $0x138] sm:$0xff] %vm3226_vm2, %v3221_v50  ;;  %v3219_v54 = vpop.permute.xlu1 %3218  ;;  %v3346_v56 = vld [vmem:[#allocation4 + $0x30] sm:$0xff] }
 0x699   : > { %3229 = vst.msk [vmem:[#allocation4 + $0x130] sm:$0xff] %vm3226_vm2, %v3219_v54  ;;  %v5086_v48 = vpack.c.bf16 %v3347_v51, %v3346_v56  ;;  %v3332_v54 = vld [vmem:[%s7758_s5] sm:$0xff] }
 0x69b   : > { %v3183_v26 = vpop.permute.xlu0 %3182  ;;  %5087 = vmatpush3.bf16.msra.mxu1 %v5086_v48  ;;  %v3395_v60 = vld [vmem:[#allocation4 + $0x1b8] sm:$0xff] }
 0x69c   : > { %3192 = vst.msk [vmem:[#allocation4 + $0xd8] sm:$0xff] %vm7808_vm3, %v3183_v26  ;;  %5089 = vmatprep.subr.bf16.mxu1 %v5088_v57  ;;  %v3181_v37 = vpop.permute.xlu1 %3180  ;;  %v3394_v61 = vld [vmem:[#allocation4 + $0x1b0] sm:$0xff]  ;;  %v3337_v57 = vld [vmem:[%s7758_s5 + $0x28] sm:$0xff] }
 0x69d   : > { %3191 = vst.msk [vmem:[#allocation4 + $0xd0] sm:$0xff] %vm7808_vm3, %v3181_v37  ;;  %v5116_v63 = vpack.c.bf16 %v3395_v60, %v3394_v61  ;;  %v3334_v61 = vld [vmem:[%s7758_s5 + $0x10] sm:$0xff] }
 0x69f   : > { %v3115_v44 = vpop.permute.xlu0 %3114  ;;  %5091 = vmatpush3.bf16.msra.mxu1 %v5090_v62  ;;  %5117 = vmatprep.subr.bf16.mxu0 %v5116_v63  ;;  %v3379_v4 = vld [vmem:[#allocation4 + $0x138] sm:$0xff]  ;;  %v3338_v63 = vld [vmem:[%s7758_s5 + $0x30] sm:$0xff] }
 0x6a0   : > { %3124 = vst.msk [vmem:[#allocation4 + $0x58] sm:$0xff] %vm3120_vm4, %v3115_v44  ;;  %v3113_v5 = vpop.permute.xlu1 %3112  ;;  %v3378_v10 = vld [vmem:[#allocation4 + $0x130] sm:$0xff]  ;;  %v3339_v62 = vld [vmem:[%s7758_s5 + $0x38] sm:$0xff] }
 0x6a1   : > { %3123 = vst.msk [vmem:[#allocation4 + $0x50] sm:$0xff] %vm3120_vm4, %v3113_v5  ;;  %v5118_v11 = vpack.c.bf16 %v3379_v4, %v3378_v10 }
 0x6a3   : > { %v3306_v15 = vpop.permute.xlu0 %3305  ;;  %5119 = vmatpush3.bf16.msra.mxu0 %v5118_v11  ;;  %v3367_v17 = vld [vmem:[#allocation4 + $0xd8] sm:$0xff] }
 0x6a4   : > { %3315 = vst.msk [vmem:[#allocation4 + $0x1d8] sm:$0xff] %vm3311_vm5, %v3306_v15  ;;  %5121 = vmatprep.subr.bf16.mxu0 %v5120_v12  ;;  %v3304_v18 = vpop.permute.xlu1 %3303  ;;  %v3366_v0 = vld [vmem:[#allocation4 + $0xd0] sm:$0xff] }
 0x6a5   : > { %3314 = vst.msk [vmem:[#allocation4 + $0x1d0] sm:$0xff] %vm3311_vm5, %v3304_v18  ;;  %v5092_v19 = vpack.c.bf16 %v3367_v17, %v3366_v0 }
 0x6a7   : > { %v3238_v21 = vpop.permute.xlu0 %3237  ;;  %5093 = vmatprep.subr.bf16.mxu1 %v5092_v19  ;;  %5123 = vmatpush3.bf16.msra.mxu0 %v5122_v20  ;;  %v3351_v22 = vld [vmem:[#allocation4 + $0x58] sm:$0xff] }
 0x6a8   : > { %3247 = vst.msk [vmem:[#allocation4 + $0x158] sm:$0xff] %vm3243_vm6, %v3238_v21  ;;  %v3236_v6 = vpop.permute.xlu1 %3235  ;;  %v3350_v7 = vld [vmem:[#allocation4 + $0x50] sm:$0xff] }
 0x6a9   : > { %3246 = vst.msk [vmem:[#allocation4 + $0x150] sm:$0xff] %vm3243_vm6, %v3236_v6  ;;  %v5094_v16 = vpack.c.bf16 %v3351_v22, %v3350_v7 }
 0x6ab   : > { %v3132_v31 = vpop.permute.xlu0 %3131  ;;  %5095 = vmatpush3.bf16.msra.mxu1 %v5094_v16  ;;  %v3399_v33 = vld [vmem:[#allocation4 + $0x1d8] sm:$0xff]  ;;  %v3762_v16 = vld [vmem:[%s7761_s8] sm:$0xff] }
 0x6ac   : > { %3141 = vst.msk [vmem:[#allocation4 + $0x78] sm:$0xff] %vm3137_vm7, %v3132_v31  ;;  %5097 = vmatprep.subr.bf16.mxu1 %v5096_v28  ;;  %v3130_v36 = vpop.permute.xlu1 %3129  ;;  %v3398_v24 = vld [vmem:[#allocation4 + $0x1d0] sm:$0xff] }
 0x6ad   : > { %3140 = vst.msk [vmem:[#allocation4 + $0x70] sm:$0xff] %vm3137_vm7, %v3130_v36  ;;  %v5124_v39 = vpack.c.bf16 %v3399_v33, %v3398_v24  ;;  %v3729_v28 = vld [vmem:[#allocation11 + $0x8] sm:$0xff] }
 0x6af   : > { %v3323_v42 = vpop.permute.xlu0 %3322  ;;  %5099 = vmatpush3.bf16.msra.mxu1 %v5098_v38  ;;  %5125 = vmatprep.subr.bf16.mxu0 %v5124_v39  ;;  %v3383_v43 = vld [vmem:[#allocation4 + $0x158] sm:$0xff] }
 0x6b0   : > { %3331 = vst.msk [vmem:[#allocation4 + $0x1f8] sm:$0xff] %vm7807_vm0, %v3323_v42  ;;  %v3321_v45 = vpop.permute.xlu1 %3320  ;;  %5101 = vmatprep.subr.bf16.mxu1 %v5100_v40  ;;  %v3382_v46 = vld [vmem:[#allocation4 + $0x150] sm:$0xff] }
 0x6b1   : > { %3330 = vst.msk [vmem:[#allocation4 + $0x1f0] sm:$0xff] %vm7807_vm0, %v3321_v45  ;;  %v5126_v47 = vpack.c.bf16 %v3383_v43, %v3382_v46 }
 0x6b3   : > { %v3255_v49 = vpop.permute.xlu0 %3254  ;;  %5127 = vmatpush3.bf16.msra.mxu0 %v5126_v47  ;;  %v3355_v41 = vld [vmem:[#allocation4 + $0x78] sm:$0xff] }
 0x6b4   : > { %3264 = vst.msk [vmem:[#allocation4 + $0x178] sm:$0xff] %vm3260_vm8, %v3255_v49  ;;  %5129 = vmatprep.subr.bf16.mxu0 %v5128_v32  ;;  %v3253_v50 = vpop.permute.xlu1 %3252  ;;  %v3354_v51 = vld [vmem:[#allocation4 + $0x70] sm:$0xff] }
 0x6b5   : > { %3263 = vst.msk [vmem:[#allocation4 + $0x170] sm:$0xff] %vm3260_vm8, %v3253_v50  ;;  %v5102_v52 = vpack.c.bf16 %v3355_v41, %v3354_v51 }
 0x6b7   : > { %5103 = vmatpush3.bf16.msra.mxu1 %v5102_v52  ;;  %5131 = vmatpush3.bf16.msra.mxu0 %v5130_v53  ;;  %v3403_v56 = vld [vmem:[#allocation4 + $0x1f8] sm:$0xff] }
 0x6b8   : > { %v3402_v48 = vld [vmem:[#allocation4 + $0x1f0] sm:$0xff] }
 0x6b9   : > { %v5132_v58 = vpack.c.bf16 %v3403_v56, %v3402_v48 }
 0x6ba   : > { %3481 = vmatmul.mubr.f32.vlgmr.msra.gmra.mrb[52].mxu1 %v3332_v54 }
 0x6bb   : > { %5133 = vmatprep.subr.bf16.mxu0 %v5132_v58  ;;  %3485 = vmatprep.mubr.f32.mxu1 %v3337_v57  ;;  %v3387_v26 = vld [vmem:[#allocation4 + $0x178] sm:$0xff] }
 0x6bc   : > { %v3386_v60 = vld [vmem:[#allocation4 + $0x170] sm:$0xff] }
 0x6bd   : > { %v5134_v37 = vpack.c.bf16 %v3387_v26, %v3386_v60 }
 0x6be   : > { %3486 = vmatmul.mubr.f32.gmra.mrb[54].mxu1 %v3336_v59 }
 0x6bf   : > { %5135 = vmatpush3.bf16.msra.mxu0 %v5134_v37  ;;  %3832 = vmatprep.mubr.f32.mxu1 %v3729_v28 }
 0x6c2   : > { %3556 = vmatmul.mubr.f32.vlgmr.msra.gmra.mrb[48].mxu0 %v3334_v61 }
 0x6c3   : > { %3560 = vmatprep.mubr.f32.mxu0 %v3339_v62 }
 0x6c4   : > { %v3414_v0 = vpop.permute.xlu0 %3413 }
 0x6c5   : > { %v3409_v12 = vpop.permute.xlu1 %3408 }
 0x6c6   : > { %3561 = vmatmul.mubr.f32.gmra.mrb[50].mxu0 %v3338_v63 }
 0x78d   : > { %v4667_v44 = vpop.f32.mrb[52].mxu1 }
 0x78e   : > { %v4668_v4 = vpop.f32.mrb[53].mxu1 }
 0x78f   : > { %v4669_v55 = vadd.f32 %v4668_v4, %v4667_v44 }
 0x791   : > { %v4670_v9 = vpop.f32.mrb[54].mxu1  ;;  %v3483_v14 = vadd.f32 %v4669_v55, %v3409_v12 }
 0x792   : > { %v4671_v5 = vpop.f32.mrb[55].mxu1 }
 0x793   : > { %v4672_v10 = vadd.f32 %v4671_v5, %v4670_v9 }
 0x795   : > { %v4705_v11 = vpop.f32.mrb[48].mxu0  ;;  %v3488_v20 = vadd.f32 %v4672_v10, %v3414_v0 }
 0x796   : > { %v4706_v13 = vpop.f32.mrb[49].mxu0 }
 0x797   : > { %v4707_v15 = vadd.f32 %v4706_v13, %v4705_v11 }
 0x799   : > { %v3558_v17 = vadd.f32 %v4707_v15, %v3483_v14  ;;  %v4708_v18 = vpop.f32.mrb[50].mxu0 }
 0x79a   : > { %v4709_v19 = vpop.f32.mrb[51].mxu0 }
 0x79b   : > { %vm3566_vm0 = vcmp.ge.f32.partialorder %v3558_v17, 0.0  ;;  %v3568_v21 = vmul.f32 0.01, %v3558_v17  ;;  %v4710_v22 = vadd.f32 %v4709_v19, %v4708_v18 }
 0x79d   : > { %v3570_v23 = vsel %vm3566_vm0, %v3558_v17, %v3568_v21  ;;  %v3563_v25 = vadd.f32 %v4710_v22, %v3488_v20  ;;  %vm7857_vm0 = vcmask 130056  }
 0x79e   : > { %3662 = vst.msk [vmem:[#allocation5 + $0x70] sm:$0xff] %vm3005_vm9, %v3570_v23  ;;  %3664 = vrot.lane.b32.xlu1 %v3570_v23, %s7837_s24 }
 0x79f   : > { %vm3567_vm3 = vcmp.ge.f32.partialorder %v3563_v25, 0.0  ;;  %v3569_v6 = vmul.f32 0.01, %v3563_v25 }
 0x7a1   : > { %v3571_v7 = vsel %vm3567_vm3, %v3563_v25, %v3569_v6  ;;  %vm3947_vm3 = vcmask 261160  }
 0x7a2   : > { %3663 = vst.msk [vmem:[#allocation5 + $0x78] sm:$0xff] %vm3005_vm9, %v3571_v7  ;;  %3666 = vrot.lane.b32.xlu0 %v3571_v7, %s7837_s24  ;;  %3606 = vrot.lane.b32.xlu1 %v3570_v23, %s7854_s1 }
 0x7a6   : > { %3608 = vrot.lane.b32.xlu0 %v3571_v7, %s7854_s1  ;;  %3672 = vrot.lane.b32.xlu1 %v3570_v23, %s7841_s26 }
 0x7aa   : > { %3674 = vrot.lane.b32.xlu0 %v3571_v7, %s7841_s26  ;;  %3614 = vrot.lane.b32.xlu1 %v3570_v23, %s7850_s14 }
 0x7ae   : > { %3616 = vrot.lane.b32.xlu0 %v3571_v7, %s7850_s14  ;;  %3680 = vrot.lane.b32.xlu1 %v3570_v23, %s7836_s30 }
 0x7b2   : > { %3682 = vrot.lane.b32.xlu0 %v3571_v7, %s7836_s30  ;;  %3622 = vrot.lane.b32.xlu1 %v3570_v23, %s7852_s27 }
 0x7b6   : > { %3624 = vrot.lane.b32.xlu0 %v3571_v7, %s7852_s27  ;;  %3688 = vrot.lane.b32.xlu1 %v3570_v23, %s7840_s29 }
 0x7ba   : > { %3690 = vrot.lane.b32.xlu0 %v3571_v7, %s7840_s29  ;;  %3630 = vrot.lane.b32.xlu1 %v3570_v23, %s7853_s16 }
 0x7be   : > { %3632 = vrot.lane.b32.xlu0 %v3571_v7, %s7853_s16  ;;  %3696 = vrot.lane.b32.xlu1 %v3570_v23, %s7839_s21 }
 0x7c2   : > { %3698 = vrot.lane.b32.xlu0 %v3571_v7, %s7839_s21  ;;  %3638 = vrot.lane.b32.xlu1 %v3570_v23, %s7855_s2 }
 0x7c6   : > { %3640 = vrot.lane.b32.xlu0 %v3571_v7, %s7855_s2  ;;  %3704 = vrot.lane.b32.xlu1 %v3570_v23, %s7842_s25 }
 0x7ca   : > { %3706 = vrot.lane.b32.xlu0 %v3571_v7, %s7842_s25  ;;  %3646 = vrot.lane.b32.xlu1 %v3570_v23, %s7835_s23 }
 0x7ce   : > { %3648 = vrot.lane.b32.xlu0 %v3571_v7, %s7835_s23  ;;  %3712 = vrot.lane.b32.xlu1 %v3570_v23, %s7838_s7 }
 0x7d2   : > { %3714 = vrot.lane.b32.xlu0 %v3571_v7, %s7838_s7  ;;  %3654 = vrot.lane.b32.xlu1 %v3570_v23, %s7851_s18 }
 0x7d6   : > { %3656 = vrot.lane.b32.xlu0 %v3571_v7, %s7851_s18  ;;  %3720 = vrot.lane.b32.xlu1 %v3570_v23, %s7856_s3 }
 0x7da   : > { %3722 = vrot.lane.b32.xlu0 %v3571_v7, %s7856_s3  ;;  %3765 = vperm.xlu1 %5287, %v3762_v16  }
 0x810   : > { %v3665_v29 = vpop.permute.xlu1 %3664 }
 0x811   : > { %3670 = vst.msk [vmem:[#allocation5 + $0x80] sm:$0xff] %vm3209_vm13, %v3665_v29 }
 0x814   : > { %v3667_v30 = vpop.permute.xlu0 %3666  ;;  %v3607_v31 = vpop.permute.xlu1 %3606 }
 0x815   : > { %3671 = vst.msk [vmem:[#allocation5 + $0x88] sm:$0xff] %vm3209_vm13, %v3667_v30  ;;  %vm5469_vm13 = vmmov 0  }
 0x816   : > { %3612 = vst.msk [vmem:[#allocation5] sm:$0xff] %vm3086_vm11, %v3607_v31  ;;  %4778 = vmatprep.mubr.msk.f32.mxu0 %vm5469_vm13, %v5451_v1 }
 0x818   : > { %v3609_v33 = vpop.permute.xlu0 %3608  ;;  %v3673_v34 = vpop.permute.xlu1 %3672  ;;  %v3746_v24 = vld [vmem:[#allocation5 + $0x80] sm:$0xff] }
 0x819   : > { %3613 = vst.msk [vmem:[#allocation5 + $0x8] sm:$0xff] %vm3086_vm11, %v3609_v33  ;;  %vm7859_vm11 = vcmask 64512  }
 0x81a   : > { %3678 = vst.msk [vmem:[#allocation5 + $0x90] sm:$0xff] %vm3226_vm2, %v3673_v34 }
 0x81c   : > { %v3675_v35 = vpop.permute.xlu0 %3674  ;;  %v3615_v36 = vpop.permute.xlu1 %3614  ;;  %v3747_v38 = vld [vmem:[#allocation5 + $0x88] sm:$0xff] }
 0x81d   : > { %3679 = vst.msk [vmem:[#allocation5 + $0x98] sm:$0xff] %vm3226_vm2, %v3675_v35  ;;  %v5136_v39 = vpack.c.bf16 %v3747_v38, %v3746_v24  ;;  %v3730_v43 = vld [vmem:[#allocation5] sm:$0xff]  ;;  %vm3952_vm2 = vcmask 261152  }
 0x81e   : > { %3620 = vst.msk [vmem:[#allocation5 + $0x10] sm:$0xff] %vm3103_vm14, %v3615_v36 }
 0x81f   : > { %5137 = vmatprep.subr.bf16.mxu1 %v5136_v39  ;;  %v3745_v39 = vld [vmem:[#allocation5 + $0x78] sm:$0xff] }
 0x820   : > { %v3617_v40 = vpop.permute.xlu0 %3616  ;;  %v3681_v42 = vpop.permute.xlu1 %3680  ;;  %v3731_v8 = vld [vmem:[#allocation5 + $0x8] sm:$0xff] }
 0x821   : > { %3621 = vst.msk [vmem:[#allocation5 + $0x18] sm:$0xff] %vm3103_vm14, %v3617_v40  ;;  %v5138_v27 = vpack.c.bf16 %v3731_v8, %v3730_v43  ;;  %v3748_v47 = vld [vmem:[#allocation5 + $0x90] sm:$0xff]  ;;  %vm3916_vm14 = vcmask 261120  }
 0x822   : > { %3686 = vst.msk [vmem:[#allocation5 + $0xa0] sm:$0xff] %vm3243_vm6, %v3681_v42  ;;  %v3744_v8 = vld [vmem:[#allocation5 + $0x70] sm:$0xff] }
 0x823   : > { %5139 = vmatpush3.bf16.msra.mxu1 %v5138_v27  ;;  %v5166_v27 = vpack.c.bf16 %v3745_v39, %v3744_v8  ;;  %3918 = vst.msk [vmem:[#allocation6 + $0x8] sm:$0xff] %vm3916_vm14, %v5451_v1  ;;  %3917 = vst.msk [vmem:[#allocation6] sm:$0xff] %vm3916_vm14, %v5451_v1 }
 0x824   : > { %v3683_v45 = vpop.permute.xlu0 %3682  ;;  %v3623_v46 = vpop.permute.xlu1 %3622  ;;  %v3749_v32 = vld [vmem:[#allocation5 + $0x98] sm:$0xff]  ;;  %3919 = vst.msk [vmem:[#allocation6 + $0x10] sm:$0xff] %vm3916_vm14, %v5451_v1  ;;  %3920 = vst.msk [vmem:[#allocation6 + $0x18] sm:$0xff] %vm3916_vm14, %v5451_v1 }
 0x825   : > { %3687 = vst.msk [vmem:[#allocation5 + $0xa8] sm:$0xff] %vm3243_vm6, %v3683_v45  ;;  %v5140_v2 = vpack.c.bf16 %v3749_v32, %v3748_v47  ;;  %v3732_v41 = vld [vmem:[#allocation5 + $0x10] sm:$0xff]  ;;  %v3728_v45 = vld [vmem:[#allocation11] sm:$0xff]  ;;  %vm3973_vm6 = vcmask 252928  }
 0x826   : > { %3628 = vst.msk [vmem:[#allocation5 + $0x20] sm:$0xff] %vm3120_vm4, %v3623_v46  ;;  %v3841_v46 = vld [vmem:[%s7765_s12] sm:$0xff]  ;;  %v3842_v47 = vld [vmem:[%s7765_s12 + $0x8] sm:$0xff] }
 0x827   : > { %5141 = vmatprep.subr.bf16.mxu1 %v5140_v2  ;;  %v5169_v32 = vpack.c.bf16 %v3842_v47, %v3841_v46  ;;  %v5468_v2 = vmov 0.0|0.0   ;;  %3921 = vst.msk [vmem:[#allocation6 + $0x20] sm:$0xff] %vm3916_vm14, %v5451_v1  ;;  %3922 = vst.msk [vmem:[#allocation6 + $0x28] sm:$0xff] %vm3916_vm14, %v5451_v1 }
 0x828   : > { %v3625_v3 = vpop.permute.xlu0 %3624  ;;  %v3689_v49 = vpop.permute.xlu1 %3688  ;;  %v3733_v50 = vld [vmem:[#allocation5 + $0x18] sm:$0xff]  ;;  %5168 = vmatprep.subr.bf16.mxu0 %v5468_v2  ;;  %3923 = vst.msk [vmem:[#allocation6 + $0x30] sm:$0xff] %vm3916_vm14, %v5451_v1  ;;  %3924 = vst.msk [vmem:[#allocation6 + $0x38] sm:$0xff] %vm3916_vm14, %v5451_v1 }
 0x829   : > { %3629 = vst.msk [vmem:[#allocation5 + $0x28] sm:$0xff] %vm3120_vm4, %v3625_v3  ;;  %v5142_v51 = vpack.c.bf16 %v3733_v50, %v3732_v41  ;;  %v3750_v54 = vld [vmem:[#allocation5 + $0xa0] sm:$0xff]  ;;  %5170 = vmatpush3.bf16.msra.mxu0 %v5169_v32  ;;  %vm3962_vm4 = vcmask 261136  }
 0x82a   : > { %3694 = vst.msk [vmem:[#allocation5 + $0xb0] sm:$0xff] %vm3260_vm8, %v3689_v49  ;;  %5171 = vmatprep.subr.bf16.mxu0 %v5468_v2 }
 0x82b   : > { %5143 = vmatpush3.bf16.msra.mxu1 %v5142_v51  ;;  %3925 = vst.msk [vmem:[#allocation6 + $0x40] sm:$0xff] %vm3916_vm14, %v5451_v1  ;;  %3926 = vst.msk [vmem:[#allocation6 + $0x48] sm:$0xff] %vm3916_vm14, %v5451_v1 }
 0x82c   : > { %v3691_v52 = vpop.permute.xlu0 %3690  ;;  %v3631_v53 = vpop.permute.xlu1 %3630  ;;  %v3751_v56 = vld [vmem:[#allocation5 + $0xa8] sm:$0xff]  ;;  %3927 = vst.msk [vmem:[#allocation6 + $0x50] sm:$0xff] %vm3916_vm14, %v5451_v1  ;;  %3928 = vst.msk [vmem:[#allocation6 + $0x58] sm:$0xff] %vm3916_vm14, %v5451_v1 }
 0x82d   : > { %3695 = vst.msk [vmem:[#allocation5 + $0xb8] sm:$0xff] %vm3260_vm8, %v3691_v52  ;;  %v5144_v48 = vpack.c.bf16 %v3751_v56, %v3750_v54  ;;  %v3734_v59 = vld [vmem:[#allocation5 + $0x20] sm:$0xff]  ;;  %vm3983_vm8 = vcmask 236544  }
 0x82e   : > { %3636 = vst.msk [vmem:[#allocation5 + $0x30] sm:$0xff] %vm3137_vm7, %v3631_v53 }
 0x82f   : > { %5145 = vmatprep.subr.bf16.mxu1 %v5144_v48  ;;  %3929 = vst.msk [vmem:[#allocation6 + $0x60] sm:$0xff] %vm3916_vm14, %v5451_v1  ;;  %3930 = vst.msk [vmem:[#allocation6 + $0x68] sm:$0xff] %vm3916_vm14, %v5451_v1 }
 0x830   : > { %v3633_v57 = vpop.permute.xlu0 %3632  ;;  %v3697_v58 = vpop.permute.xlu1 %3696  ;;  %v3735_v26 = vld [vmem:[#allocation5 + $0x28] sm:$0xff]  ;;  %3931 = vst.msk [vmem:[#allocation6 + $0x70] sm:$0xff] %vm3916_vm14, %v5451_v1  ;;  %3932 = vst.msk [vmem:[#allocation6 + $0x78] sm:$0xff] %vm3916_vm14, %v5451_v1 }
 0x831   : > { %3637 = vst.msk [vmem:[#allocation5 + $0x38] sm:$0xff] %vm3137_vm7, %v3633_v57  ;;  %v5146_v60 = vpack.c.bf16 %v3735_v26, %v3734_v59  ;;  %v3752_v62 = vld [vmem:[#allocation5 + $0xb0] sm:$0xff]  ;;  %vm3967_vm7 = vcmask 261128  }
 0x832   : > { %3702 = vst.msk [vmem:[#allocation5 + $0xc0] sm:$0xff] %vm3277_vm12, %v3697_v58 }
 0x833   : > { %5147 = vmatpush3.bf16.msra.mxu1 %v5146_v60 }
 0x834   : > { %v3699_v37 = vpop.permute.xlu0 %3698  ;;  %v3639_v61 = vpop.permute.xlu1 %3638  ;;  %v3753_v63 = vld [vmem:[#allocation5 + $0xb8] sm:$0xff] }
 0x835   : > { %3703 = vst.msk [vmem:[#allocation5 + $0xc8] sm:$0xff] %vm3277_vm12, %v3699_v37  ;;  %v5148_v44 = vpack.c.bf16 %v3753_v63, %v3752_v62  ;;  %v3736_v9 = vld [vmem:[#allocation5 + $0x30] sm:$0xff]  ;;  %vm7860_vm12 = vmmov %vm7859_vm11 }
 0x836   : > { %3644 = vst.msk [vmem:[#allocation5 + $0x40] sm:$0xff] %vm3154_vm10, %v3639_v61 }
 0x837   : > { %5149 = vmatprep.subr.bf16.mxu1 %v5148_v44 }
 0x838   : > { %v3641_v4 = vpop.permute.xlu0 %3640  ;;  %v3705_v55 = vpop.permute.xlu1 %3704  ;;  %v3737_v5 = vld [vmem:[#allocation5 + $0x38] sm:$0xff] }
 0x839   : > { %3645 = vst.msk [vmem:[#allocation5 + $0x48] sm:$0xff] %vm3154_vm10, %v3641_v4  ;;  %v5150_v10 = vpack.c.bf16 %v3737_v5, %v3736_v9  ;;  %v3754_v13 = vld [vmem:[#allocation5 + $0xc0] sm:$0xff]  ;;  %vm7858_vm10 = vmmov %vm7857_vm0 }
 0x83a   : > { %3710 = vst.msk [vmem:[#allocation5 + $0xd0] sm:$0xff] %vm3294_vm1, %v3705_v55 }
 0x83b   : > { %5151 = vmatpush3.bf16.msra.mxu1 %v5150_v10 }
 0x83c   : > { %v3707_v11 = vpop.permute.xlu0 %3706  ;;  %v3647_v12 = vpop.permute.xlu1 %3646  ;;  %v3755_v14 = vld [vmem:[#allocation5 + $0xc8] sm:$0xff] }
 0x83d   : > { %3711 = vst.msk [vmem:[#allocation5 + $0xd8] sm:$0xff] %vm3294_vm1, %v3707_v11  ;;  %v5152_v15 = vpack.c.bf16 %v3755_v14, %v3754_v13  ;;  %v3738_v0 = vld [vmem:[#allocation5 + $0x40] sm:$0xff]  ;;  %vm3937_vm1 = vcmask 261176  }
 0x83e   : > { %3652 = vst.msk [vmem:[#allocation5 + $0x50] sm:$0xff] %vm3171_vm15, %v3647_v12 }
 0x83f   : > { %5153 = vmatprep.subr.bf16.mxu1 %v5152_v15 }
 0x840   : > { %v3649_v17 = vpop.permute.xlu0 %3648  ;;  %v3713_v18 = vpop.permute.xlu1 %3712  ;;  %v3739_v19 = vld [vmem:[#allocation5 + $0x48] sm:$0xff] }
 0x841   : > { %3653 = vst.msk [vmem:[#allocation5 + $0x58] sm:$0xff] %vm3171_vm15, %v3649_v17  ;;  %v5154_v20 = vpack.c.bf16 %v3739_v19, %v3738_v0  ;;  %v3756_v23 = vld [vmem:[#allocation5 + $0xd0] sm:$0xff] }
 0x842   : > { %3718 = vst.msk [vmem:[#allocation5 + $0xe0] sm:$0xff] %vm3311_vm5, %v3713_v18 }
 0x843   : > { %5155 = vmatpush3.bf16.msra.mxu1 %v5154_v20 }
 0x844   : > { %v3715_v21 = vpop.permute.xlu0 %3714  ;;  %v3655_v22 = vpop.permute.xlu1 %3654  ;;  %v3757_v25 = vld [vmem:[#allocation5 + $0xd8] sm:$0xff] }
 0x845   : > { %3719 = vst.msk [vmem:[#allocation5 + $0xe8] sm:$0xff] %vm3311_vm5, %v3715_v21  ;;  %v5156_v6 = vpack.c.bf16 %v3757_v25, %v3756_v23  ;;  %v3740_v28 = vld [vmem:[#allocation5 + $0x50] sm:$0xff]  ;;  %vm3957_vm5 = vcmask 261144  }
 0x846   : > { %3660 = vst.msk [vmem:[#allocation5 + $0x60] sm:$0xff] %vm7857_vm0, %v3655_v22  ;;  %vm3978_vm0 = vcmask 244736  }
 0x847   : > { %5157 = vmatprep.subr.bf16.mxu1 %v5156_v6 }
 0x848   : > { %v3657_v7 = vpop.permute.xlu0 %3656  ;;  %v3721_v16 = vpop.permute.xlu1 %3720  ;;  %v3741_v29 = vld [vmem:[#allocation5 + $0x58] sm:$0xff] }
 0x849   : > { %3661 = vst.msk [vmem:[#allocation5 + $0x68] sm:$0xff] %vm7858_vm10, %v3657_v7  ;;  %v5158_v30 = vpack.c.bf16 %v3741_v29, %v3740_v28  ;;  %v3758_v33 = vld [vmem:[#allocation5 + $0xe0] sm:$0xff]  ;;  %vm3993_vm10 = vcmask 220160  }
 0x84a   : > { %3726 = vst.msk [vmem:[#allocation5 + $0xf0] sm:$0xff] %vm7859_vm11, %v3721_v16  ;;  %vm3988_vm11 = vcmask 228352  }
 0x84b   : > { %5159 = vmatpush3.bf16.msra.mxu1 %v5158_v30 }
 0x84c   : > { %v3723_v31 = vpop.permute.xlu0 %3722  ;;  %v3759_v34 = vld [vmem:[#allocation5 + $0xe8] sm:$0xff] }
 0x84d   : > { %3727 = vst.msk [vmem:[#allocation5 + $0xf8] sm:$0xff] %vm7860_vm12, %v3723_v31  ;;  %v5160_v35 = vpack.c.bf16 %v3759_v34, %v3758_v33  ;;  %v3742_v36 = vld [vmem:[#allocation5 + $0x60] sm:$0xff]  ;;  %vm4003_vm12 = vcmask 203776  }
 0x84f   : > { %5161 = vmatprep.subr.bf16.mxu1 %v5160_v35  ;;  %v4010_v35 = vld [vmem:[#allocation13] sm:$0x1] }
 0x850   : > { %v3743_v24 = vld [vmem:[#allocation5 + $0x68] sm:$0xff] }
 0x851   : > { %v5162_v38 = vpack.c.bf16 %v3743_v24, %v3742_v36  ;;  %v3760_v40 = vld [vmem:[#allocation5 + $0xf0] sm:$0xff]  ;;  %v4033_v36 = vlaneseq }
 0x853   : > { %5163 = vmatpush3.bf16.msra.mxu1 %v5162_v38  ;;  %v4034_v24 = vshrl.u32 %v4033_v36, 7 }
 0x854   : > { %v3761_v42 = vld [vmem:[#allocation5 + $0xf8] sm:$0xff] }
 0x855   : > { %v5164_v43 = vpack.c.bf16 %v3761_v42, %v3760_v40  ;;  %v4035_v38 = vsub.s32 0, %v4034_v24 }
 0x857   : > { %5165 = vmatprep.subr.bf16.mxu1 %v5164_v43 }
 0x858   : > { %5167 = vmatpush3.bf16.msra.mxu1 %v5166_v27 }
 0x859   : > { %v3766_v50 = vpop.permute.xlu1 %3765 }
 0x85b   : > { %3833 = vmatmul.mubr.f32.vlgmr.msra.gmra.mrb[56].mxu1 %v3728_v45 }
 0x92e   : > { %v4743_v3 = vpop.f32.mrb[56].mxu1 }
 0x92f   : > { %v4744_v49 = vpop.f32.mrb[57].mxu1 }
 0x930   : > { %v4745_v41 = vadd.f32 %v4744_v49, %v4743_v3 }
 0x932   : > { %v3835_v51 = vadd.f32 %v4745_v41, %v3766_v50 }
 0x934   : > { %vm3838_vm15 = vcmp.ge.f32.partialorder %v3835_v51, 0.0  ;;  %v3839_v52 = vmul.f32 0.01, %v3835_v51 }
 0x936   : > { %v3840_v53 = vsel %vm3838_vm15, %v3835_v51, %v3839_v52  ;;  %vm4008_vm15 = vcmask 195584  }
 0x937   : > { %4779 = vmatmul.mubr.msk.f32.vlgmr.msra.gmra.mrb[52].mxu0 %vm3005_vm9, %v3840_v53  ;;  %vm3942_vm9 = vcmask 261168  }
 0x938   : > { %4813 = vmatprep.mubr.msk.f32.mxu0 %vm5469_vm13, %v5451_v1  ;;  %v4027_v1 = vld [vmem:[#allocation7] sm:$0x1]  ;;  %vm3998_vm13 = vcmask 211968  }
 0xa0a   : > { %v3912_v54 = vpop.f32.mrb[52].mxu0 }
 0xa0b   : > { %3939 = vrot.lane.b32.xlu1 %v3912_v54, %s7850_s14  ;;  %3934 = vrot.lane.b32.xlu0 %v3912_v54, %s7854_s1  ;;  %v4780_v56 = vpop.f32.mrb[53].mxu0  ;;  %3969 = vst.msk [vmem:[#allocation6 + $0x38] sm:$0xff] %vm3916_vm14, %v3912_v54  ;;  %vm4108_vm14 = vcmask 253952  }
 0xa0f   : > { %3949 = vrot.lane.b32.xlu1 %v3912_v54, %s7853_s16  ;;  %3944 = vrot.lane.b32.xlu0 %v3912_v54, %s7852_s27 }
 0xa12   : > { %v4018_v18 = vld [vmem:[#allocation6 + $0x38] sm:$0xff] }
 0xa13   : > { %3959 = vrot.lane.b32.xlu1 %v3912_v54, %s7835_s23  ;;  %3954 = vrot.lane.b32.xlu0 %v3912_v54, %s7855_s2  ;;  %s473_s23 = sand.u32 1, %s5436_s28  }
 0xa17   : > { %3970 = vrot.lane.b32.xlu1 %v3912_v54, %s7837_s24  ;;  %3964 = vrot.lane.b32.xlu0 %v3912_v54, %s7851_s18  ;;  %s474_s24 = scalar_lea.vmem [#allocation14], %s473_s23 }
 0xa1b   : > { %3980 = vrot.lane.b32.xlu1 %v3912_v54, %s7836_s30  ;;  %3975 = vrot.lane.b32.xlu0 %v3912_v54, %s7841_s26  ;;  %s4226_s30 = sshll.u32 %s5565_s10, 4  ;;  %s5470_s10 = smov [#allocation14]  }
 0xa1c   : > { %s7711_s26 = scalar_lea.hbm %s7766_s13, %s4226_s30  ;;  %s5378_s18 = sshll.u32 %s5470_s10, 4  ;;  %s5379_s18 = int_to_ptr.vmem [resolvable:$false] %s5378_s18 }
 0xa1d   : > { %s5380_s27 = scalar_lea.vmem %s5379_s18, 32 }
 0xa1f   : > { %3990 = vrot.lane.b32.xlu1 %v3912_v54, %s7839_s21  ;;  %3985 = vrot.lane.b32.xlu0 %v3912_v54, %s7840_s29 }
 0xa23   : > { %4000 = vrot.lane.b32.xlu1 %v3912_v54, %s7838_s7  ;;  %3995 = vrot.lane.b32.xlu0 %v3912_v54, %s7842_s25  ;;  %s4123_s7 = sshll.u32 %s474_s24, 4  ;;  %s4111_s25 = scalar_lea.sflag [#allocation10], %s473_s23  ;;  %s7713_s7 = int_to_ptr.vmem [resolvable:$true] %s4123_s7 }
 0xa24   : > { %s5374_s14 = scalar_lea.vmem %s7713_s7, 16  ;;  %p5381_p4 = scmp.lt.s32.totalorder %s7713_s7, %s5379_s18 }
 0xa25   : > { %p5375_p12 = scmp.ne.s32.totalorder %s7713_s7, %s5374_s14  ;;  %p5382_p7 = scmp.lt.s32.totalorder %s5380_s27, %s5374_s14 }
 0xa27   : > { %4030 = vperm.xlu1 %5287, %v4027_v1   ;;  %4005 = vrot.lane.b32.xlu0 %v3912_v54, %s7856_s3  ;;  %p5376_p2 = pnand %p5375_p12, %p7861_p10  ;;  %p5383_p8 = por %p5382_p7, %p5381_p4 }
 0xa29   : > { %p5377_p3 = pneg %p5376_p2 }
 0xa2b   : > { %p5384_p11 = pnand %p5383_p8, %p5377_p3 }
 0xa7d   : > { %v3940_v48 = vpop.permute.xlu1 %3939  ;;  %v3935_v57 = vpop.permute.xlu0 %3934 }
 0xa7e   : > { %3943 = vst.msk [vmem:[#allocation6 + $0x8] sm:$0xff] %vm3942_vm9, %v3940_v48 }
 0xa7f   : > { %3938 = vst.msk [vmem:[#allocation6] sm:$0xff] %vm3937_vm1, %v3935_v57 }
 0xa81   : > { %v3950_v58 = vpop.permute.xlu1 %3949  ;;  %v3945_v59 = vpop.permute.xlu0 %3944 }
 0xa82   : > { %3953 = vst.msk [vmem:[#allocation6 + $0x18] sm:$0xff] %vm3952_vm2, %v3950_v58 }
 0xa83   : > { %3948 = vst.msk [vmem:[#allocation6 + $0x10] sm:$0xff] %vm3947_vm3, %v3945_v59 }
 0xa85   : > { %v3960_v26 = vpop.permute.xlu1 %3959  ;;  %v3955_v60 = vpop.permute.xlu0 %3954  ;;  %v4012_v61 = vld [vmem:[#allocation6 + $0x8] sm:$0xff] }
 0xa86   : > { %v4011_v37 = vld [vmem:[#allocation6] sm:$0xff]  ;;  %3963 = vst.msk [vmem:[#allocation6 + $0x28] sm:$0xff] %vm3962_vm4, %v3960_v26 }
 0xa87   : > { %3958 = vst.msk [vmem:[#allocation6 + $0x20] sm:$0xff] %vm3957_vm5, %v3955_v60  ;;  %v5172_v62 = vpack.c.bf16 %v4012_v61, %v4011_v37 }
 0xa89   : > { %5173 = vmatpush3.bf16.msra.mxu0 %v5172_v62  ;;  %v3971_v63 = vpop.permute.xlu1 %3970  ;;  %v3965_v44 = vpop.permute.xlu0 %3964  ;;  %v4014_v55 = vld [vmem:[#allocation6 + $0x18] sm:$0xff] }
 0xa8a   : > { %5174 = vmatprep.subr.bf16.mxu0 %v5468_v2  ;;  %v4013_v4 = vld [vmem:[#allocation6 + $0x10] sm:$0xff]  ;;  %3974 = vst.msk [vmem:[#allocation6 + $0x40] sm:$0xff] %vm3973_vm6, %v3971_v63 }
 0xa8b   : > { %3968 = vst.msk [vmem:[#allocation6 + $0x30] sm:$0xff] %vm3967_vm7, %v3965_v44  ;;  %v5175_v9 = vpack.c.bf16 %v4014_v55, %v4013_v4 }
 0xa8d   : > { %5176 = vmatpush3.bf16.msra.mxu0 %v5175_v9  ;;  %v3981_v5 = vpop.permute.xlu1 %3980  ;;  %v3976_v10 = vpop.permute.xlu0 %3975  ;;  %v4016_v12 = vld [vmem:[#allocation6 + $0x28] sm:$0xff] }
 0xa8e   : > { %5177 = vmatprep.subr.bf16.mxu0 %v5468_v2  ;;  %v4015_v11 = vld [vmem:[#allocation6 + $0x20] sm:$0xff]  ;;  %3984 = vst.msk [vmem:[#allocation6 + $0x50] sm:$0xff] %vm3983_vm8, %v3981_v5 }
 0xa8f   : > { %3979 = vst.msk [vmem:[#allocation6 + $0x48] sm:$0xff] %vm3978_vm0, %v3976_v10  ;;  %v5178_v13 = vpack.c.bf16 %v4016_v12, %v4015_v11 }
 0xa91   : > { %5179 = vmatpush3.bf16.msra.mxu0 %v5178_v13  ;;  %v3991_v14 = vpop.permute.xlu1 %3990  ;;  %v3986_v15 = vpop.permute.xlu0 %3985  ;;  %v4019_v21 = vld [vmem:[#allocation6 + $0x40] sm:$0xff] }
 0xa92   : > { %5180 = vmatprep.subr.bf16.mxu0 %v5468_v2  ;;  %v4017_v17 = vld [vmem:[#allocation6 + $0x30] sm:$0xff]  ;;  %3994 = vst.msk [vmem:[#allocation6 + $0x60] sm:$0xff] %vm3993_vm10, %v3991_v14 }
 0xa93   : > { %3989 = vst.msk [vmem:[#allocation6 + $0x58] sm:$0xff] %vm3988_vm11, %v3986_v15  ;;  %v5181_v0 = vpack.c.bf16 %v4018_v18, %v4017_v17 }
 0xa95   : > { %5182 = vmatpush3.bf16.msra.mxu0 %v5181_v0  ;;  %v4001_v19 = vpop.permute.xlu1 %4000  ;;  %v3996_v20 = vpop.permute.xlu0 %3995  ;;  %v4021_v6 = vld [vmem:[#allocation6 + $0x50] sm:$0xff] }
 0xa96   : > { %5183 = vmatprep.subr.bf16.mxu0 %v5468_v2  ;;  %v4020_v22 = vld [vmem:[#allocation6 + $0x48] sm:$0xff]  ;;  %4004 = vst.msk [vmem:[#allocation6 + $0x70] sm:$0xff] %vm4003_vm12, %v4001_v19 }
 0xa97   : > { %3999 = vst.msk [vmem:[#allocation6 + $0x68] sm:$0xff] %vm3998_vm13, %v3996_v20  ;;  %v5184_v23 = vpack.c.bf16 %v4020_v22, %v4019_v21 }
 0xa99   : > { %5185 = vmatpush3.bf16.msra.mxu0 %v5184_v23  ;;  %v4006_v25 = vpop.permute.xlu0 %4005  ;;  %v4023_v28 = vld [vmem:[#allocation6 + $0x60] sm:$0xff] }
 0xa9a   : > { %5186 = vmatprep.subr.bf16.mxu0 %v5468_v2  ;;  %v4022_v7 = vld [vmem:[#allocation6 + $0x58] sm:$0xff]  ;;  %4009 = vst.msk [vmem:[#allocation6 + $0x78] sm:$0xff] %vm4008_vm15, %v4006_v25 }
 0xa9b   : > { %v5187_v16 = vpack.c.bf16 %v4022_v7, %v4021_v6 }
 0xa9d   : > { %5188 = vmatpush3.bf16.msra.mxu0 %v5187_v16  ;;  %v4025_v31 = vld [vmem:[#allocation6 + $0x70] sm:$0xff] }
 0xa9e   : > { %5189 = vmatprep.subr.bf16.mxu0 %v5468_v2  ;;  %v4024_v29 = vld [vmem:[#allocation6 + $0x68] sm:$0xff] }
 0xa9f   : > { %v5190_v30 = vpack.c.bf16 %v4024_v29, %v4023_v28 }
 0xaa1   : > { %5191 = vmatpush3.bf16.msra.mxu0 %v5190_v30  ;;  %v4026_v33 = vld [vmem:[#allocation6 + $0x78] sm:$0xff] }
 0xaa2   : > { %5192 = vmatprep.subr.bf16.mxu0 %v5468_v2  ;;  %v5193_v34 = vpack.c.bf16 %v4026_v33, %v4025_v31 }
 0xaa5   : > { %5194 = vmatpush3.bf16.msra.mxu0 %v5193_v34 }
 0xaa6   : > { %v4031_v39 = vpop.permute.xlu1 %4030 }
 0xaa7   : > { %v4036_v40 = vrot.slane %v4031_v39, %v4035_v38 }
 0xaa8   : > { %4814 = vmatmul.mubr.f32.vlgmr.msra.gmra.mrb[54].mxu0 %v4010_v35 }
 0xb7b   : > { %v4103_v42 = vpop.f32.mrb[54].mxu0 }
 0xb7c   : > { %v4104_v43 = vadd.f32 %v4103_v42, %v4036_v40  ;;  %v4815_v8 = vpop.f32.mrb[55].mxu0 }
 0xb7e   : > { %5288 = vtanh.f32 %v4104_v43 }
 0xb88   : > { %v5289_v27 = vpop.eup %5288 }
 0xb89   : > { %4109 = vst.msk [vmem:[%s474_s24] sm:$0x1] %vm4108_vm14, %v5289_v27 }
 0xb8a   : > { %5387 = shalt.err (!%p5384_p11)
}
 0xb8b   : > { %s5388_s16 = scalar_lea.hbm %s7711_s26, 16  ;;  %s5392_s3 = scalar_lea.hbm %s7766_s13, 32 }
 0xb8c   : > { %p5389_p13 = scmp.ne.s32.totalorder %s7711_s26, %s5388_s16  ;;  %p5393_p6 = scmp.lt.u32.totalorder %s7711_s26, %s7766_s13 }
 0xb8d   : > { %p5394_p5 = scmp.lt.u32.totalorder %s5392_s3, %s5388_s16  ;;  %p5396_p12 = scmp.lt.u32.totalorder %s5388_s16, %s7711_s26 }
 0xb8e   : > { %p5390_p1 = pnand %p5389_p13, %p7861_p10 }
 0xb8f   : > { %p5395_p9 = por %p5394_p5, %p5393_p6 }
 0xb90   : > { %p5391_p0 = pneg %p5390_p1 }
 0xb91   : > { %p5397_p2 = por %p5396_p12, %p5395_p9 }
 0xb93   : > { %p5398_p3 = pnand %p5397_p2, %p5391_p0 }
 0xb95   : > { %5401 = shalt.err (!%p5398_p3)
}
 0xb96   : > { %5207 = dma.vmem_to_hbm [thread:$0]  (%p7861_p10), %s7713_s7, 16, %s7711_s26, %s4111_s25  }
 0xb97 PF: > { %s7862_s0 = sld [smem:[#allocation20_spill]]  ;;  %s7863_s15 = sld [smem:[#allocation18_spill]] }
 0xb98   : > { %s7864_s20 = sld [smem:[#allocation23_spill]] }
 0xb9d   : > { %p5229_p4 = scmp.ge.s32.totalorder %s7862_s0, 2  ;;  %s4135_s23 = sand.u32 1, %s7863_s15  }
 0xb9e   : > { %p7865_p7 = scmp.ne.s32.totalorder %s7864_s20, 0  ;;  %s4136_s30 = scalar_lea.sflag [#allocation10], %s4135_s23 }
 0xba0   : > { %p5220_p8 = pnand %p5229_p4, %p7865_p7 }
 0xba2   : > { %5427 = dma.done.wait (!%p5220_p8), %s4136_s30, 16  }
 0xba3   : > { %5429 = vsyncadd (!%p5220_p8), %s4136_s30, 4294967280  ;;  %s7866_s30 = sld [smem:[#allocation21_spill]]  ;;  %s7867_s24 = sld [smem:[#allocation19_spill]] }
 0xba4   : > { %s7868_s29 = sld [smem:[#allocation22_spill]]  ;;  %s7869_s27 = smov %s5436_s28 }
 0xba9   : > { %p27_p11 = scmp.ge.s32.totalorder %s7866_s30, 4   ;;  %s7870_s28 = smov %s7867_s24 }
 0xbab   :  { %29 = sbr.rel (!%p27_p11) target bundleno = 11 (0xb), region = 120 }
 0xbb2   :  { %4140 = vsyncpa [#allocation9], 1 }
 0xbb3   :  { %4142 = vsyncpa [#allocation9 + $0x1], 1 }
 0xbb4   :  { %4143 = vsyncpa [#allocation12], 1 }
 0xbb5   :  { %4144 = vsyncpa [#allocation10], 1 }
 0xbb6   :  { %4146 = vsyncpa [#allocation10 + $0x1], 1 }

</bundles_post_ra>
